<compile_context>
chip_gen: v7x
topology: tpu7x:2x2x1
jax: 0.10.0
libtpu: 0.0.40
codegen_flags: <defaults>
</compile_context>

<pallas_src>
import jax
import jax.numpy as jnp
import numpy as np
from jax import lax
from jax.experimental import pallas as pl
from jax.experimental.pallas import tpu as pltpu


# ---------------------------------------------------------------------------
# Wrapper: NCHW in / NCHW out, one fused pallas_call for the whole network.
# ---------------------------------------------------------------------------
def deepconvnet_forward(x_nchw, p, eps=1e-5):
    f32, bf16 = jnp.float32, jnp.bfloat16
    N, Cin, H, W = x_nchw.shape
    assert Cin == 1

    # ---- static shape bookkeeping (mirrors the module's layer stack) -------
    KH1 = p['w1'].shape[2]                      # conv1 (10, 1)
    KW2 = p['w2'].shape[3]                      # conv2 (1, 3)
    K3, K4, K5 = p['w3'].shape[2], p['w4'].shape[2], p['w5'].shape[2]
    C2 = p['w2'].shape[0]                       # 25
    C3, C4, C5 = p['w3'].shape[0], p['w4'].shape[0], p['w5'].shape[0]

    H1 = H - KH1 + 1                            # 111
    Wc = W - KW2 + 1                            # 4
    M1 = H1 * Wc                                # 444
    M1p = ((M1 + 7) // 8) * 8                   # 448 (sublane-aligned rows)
    H3 = H1 - K3 + 1                            # 102
    M3 = H3 * Wc                                # 408
    H3p = H3 // 3                               # 34 (MaxPool floor semantics)
    M3p = H3p * Wc                              # 136
    H4 = H3p - K4 + 1                           # 25
    M4 = H4 * Wc                                # 100
    H5 = H4 - K5 + 1                            # 16
    M5 = H5 * Wc                                # 64
    H5p = H5 // 3                               # 5
    Mo = H5p * Wc                               # 20

    CP = 128                                    # lane-padded width for 25/50/100 ch
    CPo = 256                                   # lane-padded width for 200 ch

    # ---- block1 im2col at the call boundary: 30 taps, pre-flattened, bf16 --
    x2d = x_nchw[:, 0].astype(f32)              # (N, H, W)
    taps = [x2d[:, kh:kh + H1, kw:kw + Wc]
            for kh in range(KH1) for kw in range(KW2)]
    xcol = jnp.stack(taps, axis=-1).reshape(N, M1, KH1 * KW2)
    xcol = jnp.pad(xcol, ((0, 0), (0, M1p - M1), (0, 0))).astype(bf16)

    # ---- compose conv1 (10,1) and conv2 (1,3) into one (10,3) conv ---------
    w1m = p['w1'][:, 0, :, 0]                   # (C1, KH1)   [c1, kh]
    w2m = p['w2'][:, :, 0, :]                   # (C2, C1, KW2) [c2, c1, kw]
    w_eq = jnp.einsum('ak,bac->kcb', w1m, w2m)  # (KH1, KW2, C2)
    w12 = w_eq.reshape(KH1 * KW2, C2)           # row = kh*KW2 + kw
    w12_p = jnp.pad(w12, ((0, 0), (0, CP - C2))).astype(bf16)       # (30, 128)
    b_eq = p['b2'] + jnp.einsum('bac,a->b', w2m, p['b1'])           # composed bias

    # ---- tap-concatenated, zero-padded weights for the single-dot convs ----
    def pack_w(w, cin_pad, cout_pad):
        cout, cin, k, _ = w.shape
        wt = jnp.transpose(w[:, :, :, 0], (2, 1, 0))                # (K, Cin, Cout)
        wt = jnp.pad(wt, ((0, 0), (0, cin_pad - cin), (0, cout_pad - cout)))
        return wt.reshape(k * cin_pad, cout_pad).astype(bf16)

    w3_p = pack_w(p['w3'], CP, CP)              # (1280, 128)
    w4_p = pack_w(p['w4'], CP, CP)              # (1280, 128)
    w5_p = pack_w(p['w5'], CP, CPo)             # (1280, 256)

    # ---- BatchNorm (eval, running stats) + conv bias -> per-channel affine --
    def bn_affine(i):
        s = p[f'bn{i}_gamma'] * lax.rsqrt(p[f'bn{i}_var'] + eps)
        t = p[f'bn{i}_beta'] - p[f'bn{i}_mean'] * s
        return s, t

    s1, t1 = bn_affine(1)
    s2, t2 = bn_affine(2)
    s3, t3 = bn_affine(3)
    s4, t4 = bn_affine(4)

    def padc(v):
        return jnp.pad(v.astype(f32), (0, CPo - v.shape[0]))

    scales = jnp.stack([padc(s1), padc(s2), padc(s3), padc(s4)])            # (4,256)
    shifts = jnp.stack([padc(s1 * b_eq + t1), padc(s2 * p['b3'] + t2),
                        padc(s3 * p['b4'] + t3), padc(s4 * p['b5'] + t4)])  # (4,256)

    # -----------------------------------------------------------------------
    # Fused kernel: whole network for one sample, all activations in VMEM.
    # -----------------------------------------------------------------------
    def kernel(xcol_ref, w12_ref, w3_ref, w4_ref, w5_ref, sc_ref, sh_ref,
               o_ref, a2_ref, a3_ref, a4_ref, col3_ref, col4_ref, col5_ref):

        def affine_elu(acc, layer, cpad):
            # f32 epilogue: folded scale/shift, ELU(alpha=1) with finite exp.
            s = sc_ref[layer:layer + 1, :cpad]
            t = sh_ref[layer:layer + 1, :cpad]
            y = acc * s + t
            return jnp.where(y > 0.0, y, jnp.exp(jnp.minimum(y, 0.0)) - 1.0)

        # ---- blck1: composed conv1*conv2 (one 30-deep dot) -> BN1 -> ELU ---
        acc = jnp.dot(xcol_ref[...], w12_ref[...],
                      preferred_element_type=jnp.float32)       # (448, 128)
        a2_ref[...] = affine_elu(acc, 0, CP).astype(jnp.bfloat16)

        # ---- blck2: conv3 (10,1) -> BN2 -> ELU -> MaxPool([3,1]) -----------
        # im2col: one contiguous row-slice copy per tap, each landing on a
        # 128-lane boundary -> one 1280-deep dot.
        for k in range(K3):
            col3_ref[:, k * CP:(k + 1) * CP] = a2_ref[k * Wc:k * Wc + M3, :]
        acc = jnp.dot(col3_ref[...], w3_ref[...],
                      preferred_element_type=jnp.float32)       # (408, 128)
        y = affine_elu(acc, 1, CP)
        y = jnp.max(y.reshape(H3p, 3, Wc, CP), axis=1)          # pool over H
        a3_ref[...] = y.reshape(M3p, CP).astype(jnp.bfloat16)

        # ---- blck3: conv4 (10,1) -> BN3 -> ELU ------------------------------
        for k in range(K4):
            col4_ref[:, k * CP:(k + 1) * CP] = a3_ref[k * Wc:k * Wc + M4, :]
        acc = jnp.dot(col4_ref[...], w4_ref[...],
                      preferred_element_type=jnp.float32)       # (100, 128)
        a4_ref[...] = affine_elu(acc, 2, CP).astype(jnp.bfloat16)

        # ---- blck4: conv5 (10,1) -> BN4 -> ELU -> MaxPool([3,1]) -----------
        for k in range(K5):
            col5_ref[:, k * CP:(k + 1) * CP] = a4_ref[k * Wc:k * Wc + M5, :]
        acc = jnp.dot(col5_ref[...], w5_ref[...],
                      preferred_element_type=jnp.float32)       # (64, 256)
        y = affine_elu(acc, 3, CPo)
        y = jnp.max(y[:H5p * 3 * Wc].reshape(H5p, 3, Wc, CPo), axis=1)
        o_ref[...] = y.reshape(Mo, CPo).astype(o_ref.dtype)     # lane-dense out

    out = pl.pallas_call(
        kernel,
        out_shape=jax.ShapeDtypeStruct((N, Mo, CPo), f32),
        grid=(N,),            # one sample per step; "parallel" lets v7x shard
        in_specs=[            # the batch across its two TensorCores.
            pl.BlockSpec((None, M1p, KH1 * KW2), lambda n: (n, 0, 0)),
            pl.BlockSpec((KH1 * KW2, CP), lambda n: (0, 0)),
            pl.BlockSpec((K3 * CP, CP), lambda n: (0, 0)),
            pl.BlockSpec((K4 * CP, CP), lambda n: (0, 0)),
            pl.BlockSpec((K5 * CP, CPo), lambda n: (0, 0)),
            pl.BlockSpec((4, CPo), lambda n: (0, 0)),
            pl.BlockSpec((4, CPo), lambda n: (0, 0)),
        ],
        out_specs=pl.BlockSpec((None, Mo, CPo), lambda n: (n, 0, 0)),
        scratch_shapes=[                      # everything stays in VMEM, bf16
            pltpu.VMEM((M1p, CP), bf16),      # blck1 output (flat H*W, padded C)
            pltpu.VMEM((M3p, CP), bf16),      # blck2 output (pooled)
            pltpu.VMEM((M4, CP), bf16),       # blck3 output
            pltpu.VMEM((M3, K3 * CP), bf16),  # conv3 im2col
            pltpu.VMEM((M4, K4 * CP), bf16),  # conv4 im2col
            pltpu.VMEM((M5, K5 * CP), bf16),  # conv5 im2col
        ],
        compiler_params=pltpu.CompilerParams(
            dimension_semantics=("parallel",),
            vmem_limit_bytes=32 * 1024 * 1024),
    )(xcol, w12_p, w3_p, w4_p, w5_p, scales, shifts)

    # (N, 20, 256) -> (N, 200, 5, 4) NCHW
    out = out[:, :, :C5].reshape(N, H5p, Wc, C5)
    return jnp.transpose(out, (0, 3, 1, 2))


# ---------------------------------------------------------------------------
# Parameters (deterministic, matching the PyTorch __init__ shapes/init)
# ---------------------------------------------------------------------------
def init_params(key):
    def conv_params(k, cout, cin, kh, kw):
        k1, k2 = jax.random.split(k)
        w = jax.random.normal(k1, (cout, cin, kh, kw), jnp.float32) * 1e-4
        fan_in = cin * kh * kw
        bound = 1.0 / np.sqrt(fan_in)
        b = jax.random.uniform(k2, (cout,), jnp.float32, -bound, bound)
        return w, b

    keys = jax.random.split(key, 5)
    p = {}
    p['w1'], p['b1'] = conv_params(keys[0], 25, 1, 10, 1)
    p['w2'], p['b2'] = conv_params(keys[1], 25, 25, 1, 3)
    p['w3'], p['b3'] = conv_params(keys[2], 50, 25, 10, 1)
    p['w4'], p['b4'] = conv_params(keys[3], 100, 50, 10, 1)
    p['w5'], p['b5'] = conv_params(keys[4], 200, 100, 10, 1)
    for i, c in zip((1, 2, 3, 4), (25, 50, 100, 200)):
        p[f'bn{i}_gamma'] = jnp.ones((c,), jnp.float32)
        p[f'bn{i}_beta'] = jnp.zeros((c,), jnp.float32)
        p[f'bn{i}_mean'] = jnp.zeros((c,), jnp.float32)
        p[f'bn{i}_var'] = jnp.ones((c,), jnp.float32)
    return p


# ---------------------------------------------------------------------------
# Plain-JAX reference (NCHW, f32 lax.conv) for the correctness check
# ---------------------------------------------------------------------------
def ref_forward(x, p, eps=1e-5):
    def conv(x, w, b):
        y = lax.conv_general_dilated(
            x, w, (1, 1), 'VALID',
            dimension_numbers=('NCHW', 'OIHW', 'NCHW'),
            precision=lax.Precision.HIGHEST)
        return y + b.reshape(1, -1, 1, 1)

    def bn(x, i):
        s = p[f'bn{i}_gamma'] * lax.rsqrt(p[f'bn{i}_var'] + eps)
        t = p[f'bn{i}_beta'] - p[f'bn{i}_mean'] * s
        return x * s.reshape(1, -1, 1, 1) + t.reshape(1, -1, 1, 1)

    def elu(x):
        return jnp.where(x > 0.0, x, jnp.exp(x) - 1.0)

    def pool(x):
        return lax.reduce_window(x, -jnp.inf, lax.max,
                                 (1, 1, 3, 1), (1, 1, 3, 1), 'VALID')

    x = conv(x, p['w1'], p['b1'])
    x = conv(x, p['w2'], p['b2'])
    x = elu(bn(x, 1))
    x = conv(x, p['w3'], p['b3'])
    x = elu(bn(x, 2))
    x = pool(x)
    x = conv(x, p['w4'], p['b4'])
    x = elu(bn(x, 3))
    x = conv(x, p['w5'], p['b5'])
    x = elu(bn(x, 4))
    x = pool(x)
    return x


if __name__ == "__main__":
    key = jax.random.PRNGKey(0)
    kx, kp = jax.random.split(key)

    # PyTorch NCHW input: (batch=2, in_channels=1, H=time=120, W=electrodes=6)
    x = jax.random.normal(kx, (2, 1, 120, 6), jnp.float32)
    params = init_params(kp)

    fwd = jax.jit(deepconvnet_forward)
    out = jax.block_until_ready(fwd(x, params))
    assert out.shape == (2, 200, 5, 4), out.shape

    ref = jax.block_until_ready(ref_forward(x, params))
    # bf16 MXU operands + bf16-stored activations (f32 accumulation and f32
    # affine/ELU epilogue) vs. the f32 reference.
    np.testing.assert_allclose(np.asarray(out), np.asarray(ref),
                               rtol=2e-3, atol=2e-4)
    print("KERNEL_OK")
</pallas_src>

<mosaic_0001>
module attributes {stable_mosaic.version = 11 : i64} {
  func.func @kernel(%arg0: i32, %arg1: memref<1x448x30xbf16, #tpu.memory_space<vmem>>, %arg2: memref<30x128xbf16, #tpu.memory_space<vmem>>, %arg3: memref<1280x128xbf16, #tpu.memory_space<vmem>>, %arg4: memref<1280x128xbf16, #tpu.memory_space<vmem>>, %arg5: memref<1280x256xbf16, #tpu.memory_space<vmem>>, %arg6: memref<4x256xf32, #tpu.memory_space<vmem>>, %arg7: memref<4x256xf32, #tpu.memory_space<vmem>>, %arg8: memref<1x20x256xf32, #tpu.memory_space<vmem>>, %arg9: memref<448x128xbf16, #tpu.memory_space<vmem>>, %arg10: memref<136x128xbf16, #tpu.memory_space<vmem>>, %arg11: memref<100x128xbf16, #tpu.memory_space<vmem>>, %arg12: memref<408x1280xbf16, #tpu.memory_space<vmem>>, %arg13: memref<100x1280xbf16, #tpu.memory_space<vmem>>, %arg14: memref<64x1280xbf16, #tpu.memory_space<vmem>>) attributes {dimension_semantics = [#tpu.dimension_semantics<parallel>], iteration_bounds = array<i64: 2>, scalar_prefetch = 0 : i64, scratch_operands = 6 : i64, tpu.core_type = #tpu.core_type<tc>, window_params = [{transform_indices = @transform_0, window_bounds = array<i64: 1, 448, 30>}, {pipeline_mode = #tpu.pipeline_mode<synchronous>, transform_indices = @transform_1, window_bounds = array<i64: 30, 128>}, {pipeline_mode = #tpu.pipeline_mode<synchronous>, transform_indices = @transform_2, window_bounds = array<i64: 1280, 128>}, {pipeline_mode = #tpu.pipeline_mode<synchronous>, transform_indices = @transform_3, window_bounds = array<i64: 1280, 128>}, {pipeline_mode = #tpu.pipeline_mode<synchronous>, transform_indices = @transform_4, window_bounds = array<i64: 1280, 256>}, {pipeline_mode = #tpu.pipeline_mode<synchronous>, transform_indices = @transform_5, window_bounds = array<i64: 4, 256>}, {pipeline_mode = #tpu.pipeline_mode<synchronous>, transform_indices = @transform_6, window_bounds = array<i64: 4, 256>}, {transform_indices = @transform_7, window_bounds = array<i64: 1, 20, 256>}]} {
    %c0 = arith.constant 0 : index
    %c0_0 = arith.constant 0 : index
    %c0_1 = arith.constant 0 : index
    %0 = vector.load %arg1[%c0, %c0_0, %c0_1] : memref<1x448x30xbf16, #tpu.memory_space<vmem>>, vector<1x448x30xbf16>
    %1 = vector.shape_cast %0 : vector<1x448x30xbf16> to vector<448x30xbf16>
    %c0_2 = arith.constant 0 : index
    %c0_3 = arith.constant 0 : index
    %2 = vector.load %arg2[%c0_2, %c0_3] : memref<30x128xbf16, #tpu.memory_space<vmem>>, vector<30x128xbf16>
    %cst = arith.constant dense<0.000000e+00> : vector<448x128xf32>
    %3 = tpu.matmul %1, %2, %cst {dimension_numbers = #tpu.dot_dimension_numbers<[1], [0], [0], [1], [0, 0, 1, 1], [], []>} : vector<448x30xbf16>, vector<30x128xbf16>, vector<448x128xf32> -> vector<448x128xf32>
    %c0_4 = arith.constant 0 : index
    %c0_5 = arith.constant 0 : index
    %4 = vector.load %arg6[%c0_4, %c0_5] : memref<4x256xf32, #tpu.memory_space<vmem>>, vector<1x128xf32>
    %c0_6 = arith.constant 0 : index
    %c0_7 = arith.constant 0 : index
    %5 = vector.load %arg7[%c0_6, %c0_7] : memref<4x256xf32, #tpu.memory_space<vmem>>, vector<1x128xf32>
    %6 = vector.broadcast %4 : vector<1x128xf32> to vector<448x128xf32>
    %7 = arith.mulf %3, %6 : vector<448x128xf32>
    %8 = vector.broadcast %5 : vector<1x128xf32> to vector<448x128xf32>
    %9 = arith.addf %7, %8 : vector<448x128xf32>
    %cst_8 = arith.constant 0.000000e+00 : f32
    %10 = vector.broadcast %cst_8 : f32 to vector<448x128xf32>
    %11 = arith.cmpf ogt, %9, %10 : vector<448x128xf32>
    %cst_9 = arith.constant 0.000000e+00 : f32
    %12 = vector.broadcast %cst_9 : f32 to vector<448x128xf32>
    %13 = arith.minimumf %9, %12 : vector<448x128xf32>
    %14 = math.exp %13 : vector<448x128xf32>
    %cst_10 = arith.constant 1.000000e+00 : f32
    %15 = vector.broadcast %cst_10 : f32 to vector<448x128xf32>
    %16 = arith.subf %14, %15 : vector<448x128xf32>
    %17 = arith.select %11, %9, %16 : vector<448x128xi1>, vector<448x128xf32>
    %18 = arith.truncf %17 : vector<448x128xf32> to vector<448x128xbf16>
    %c0_11 = arith.constant 0 : index
    %c0_12 = arith.constant 0 : index
    %19 = vector.load %arg9[%c0_11, %c0_12] : memref<448x128xbf16, #tpu.memory_space<vmem>>, vector<448x128xbf16>
    tpu.vector_store %arg9[%c0_11, %c0_12], %18 {strides = array<i32>} : memref<448x128xbf16, #tpu.memory_space<vmem>>, vector<448x128xbf16>,
    %c0_13 = arith.constant 0 : index
    %c0_14 = arith.constant 0 : index
    %20 = vector.load %arg9[%c0_13, %c0_14] : memref<448x128xbf16, #tpu.memory_space<vmem>>, vector<408x128xbf16>
    %c0_15 = arith.constant 0 : index
    %c0_16 = arith.constant 0 : index
    %21 = vector.load %arg12[%c0_15, %c0_16] : memref<408x1280xbf16, #tpu.memory_space<vmem>>, vector<408x128xbf16>
    tpu.vector_store %arg12[%c0_15, %c0_16], %20 {strides = array<i32>} : memref<408x1280xbf16, #tpu.memory_space<vmem>>, vector<408x128xbf16>,
    %c4 = arith.constant 4 : index
    %c0_17 = arith.constant 0 : index
    %22 = vector.load %arg9[%c4, %c0_17] : memref<448x128xbf16, #tpu.memory_space<vmem>>, vector<408x128xbf16>
    %c0_18 = arith.constant 0 : index
    %c128 = arith.constant 128 : index
    %23 = vector.load %arg12[%c0_18, %c128] : memref<408x1280xbf16, #tpu.memory_space<vmem>>, vector<408x128xbf16>
    tpu.vector_store %arg12[%c0_18, %c128], %22 {strides = array<i32>} : memref<408x1280xbf16, #tpu.memory_space<vmem>>, vector<408x128xbf16>,
    %c8 = arith.constant 8 : index
    %c0_19 = arith.constant 0 : index
    %24 = vector.load %arg9[%c8, %c0_19] : memref<448x128xbf16, #tpu.memory_space<vmem>>, vector<408x128xbf16>
    %c0_20 = arith.constant 0 : index
    %c256 = arith.constant 256 : index
    %25 = vector.load %arg12[%c0_20, %c256] : memref<408x1280xbf16, #tpu.memory_space<vmem>>, vector<408x128xbf16>
    tpu.vector_store %arg12[%c0_20, %c256], %24 {strides = array<i32>} : memref<408x1280xbf16, #tpu.memory_space<vmem>>, vector<408x128xbf16>,
    %c12 = arith.constant 12 : index
    %c0_21 = arith.constant 0 : index
    %26 = vector.load %arg9[%c12, %c0_21] : memref<448x128xbf16, #tpu.memory_space<vmem>>, vector<408x128xbf16>
    %c0_22 = arith.constant 0 : index
    %c384 = arith.constant 384 : index
    %27 = vector.load %arg12[%c0_22, %c384] : memref<408x1280xbf16, #tpu.memory_space<vmem>>, vector<408x128xbf16>
    tpu.vector_store %arg12[%c0_22, %c384], %26 {strides = array<i32>} : memref<408x1280xbf16, #tpu.memory_space<vmem>>, vector<408x128xbf16>,
    %c16 = arith.constant 16 : index
    %c0_23 = arith.constant 0 : index
    %28 = vector.load %arg9[%c16, %c0_23] : memref<448x128xbf16, #tpu.memory_space<vmem>>, vector<408x128xbf16>
    %c0_24 = arith.constant 0 : index
    %c512 = arith.constant 512 : index
    %29 = vector.load %arg12[%c0_24, %c512] : memref<408x1280xbf16, #tpu.memory_space<vmem>>, vector<408x128xbf16>
    tpu.vector_store %arg12[%c0_24, %c512], %28 {strides = array<i32>} : memref<408x1280xbf16, #tpu.memory_space<vmem>>, vector<408x128xbf16>,
    %c20 = arith.constant 20 : index
    %c0_25 = arith.constant 0 : index
    %30 = vector.load %arg9[%c20, %c0_25] : memref<448x128xbf16, #tpu.memory_space<vmem>>, vector<408x128xbf16>
    %c0_26 = arith.constant 0 : index
    %c640 = arith.constant 640 : index
    %31 = vector.load %arg12[%c0_26, %c640] : memref<408x1280xbf16, #tpu.memory_space<vmem>>, vector<408x128xbf16>
    tpu.vector_store %arg12[%c0_26, %c640], %30 {strides = array<i32>} : memref<408x1280xbf16, #tpu.memory_space<vmem>>, vector<408x128xbf16>,
    %c24 = arith.constant 24 : index
    %c0_27 = arith.constant 0 : index
    %32 = vector.load %arg9[%c24, %c0_27] : memref<448x128xbf16, #tpu.memory_space<vmem>>, vector<408x128xbf16>
    %c0_28 = arith.constant 0 : index
    %c768 = arith.constant 768 : index
    %33 = vector.load %arg12[%c0_28, %c768] : memref<408x1280xbf16, #tpu.memory_space<vmem>>, vector<408x128xbf16>
    tpu.vector_store %arg12[%c0_28, %c768], %32 {strides = array<i32>} : memref<408x1280xbf16, #tpu.memory_space<vmem>>, vector<408x128xbf16>,
    %c28 = arith.constant 28 : index
    %c0_29 = arith.constant 0 : index
    %34 = vector.load %arg9[%c28, %c0_29] : memref<448x128xbf16, #tpu.memory_space<vmem>>, vector<408x128xbf16>
    %c0_30 = arith.constant 0 : index
    %c896 = arith.constant 896 : index
    %35 = vector.load %arg12[%c0_30, %c896] : memref<408x1280xbf16, #tpu.memory_space<vmem>>, vector<408x128xbf16>
    tpu.vector_store %arg12[%c0_30, %c896], %34 {strides = array<i32>} : memref<408x1280xbf16, #tpu.memory_space<vmem>>, vector<408x128xbf16>,
    %c32 = arith.constant 32 : index
    %c0_31 = arith.constant 0 : index
    %36 = vector.load %arg9[%c32, %c0_31] : memref<448x128xbf16, #tpu.memory_space<vmem>>, vector<408x128xbf16>
    %c0_32 = arith.constant 0 : index
    %c1024 = arith.constant 1024 : index
    %37 = vector.load %arg12[%c0_32, %c1024] : memref<408x1280xbf16, #tpu.memory_space<vmem>>, vector<408x128xbf16>
    tpu.vector_store %arg12[%c0_32, %c1024], %36 {strides = array<i32>} : memref<408x1280xbf16, #tpu.memory_space<vmem>>, vector<408x128xbf16>,
    %c36 = arith.constant 36 : index
    %c0_33 = arith.constant 0 : index
    %38 = vector.load %arg9[%c36, %c0_33] : memref<448x128xbf16, #tpu.memory_space<vmem>>, vector<408x128xbf16>
    %c0_34 = arith.constant 0 : index
    %c1152 = arith.constant 1152 : index
    %39 = vector.load %arg12[%c0_34, %c1152] : memref<408x1280xbf16, #tpu.memory_space<vmem>>, vector<408x128xbf16>
    tpu.vector_store %arg12[%c0_34, %c1152], %38 {strides = array<i32>} : memref<408x1280xbf16, #tpu.memory_space<vmem>>, vector<408x128xbf16>,
    %c0_35 = arith.constant 0 : index
    %c0_36 = arith.constant 0 : index
    %40 = vector.load %arg12[%c0_35, %c0_36] : memref<408x1280xbf16, #tpu.memory_space<vmem>>, vector<408x1280xbf16>
    %c0_37 = arith.constant 0 : index
    %c0_38 = arith.constant 0 : index
    %41 = vector.load %arg3[%c0_37, %c0_38] : memref<1280x128xbf16, #tpu.memory_space<vmem>>, vector<1280x128xbf16>
    %cst_39 = arith.constant dense<0.000000e+00> : vector<408x128xf32>
    %42 = tpu.matmul %40, %41, %cst_39 {dimension_numbers = #tpu.dot_dimension_numbers<[1], [0], [0], [1], [0, 0, 1, 1], [], []>} : vector<408x1280xbf16>, vector<1280x128xbf16>, vector<408x128xf32> -> vector<408x128xf32>
    %c1 = arith.constant 1 : index
    %c0_40 = arith.constant 0 : index
    %43 = vector.load %arg6[%c1, %c0_40] : memref<4x256xf32, #tpu.memory_space<vmem>>, vector<1x128xf32>
    %c1_41 = arith.constant 1 : index
    %c0_42 = arith.constant 0 : index
    %44 = vector.load %arg7[%c1_41, %c0_42] : memref<4x256xf32, #tpu.memory_space<vmem>>, vector<1x128xf32>
    %45 = vector.broadcast %43 : vector<1x128xf32> to vector<408x128xf32>
    %46 = arith.mulf %42, %45 : vector<408x128xf32>
    %47 = vector.broadcast %44 : vector<1x128xf32> to vector<408x128xf32>
    %48 = arith.addf %46, %47 : vector<408x128xf32>
    %cst_43 = arith.constant 0.000000e+00 : f32
    %49 = vector.broadcast %cst_43 : f32 to vector<408x128xf32>
    %50 = arith.cmpf ogt, %48, %49 : vector<408x128xf32>
    %cst_44 = arith.constant 0.000000e+00 : f32
    %51 = vector.broadcast %cst_44 : f32 to vector<408x128xf32>
    %52 = arith.minimumf %48, %51 : vector<408x128xf32>
    %53 = math.exp %52 : vector<408x128xf32>
    %cst_45 = arith.constant 1.000000e+00 : f32
    %54 = vector.broadcast %cst_45 : f32 to vector<408x128xf32>
    %55 = arith.subf %53, %54 : vector<408x128xf32>
    %56 = arith.select %50, %48, %55 : vector<408x128xi1>, vector<408x128xf32>
    %57 = vector.shape_cast %56 : vector<408x128xf32> to vector<34x3x4x128xf32>
    %cst_46 = arith.constant dense<0xFF800000> : vector<34x4x128xf32>
    %58 = vector.multi_reduction <maximumf>, %57, %cst_46 [1] : vector<34x3x4x128xf32> to vector<34x4x128xf32>
    %59 = vector.shape_cast %58 : vector<34x4x128xf32> to vector<136x128xf32>
    %60 = arith.truncf %59 : vector<136x128xf32> to vector<136x128xbf16>
    %c0_47 = arith.constant 0 : index
    %c0_48 = arith.constant 0 : index
    %61 = vector.load %arg10[%c0_47, %c0_48] : memref<136x128xbf16, #tpu.memory_space<vmem>>, vector<136x128xbf16>
    tpu.vector_store %arg10[%c0_47, %c0_48], %60 {strides = array<i32>} : memref<136x128xbf16, #tpu.memory_space<vmem>>, vector<136x128xbf16>,
    %c0_49 = arith.constant 0 : index
    %c0_50 = arith.constant 0 : index
    %62 = vector.load %arg10[%c0_49, %c0_50] : memref<136x128xbf16, #tpu.memory_space<vmem>>, vector<100x128xbf16>
    %c0_51 = arith.constant 0 : index
    %c0_52 = arith.constant 0 : index
    %63 = vector.load %arg13[%c0_51, %c0_52] : memref<100x1280xbf16, #tpu.memory_space<vmem>>, vector<100x128xbf16>
    tpu.vector_store %arg13[%c0_51, %c0_52], %62 {strides = array<i32>} : memref<100x1280xbf16, #tpu.memory_space<vmem>>, vector<100x128xbf16>,
    %c4_53 = arith.constant 4 : index
    %c0_54 = arith.constant 0 : index
    %64 = vector.load %arg10[%c4_53, %c0_54] : memref<136x128xbf16, #tpu.memory_space<vmem>>, vector<100x128xbf16>
    %c0_55 = arith.constant 0 : index
    %c128_56 = arith.constant 128 : index
    %65 = vector.load %arg13[%c0_55, %c128_56] : memref<100x1280xbf16, #tpu.memory_space<vmem>>, vector<100x128xbf16>
    tpu.vector_store %arg13[%c0_55, %c128_56], %64 {strides = array<i32>} : memref<100x1280xbf16, #tpu.memory_space<vmem>>, vector<100x128xbf16>,
    %c8_57 = arith.constant 8 : index
    %c0_58 = arith.constant 0 : index
    %66 = vector.load %arg10[%c8_57, %c0_58] : memref<136x128xbf16, #tpu.memory_space<vmem>>, vector<100x128xbf16>
    %c0_59 = arith.constant 0 : index
    %c256_60 = arith.constant 256 : index
    %67 = vector.load %arg13[%c0_59, %c256_60] : memref<100x1280xbf16, #tpu.memory_space<vmem>>, vector<100x128xbf16>
    tpu.vector_store %arg13[%c0_59, %c256_60], %66 {strides = array<i32>} : memref<100x1280xbf16, #tpu.memory_space<vmem>>, vector<100x128xbf16>,
    %c12_61 = arith.constant 12 : index
    %c0_62 = arith.constant 0 : index
    %68 = vector.load %arg10[%c12_61, %c0_62] : memref<136x128xbf16, #tpu.memory_space<vmem>>, vector<100x128xbf16>
    %c0_63 = arith.constant 0 : index
    %c384_64 = arith.constant 384 : index
    %69 = vector.load %arg13[%c0_63, %c384_64] : memref<100x1280xbf16, #tpu.memory_space<vmem>>, vector<100x128xbf16>
    tpu.vector_store %arg13[%c0_63, %c384_64], %68 {strides = array<i32>} : memref<100x1280xbf16, #tpu.memory_space<vmem>>, vector<100x128xbf16>,
    %c16_65 = arith.constant 16 : index
    %c0_66 = arith.constant 0 : index
    %70 = vector.load %arg10[%c16_65, %c0_66] : memref<136x128xbf16, #tpu.memory_space<vmem>>, vector<100x128xbf16>
    %c0_67 = arith.constant 0 : index
    %c512_68 = arith.constant 512 : index
    %71 = vector.load %arg13[%c0_67, %c512_68] : memref<100x1280xbf16, #tpu.memory_space<vmem>>, vector<100x128xbf16>
    tpu.vector_store %arg13[%c0_67, %c512_68], %70 {strides = array<i32>} : memref<100x1280xbf16, #tpu.memory_space<vmem>>, vector<100x128xbf16>,
    %c20_69 = arith.constant 20 : index
    %c0_70 = arith.constant 0 : index
    %72 = vector.load %arg10[%c20_69, %c0_70] : memref<136x128xbf16, #tpu.memory_space<vmem>>, vector<100x128xbf16>
    %c0_71 = arith.constant 0 : index
    %c640_72 = arith.constant 640 : index
    %73 = vector.load %arg13[%c0_71, %c640_72] : memref<100x1280xbf16, #tpu.memory_space<vmem>>, vector<100x128xbf16>
    tpu.vector_store %arg13[%c0_71, %c640_72], %72 {strides = array<i32>} : memref<100x1280xbf16, #tpu.memory_space<vmem>>, vector<100x128xbf16>,
    %c24_73 = arith.constant 24 : index
    %c0_74 = arith.constant 0 : index
    %74 = vector.load %arg10[%c24_73, %c0_74] : memref<136x128xbf16, #tpu.memory_space<vmem>>, vector<100x128xbf16>
    %c0_75 = arith.constant 0 : index
    %c768_76 = arith.constant 768 : index
    %75 = vector.load %arg13[%c0_75, %c768_76] : memref<100x1280xbf16, #tpu.memory_space<vmem>>, vector<100x128xbf16>
    tpu.vector_store %arg13[%c0_75, %c768_76], %74 {strides = array<i32>} : memref<100x1280xbf16, #tpu.memory_space<vmem>>, vector<100x128xbf16>,
    %c28_77 = arith.constant 28 : index
    %c0_78 = arith.constant 0 : index
    %76 = vector.load %arg10[%c28_77, %c0_78] : memref<136x128xbf16, #tpu.memory_space<vmem>>, vector<100x128xbf16>
    %c0_79 = arith.constant 0 : index
    %c896_80 = arith.constant 896 : index
    %77 = vector.load %arg13[%c0_79, %c896_80] : memref<100x1280xbf16, #tpu.memory_space<vmem>>, vector<100x128xbf16>
    tpu.vector_store %arg13[%c0_79, %c896_80], %76 {strides = array<i32>} : memref<100x1280xbf16, #tpu.memory_space<vmem>>, vector<100x128xbf16>,
    %c32_81 = arith.constant 32 : index
    %c0_82 = arith.constant 0 : index
    %78 = vector.load %arg10[%c32_81, %c0_82] : memref<136x128xbf16, #tpu.memory_space<vmem>>, vector<100x128xbf16>
    %c0_83 = arith.constant 0 : index
    %c1024_84 = arith.constant 1024 : index
    %79 = vector.load %arg13[%c0_83, %c1024_84] : memref<100x1280xbf16, #tpu.memory_space<vmem>>, vector<100x128xbf16>
    tpu.vector_store %arg13[%c0_83, %c1024_84], %78 {strides = array<i32>} : memref<100x1280xbf16, #tpu.memory_space<vmem>>, vector<100x128xbf16>,
    %c36_85 = arith.constant 36 : index
    %c0_86 = arith.constant 0 : index
    %80 = vector.load %arg10[%c36_85, %c0_86] : memref<136x128xbf16, #tpu.memory_space<vmem>>, vector<100x128xbf16>
    %c0_87 = arith.constant 0 : index
    %c1152_88 = arith.constant 1152 : index
    %81 = vector.load %arg13[%c0_87, %c1152_88] : memref<100x1280xbf16, #tpu.memory_space<vmem>>, vector<100x128xbf16>
    tpu.vector_store %arg13[%c0_87, %c1152_88], %80 {strides = array<i32>} : memref<100x1280xbf16, #tpu.memory_space<vmem>>, vector<100x128xbf16>,
    %c0_89 = arith.constant 0 : index
    %c0_90 = arith.constant 0 : index
    %82 = vector.load %arg13[%c0_89, %c0_90] : memref<100x1280xbf16, #tpu.memory_space<vmem>>, vector<100x1280xbf16>
    %c0_91 = arith.constant 0 : index
    %c0_92 = arith.constant 0 : index
    %83 = vector.load %arg4[%c0_91, %c0_92] : memref<1280x128xbf16, #tpu.memory_space<vmem>>, vector<1280x128xbf16>
    %cst_93 = arith.constant dense<0.000000e+00> : vector<100x128xf32>
    %84 = tpu.matmul %82, %83, %cst_93 {dimension_numbers = #tpu.dot_dimension_numbers<[1], [0], [0], [1], [0, 0, 1, 1], [], []>} : vector<100x1280xbf16>, vector<1280x128xbf16>, vector<100x128xf32> -> vector<100x128xf32>
    %c2 = arith.constant 2 : index
    %c0_94 = arith.constant 0 : index
    %85 = vector.load %arg6[%c2, %c0_94] : memref<4x256xf32, #tpu.memory_space<vmem>>, vector<1x128xf32>
    %c2_95 = arith.constant 2 : index
    %c0_96 = arith.constant 0 : index
    %86 = vector.load %arg7[%c2_95, %c0_96] : memref<4x256xf32, #tpu.memory_space<vmem>>, vector<1x128xf32>
    %87 = vector.broadcast %85 : vector<1x128xf32> to vector<100x128xf32>
    %88 = arith.mulf %84, %87 : vector<100x128xf32>
    %89 = vector.broadcast %86 : vector<1x128xf32> to vector<100x128xf32>
    %90 = arith.addf %88, %89 : vector<100x128xf32>
    %cst_97 = arith.constant 0.000000e+00 : f32
    %91 = vector.broadcast %cst_97 : f32 to vector<100x128xf32>
    %92 = arith.cmpf ogt, %90, %91 : vector<100x128xf32>
    %cst_98 = arith.constant 0.000000e+00 : f32
    %93 = vector.broadcast %cst_98 : f32 to vector<100x128xf32>
    %94 = arith.minimumf %90, %93 : vector<100x128xf32>
    %95 = math.exp %94 : vector<100x128xf32>
    %cst_99 = arith.constant 1.000000e+00 : f32
    %96 = vector.broadcast %cst_99 : f32 to vector<100x128xf32>
    %97 = arith.subf %95, %96 : vector<100x128xf32>
    %98 = arith.select %92, %90, %97 : vector<100x128xi1>, vector<100x128xf32>
    %99 = arith.truncf %98 : vector<100x128xf32> to vector<100x128xbf16>
    %c0_100 = arith.constant 0 : index
    %c0_101 = arith.constant 0 : index
    %100 = vector.load %arg11[%c0_100, %c0_101] : memref<100x128xbf16, #tpu.memory_space<vmem>>, vector<100x128xbf16>
    tpu.vector_store %arg11[%c0_100, %c0_101], %99 {strides = array<i32>} : memref<100x128xbf16, #tpu.memory_space<vmem>>, vector<100x128xbf16>,
    %c0_102 = arith.constant 0 : index
    %c0_103 = arith.constant 0 : index
    %101 = vector.load %arg11[%c0_102, %c0_103] : memref<100x128xbf16, #tpu.memory_space<vmem>>, vector<64x128xbf16>
    %c0_104 = arith.constant 0 : index
    %c0_105 = arith.constant 0 : index
    %102 = vector.load %arg14[%c0_104, %c0_105] : memref<64x1280xbf16, #tpu.memory_space<vmem>>, vector<64x128xbf16>
    tpu.vector_store %arg14[%c0_104, %c0_105], %101 {strides = array<i32>} : memref<64x1280xbf16, #tpu.memory_space<vmem>>, vector<64x128xbf16>,
    %c4_106 = arith.constant 4 : index
    %c0_107 = arith.constant 0 : index
    %103 = vector.load %arg11[%c4_106, %c0_107] : memref<100x128xbf16, #tpu.memory_space<vmem>>, vector<64x128xbf16>
    %c0_108 = arith.constant 0 : index
    %c128_109 = arith.constant 128 : index
    %104 = vector.load %arg14[%c0_108, %c128_109] : memref<64x1280xbf16, #tpu.memory_space<vmem>>, vector<64x128xbf16>
    tpu.vector_store %arg14[%c0_108, %c128_109], %103 {strides = array<i32>} : memref<64x1280xbf16, #tpu.memory_space<vmem>>, vector<64x128xbf16>,
    %c8_110 = arith.constant 8 : index
    %c0_111 = arith.constant 0 : index
    %105 = vector.load %arg11[%c8_110, %c0_111] : memref<100x128xbf16, #tpu.memory_space<vmem>>, vector<64x128xbf16>
    %c0_112 = arith.constant 0 : index
    %c256_113 = arith.constant 256 : index
    %106 = vector.load %arg14[%c0_112, %c256_113] : memref<64x1280xbf16, #tpu.memory_space<vmem>>, vector<64x128xbf16>
    tpu.vector_store %arg14[%c0_112, %c256_113], %105 {strides = array<i32>} : memref<64x1280xbf16, #tpu.memory_space<vmem>>, vector<64x128xbf16>,
    %c12_114 = arith.constant 12 : index
    %c0_115 = arith.constant 0 : index
    %107 = vector.load %arg11[%c12_114, %c0_115] : memref<100x128xbf16, #tpu.memory_space<vmem>>, vector<64x128xbf16>
    %c0_116 = arith.constant 0 : index
    %c384_117 = arith.constant 384 : index
    %108 = vector.load %arg14[%c0_116, %c384_117] : memref<64x1280xbf16, #tpu.memory_space<vmem>>, vector<64x128xbf16>
    tpu.vector_store %arg14[%c0_116, %c384_117], %107 {strides = array<i32>} : memref<64x1280xbf16, #tpu.memory_space<vmem>>, vector<64x128xbf16>,
    %c16_118 = arith.constant 16 : index
    %c0_119 = arith.constant 0 : index
    %109 = vector.load %arg11[%c16_118, %c0_119] : memref<100x128xbf16, #tpu.memory_space<vmem>>, vector<64x128xbf16>
    %c0_120 = arith.constant 0 : index
    %c512_121 = arith.constant 512 : index
    %110 = vector.load %arg14[%c0_120, %c512_121] : memref<64x1280xbf16, #tpu.memory_space<vmem>>, vector<64x128xbf16>
    tpu.vector_store %arg14[%c0_120, %c512_121], %109 {strides = array<i32>} : memref<64x1280xbf16, #tpu.memory_space<vmem>>, vector<64x128xbf16>,
    %c20_122 = arith.constant 20 : index
    %c0_123 = arith.constant 0 : index
    %111 = vector.load %arg11[%c20_122, %c0_123] : memref<100x128xbf16, #tpu.memory_space<vmem>>, vector<64x128xbf16>
    %c0_124 = arith.constant 0 : index
    %c640_125 = arith.constant 640 : index
    %112 = vector.load %arg14[%c0_124, %c640_125] : memref<64x1280xbf16, #tpu.memory_space<vmem>>, vector<64x128xbf16>
    tpu.vector_store %arg14[%c0_124, %c640_125], %111 {strides = array<i32>} : memref<64x1280xbf16, #tpu.memory_space<vmem>>, vector<64x128xbf16>,
    %c24_126 = arith.constant 24 : index
    %c0_127 = arith.constant 0 : index
    %113 = vector.load %arg11[%c24_126, %c0_127] : memref<100x128xbf16, #tpu.memory_space<vmem>>, vector<64x128xbf16>
    %c0_128 = arith.constant 0 : index
    %c768_129 = arith.constant 768 : index
    %114 = vector.load %arg14[%c0_128, %c768_129] : memref<64x1280xbf16, #tpu.memory_space<vmem>>, vector<64x128xbf16>
    tpu.vector_store %arg14[%c0_128, %c768_129], %113 {strides = array<i32>} : memref<64x1280xbf16, #tpu.memory_space<vmem>>, vector<64x128xbf16>,
    %c28_130 = arith.constant 28 : index
    %c0_131 = arith.constant 0 : index
    %115 = vector.load %arg11[%c28_130, %c0_131] : memref<100x128xbf16, #tpu.memory_space<vmem>>, vector<64x128xbf16>
    %c0_132 = arith.constant 0 : index
    %c896_133 = arith.constant 896 : index
    %116 = vector.load %arg14[%c0_132, %c896_133] : memref<64x1280xbf16, #tpu.memory_space<vmem>>, vector<64x128xbf16>
    tpu.vector_store %arg14[%c0_132, %c896_133], %115 {strides = array<i32>} : memref<64x1280xbf16, #tpu.memory_space<vmem>>, vector<64x128xbf16>,
    %c32_134 = arith.constant 32 : index
    %c0_135 = arith.constant 0 : index
    %117 = vector.load %arg11[%c32_134, %c0_135] : memref<100x128xbf16, #tpu.memory_space<vmem>>, vector<64x128xbf16>
    %c0_136 = arith.constant 0 : index
    %c1024_137 = arith.constant 1024 : index
    %118 = vector.load %arg14[%c0_136, %c1024_137] : memref<64x1280xbf16, #tpu.memory_space<vmem>>, vector<64x128xbf16>
    tpu.vector_store %arg14[%c0_136, %c1024_137], %117 {strides = array<i32>} : memref<64x1280xbf16, #tpu.memory_space<vmem>>, vector<64x128xbf16>,
    %c36_138 = arith.constant 36 : index
    %c0_139 = arith.constant 0 : index
    %119 = vector.load %arg11[%c36_138, %c0_139] : memref<100x128xbf16, #tpu.memory_space<vmem>>, vector<64x128xbf16>
    %c0_140 = arith.constant 0 : index
    %c1152_141 = arith.constant 1152 : index
    %120 = vector.load %arg14[%c0_140, %c1152_141] : memref<64x1280xbf16, #tpu.memory_space<vmem>>, vector<64x128xbf16>
    tpu.vector_store %arg14[%c0_140, %c1152_141], %119 {strides = array<i32>} : memref<64x1280xbf16, #tpu.memory_space<vmem>>, vector<64x128xbf16>,
    %c0_142 = arith.constant 0 : index
    %c0_143 = arith.constant 0 : index
    %121 = vector.load %arg14[%c0_142, %c0_143] : memref<64x1280xbf16, #tpu.memory_space<vmem>>, vector<64x1280xbf16>
    %c0_144 = arith.constant 0 : index
    %c0_145 = arith.constant 0 : index
    %122 = vector.load %arg5[%c0_144, %c0_145] : memref<1280x256xbf16, #tpu.memory_space<vmem>>, vector<1280x256xbf16>
    %cst_146 = arith.constant dense<0.000000e+00> : vector<64x256xf32>
    %123 = tpu.matmul %121, %122, %cst_146 {dimension_numbers = #tpu.dot_dimension_numbers<[1], [0], [0], [1], [0, 0, 1, 1], [], []>} : vector<64x1280xbf16>, vector<1280x256xbf16>, vector<64x256xf32> -> vector<64x256xf32>
    %c3 = arith.constant 3 : index
    %c0_147 = arith.constant 0 : index
    %124 = vector.load %arg6[%c3, %c0_147] : memref<4x256xf32, #tpu.memory_space<vmem>>, vector<1x256xf32>
    %c3_148 = arith.constant 3 : index
    %c0_149 = arith.constant 0 : index
    %125 = vector.load %arg7[%c3_148, %c0_149] : memref<4x256xf32, #tpu.memory_space<vmem>>, vector<1x256xf32>
    %126 = vector.broadcast %124 : vector<1x256xf32> to vector<64x256xf32>
    %127 = arith.mulf %123, %126 : vector<64x256xf32>
    %128 = vector.broadcast %125 : vector<1x256xf32> to vector<64x256xf32>
    %129 = arith.addf %127, %128 : vector<64x256xf32>
    %cst_150 = arith.constant 0.000000e+00 : f32
    %130 = vector.broadcast %cst_150 : f32 to vector<64x256xf32>
    %131 = arith.cmpf ogt, %129, %130 : vector<64x256xf32>
    %cst_151 = arith.constant 0.000000e+00 : f32
    %132 = vector.broadcast %cst_151 : f32 to vector<64x256xf32>
    %133 = arith.minimumf %129, %132 : vector<64x256xf32>
    %134 = math.exp %133 : vector<64x256xf32>
    %cst_152 = arith.constant 1.000000e+00 : f32
    %135 = vector.broadcast %cst_152 : f32 to vector<64x256xf32>
    %136 = arith.subf %134, %135 : vector<64x256xf32>
    %137 = arith.select %131, %129, %136 : vector<64x256xi1>, vector<64x256xf32>
    %138 = vector.extract_strided_slice %137 {offsets = [0, 0], sizes = [60, 256], strides = [1, 1]} : vector<64x256xf32> to vector<60x256xf32>
    %139 = vector.shape_cast %138 : vector<60x256xf32> to vector<5x3x4x256xf32>
    %cst_153 = arith.constant dense<0xFF800000> : vector<5x4x256xf32>
    %140 = vector.multi_reduction <maximumf>, %139, %cst_153 [1] : vector<5x3x4x256xf32> to vector<5x4x256xf32>
    %141 = vector.shape_cast %140 : vector<5x4x256xf32> to vector<20x256xf32>
    %c0_154 = arith.constant 0 : index
    %c0_155 = arith.constant 0 : index
    %c0_156 = arith.constant 0 : index
    %142 = vector.load %arg8[%c0_154, %c0_155, %c0_156] : memref<1x20x256xf32, #tpu.memory_space<vmem>>, vector<1x20x256xf32>
    %143 = vector.shape_cast %142 : vector<1x20x256xf32> to vector<20x256xf32>
    %144 = vector.shape_cast %141 : vector<20x256xf32> to vector<1x20x256xf32>
    tpu.vector_store %arg8[%c0_154, %c0_155, %c0_156], %144 {strides = array<i32>} : memref<1x20x256xf32, #tpu.memory_space<vmem>>, vector<1x20x256xf32>,
    return
  }
  func.func @transform_0(%arg0: i32) -> (i32, i32, i32) {
    %c0_i32 = arith.constant 0 : i32
    %c0_i32_0 = arith.constant 0 : i32
    %c0_i32_1 = arith.constant 0 : i32
    return %arg0, %c0_i32, %c0_i32_0 : i32, i32, i32
  }
  func.func @transform_1(%arg0: i32) -> (i32, i32) {
    %c0_i32 = arith.constant 0 : i32
    %c0_i32_0 = arith.constant 0 : i32
    %c0_i32_1 = arith.constant 0 : i32
    return %c0_i32, %c0_i32_0 : i32, i32
  }
  func.func @transform_2(%arg0: i32) -> (i32, i32) {
    %c0_i32 = arith.constant 0 : i32
    %c0_i32_0 = arith.constant 0 : i32
    %c0_i32_1 = arith.constant 0 : i32
    return %c0_i32, %c0_i32_0 : i32, i32
  }
  func.func @transform_3(%arg0: i32) -> (i32, i32) {
    %c0_i32 = arith.constant 0 : i32
    %c0_i32_0 = arith.constant 0 : i32
    %c0_i32_1 = arith.constant 0 : i32
    return %c0_i32, %c0_i32_0 : i32, i32
  }
  func.func @transform_4(%arg0: i32) -> (i32, i32) {
    %c0_i32 = arith.constant 0 : i32
    %c0_i32_0 = arith.constant 0 : i32
    %c0_i32_1 = arith.constant 0 : i32
    return %c0_i32, %c0_i32_0 : i32, i32
  }
  func.func @transform_5(%arg0: i32) -> (i32, i32) {
    %c0_i32 = arith.constant 0 : i32
    %c0_i32_0 = arith.constant 0 : i32
    %c0_i32_1 = arith.constant 0 : i32
    return %c0_i32, %c0_i32_0 : i32, i32
  }
  func.func @transform_6(%arg0: i32) -> (i32, i32) {
    %c0_i32 = arith.constant 0 : i32
    %c0_i32_0 = arith.constant 0 : i32
    %c0_i32_1 = arith.constant 0 : i32
    return %c0_i32, %c0_i32_0 : i32, i32
  }
  func.func @transform_7(%arg0: i32) -> (i32, i32, i32) {
    %c0_i32 = arith.constant 0 : i32
    %c0_i32_0 = arith.constant 0 : i32
    %c0_i32_1 = arith.constant 0 : i32
    return %arg0, %c0_i32, %c0_i32_0 : i32, i32, i32
  }
}

</mosaic_0001>

<bundles_post_ra>
// kernel: deepconvnet_forward.1
= control target key start
LH: loop header
LB: loop body
LE: loop exit
PB: predicated region body
PF: predicated region fallthrough
CT: control target
= control target key end

     0   :  { %s17197_s24 = smov 0   ;;  %s21250_s0 = inlined_call_operand.vmem [shape: bf16[2,448,30], index: 0, kind: input, shape index: {}]   ;;  %s21251_s1 = inlined_call_operand.vmem [shape: bf16[30,128], index: 1, kind: input, shape index: {}]   ;;  %s21252_s2 = inlined_call_operand.vmem [shape: bf16[1280,128], index: 2, kind: input, shape index: {}]   ;;  %s21253_s3 = inlined_call_operand.vmem [shape: bf16[1280,128], index: 3, kind: input, shape index: {}]   ;;  %s21254_s4 = inlined_call_operand.vmem [shape: bf16[1280,256], index: 4, kind: input, shape index: {}]   ;;  %s21255_s5 = inlined_call_operand.vmem [shape: f32[4,256], index: 5, kind: input, shape index: {}]   ;;  %s21256_s6 = inlined_call_operand.vmem [shape: f32[4,256], index: 6, kind: input, shape index: {}]   ;;  %s21257_s7 = inlined_call_operand.vmem [shape: f32[2,20,256], index: 7, kind: output, shape index: {}]  }
   0x1 LB: > { %s13291_s25 = sadd.s32 4294967295, %s17154_s24   ;;  %p13295_p0 = scmp.ge.s32.totalorder %s17154_s24, 1  ;;  %s17154_s24 = sphi %s17197_s24, %s17_s24  }
   0x2   : > { %p237_p1 = scmp.lt.s32.totalorder %s17154_s24, 3 }
   0x4   : > { %p238_p2 = pnand %p13295_p0, %p237_p1 }
   0x6   : > { %241 = sbr.rel (%p238_p2) target bundleno = 2380 (0x94c), region = 48 }
   0xd   : > { %v15683_v0 = vld [vmem:[%s21251_s1] sm:$0xff]   ;;  %vm576_vm0 = vcmask 1046528   ;;  %v15684_v1 = vld [vmem:[%s21251_s1 + $0x8] sm:$0x7f]   ;;  %p269_p3 = scmp.lt.s32.totalorder %s13291_s25, 1  ;;  %v17156_v4 = vmov 0  }
   0xe   : > { %15184 = vmatprep.subr.bf16.mxu0 %v15683_v0  ;;  %v15713_v2 = vld [vmem:[%s21252_s2 + $0x80] sm:$0xff]   ;;  %v578_v3 = vsel %vm576_vm0, %v15684_v1, 0  ;;  %7118 = vmatprep.subr.bf16.mxu1 %v17156_v4  ;;  %v15715_v5 = vld [vmem:[%s21252_s2 + $0x88] sm:$0xff]   ;;  %vm491_vm1 = vcmask 244736   ;;  %v15717_v7 = vld [vmem:[%s21252_s2 + $0x90] sm:$0xff]  }
   0xf   : > { %15185 = vmatpush3.bf16.msra.mxu0 %v15683_v0  ;;  %s21277_s25 = smov (!%p269_p3, %s13291_s25), 1  ;;  %7119 = vmatpush1.bf16.msra.mxu1 %v15713_v2  ;;  %v15714_v6 = vld [vmem:[%s21252_s2] sm:$0xff]   ;;  %v15716_v11 = vld [vmem:[%s21252_s2 + $0x8] sm:$0xff]   ;;  %v15718_v12 = vld [vmem:[%s21252_s2 + $0x10] sm:$0xff]  }
  0x10   : > { %15671 = vmatprep.subr.msk.bf16.mxu0 %vm576_vm0, %v15684_v1  ;;  %7120 = vmatprep.subr.bf16.mxu1 %v17156_v4  ;;  %s15672_s11 = smul.u32 224, %s21277_s25  ;;  %v15719_v33 = vld [vmem:[%s21252_s2 + $0x98] sm:$0xff]   ;;  %v15721_v37 = vld [vmem:[%s21252_s2 + $0xa0] sm:$0xff]   ;;  %v15723_v39 = vld [vmem:[%s21252_s2 + $0xa8] sm:$0xff]  }
  0x11   : > { %v15720_v36 = vld [vmem:[%s21252_s2 + $0x18] sm:$0xff]   ;;  %v15722_v38 = vld [vmem:[%s21252_s2 + $0x20] sm:$0xff]   ;;  %v15724_v42 = vld [vmem:[%s21252_s2 + $0x28] sm:$0xff]  }
  0x12   : > { %s17228_s16 = scalar_lea.vmem %s21250_s0, %s15672_s11  ;;  %v15725_v43 = vld [vmem:[%s21252_s2 + $0xb0] sm:$0xff]   ;;  %v15727_v45 = vld [vmem:[%s21252_s2 + $0xb8] sm:$0xff]   ;;  %v15729_v48 = vld [vmem:[%s21252_s2 + $0xc0] sm:$0xff]   ;;  %s15673_s11 = smul.u32 48, %s21277_s25 }
  0x13   : > { %15187 = vmatpush3.bf16.msra.mxu0 %v578_v3  ;;  %7121 = vmatpush1.bf16.msra.mxu1 %v15715_v5  ;;  %v15685_v8 = vld [vmem:[%s17228_s16] sm:$0xff]   ;;  %v15686_v9 = vld [vmem:[%s17228_s16 + $0x8] sm:$0xff]   ;;  %v15687_v10 = vld [vmem:[%s17228_s16 + $0x10] sm:$0xff]  }
  0x14   : > { %6878 = vmatprep.subr.bf16.mxu0 %v17156_v4  ;;  %7122 = vmatprep.subr.bf16.mxu1 %v17156_v4  ;;  %v15688_v13 = vld [vmem:[%s17228_s16 + $0x18] sm:$0xff]   ;;  %v15689_v14 = vld [vmem:[%s17228_s16 + $0x20] sm:$0xff]   ;;  %v15690_v15 = vld [vmem:[%s17228_s16 + $0x28] sm:$0xff]   ;;  %s21223_s13 = scalar_lea.vmem %s21257_s7, %s15673_s11 }
  0x15   : > { %15188 = vmatprep.mubr.msk.bf16.mxu0 %vm491_vm1, %v15685_v8  ;;  %v15691_v16 = vld [vmem:[%s17228_s16 + $0x30] sm:$0xff]   ;;  %v15692_v17 = vld [vmem:[%s17228_s16 + $0x38] sm:$0xff]   ;;  %v15693_v18 = vld [vmem:[%s17228_s16 + $0x40] sm:$0xff]  }
  0x16   : > { %15189 = vmatmul.mubr.msk.bf16.vlgmr.msra.gmra.mrb[0].mxu0 %vm491_vm1, %v15686_v9  ;;  %v15694_v19 = vld [vmem:[%s17228_s16 + $0x48] sm:$0xff]   ;;  %v15695_v20 = vld [vmem:[%s17228_s16 + $0x50] sm:$0xff]   ;;  %v15696_v21 = vld [vmem:[%s17228_s16 + $0x58] sm:$0xff]  }
  0x17   : > { %7123 = vmatpush1.bf16.msra.mxu1 %v15717_v7  ;;  %15192 = vmatprep.mubr.msk.bf16.mxu0 %vm491_vm1, %v15687_v10  ;;  %v15697_v22 = vld [vmem:[%s17228_s16 + $0x60] sm:$0xff]   ;;  %v15698_v23 = vld [vmem:[%s17228_s16 + $0x68] sm:$0xff]   ;;  %v15699_v24 = vld [vmem:[%s17228_s16 + $0x70] sm:$0xff]  }
  0x18   : > { %6879 = vmatpush1.bf16.msra.mxu0 %v15714_v6  ;;  %7124 = vmatprep.subr.bf16.mxu1 %v17156_v4  ;;  %v15700_v25 = vld [vmem:[%s17228_s16 + $0x78] sm:$0xff]   ;;  %v15701_v26 = vld [vmem:[%s17228_s16 + $0x80] sm:$0xff]   ;;  %v15702_v27 = vld [vmem:[%s17228_s16 + $0x88] sm:$0xff]  }
  0x19   : > { %6880 = vmatprep.subr.bf16.mxu0 %v17156_v4  ;;  %v15703_v28 = vld [vmem:[%s17228_s16 + $0x90] sm:$0xff]   ;;  %v15704_v29 = vld [vmem:[%s17228_s16 + $0x98] sm:$0xff]   ;;  %v15705_v30 = vld [vmem:[%s17228_s16 + $0xa0] sm:$0xff]  }
  0x1a   : > { %v15706_v31 = vld [vmem:[%s17228_s16 + $0xa8] sm:$0xff]   ;;  %v15707_v32 = vld [vmem:[%s17228_s16 + $0xb0] sm:$0xff]   ;;  %v15708_v34 = vld [vmem:[%s17228_s16 + $0xb8] sm:$0xff]  }
  0x1b   : > { %7125 = vmatpush1.bf16.msra.mxu1 %v15719_v33  ;;  %v15709_v35 = vld [vmem:[%s17228_s16 + $0xc0] sm:$0xff]   ;;  %v15710_v40 = vld [vmem:[%s17228_s16 + $0xc8] sm:$0xff]   ;;  %v15711_v41 = vld [vmem:[%s17228_s16 + $0xd0] sm:$0xff]  }
  0x1c   : > { %6881 = vmatpush1.bf16.msra.mxu0 %v15716_v11  ;;  %7126 = vmatprep.subr.bf16.mxu1 %v17156_v4  ;;  %v15726_v44 = vld [vmem:[%s21252_s2 + $0x30] sm:$0xff]   ;;  %v15712_v46 = vld [vmem:[%s17228_s16 + $0xd8] sm:$0xff]   ;;  %v15730_v49 = vld [vmem:[%s21252_s2 + $0x40] sm:$0xff]  }
  0x1d   : > { %6882 = vmatprep.subr.bf16.mxu0 %v17156_v4  ;;  %v15728_v47 = vld [vmem:[%s21252_s2 + $0x38] sm:$0xff]   ;;  %v15731_v50 = vld [vmem:[%s21252_s2 + $0xc8] sm:$0xff]   ;;  %v15733_v52 = vld [vmem:[%s21252_s2 + $0xd0] sm:$0xff]  }
  0x1e   : > { %15193 = vmatmul.mubr.msk.bf16.gmra.mrb[4].mxu0 %vm491_vm1, %v15688_v13  ;;  %v15732_v51 = vld [vmem:[%s21252_s2 + $0x48] sm:$0xff]   ;;  %v15734_v53 = vld [vmem:[%s21252_s2 + $0x50] sm:$0xff]   ;;  %v15735_v54 = vld [vmem:[%s21252_s2 + $0xd8] sm:$0xff]  }
  0x1f   : > { %15196 = vmatprep.mubr.msk.bf16.mxu0 %vm491_vm1, %v15689_v14  ;;  %7127 = vmatpush1.bf16.msra.mxu1 %v15721_v37  ;;  %v15736_v55 = vld [vmem:[%s21252_s2 + $0x58] sm:$0xff]   ;;  %v15737_v56 = vld [vmem:[%s21252_s2 + $0xe0] sm:$0xff]   ;;  %v15739_v58 = vld [vmem:[%s21252_s2 + $0xe8] sm:$0xff]  }
  0x20   : > { %6883 = vmatpush1.bf16.msra.mxu0 %v15718_v12  ;;  %7128 = vmatprep.subr.bf16.mxu1 %v17156_v4  ;;  %v15738_v57 = vld [vmem:[%s21252_s2 + $0x60] sm:$0xff]   ;;  %v15740_v59 = vld [vmem:[%s21252_s2 + $0x68] sm:$0xff]   ;;  %v15741_v60 = vld [vmem:[%s21252_s2 + $0xf0] sm:$0xff]  }
  0x21   : > { %6884 = vmatprep.subr.bf16.mxu0 %v17156_v4  ;;  %v15742_v61 = vld [vmem:[%s21252_s2 + $0x70] sm:$0xff]   ;;  %v15743_v62 = vld [vmem:[%s21252_s2 + $0xf8] sm:$0xff]   ;;  %v17407_v0 = vld [vmem:[%s21255_s5] ss:$0 sm:$0xff] }
  0x22   : > { %v15744_v63 = vld [vmem:[%s21252_s2 + $0x78] sm:$0xff]   ;;  %v17412_v2 = vld [vmem:[%s21256_s6] ss:$0 sm:$0xff] }
  0x23   : > { %7129 = vmatpush1.bf16.msra.mxu1 %v15723_v39 }
  0x24   : > { %6885 = vmatpush1.bf16.msra.mxu0 %v15720_v36  ;;  %7130 = vmatprep.subr.bf16.mxu1 %v17156_v4 }
  0x25   : > { %6886 = vmatprep.subr.bf16.mxu0 %v17156_v4 }
  0x26   : > { %15197 = vmatmul.mubr.msk.bf16.gmra.mrb[8].mxu0 %vm491_vm1, %v15690_v15 }
  0x27   : > { %15200 = vmatprep.mubr.msk.bf16.mxu0 %vm491_vm1, %v15691_v16  ;;  %7131 = vmatpush1.bf16.msra.mxu1 %v15725_v43 }
  0x28   : > { %6887 = vmatpush1.bf16.msra.mxu0 %v15722_v38  ;;  %7132 = vmatprep.subr.bf16.mxu1 %v17156_v4 }
  0x29   : > { %6888 = vmatprep.subr.bf16.mxu0 %v17156_v4 }
  0x2b   : > { %7133 = vmatpush1.bf16.msra.mxu1 %v15727_v45 }
  0x2c   : > { %6889 = vmatpush1.bf16.msra.mxu0 %v15724_v42  ;;  %7134 = vmatprep.subr.bf16.mxu1 %v17156_v4 }
  0x2d   : > { %6890 = vmatprep.subr.bf16.mxu0 %v17156_v4 }
  0x2e   : > { %15201 = vmatmul.mubr.msk.bf16.gmra.mrb[12].mxu0 %vm491_vm1, %v15692_v17 }
  0x2f   : > { %15204 = vmatprep.mubr.msk.bf16.mxu0 %vm491_vm1, %v15693_v18  ;;  %7135 = vmatpush1.bf16.msra.mxu1 %v15729_v48 }
  0x30   : > { %6891 = vmatpush1.bf16.msra.mxu0 %v15726_v44  ;;  %7136 = vmatprep.subr.bf16.mxu1 %v17156_v4 }
  0x31   : > { %6892 = vmatprep.subr.bf16.mxu0 %v17156_v4 }
  0x33   : > { %7137 = vmatpush1.bf16.msra.mxu1 %v15731_v50 }
  0x34   : > { %6893 = vmatpush1.bf16.msra.mxu0 %v15728_v47  ;;  %7138 = vmatprep.subr.bf16.mxu1 %v17156_v4 }
  0x35   : > { %6894 = vmatprep.subr.bf16.mxu0 %v17156_v4 }
  0x36   : > { %15205 = vmatmul.mubr.msk.bf16.gmra.mrb[16].mxu0 %vm491_vm1, %v15694_v19 }
  0x37   : > { %15208 = vmatprep.mubr.msk.bf16.mxu0 %vm491_vm1, %v15695_v20  ;;  %7139 = vmatpush1.bf16.msra.mxu1 %v15733_v52 }
  0x38   : > { %6895 = vmatpush1.bf16.msra.mxu0 %v15730_v49  ;;  %7140 = vmatprep.subr.bf16.mxu1 %v17156_v4 }
  0x39   : > { %6896 = vmatprep.subr.bf16.mxu0 %v17156_v4 }
  0x3b   : > { %7141 = vmatpush1.bf16.msra.mxu1 %v15735_v54 }
  0x3c   : > { %6897 = vmatpush1.bf16.msra.mxu0 %v15732_v51  ;;  %7142 = vmatprep.subr.bf16.mxu1 %v17156_v4 }
  0x3d   : > { %6898 = vmatprep.subr.bf16.mxu0 %v17156_v4 }
  0x3e   : > { %15209 = vmatmul.mubr.msk.bf16.gmra.mrb[20].mxu0 %vm491_vm1, %v15696_v21 }
  0x3f   : > { %15212 = vmatprep.mubr.msk.bf16.mxu0 %vm491_vm1, %v15697_v22  ;;  %7143 = vmatpush1.bf16.msra.mxu1 %v15737_v56 }
  0x40   : > { %6899 = vmatpush1.bf16.msra.mxu0 %v15734_v53  ;;  %7144 = vmatprep.subr.bf16.mxu1 %v17156_v4 }
  0x41   : > { %6900 = vmatprep.subr.bf16.mxu0 %v17156_v4 }
  0x43   : > { %7145 = vmatpush1.bf16.msra.mxu1 %v15739_v58 }
  0x44   : > { %6901 = vmatpush1.bf16.msra.mxu0 %v15736_v55  ;;  %7146 = vmatprep.subr.bf16.mxu1 %v17156_v4 }
  0x45   : > { %6902 = vmatprep.subr.bf16.mxu0 %v17156_v4 }
  0x46   : > { %15213 = vmatmul.mubr.msk.bf16.gmra.mrb[24].mxu0 %vm491_vm1, %v15698_v23 }
  0x47   : > { %15216 = vmatprep.mubr.msk.bf16.mxu0 %vm491_vm1, %v15699_v24  ;;  %7147 = vmatpush1.bf16.msra.mxu1 %v15741_v60 }
  0x48   : > { %6903 = vmatpush1.bf16.msra.mxu0 %v15738_v57  ;;  %7148 = vmatprep.subr.bf16.mxu1 %v17156_v4 }
  0x49   : > { %6904 = vmatprep.subr.bf16.mxu0 %v17156_v4 }
  0x4b   : > { %7149 = vmatpush1.bf16.msra.mxu1 %v15743_v62 }
  0x4c   : > { %6905 = vmatpush1.bf16.msra.mxu0 %v15740_v59  ;;  %7358 = vmatprep.subr.bf16.mxu1 %v17156_v4 }
  0x4d   : > { %6906 = vmatprep.subr.bf16.mxu0 %v17156_v4 }
  0x4e   : > { %15217 = vmatmul.mubr.msk.bf16.gmra.mrb[28].mxu0 %vm491_vm1, %v15700_v25 }
  0x4f   : > { %15220 = vmatprep.mubr.msk.bf16.mxu0 %vm491_vm1, %v15701_v26 }
  0x50   : > { %6907 = vmatpush1.bf16.msra.mxu0 %v15742_v61 }
  0x51   : > { %6908 = vmatprep.subr.bf16.mxu0 %v17156_v4 }
  0x54   : > { %6909 = vmatpush1.bf16.msra.mxu0 %v15744_v63 }
  0x56   : > { %15221 = vmatmul.mubr.msk.bf16.gmra.mrb[32].mxu0 %vm491_vm1, %v15702_v27 }
  0x57   : > { %15224 = vmatprep.mubr.msk.bf16.mxu0 %vm491_vm1, %v15703_v28 }
  0x5e   : > { %15225 = vmatmul.mubr.msk.bf16.gmra.mrb[36].mxu0 %vm491_vm1, %v15704_v29 }
  0x5f   : > { %15228 = vmatprep.mubr.msk.bf16.mxu0 %vm491_vm1, %v15705_v30 }
  0x66   : > { %15229 = vmatmul.mubr.msk.bf16.gmra.mrb[40].mxu0 %vm491_vm1, %v15706_v31 }
  0x67   : > { %15232 = vmatprep.mubr.msk.bf16.mxu0 %vm491_vm1, %v15707_v32 }
  0x6e   : > { %15233 = vmatmul.mubr.msk.bf16.gmra.mrb[44].mxu0 %vm491_vm1, %v15708_v34 }
  0x6f   : > { %15236 = vmatprep.mubr.msk.bf16.mxu0 %vm491_vm1, %v15709_v35 }
  0x76   : > { %15237 = vmatmul.mubr.msk.bf16.gmra.mrb[48].mxu0 %vm491_vm1, %v15710_v40 }
  0x77   : > { %15240 = vmatprep.mubr.msk.bf16.mxu0 %vm491_vm1, %v15711_v41 }
  0x7e   : > { %15241 = vmatmul.mubr.msk.bf16.gmra.mrb[52].mxu0 %vm491_vm1, %v15712_v46 }
  0xe9   : > { %v15190_v1 = vpop.f32.mrb[0].mxu0 }
  0xea   : > { %v845_v3 = vmul.f32 %v15190_v1, %v17407_v0  ;;  %v614_v5 = vpop.f32.mrb[1].mxu0 }
  0xeb   : > { %v843_v6 = vmul.f32 %v17407_v0, %v614_v5  ;;  %v15191_v7 = vpop.f32.mrb[2].mxu0 }
  0xec   : > { %v17417_v8 = vadd.f32 %v17412_v2, %v845_v3  ;;  %v846_v9 = vmul.f32 %v15191_v7, %v17407_v0  ;;  %v617_v10 = vpop.f32.mrb[3].mxu0 }
  0xed   : > { %v17421_v11 = vadd.f32 %v17412_v2, %v843_v6  ;;  %v844_v12 = vmul.f32 %v17407_v0, %v617_v10 }
  0xee   : > { %v1017_v13 = vmin.f32 %v17417_v8, 0.0  ;;  %v17426_v14 = vadd.f32 %v17412_v2, %v846_v9  ;;  %vm961_vm2 = vcmp.gt.f32.partialorder %v17417_v8, 0.0 }
  0xef   : > { %v1015_v15 = vmin.f32 %v17421_v11, 0.0  ;;  %v17430_v16 = vadd.f32 %v17412_v2, %v844_v12  ;;  %vm959_vm3 = vcmp.gt.f32.partialorder %v17421_v11, 0.0 }
  0xf0   : > { %v1075_v17 = vmul.f32 1.442695, %v1017_v13  ;;  %v1018_v18 = vmin.f32 %v17426_v14, 0.0  ;;  %vm962_vm4 = vcmp.gt.f32.partialorder %v17426_v14, 0.0 }
  0xf1   : > { %v1071_v19 = vmul.f32 1.442695, %v1015_v15  ;;  %v1016_v20 = vmin.f32 %v17430_v16, 0.0  ;;  %v15194_v21 = vpop.f32.mrb[4].mxu0  ;;  %vm960_vm5 = vcmp.gt.f32.partialorder %v17430_v16, 0.0 }
  0xf2   : > { %16856 = vpow2.f32 %v1075_v17  ;;  %v1077_v22 = vmul.f32 1.442695, %v1018_v18  ;;  %v849_v23 = vmul.f32 %v15194_v21, %v17407_v0  ;;  %v630_v24 = vpop.f32.mrb[5].mxu0 }
  0xf3   : > { %16858 = vpow2.f32 %v1071_v19  ;;  %v1073_v25 = vmul.f32 1.442695, %v1016_v20  ;;  %v847_v26 = vmul.f32 %v17407_v0, %v630_v24  ;;  %v15195_v27 = vpop.f32.mrb[6].mxu0 }
  0xf4   : > { %16860 = vpow2.f32 %v1077_v22  ;;  %v17437_v28 = vadd.f32 %v17412_v2, %v849_v23  ;;  %v850_v29 = vmul.f32 %v15195_v27, %v17407_v0  ;;  %v633_v30 = vpop.f32.mrb[7].mxu0 }
  0xf5   : > { %16862 = vpow2.f32 %v1073_v25  ;;  %v17441_v31 = vadd.f32 %v17412_v2, %v847_v26  ;;  %v848_v32 = vmul.f32 %v17407_v0, %v633_v30 }
  0xf6   : > { %v1021_v33 = vmin.f32 %v17437_v28, 0.0  ;;  %v17446_v34 = vadd.f32 %v17412_v2, %v850_v29  ;;  %vm965_vm6 = vcmp.gt.f32.partialorder %v17437_v28, 0.0 }
  0xf7   : > { %v1019_v35 = vmin.f32 %v17441_v31, 0.0  ;;  %v17450_v36 = vadd.f32 %v17412_v2, %v848_v32  ;;  %vm963_vm7 = vcmp.gt.f32.partialorder %v17441_v31, 0.0 }
  0xf8   : > { %v1083_v37 = vmul.f32 1.442695, %v1021_v33  ;;  %v1022_v38 = vmin.f32 %v17446_v34, 0.0  ;;  %vm966_vm8 = vcmp.gt.f32.partialorder %v17446_v34, 0.0 }
  0xf9   : > { %v1079_v39 = vmul.f32 1.442695, %v1019_v35  ;;  %v1020_v40 = vmin.f32 %v17450_v36, 0.0  ;;  %v15198_v41 = vpop.f32.mrb[8].mxu0  ;;  %vm964_vm9 = vcmp.gt.f32.partialorder %v17450_v36, 0.0 }
  0xfa   : > { %16864 = vpow2.f32 %v1083_v37  ;;  %v1085_v42 = vmul.f32 1.442695, %v1022_v38  ;;  %v853_v43 = vmul.f32 %v15198_v41, %v17407_v0  ;;  %v646_v44 = vpop.f32.mrb[9].mxu0 }
  0xfb   : > { %16866 = vpow2.f32 %v1079_v39  ;;  %v1081_v45 = vmul.f32 1.442695, %v1020_v40  ;;  %v851_v46 = vmul.f32 %v17407_v0, %v646_v44  ;;  %v15199_v47 = vpop.f32.mrb[10].mxu0 }
  0xfc   : > { %v16857_v48 = vpop.eup %16856  ;;  %16868 = vpow2.f32 %v1085_v42  ;;  %v17458_v49 = vadd.f32 %v17412_v2, %v853_v43  ;;  %v854_v50 = vmul.f32 %v15199_v47, %v17407_v0  ;;  %v649_v51 = vpop.f32.mrb[11].mxu0 }
  0xfd   : > { %v16859_v52 = vpop.eup %16858  ;;  %v13360_v53 = vadd.f32 -1.0, %v16857_v48  ;;  %16870 = vpow2.f32 %v1081_v45  ;;  %v17462_v54 = vadd.f32 %v17412_v2, %v851_v46  ;;  %v852_v55 = vmul.f32 %v17407_v0, %v649_v51 }
  0xfe   : > { %v16861_v56 = vpop.eup %16860  ;;  %v13358_v57 = vadd.f32 -1.0, %v16859_v52  ;;  %v1025_v58 = vmin.f32 %v17458_v49, 0.0  ;;  %v17468_v59 = vadd.f32 %v17412_v2, %v854_v50  ;;  %vm969_vm10 = vcmp.gt.f32.partialorder %v17458_v49, 0.0 }
  0xff   : > { %v16863_v60 = vpop.eup %16862  ;;  %v13361_v61 = vadd.f32 -1.0, %v16861_v56  ;;  %v1023_v62 = vmin.f32 %v17462_v54, 0.0  ;;  %v1241_v63 = vsel %vm961_vm2, %v17417_v8, %v13360_v53  ;;  %v17484_v10 = vadd.f32 %v17412_v2, %v852_v55 }
 0x100   : > { %v17477_v1 = vsel %vm959_vm3, %v17421_v11, %v13358_v57  ;;  %v13359_v3 = vadd.f32 -1.0, %v16863_v60  ;;  %v1091_v5 = vmul.f32 1.442695, %v1025_v58  ;;  %v1026_v9 = vmin.f32 %v17468_v59, 0.0 }
 0x101   : > { %v17480_v6 = vsel %vm962_vm4, %v17426_v14, %v13361_v61  ;;  %v1087_v7 = vmul.f32 1.442695, %v1023_v62  ;;  %v15202_v12 = vpop.f32.mrb[12].mxu0  ;;  %v1024_v20 = vmin.f32 %v17484_v10, 0.0  ;;  %v17501_v26 = vpack.c.bf16 %v1241_v63, %v1241_v63 }
 0x102   : > { %v1296_v13 = vpack.c.bf16 %v17480_v6, %v1241_v63  ;;  %v17488_v15 = vsel %vm960_vm5, %v17430_v16, %v13359_v3  ;;  %16872 = vpow2.f32 %v1091_v5  ;;  %v857_v8 = vmul.f32 %v15202_v12, %v17407_v0  ;;  %v662_v11 = vpop.f32.mrb[13].mxu0 }
 0x103   : > { %v1295_v14 = vpack.c.bf16 %v17488_v15, %v17477_v1  ;;  %16874 = vpow2.f32 %v1087_v7  ;;  %v1093_v17 = vmul.f32 1.442695, %v1026_v9  ;;  %v15203_v18 = vpop.f32.mrb[14].mxu0  ;;  %v855_v16 = vmul.f32 %v17407_v0, %v662_v11  ;;  %2228 = vst [vmem:[#allocation5 + $0x30] sm:$0xf] %v17501_v26 }
 0x104   : > { %v16865_v19 = vpop.eup %16864  ;;  %1324 = vst [vmem:[#allocation2 + $0x8] sm:$0xff] %v1296_v13  ;;  %v17496_v21 = vadd.f32 %v17412_v2, %v857_v8  ;;  %v858_v22 = vmul.f32 %v15203_v18, %v17407_v0  ;;  %v665_v23 = vpop.f32.mrb[15].mxu0  ;;  %v1089_v30 = vmul.f32 1.442695, %v1024_v20  ;;  %1558 = vst [vmem:[#allocation5 + $0x50] sm:$0xf] %v17501_v26  ;;  %v17547_v60 = vpack.c.bf16 %v17480_v6, %v17480_v6 }
 0x105   : > { %v16867_v24 = vpop.eup %16866  ;;  %1323 = vst [vmem:[#allocation2] sm:$0xff] %v1295_v14  ;;  %v13364_v25 = vadd.f32 -1.0, %v16865_v19  ;;  %16876 = vpow2.f32 %v1093_v17  ;;  %v17506_v37 = vadd.f32 %v17412_v2, %v855_v16  ;;  %v856_v39 = vmul.f32 %v17407_v0, %v665_v23 }
 0x106   : > { %v16869_v27 = vpop.eup %16868  ;;  %v13362_v29 = vadd.f32 -1.0, %v16867_v24  ;;  %v1029_v32 = vmin.f32 %v17496_v21, 0.0  ;;  %v17509_v38 = vadd.f32 %v17412_v2, %v858_v22  ;;  %16878 = vpow2.f32 %v1089_v30  ;;  %2229 = vst [vmem:[#allocation5 + $0x58] sm:$0xf] %v17547_v60  ;;  %1559 = vst [vmem:[#allocation5 + $0x78] sm:$0xf] %v17547_v60 }
 0x107   : > { %v16871_v33 = vpop.eup %16870  ;;  %v13365_v35 = vadd.f32 -1.0, %v16869_v27  ;;  %v17518_v42 = vsel %vm965_vm6, %v17437_v28, %v13364_v25  ;;  %v1027_v45 = vmin.f32 %v17506_v37, 0.0  ;;  %vm967_vm11 = vcmp.gt.f32.partialorder %v17462_v54, 0.0 }
 0x108   : > { %v13363_v40 = vadd.f32 -1.0, %v16871_v33  ;;  %v1099_v41 = vmul.f32 1.442695, %v1029_v32  ;;  %v17523_v43 = vsel %vm963_vm7, %v17441_v31, %v13362_v29  ;;  %v1030_v28 = vmin.f32 %v17509_v38, 0.0 }
 0x109   : > { %v17528_v44 = vsel %vm966_vm8, %v17446_v34, %v13365_v35  ;;  %v15206_v46 = vpop.f32.mrb[16].mxu0  ;;  %v1095_v51 = vmul.f32 1.442695, %v1027_v45  ;;  %v17540_v34 = vadd.f32 %v17412_v2, %v856_v39  ;;  %vm970_vm12 = vcmp.gt.f32.partialorder %v17468_v59, 0.0 }
 0x10a   : > { %v1298_v47 = vpack.c.bf16 %v17528_v44, %v17518_v42  ;;  %v17534_v48 = vsel %vm964_vm9, %v17450_v36, %v13363_v40  ;;  %16880 = vpow2.f32 %v1099_v41  ;;  %v678_v50 = vpop.f32.mrb[17].mxu0  ;;  %v861_v52 = vmul.f32 %v15206_v46, %v17407_v0 }
 0x10b   : > { %v1297_v31 = vpack.c.bf16 %v17534_v48, %v17523_v43  ;;  %v15207_v53 = vpop.f32.mrb[18].mxu0  ;;  %v1101_v56 = vmul.f32 1.442695, %v1030_v28  ;;  %v859_v36 = vmul.f32 %v17407_v0, %v678_v50  ;;  %16882 = vpow2.f32 %v1095_v51 }
 0x10c   : > { %v16873_v55 = vpop.eup %16872  ;;  %1326 = vst [vmem:[#allocation2 + $0x18] sm:$0xff] %v1298_v47  ;;  %v862_v57 = vmul.f32 %v15207_v53, %v17407_v0  ;;  %v681_v58 = vpop.f32.mrb[19].mxu0  ;;  %v1028_v63 = vmin.f32 %v17540_v34, 0.0  ;;  %v15745_v3 = vld [vmem:[#allocation2 + $0x4] ss:$0 sps:$4 sm:$0xff]   ;;  %v17552_v5 = vadd.f32 %v17412_v2, %v861_v52  ;;  %vm968_vm13 = vcmp.gt.f32.partialorder %v17484_v10, 0.0 }
 0x10d   : > { %v16875_v61 = vpop.eup %16874  ;;  %1325 = vst [vmem:[#allocation2 + $0x10] sm:$0xff] %v1297_v31  ;;  %v13368_v62 = vadd.f32 -1.0, %v16873_v55  ;;  %16884 = vpow2.f32 %v1101_v56  ;;  %v17555_v7 = vadd.f32 %v17412_v2, %v859_v36  ;;  %v860_v13 = vmul.f32 %v17407_v0, %v681_v58  ;;  %2227 = vst [vmem:[#allocation5 + $0x8] sm:$0xf] %v15745_v3 }
 0x10e   : > { %v1097_v9 = vmul.f32 1.442695, %v1028_v63  ;;  %v17561_v12 = vadd.f32 %v17412_v2, %v862_v57  ;;  %v1033_v11 = vmin.f32 %v17552_v5, 0.0  ;;  %v13366_v17 = vadd.f32 -1.0, %v16875_v61 }
 0x10f   : > { %v16877_v6 = vpop.eup %16876  ;;  %v17570_v14 = vsel %vm969_vm10, %v17458_v49, %v13368_v62  ;;  %v1031_v18 = vmin.f32 %v17555_v7, 0.0  ;;  %vm973_vm14 = vcmp.gt.f32.partialorder %v17496_v21, 0.0  ;;  %v17579_v24 = vadd.f32 %v17412_v2, %v860_v13 }
 0x110   : > { %v13369_v8 = vadd.f32 -1.0, %v16877_v6  ;;  %16886 = vpow2.f32 %v1097_v9  ;;  %v16879_v20 = vpop.eup %16878  ;;  %v1107_v22 = vmul.f32 1.442695, %v1033_v11  ;;  %v1034_v23 = vmin.f32 %v17561_v12, 0.0 }
 0x111   : > { %v15210_v19 = vpop.f32.mrb[20].mxu0  ;;  %v13367_v27 = vadd.f32 -1.0, %v16879_v20  ;;  %vm971_vm15 = vcmp.gt.f32.partialorder %v17506_v37, 0.0  ;;  %v1103_v29 = vmul.f32 1.442695, %v1031_v18  ;;  %vm974_vm0 = vcmp.gt.f32.partialorder %v17509_v38, 0.0 }
 0x112   : > { %v17574_v16 = vsel %vm970_vm12, %v17468_v59, %v13369_v8  ;;  %v694_v25 = vpop.f32.mrb[21].mxu0  ;;  %v865_v30 = vmul.f32 %v15210_v19, %v17407_v0  ;;  %16888 = vpow2.f32 %v1107_v22  ;;  %v1109_v33 = vmul.f32 1.442695, %v1034_v23 }
 0x113   : > { %v1300_v49 = vpack.c.bf16 %v17574_v16, %v17570_v14  ;;  %v15211_v59 = vpop.f32.mrb[22].mxu0  ;;  %v1032_v35 = vmin.f32 %v17579_v24, 0.0  ;;  %v17590_v40 = vsel %vm967_vm11, %v17462_v54, %v13366_v17  ;;  %v17595_v41 = vsel %vm968_vm13, %v17484_v10, %v13367_v27 }
 0x114   : > { %v16881_v32 = vpop.eup %16880  ;;  %v697_v39 = vpop.f32.mrb[23].mxu0  ;;  %vm972_vm1 = vcmp.gt.f32.partialorder %v17540_v34, 0.0  ;;  %16890 = vpow2.f32 %v1103_v29  ;;  %v17599_v45 = vadd.f32 %v17412_v2, %v865_v30  ;;  %v1299_v46 = vpack.c.bf16 %v17595_v41, %v17590_v40  ;;  %v15746_v29 = vld [vmem:[#allocation2 + $0x4] ss:$0 sps:$4 sm:$0xcc]  }
 0x115   : > { %1328 = vst [vmem:[#allocation2 + $0x28] sm:$0xff] %v1300_v49  ;;  %16892 = vpow2.f32 %v1109_v33  ;;  %v1105_v47 = vmul.f32 1.442695, %v1032_v35  ;;  %v863_v54 = vmul.f32 %v17407_v0, %v694_v25  ;;  %v16883_v28 = vpop.eup %16882  ;;  %v13372_v50 = vadd.f32 -1.0, %v16881_v32 }
 0x116   : > { %vm977_vm2 = vcmp.gt.f32.partialorder %v17552_v5, 0.0  ;;  %v1037_v10 = vmin.f32 %v17599_v45, 0.0  ;;  %v866_v31 = vmul.f32 %v15211_v59, %v17407_v0  ;;  %1327 = vst [vmem:[#allocation2 + $0x20] sm:$0xff] %v1299_v46  ;;  %v13370_v52 = vadd.f32 -1.0, %v16883_v28 }
 0x117   : > { %v16885_v51 = vpop.eup %16884  ;;  %16894 = vpow2.f32 %v1105_v47  ;;  %v17608_v53 = vadd.f32 %v17412_v2, %v863_v54  ;;  %v864_v55 = vmul.f32 %v17407_v0, %v697_v39  ;;  %vm975_vm3 = vcmp.gt.f32.partialorder %v17555_v7, 0.0 }
 0x118   : > { %v13373_v56 = vadd.f32 -1.0, %v16885_v51  ;;  %v1115_v36 = vmul.f32 1.442695, %v1037_v10  ;;  %v17613_v57 = vadd.f32 %v17412_v2, %v866_v31  ;;  %vm978_vm4 = vcmp.gt.f32.partialorder %v17561_v12, 0.0 }
 0x119   : > { %v15214_v58 = vpop.f32.mrb[24].mxu0  ;;  %vm976_vm5 = vcmp.gt.f32.partialorder %v17579_v24, 0.0  ;;  %v1035_v61 = vmin.f32 %v17608_v53, 0.0  ;;  %v17619_v62 = vadd.f32 %v17412_v2, %v864_v55  ;;  %v1253_v6 = vsel %vm973_vm14, %v17496_v21, %v13372_v50 }
 0x11a   : > { %v710_v63 = vpop.f32.mrb[25].mxu0  ;;  %v16887_v3 = vpop.eup %16886  ;;  %v1254_v9 = vsel %vm974_vm0, %v17509_v38, %v13373_v56  ;;  %16896 = vpow2.f32 %v1115_v36  ;;  %v1038_v13 = vmin.f32 %v17613_v57, 0.0  ;;  %vm1763_vm6 = vcmask 1041408  }
 0x11b   : > { %v15215_v8 = vpop.f32.mrb[26].mxu0  ;;  %vm1764_vm7 = vcmask 1045508   ;;  %v1251_v11 = vsel %vm971_vm15, %v17506_v37, %v13370_v52  ;;  %v1302_v17 = vpack.c.bf16 %v1254_v9, %v1253_v6  ;;  %v13371_v18 = vadd.f32 -1.0, %v16887_v3 }
 0x11c   : > { %v1111_v19 = vmul.f32 1.442695, %v1035_v61  ;;  %v713_v20 = vpop.f32.mrb[27].mxu0  ;;  %vm981_vm8 = vcmp.gt.f32.partialorder %v17599_v45, 0.0  ;;  %v1117_v21 = vmul.f32 1.442695, %v1038_v13  ;;  %v869_v38 = vmul.f32 %v15214_v58, %v17407_v0  ;;  %v16889_v25 = vpop.eup %16888  ;;  %vm17684_vm12 = vmor %vm1763_vm6, %vm1764_vm7 }
 0x11d   : > { %v1036_v22 = vmin.f32 %v17619_v62, 0.0  ;;  %v867_v23 = vmul.f32 %v17407_v0, %v710_v63  ;;  %1330 = vst [vmem:[#allocation2 + $0x38] sm:$0xff] %v1302_v17  ;;  %v1252_v49 = vsel %vm972_vm1, %v17540_v34, %v13371_v18  ;;  %v870_v37 = vmul.f32 %v15215_v8, %v17407_v0 }
 0x11e   : > { %16898 = vpow2.f32 %v1111_v19  ;;  %v868_v27 = vmul.f32 %v17407_v0, %v713_v20  ;;  %v16891_v30 = vpop.eup %16890  ;;  %v1301_v59 = vpack.c.bf16 %v1252_v49, %v1251_v11  ;;  %v13376_v32 = vadd.f32 -1.0, %v16889_v25  ;;  %v16514_v20 = vld [vmem:[%s21253_s3 + $0x1b8] sm:$0xff]  }
 0x11f   : > { %16900 = vpow2.f32 %v1117_v21  ;;  %v1113_v33 = vmul.f32 1.442695, %v1036_v22  ;;  %v16893_v35 = vpop.eup %16892  ;;  %v13374_v39 = vadd.f32 -1.0, %v16891_v30  ;;  %v17641_v46 = vadd.f32 %v17412_v2, %v869_v38  ;;  %v1607_v21 = vld [vmem:[#allocation2] sm:$0xfc] }
 0x120   : > { %v17644_v47 = vadd.f32 %v17412_v2, %v867_v23  ;;  %v17647_v34 = vadd.f32 %v17412_v2, %v870_v37  ;;  %1329 = vst [vmem:[#allocation2 + $0x30] sm:$0xff] %v1301_v59  ;;  %v1257_v54 = vsel %vm977_vm2, %v17552_v5, %v13376_v32  ;;  %v13377_v28 = vadd.f32 -1.0, %v16893_v35 }
 0x121   : > { %16902 = vpow2.f32 %v1113_v33  ;;  %v17653_v50 = vadd.f32 %v17412_v2, %v868_v27  ;;  %v17655_v10 = vpop.f32.mrb[28].mxu0  ;;  %v16895_v31 = vpop.eup %16894  ;;  %vm979_vm9 = vcmp.gt.f32.partialorder %v17608_v53, 0.0  ;;  %vm982_vm10 = vcmp.gt.f32.partialorder %v17613_v57, 0.0 }
 0x122   : > { %v1041_v51 = vmin.f32 %v17641_v46, 0.0  ;;  %v13621_v52 = vrot.slane %v15746_v29, 10  ;;  %v17660_v55 = vpop.f32.mrb[29].mxu0  ;;  %v1255_v5 = vsel %vm975_vm3, %v17555_v7, %v13374_v39  ;;  %v1258_v56 = vsel %vm978_vm4, %v17561_v12, %v13377_v28 }
 0x123   : > { %v13375_v36 = vadd.f32 -1.0, %v16895_v31  ;;  %v1039_v58 = vmin.f32 %v17644_v47, 0.0  ;;  %v17669_v61 = vpop.f32.mrb[30].mxu0  ;;  %v1304_v63 = vpack.c.bf16 %v1258_v56, %v1257_v54  ;;  %vm980_vm11 = vcmp.gt.f32.partialorder %v17619_v62, 0.0 }
 0x124   : > { %v1123_v3 = vmul.f32 1.442695, %v1041_v51  ;;  %v1042_v6 = vmin.f32 %v17647_v34, 0.0  ;;  %v17673_v9 = vpop.f32.mrb[31].mxu0  ;;  %v16897_v13 = vpop.eup %16896  ;;  %v1040_v12 = vmin.f32 %v17653_v50, 0.0  ;;  %v17680_v11 = vrot.slane %v17501_v26, 6 }
 0x125   : > { %v1256_v7 = vsel %vm976_vm5, %v17579_v24, %v13375_v36  ;;  %v1119_v8 = vmul.f32 1.442695, %v1039_v58  ;;  %1332 = vst [vmem:[#allocation2 + $0x48] sm:$0xff] %v1304_v63  ;;  %v13380_v18 = vadd.f32 -1.0, %v16897_v13  ;;  %vm985_vm13 = vcmp.gt.f32.partialorder %v17641_v46, 0.0 }
 0x126   : > { %v1303_v17 = vpack.c.bf16 %v1256_v7, %v1255_v5  ;;  %16904 = vpow2.f32 %v1123_v3  ;;  %v1125_v19 = vmul.f32 1.442695, %v1042_v6  ;;  %v1121_v24 = vmul.f32 1.442695, %v1040_v12 }
 0x127   : > { %16906 = vpow2.f32 %v1119_v8  ;;  %v2439_v22 = vsel %vm17684_vm12, %v13621_v52, %v17680_v11  ;;  %v2440_v26 = vrot.slane %v17680_v11, 4  ;;  %v1261_v23 = vsel %vm981_vm8, %v17599_v45, %v13380_v18 }
 0x128   : > { %v16899_v38 = vpop.eup %16898  ;;  %1331 = vst [vmem:[#allocation2 + $0x40] sm:$0xff] %v1303_v17  ;;  %16908 = vpow2.f32 %v1125_v19  ;;  %v2441_v25 = vrot.slane %v17547_v60, 6  ;;  %2641 = vst [vmem:[#allocation5 + $0xc] sm:$0xf] %v2439_v22  ;;  %v17138_v49 = vpack.c.bf16 %v17477_v1, %v17477_v1  ;;  %vm983_vm14 = vcmp.gt.f32.partialorder %v17644_v47, 0.0  ;;  %v15755_v17 = vld [vmem:[%s21252_s2 + $0x100] sm:$0xff]  }
 0x129   : > { %v16901_v37 = vpop.eup %16900  ;;  %v13378_v27 = vadd.f32 -1.0, %v16899_v38  ;;  %16910 = vpow2.f32 %v1121_v24  ;;  %v17139_v29 = vpack.c.bf16 %v17488_v15, %v17488_v15  ;;  %v13465_v30 = vcombine.low %v1607_v21, %v1607_v21  ;;  %v17702_v59 = vpop.f32.mrb[32].mxu0  ;;  %v15747_v24 = vld [vmem:[#allocation5 + $0x8] ss:$40 sps:$4 sm:$0xff]  }
 0x12a   : > { %v13381_v45 = vadd.f32 -1.0, %v16901_v37  ;;  %vm986_vm15 = vcmp.gt.f32.partialorder %v17647_v34, 0.0  ;;  %v2442_v60 = vsel %vm17684_vm12, %v2440_v26, %v2441_v25  ;;  %v2443_v32 = vrot.slane %v2441_v25, 4  ;;  %1556 = vst [vmem:[#allocation5] sm:$0xf] %v17138_v49  ;;  %v17707_v33 = vpop.f32.mrb[33].mxu0 }
 0x12b   : > { %v13466_v1 = vcombine.high %v1607_v21, %v1607_v21  ;;  %v16903_v35 = vpop.eup %16902  ;;  %v1259_v39 = vsel %vm979_vm9, %v17608_v53, %v13378_v27  ;;  %vm984_vm0 = vcmp.gt.f32.partialorder %v17653_v50, 0.0  ;;  %2642 = vst [vmem:[#allocation5 + $0x34] sm:$0xf] %v2442_v60  ;;  %1557 = vst [vmem:[#allocation5 + $0x28] sm:$0xf] %v17139_v29  ;;  %v13517_v15 = vrot.slane %v13465_v30, 10 }
 0x12c   : > { %v17140_v54 = vpack.c.bf16 %v17523_v43, %v17523_v43  ;;  %v17715_v28 = vpop.f32.mrb[34].mxu0  ;;  %v1262_v31 = vsel %vm982_vm10, %v17613_v57, %v13381_v45  ;;  %v13379_v51 = vadd.f32 -1.0, %v16903_v35  ;;  %v17141_v36 = vpack.c.bf16 %v17534_v48, %v17534_v48  ;;  %1973 = vst [vmem:[#allocation5 + $0x54] sm:$0xf] %v2442_v60 }
 0x12d   : > { %v1768_v52 = vrot.slane %v13466_v1, 6  ;;  %v17720_v5 = vpop.f32.mrb[35].mxu0  ;;  %v1306_v56 = vpack.c.bf16 %v1262_v31, %v1261_v23  ;;  %v873_v7 = vmul.f32 %v17655_v10, %v17407_v0  ;;  %v17142_v18 = vpack.c.bf16 %v17518_v42, %v17518_v42 }
 0x12e   : > { %v1777_v53 = vrot.slane %v17140_v54, 6  ;;  %2230 = vst [vmem:[#allocation5 + $0x80] sm:$0xf] %v17140_v54  ;;  %1560 = vst [vmem:[#allocation5 + $0xa0] sm:$0xf] %v17140_v54  ;;  %v1260_v43 = vsel %vm980_vm11, %v17619_v62, %v13379_v51  ;;  %v2447_v62 = vrot.slane %v17141_v36, 6  ;;  %v871_v23 = vmul.f32 %v17407_v0, %v17660_v55 }
 0x12f   : > { %v1769_v58 = vsel %vm17684_vm12, %v13517_v15, %v1768_v52  ;;  %v1770_v63 = vrot.slane %v1768_v52, 4  ;;  %1334 = vst [vmem:[#allocation2 + $0x58] sm:$0xff] %v1306_v56  ;;  %v1305_v57 = vpack.c.bf16 %v1260_v43, %v1259_v39  ;;  %1561 = vst [vmem:[#allocation5 + $0xc8] sm:$0xf] %v17141_v36  ;;  %v17750_v38 = vadd.f32 %v17412_v2, %v873_v7  ;;  %v16113_v15 = vld [vmem:[#allocation2 + $0xc] ss:$0 sps:$4 sm:$0xff]  }
 0x130   : > { %1971 = vst [vmem:[#allocation5 + $0x4] sm:$0xf] %v1769_v58  ;;  %v2445_v3 = vsel %vm17684_vm12, %v2443_v32, %v1777_v53  ;;  %v2446_v6 = vrot.slane %v1777_v53, 4  ;;  %2231 = vst [vmem:[#allocation5 + $0xa8] sm:$0xf] %v17141_v36  ;;  %v16905_v13 = vpop.eup %16904  ;;  %v1782_v49 = vrot.slane %v2447_v62, 4  ;;  %v17777_v39 = vadd.f32 %v17412_v2, %v871_v23 }
 0x131   : > { %v1772_v48 = vsel %vm17684_vm12, %v1770_v63, %v17680_v11  ;;  %2643 = vst [vmem:[#allocation5 + $0x5c] sm:$0xf] %v2445_v3  ;;  %v16907_v8 = vpop.eup %16906  ;;  %1333 = vst [vmem:[#allocation2 + $0x50] sm:$0xff] %v1305_v57  ;;  %v13384_v12 = vadd.f32 -1.0, %v16905_v13  ;;  %v17743_v11 = vpack.c.bf16 %v17528_v44, %v17528_v44  ;;  %v17745_v19 = vpop.f32.mrb[36].mxu0  ;;  %v1045_v29 = vmin.f32 %v17750_v38, 0.0 }
 0x132   : > { %1972 = vst [vmem:[#allocation5 + $0x2c] sm:$0xf] %v1772_v48  ;;  %1974 = vst [vmem:[#allocation5 + $0x7c] sm:$0xf] %v2445_v3  ;;  %v16909_v21 = vpop.eup %16908  ;;  %v13382_v10 = vadd.f32 -1.0, %v16907_v8  ;;  %v2448_v26 = vsel %vm17684_vm12, %v2446_v6, %v2447_v62  ;;  %v17759_v37 = vpop.f32.mrb[37].mxu0  ;;  %v874_v56 = vmul.f32 %v17669_v61, %v17407_v0  ;;  %v872_v53 = vmul.f32 %v17407_v0, %v17673_v9 }
 0x133   : > { %v15749_v22 = vld [vmem:[#allocation5 + $0xc] ss:$40 sps:$4 sm:$0xff]   ;;  %v16911_v42 = vpop.eup %16910  ;;  %v1265_v44 = vsel %vm985_vm13, %v17641_v46, %v13384_v12  ;;  %v13385_v25 = vadd.f32 -1.0, %v16909_v21  ;;  %2644 = vst [vmem:[#allocation5 + $0x84] sm:$0xf] %v2448_v26  ;;  %v17765_v46 = vpop.f32.mrb[38].mxu0  ;;  %v17144_v63 = vpack.c.bf16 %v17590_v40, %v17590_v40  ;;  %v17145_v57 = vpack.c.bf16 %v17595_v41, %v17595_v41 }
 0x134   : > { %2232 = vst [vmem:[#allocation5 + $0xd0] sm:$0xf] %v17142_v18  ;;  %1562 = vst [vmem:[#allocation5 + $0xf0] sm:$0xf] %v17142_v18  ;;  %v1263_v55 = vsel %vm983_vm14, %v17644_v47, %v13382_v10  ;;  %v13383_v27 = vadd.f32 -1.0, %v16911_v42  ;;  %7150 = vmatprep.mubr.bf16.mxu1 %v15749_v22  ;;  %v1783_v45 = vrot.slane %v17142_v18, 6  ;;  %v17800_v6 = vadd.f32 %v17412_v2, %v874_v56 }
 0x135   : > { %1563 = vst [vmem:[#allocation5 + $0x118] sm:$0xf] %v17743_v11  ;;  %2233 = vst [vmem:[#allocation5 + $0xf8] sm:$0xf] %v17743_v11  ;;  %v1266_v30 = vsel %vm986_vm15, %v17647_v34, %v13385_v25  ;;  %7151 = vmatmul.mubr.bf16.vlgmr.msra.gmra.mrb[0].mxu1 %v15747_v24  ;;  %v2453_v60 = vrot.slane %v17743_v11, 6  ;;  %v17771_v32 = vpop.f32.mrb[39].mxu0  ;;  %v17803_v13 = vadd.f32 %v17412_v2, %v872_v53 }
 0x136   : > { %1975 = vst [vmem:[#allocation5 + $0xa4] sm:$0xf] %v2448_v26  ;;  %v1308_v1 = vpack.c.bf16 %v1266_v30, %v1265_v44  ;;  %v1264_v47 = vsel %vm984_vm0, %v17653_v50, %v13383_v27  ;;  %7359 = vmatpush1.bf16.msra.mxu1 %v15755_v17  ;;  %v1131_v35 = vmul.f32 1.442695, %v1045_v29  ;;  %v15766_v34 = vld [vmem:[%s21252_s2 + $0x108] sm:$0xff]   ;;  %v1784_v31 = vsel %vm17684_vm12, %v1782_v49, %v1783_v45  ;;  %v15781_v61 = vld [vmem:[%s21252_s2 + $0x110] sm:$0xff]  }
 0x137   : > { %v1307_v54 = vpack.c.bf16 %v1264_v47, %v1263_v55  ;;  %v2452_v51 = vrot.slane %v1783_v45, 4  ;;  %7360 = vmatprep.subr.bf16.mxu1 %v17156_v4  ;;  %v15752_v52 = vld [vmem:[#allocation5] ss:$40 sps:$4 sm:$0xff]   ;;  %1976 = vst [vmem:[#allocation5 + $0xcc] sm:$0xf] %v1784_v31  ;;  %v1043_v58 = vmin.f32 %v17777_v39, 0.0  ;;  %v877_v40 = vmul.f32 %v17702_v59, %v17407_v0 }
 0x138   : > { %1336 = vst [vmem:[#allocation2 + $0x68] sm:$0xff] %v1308_v1  ;;  %16912 = vpow2.f32 %v1131_v35  ;;  %2645 = vst [vmem:[#allocation5 + $0xac] sm:$0xf] %v1784_v31  ;;  %v15761_v3 = vld [vmem:[#allocation5 + $0x58] ss:$40 sps:$4 sm:$0xff]   ;;  %v1788_v48 = vrot.slane %v2453_v60, 4  ;;  %v17146_v23 = vpack.c.bf16 %v17570_v14, %v17570_v14  ;;  %v875_v14 = vmul.f32 %v17407_v0, %v17707_v33 }
 0x139   : > { %v15754_v50 = vld [vmem:[#allocation5 + $0x4] ss:$40 sps:$4 sm:$0xff]   ;;  %3565 = vst [vmem:[#allocation5 + $0x18] sm:$0xf] %v16113_v15  ;;  %1335 = vst [vmem:[#allocation2 + $0x60] sm:$0xff] %v1307_v54  ;;  %v2454_v43 = vsel %vm17684_vm12, %v2452_v51, %v2453_v60  ;;  %v1789_v62 = vrot.slane %v17144_v63, 6  ;;  %v17820_v26 = vadd.f32 %v17412_v2, %v877_v40 }
 0x13a   : > { %v15756_v36 = vld [vmem:[#allocation5 + $0x54] ss:$40 sps:$4 sm:$0xff]   ;;  %6910 = vmatprep.mubr.bf16.mxu0 %v15754_v50  ;;  %2646 = vst [vmem:[#allocation5 + $0xd4] sm:$0xf] %v2454_v43  ;;  %7361 = vmatpush1.bf16.msra.mxu1 %v15766_v34  ;;  %v1127_v41 = vmul.f32 1.442695, %v1043_v58 }
 0x13b   : > { %v15758_v9 = vld [vmem:[#allocation5 + $0x5c] ss:$40 sps:$4 sm:$0xff]   ;;  %6911 = vmatmul.mubr.bf16.vlgmr.msra.gmra.mrb[56].mxu0 %v15752_v52  ;;  %2234 = vst [vmem:[#allocation5 + $0x120] sm:$0xf] %v17144_v63  ;;  %1564 = vst [vmem:[#allocation5 + $0x140] sm:$0xf] %v17144_v63  ;;  %7362 = vmatprep.subr.bf16.mxu1 %v17156_v4  ;;  %v1790_v59 = vsel %vm17684_vm12, %v1788_v48, %v1789_v62 }
 0x13c   : > { %1565 = vst [vmem:[#allocation5 + $0x168] sm:$0xf] %v17145_v57  ;;  %2235 = vst [vmem:[#allocation5 + $0x148] sm:$0xf] %v17145_v57  ;;  %6918 = vmatprep.mubr.bf16.mxu0 %v15756_v36  ;;  %7158 = vmatprep.mubr.bf16.mxu1 %v15758_v9  ;;  %v1046_v7 = vmin.f32 %v17800_v6, 0.0  ;;  %v1044_v8 = vmin.f32 %v17803_v13, 0.0  ;;  %16914 = vpow2.f32 %v1127_v41 }
 0x13d   : > { %v2027_v12 = vld [vmem:[#allocation2 + $0x28] sm:$0xff]  ;;  %v17810_v17 = vpop.f32.mrb[40].mxu0  ;;  %7159 = vmatmul.mubr.bf16.gmra.mrb[4].mxu1 %v15761_v3  ;;  %v15790_v18 = vld [vmem:[%s21252_s2 + $0x118] sm:$0xff]   ;;  %1977 = vst [vmem:[#allocation5 + $0xf4] sm:$0xf] %v2454_v43  ;;  %v2458_v24 = vrot.slane %v1789_v62, 4  ;;  %v17147_v3 = vpack.c.bf16 %v17574_v16, %v17574_v16 }
 0x13e   : > { %v17817_v11 = vpop.f32.mrb[41].mxu0  ;;  %v1133_v21 = vmul.f32 1.442695, %v1046_v7  ;;  %v1129_v10 = vmul.f32 1.442695, %v1044_v8  ;;  %v2459_v22 = vrot.slane %v17145_v57, 6  ;;  %7363 = vmatpush1.bf16.msra.mxu1 %v15781_v61  ;;  %v13527_v42 = vcombine.low %v2027_v12, %v2027_v12 }
 0x13f   : > { %1978 = vst [vmem:[#allocation5 + $0x11c] sm:$0xf] %v1790_v59  ;;  %2647 = vst [vmem:[#allocation5 + $0xfc] sm:$0xf] %v1790_v59  ;;  %7364 = vmatprep.subr.bf16.mxu1 %v17156_v4  ;;  %v17825_v44 = vpop.f32.mrb[42].mxu0  ;;  %v17829_v27 = vcombine.high %v2027_v12, %v2027_v12  ;;  %vm989_vm1 = vcmp.gt.f32.partialorder %v17750_v38, 0.0 }
 0x140   : > { %v15760_v25 = vld [vmem:[#allocation5 + $0x50] ss:$40 sps:$4 sm:$0xff]   ;;  %16916 = vpow2.f32 %v1133_v21  ;;  %v2460_v49 = vsel %vm17684_vm12, %v2458_v24, %v2459_v22  ;;  %v1794_v55 = vrot.slane %v2459_v22, 4  ;;  %v17831_v29 = vpop.f32.mrb[43].mxu0  ;;  %v15762_v2 = vld [vmem:[#allocation5 + $0xa4] ss:$40 sps:$4 sm:$0xff]  }
 0x141   : > { %v15764_v30 = vld [vmem:[#allocation5 + $0xac] ss:$40 sps:$4 sm:$0xff]   ;;  %16918 = vpow2.f32 %v1129_v10  ;;  %2648 = vst [vmem:[#allocation5 + $0x124] sm:$0xf] %v2460_v49  ;;  %2236 = vst [vmem:[#allocation5 + $0x170] sm:$0xf] %v13527_v42 }
 0x142   : > { %1566 = vst [vmem:[#allocation5 + $0x190] sm:$0xf] %v13527_v42  ;;  %v16913_v45 = vpop.eup %16912  ;;  %v1049_v60 = vmin.f32 %v17820_v26, 0.0  ;;  %v17837_v1 = vrot.slane %v17146_v23, 6  ;;  %1979 = vst [vmem:[#allocation5 + $0x144] sm:$0xf] %v2460_v49  ;;  %7365 = vmatpush1.bf16.msra.mxu1 %v15790_v18  ;;  %7166 = vmatprep.mubr.bf16.mxu1 %v15764_v30 }
 0x143   : > { %v2462_v47 = vrot.slane %v13527_v42, 6  ;;  %1567 = vst [vmem:[#allocation5 + $0x1b8] sm:$0xf] %v17829_v27  ;;  %2237 = vst [vmem:[#allocation5 + $0x198] sm:$0xf] %v17829_v27  ;;  %v15807_v35 = vld [vmem:[%s21252_s2 + $0x120] sm:$0xff]   ;;  %6919 = vmatmul.mubr.bf16.gmra.mrb[60].mxu0 %v15760_v25  ;;  %7366 = vmatprep.subr.bf16.mxu1 %v17156_v4 }
 0x144   : > { %v17844_v34 = vpop.f32.mrb[44].mxu0  ;;  %vm987_vm2 = vcmp.gt.f32.partialorder %v17777_v39, 0.0  ;;  %v15768_v0 = vld [vmem:[#allocation5 + $0xa8] ss:$40 sps:$4 sm:$0xff]   ;;  %v2465_v33 = vrot.slane %v17829_v27, 6  ;;  %6926 = vmatprep.mubr.bf16.mxu0 %v15762_v2  ;;  %v1796_v56 = vsel %vm17684_vm12, %v1794_v55, %v17837_v1  ;;  %v1613_v43 = vld [vmem:[#allocation2 + $0x30] sm:$0xff] }
 0x145   : > { %v17851_v15 = vld [vmem:[%s21256_s6] ss:$0 sm:$0xff]  ;;  %v17863_v52 = vpop.f32.mrb[45].mxu0  ;;  %v1139_v50 = vmul.f32 1.442695, %v1049_v60  ;;  %v2463_v53 = vsel %vm17684_vm12, %v1794_v55, %v2462_v47  ;;  %v2464_v36 = vrot.slane %v2462_v47, 4  ;;  %7167 = vmatmul.mubr.bf16.gmra.mrb[8].mxu1 %v15768_v0  ;;  %v13477_v8 = vcombine.low %v1613_v43, %v1613_v43 }
 0x146   : > { %v17854_v54 = vadd.f32 %v17851_v15, %v875_v14  ;;  %v17859_v31 = vld [vmem:[%s21255_s5] ss:$0 sm:$0xff]  ;;  %v17871_v58 = vpop.f32.mrb[46].mxu0  ;;  %v13388_v63 = vadd.f32 -1.0, %v16913_v45  ;;  %vm990_vm3 = vcmp.gt.f32.partialorder %v17800_v6, 0.0  ;;  %7367 = vmatpush1.bf16.msra.mxu1 %v15807_v35  ;;  %v15824_v40 = vld [vmem:[%s21252_s2 + $0x128] sm:$0xff]   ;;  %v16915_v48 = vpop.eup %16914  ;;  %v17899_v21 = vcombine.high %v1613_v43, %v1613_v43 }
 0x147   : > { %v878_v51 = vmul.f32 %v17859_v31, %v17715_v28  ;;  %1980 = vst [vmem:[#allocation5 + $0x16c] sm:$0xf] %v1796_v56  ;;  %2649 = vst [vmem:[#allocation5 + $0x14c] sm:$0xf] %v2463_v53  ;;  %16920 = vpow2.f32 %v1139_v50  ;;  %v2466_v61 = vsel %vm17684_vm12, %v2464_v36, %v2465_v33  ;;  %v876_v9 = vmul.f32 %v17859_v31, %v17720_v5  ;;  %v17889_v41 = vpop.f32.mrb[47].mxu0  ;;  %v17893_v12 = vld [vmem:[#allocation2 + $0x38] sm:$0xff] }
 0x148   : > { %v1047_v28 = vmin.f32 %v17854_v54, 0.0  ;;  %vm988_vm4 = vcmp.gt.f32.partialorder %v17803_v13, 0.0  ;;  %2650 = vst [vmem:[#allocation5 + $0x174] sm:$0xf] %v2466_v61  ;;  %7368 = vmatprep.subr.bf16.mxu1 %v17156_v4  ;;  %v13386_v16 = vadd.f32 -1.0, %v16915_v48  ;;  %v881_v10 = vmul.f32 %v17859_v31, %v17745_v19  ;;  %v15833_v14 = vld [vmem:[%s21252_s2 + $0x130] sm:$0xff]  }
 0x149   : > { %v17876_v57 = vadd.f32 %v17851_v15, %v878_v51  ;;  %v15767_v5 = vld [vmem:[#allocation5 + $0xa0] ss:$40 sps:$4 sm:$0xff]   ;;  %v15771_v59 = vld [vmem:[#allocation5 + $0xfc] ss:$40 sps:$4 sm:$0xff]   ;;  %v17897_v18 = vadd.f32 %v17851_v15, %v876_v9  ;;  %v1797_v22 = vrot.slane %v17837_v1, 4  ;;  %v1798_v23 = vrot.slane %v17147_v3, 6 }
 0x14a   : > { %v1135_v62 = vmul.f32 1.442695, %v1047_v28  ;;  %2238 = vst [vmem:[#allocation5 + $0x1c0] sm:$0xf] %v13477_v8  ;;  %1568 = vst [vmem:[#allocation5 + $0x1e0] sm:$0xf] %v13477_v8  ;;  %v16917_v25 = vpop.eup %16916  ;;  %v1269_v49 = vsel %vm989_vm1, %v17750_v38, %v13388_v63  ;;  %v1267_v55 = vsel %vm987_vm2, %v17777_v39, %v13386_v16  ;;  %7174 = vmatprep.mubr.bf16.mxu1 %v15771_v59  ;;  %7369 = vmatpush1.bf16.msra.mxu1 %v15824_v40 }
 0x14b   : > { %v1050_v7 = vmin.f32 %v17876_v57, 0.0  ;;  %v17904_v42 = vpop.f32.mrb[48].mxu0  ;;  %v15769_v2 = vld [vmem:[#allocation5 + $0xf4] ss:$40 sps:$4 sm:$0xff]   ;;  %v1048_v19 = vmin.f32 %v17897_v18, 0.0  ;;  %v1801_v30 = vrot.slane %v13477_v8, 6  ;;  %v16919_v38 = vpop.eup %16918  ;;  %6927 = vmatmul.mubr.bf16.gmra.mrb[64].mxu0 %v15767_v5  ;;  %v1799_v1 = vsel %vm17684_vm12, %v1797_v22, %v1798_v23  ;;  %7370 = vmatprep.subr.bf16.mxu1 %v17156_v4 }
 0x14c   : > { %16922 = vpow2.f32 %v1135_v62  ;;  %1569 = vst [vmem:[#allocation5 + $0x208] sm:$0xf] %v17899_v21  ;;  %2239 = vst [vmem:[#allocation5 + $0x1e8] sm:$0xf] %v17899_v21  ;;  %v17918_v45 = vpop.f32.mrb[49].mxu0  ;;  %v13389_v60 = vadd.f32 -1.0, %v16917_v25  ;;  %6934 = vmatprep.mubr.bf16.mxu0 %v15769_v2  ;;  %v17929_v50 = vadd.f32 %v17851_v15, %v881_v10  ;;  %v13479_v56 = vcombine.low %v17893_v12, %v17893_v12 }
 0x14d   : > { %v1141_v24 = vmul.f32 1.442695, %v1050_v7  ;;  %v15774_v39 = vld [vmem:[#allocation5 + $0xf8] ss:$40 sps:$4 sm:$0xff]   ;;  %vm993_vm5 = vcmp.gt.f32.partialorder %v17820_v26, 0.0  ;;  %v1800_v47 = vrot.slane %v1798_v23, 4  ;;  %v879_v25 = vmul.f32 %v17859_v31, %v17759_v37 }
 0x14e   : > { %v17924_v35 = vpop.f32.mrb[50].mxu0  ;;  %v13387_v0 = vadd.f32 -1.0, %v16919_v38  ;;  %1981 = vst [vmem:[#allocation5 + $0x194] sm:$0xf] %v1799_v1  ;;  %v2467_v51 = vrot.slane %v2465_v33, 4  ;;  %v1270_v53 = vsel %vm990_vm3, %v17800_v6, %v13389_v60  ;;  %7175 = vmatmul.mubr.bf16.gmra.mrb[12].mxu1 %v15774_v39  ;;  %v2470_v63 = vrot.slane %v1801_v30, 4 }
 0x14f   : > { %16924 = vpow2.f32 %v1141_v24  ;;  %v1137_v36 = vmul.f32 1.442695, %v1048_v19  ;;  %v1802_v43 = vsel %vm17684_vm12, %v1800_v47, %v1801_v30  ;;  %v17938_v28 = vpop.f32.mrb[51].mxu0  ;;  %v1310_v27 = vpack.c.bf16 %v1270_v53, %v1269_v49  ;;  %v15779_v61 = vld [vmem:[#allocation5 + $0x14c] ss:$40 sps:$4 sm:$0xff]   ;;  %7371 = vmatpush1.bf16.msra.mxu1 %v15833_v14  ;;  %v15850_v3 = vld [vmem:[%s21252_s2 + $0x138] sm:$0xff]  }
 0x150   : > { %v1268_v33 = vsel %vm988_vm4, %v17803_v13, %v13387_v0  ;;  %1982 = vst [vmem:[#allocation5 + $0x1bc] sm:$0xf] %v1802_v43  ;;  %v2469_v9 = vsel %vm17684_vm12, %v2467_v51, %v1801_v30  ;;  %v2471_v6 = vrot.slane %v17899_v21, 6  ;;  %2240 = vst [vmem:[#allocation5 + $0x210] sm:$0xf] %v13479_v56  ;;  %vm991_vm6 = vcmp.gt.f32.partialorder %v17854_v54, 0.0  ;;  %7372 = vmatprep.subr.bf16.mxu1 %v17156_v4 }
 0x151   : > { %1570 = vst [vmem:[#allocation5 + $0x230] sm:$0xf] %v13479_v56  ;;  %v1309_v40 = vpack.c.bf16 %v1268_v33, %v1267_v55  ;;  %16926 = vpow2.f32 %v1137_v36  ;;  %2651 = vst [vmem:[#allocation5 + $0x19c] sm:$0xf] %v2469_v9  ;;  %v1053_v13 = vmin.f32 %v17929_v50, 0.0  ;;  %v16921_v48 = vpop.eup %16920  ;;  %7182 = vmatprep.mubr.bf16.mxu1 %v15779_v61  ;;  %v1807_v16 = vrot.slane %v13479_v56, 6 }
 0x152   : > { %1338 = vst [vmem:[#allocation2 + $0x78] sm:$0xff] %v1310_v27  ;;  %v15773_v62 = vld [vmem:[#allocation5 + $0xf0] ss:$40 sps:$4 sm:$0xff]   ;;  %v2472_v7 = vsel %vm17684_vm12, %v2470_v63, %v2471_v6  ;;  %v1806_v8 = vrot.slane %v2471_v6, 4  ;;  %v13392_v5 = vadd.f32 -1.0, %v16921_v48  ;;  %v13583_v21 = vcombine.high %v17893_v12, %v17893_v12  ;;  %v17956_v10 = vpop.f32.mrb[52].mxu0 }
 0x153   : > { %1337 = vst [vmem:[#allocation2 + $0x70] sm:$0xff] %v1309_v40  ;;  %2652 = vst [vmem:[#allocation5 + $0x1c4] sm:$0xf] %v2472_v7  ;;  %v1147_v59 = vmul.f32 1.442695, %v1053_v13  ;;  %v2476_v23 = vrot.slane %v1807_v16, 4  ;;  %7373 = vmatpush1.bf16.msra.mxu1 %v15850_v3  ;;  %6935 = vmatmul.mubr.bf16.gmra.mrb[68].mxu0 %v15773_v62  ;;  %v17972_v14 = vadd.f32 %v17851_v15, %v879_v25 }
 0x154   : > { %v15775_v24 = vld [vmem:[#allocation5 + $0x144] ss:$40 sps:$4 sm:$0xff]   ;;  %v1808_v22 = vsel %vm17684_vm12, %v1806_v8, %v1807_v16  ;;  %v17965_v2 = vpop.f32.mrb[53].mxu0  ;;  %vm994_vm7 = vcmp.gt.f32.partialorder %v17876_v57, 0.0  ;;  %v15783_v12 = vld [vmem:[#allocation5 + $0x148] ss:$40 sps:$4 sm:$0xff]   ;;  %7374 = vmatprep.subr.bf16.mxu1 %v17156_v4  ;;  %v882_v38 = vmul.f32 %v17859_v31, %v17765_v46  ;;  %v880_v60 = vmul.f32 %v17859_v31, %v17771_v32 }
 0x155   : > { %v1615_v49 = vld [vmem:[#allocation2 + $0x40] sm:$0xff]  ;;  %1983 = vst [vmem:[#allocation5 + $0x1e4] sm:$0xf] %v2472_v7  ;;  %1984 = vst [vmem:[#allocation5 + $0x20c] sm:$0xf] %v1808_v22  ;;  %v2477_v30 = vrot.slane %v13583_v21, 6  ;;  %6942 = vmatprep.mubr.bf16.mxu0 %v15775_v24  ;;  %16928 = vpow2.f32 %v1147_v59  ;;  %v1273_v53 = vsel %vm993_vm5, %v17820_v26, %v13392_v5  ;;  %v885_v6 = vmul.f32 %v17859_v31, %v17810_v17 }
 0x156   : > { %v15861_v55 = vld [vmem:[%s21252_s2 + $0x140] sm:$0xff]   ;;  %v16923_v19 = vpop.eup %16922  ;;  %1571 = vst [vmem:[#allocation5 + $0x258] sm:$0xf] %v13583_v21  ;;  %2241 = vst [vmem:[#allocation5 + $0x238] sm:$0xf] %v13583_v21  ;;  %v17969_v37 = vpop.f32.mrb[54].mxu0  ;;  %7183 = vmatmul.mubr.bf16.gmra.mrb[16].mxu1 %v15783_v12  ;;  %v13481_v0 = vcombine.low %v1615_v49, %v1615_v49  ;;  %v17982_v51 = vcombine.high %v1615_v49, %v1615_v49  ;;  %v17992_v63 = vadd.f32 %v17851_v15, %v882_v38 }
 0x157   : > { %2653 = vst [vmem:[#allocation5 + $0x1ec] sm:$0xf] %v1808_v22  ;;  %v17978_v39 = vpop.f32.mrb[55].mxu0  ;;  %v2478_v47 = vsel %vm17684_vm12, %v2476_v23, %v2477_v30  ;;  %v1616_v56 = vld [vmem:[#allocation2 + $0x48] sm:$0xff]  ;;  %v13390_v36 = vadd.f32 -1.0, %v16923_v19  ;;  %v1051_v32 = vmin.f32 %v17972_v14, 0.0  ;;  %7375 = vmatpush1.bf16.msra.mxu1 %v15861_v55  ;;  %v17995_v27 = vadd.f32 %v17851_v15, %v880_v60 }
 0x158   : > { %2654 = vst [vmem:[#allocation5 + $0x214] sm:$0xf] %v2478_v47  ;;  %v15876_v43 = vld [vmem:[%s21252_s2 + $0x148] sm:$0xff]   ;;  %v1812_v33 = vrot.slane %v2477_v30, 4  ;;  %2242 = vst [vmem:[#allocation5 + $0x260] sm:$0xf] %v13481_v0  ;;  %7376 = vmatprep.subr.bf16.mxu1 %v17156_v4  ;;  %v13483_v3 = vcombine.low %v1616_v56, %v1616_v56  ;;  %v18016_v59 = vadd.f32 %v17851_v15, %v885_v6 }
 0x159   : > { %v16925_v1 = vpop.eup %16924  ;;  %1572 = vst [vmem:[#allocation5 + $0x280] sm:$0xf] %v13481_v0  ;;  %1573 = vst [vmem:[#allocation5 + $0x2a8] sm:$0xf] %v17982_v51  ;;  %v1813_v9 = vrot.slane %v13481_v0, 6  ;;  %v15893_v40 = vld [vmem:[%s21252_s2 + $0x150] sm:$0xff]  }
 0x15a   : > { %v13393_v46 = vadd.f32 -1.0, %v16925_v1  ;;  %2243 = vst [vmem:[#allocation5 + $0x288] sm:$0xf] %v17982_v51  ;;  %v15788_v61 = vld [vmem:[#allocation5 + $0x19c] ss:$40 sps:$4 sm:$0xff]   ;;  %vm992_vm8 = vcmp.gt.f32.partialorder %v17897_v18, 0.0 }
 0x15b   : > { %1985 = vst [vmem:[#allocation5 + $0x234] sm:$0xf] %v2478_v47  ;;  %v16927_v13 = vpop.eup %16926  ;;  %v15782_v62 = vld [vmem:[#allocation5 + $0x140] ss:$40 sps:$4 sm:$0xff]   ;;  %v1143_v7 = vmul.f32 1.442695, %v1051_v32  ;;  %7190 = vmatprep.mubr.bf16.mxu1 %v15788_v61  ;;  %v1814_v17 = vsel %vm17684_vm12, %v1812_v33, %v1813_v9  ;;  %7377 = vmatpush1.bf16.msra.mxu1 %v15876_v43  ;;  %v883_v32 = vmul.f32 %v17859_v31, %v17817_v11 }
 0x15c   : > { %v1274_v26 = vsel %vm994_vm7, %v17876_v57, %v13393_v46  ;;  %v1054_v8 = vmin.f32 %v17992_v63, 0.0  ;;  %v1271_v57 = vsel %vm991_vm6, %v17854_v54, %v13390_v36  ;;  %v13391_v16 = vadd.f32 -1.0, %v16927_v13  ;;  %v15785_v5 = vld [vmem:[#allocation5 + $0x194] ss:$40 sps:$4 sm:$0xff]   ;;  %2244 = vst [vmem:[#allocation5 + $0x2b0] sm:$0xf] %v13483_v3  ;;  %6943 = vmatmul.mubr.bf16.gmra.mrb[72].mxu0 %v15782_v62  ;;  %7378 = vmatprep.subr.bf16.mxu1 %v17156_v4 }
 0x15d   : > { %v1312_v48 = vpack.c.bf16 %v1274_v26, %v1273_v53  ;;  %1574 = vst [vmem:[#allocation5 + $0x2d0] sm:$0xf] %v13483_v3  ;;  %v15792_v21 = vld [vmem:[#allocation5 + $0x198] ss:$40 sps:$4 sm:$0xff]   ;;  %16930 = vpow2.f32 %v1143_v7  ;;  %v1052_v22 = vmin.f32 %v17995_v27, 0.0  ;;  %v13587_v54 = vcombine.high %v1616_v56, %v1616_v56  ;;  %6950 = vmatprep.mubr.bf16.mxu0 %v15785_v5 }
 0x15e   : > { %v1149_v24 = vmul.f32 1.442695, %v1054_v8  ;;  %1986 = vst [vmem:[#allocation5 + $0x25c] sm:$0xf] %v1814_v17  ;;  %v1272_v23 = vsel %vm992_vm8, %v17897_v18, %v13391_v16  ;;  %v2482_v25 = vrot.slane %v1813_v9, 4  ;;  %v2483_v49 = vrot.slane %v17982_v51, 6  ;;  %7191 = vmatmul.mubr.bf16.gmra.mrb[20].mxu1 %v15792_v21 }
 0x15f   : > { %1340 = vst [vmem:[#allocation2 + $0x88] sm:$0xff] %v1312_v48  ;;  %v1311_v55 = vpack.c.bf16 %v1272_v23, %v1271_v57  ;;  %vm997_vm9 = vcmp.gt.f32.partialorder %v17929_v50, 0.0  ;;  %v15797_v19 = vld [vmem:[#allocation5 + $0x1ec] ss:$40 sps:$4 sm:$0xff]   ;;  %v1145_v12 = vmul.f32 1.442695, %v1052_v22  ;;  %v16929_v30 = vpop.eup %16928  ;;  %7379 = vmatpush1.bf16.msra.mxu1 %v15893_v40  ;;  %v886_v26 = vmul.f32 %v17859_v31, %v17825_v44 }
 0x160   : > { %16932 = vpow2.f32 %v1149_v24  ;;  %1575 = vst [vmem:[#allocation5 + $0x2f8] sm:$0xf] %v13587_v54  ;;  %2245 = vst [vmem:[#allocation5 + $0x2d8] sm:$0xf] %v13587_v54  ;;  %vm995_vm10 = vcmp.gt.f32.partialorder %v17972_v14, 0.0  ;;  %v2484_v38 = vsel %vm17684_vm12, %v2482_v25, %v2483_v49  ;;  %v1057_v18 = vmin.f32 %v18016_v59, 0.0  ;;  %7198 = vmatprep.mubr.bf16.mxu1 %v15797_v19  ;;  %7380 = vmatprep.subr.bf16.mxu1 %v17156_v4 }
 0x161   : > { %v15902_v60 = vld [vmem:[%s21252_s2 + $0x158] sm:$0xff]   ;;  %1339 = vst [vmem:[#allocation2 + $0x80] sm:$0xff] %v1311_v55  ;;  %16934 = vpow2.f32 %v1145_v12  ;;  %2655 = vst [vmem:[#allocation5 + $0x23c] sm:$0xf] %v1814_v17  ;;  %v1818_v1 = vrot.slane %v2483_v49, 4  ;;  %v1819_v47 = vrot.slane %v13483_v3, 6  ;;  %v884_v61 = vmul.f32 %v17859_v31, %v17831_v29 }
 0x162   : > { %2656 = vst [vmem:[#allocation5 + $0x264] sm:$0xf] %v2484_v38  ;;  %vm998_vm11 = vcmp.gt.f32.partialorder %v17992_v63, 0.0  ;;  %v1155_v0 = vmul.f32 1.442695, %v1057_v18  ;;  %v2489_v51 = vrot.slane %v13587_v54, 6  ;;  %v18048_v3 = vadd.f32 %v17851_v15, %v883_v32 }
 0x163   : > { %v1617_v56 = vld [vmem:[#allocation2 + $0x50] sm:$0xff]  ;;  %v1820_v36 = vsel %vm17684_vm12, %v1818_v1, %v1819_v47  ;;  %v2488_v46 = vrot.slane %v1819_v47, 4  ;;  %v13396_v43 = vadd.f32 -1.0, %v16929_v30  ;;  %v15794_v33 = vld [vmem:[#allocation5 + $0x1e4] ss:$40 sps:$4 sm:$0xff]   ;;  %7381 = vmatpush1.bf16.msra.mxu1 %v15902_v60  ;;  %v18052_v44 = vadd.f32 %v17851_v15, %v886_v26  ;;  %v15936_v16 = vld [vmem:[%s21252_s2 + $0x168] sm:$0xff]  }
 0x164   : > { %v15791_v53 = vld [vmem:[#allocation5 + $0x190] ss:$40 sps:$4 sm:$0xff]   ;;  %1987 = vst [vmem:[#allocation5 + $0x284] sm:$0xf] %v2484_v38  ;;  %1988 = vst [vmem:[#allocation5 + $0x2ac] sm:$0xf] %v1820_v36  ;;  %v13485_v40 = vcombine.low %v1617_v56, %v1617_v56  ;;  %7382 = vmatprep.subr.bf16.mxu1 %v17156_v4  ;;  %16936 = vpow2.f32 %v1155_v0  ;;  %v18055_v29 = vadd.f32 %v17851_v15, %v884_v61 }
 0x165   : > { %v15919_v9 = vld [vmem:[%s21252_s2 + $0x160] sm:$0xff]   ;;  %6951 = vmatmul.mubr.bf16.gmra.mrb[76].mxu0 %v15791_v53  ;;  %v2490_v11 = vsel %vm17684_vm12, %v2488_v46, %v2489_v51  ;;  %2657 = vst [vmem:[#allocation5 + $0x28c] sm:$0xf] %v1820_v36  ;;  %v1618_v13 = vld [vmem:[#allocation2 + $0x58] sm:$0xff]  ;;  %v18057_v48 = vcombine.high %v1617_v56, %v1617_v56  ;;  %v1055_v7 = vmin.f32 %v18048_v3, 0.0  ;;  %v1824_v8 = vrot.slane %v2489_v51, 4 }
 0x166   : > { %v15800_v6 = vld [vmem:[#allocation5 + $0x1e8] ss:$40 sps:$4 sm:$0xff]   ;;  %6958 = vmatprep.mubr.bf16.mxu0 %v15794_v33  ;;  %2658 = vst [vmem:[#allocation5 + $0x2b4] sm:$0xf] %v2490_v11  ;;  %v1825_v57 = vrot.slane %v13485_v40, 6  ;;  %vm996_vm13 = vcmp.gt.f32.partialorder %v17995_v27, 0.0  ;;  %v889_v21 = vmul.f32 %v17859_v31, %v17844_v34  ;;  %v18067_v24 = vcombine.low %v1618_v13, %v1618_v13 }
 0x167   : > { %v16931_v62 = vpop.eup %16930  ;;  %7199 = vmatmul.mubr.bf16.gmra.mrb[24].mxu1 %v15800_v6  ;;  %2246 = vst [vmem:[#allocation5 + $0x300] sm:$0xf] %v13485_v40  ;;  %1576 = vst [vmem:[#allocation5 + $0x320] sm:$0xf] %v13485_v40  ;;  %v1277_v54 = vsel %vm997_vm9, %v17929_v50, %v13396_v43  ;;  %v1151_v23 = vmul.f32 1.442695, %v1055_v7  ;;  %v18086_v18 = vcombine.high %v1618_v13, %v1618_v13 }
 0x168   : > { %v13394_v5 = vadd.f32 -1.0, %v16931_v62  ;;  %1989 = vst [vmem:[#allocation5 + $0x2d4] sm:$0xf] %v2490_v11  ;;  %1577 = vst [vmem:[#allocation5 + $0x348] sm:$0xf] %v18057_v48  ;;  %7383 = vmatpush1.bf16.msra.mxu1 %v15919_v9  ;;  %v1058_v25 = vmin.f32 %v18052_v44, 0.0  ;;  %v1826_v49 = vsel %vm17684_vm12, %v1824_v8, %v1825_v57  ;;  %v18084_v38 = vadd.f32 %v17851_v15, %v889_v21 }
 0x169   : > { %v15805_v17 = vld [vmem:[#allocation5 + $0x23c] ss:$40 sps:$4 sm:$0xff]   ;;  %2247 = vst [vmem:[#allocation5 + $0x328] sm:$0xf] %v18057_v48  ;;  %7384 = vmatprep.subr.bf16.mxu1 %v17156_v4  ;;  %v1056_v19 = vmin.f32 %v18055_v29, 0.0  ;;  %16938 = vpow2.f32 %v1151_v23  ;;  %v2494_v56 = vrot.slane %v1825_v57, 4  ;;  %v887_v53 = vmul.f32 %v17859_v31, %v17863_v52 }
 0x16a   : > { %v16933_v22 = vpop.eup %16932  ;;  %v1275_v34 = vsel %vm995_vm10, %v17972_v14, %v13394_v5  ;;  %7206 = vmatprep.mubr.bf16.mxu1 %v15805_v17  ;;  %1990 = vst [vmem:[#allocation5 + $0x2fc] sm:$0xf] %v1826_v49  ;;  %2248 = vst [vmem:[#allocation5 + $0x350] sm:$0xf] %v18067_v24  ;;  %v15799_v12 = vld [vmem:[#allocation5 + $0x1e0] ss:$40 sps:$4 sm:$0xff]   ;;  %v890_v57 = vmul.f32 %v17859_v31, %v17871_v58 }
 0x16b   : > { %v13397_v55 = vadd.f32 -1.0, %v16933_v22  ;;  %1578 = vst [vmem:[#allocation5 + $0x370] sm:$0xf] %v18067_v24  ;;  %v16935_v50 = vpop.eup %16934  ;;  %v1157_v30 = vmul.f32 1.442695, %v1058_v25  ;;  %vm1001_vm14 = vcmp.gt.f32.partialorder %v18016_v59, 0.0  ;;  %v18112_v6 = vadd.f32 %v17851_v15, %v887_v53 }
 0x16c   : > { %v13395_v60 = vadd.f32 -1.0, %v16935_v50  ;;  %v15802_v1 = vld [vmem:[#allocation5 + $0x234] ss:$40 sps:$4 sm:$0xff]   ;;  %v1153_v47 = vmul.f32 1.442695, %v1056_v19  ;;  %7385 = vmatpush1.bf16.msra.mxu1 %v15936_v16  ;;  %v2495_v46 = vrot.slane %v18057_v48, 6  ;;  %v888_v16 = vmul.f32 %v17859_v31, %v17889_v41 }
 0x16d   : > { %v1278_v14 = vsel %vm998_vm11, %v17992_v63, %v13397_v55  ;;  %6959 = vmatmul.mubr.bf16.gmra.mrb[80].mxu0 %v15799_v12  ;;  %v15809_v51 = vld [vmem:[#allocation5 + $0x238] ss:$40 sps:$4 sm:$0xff]   ;;  %16940 = vpow2.f32 %v1157_v30  ;;  %2659 = vst [vmem:[#allocation5 + $0x2dc] sm:$0xf] %v1826_v49  ;;  %1579 = vst [vmem:[#allocation5 + $0x398] sm:$0xf] %v18086_v18  ;;  %7386 = vmatprep.subr.bf16.mxu1 %v17156_v4  ;;  %v18125_v23 = vadd.f32 %v17851_v15, %v890_v57 }
 0x16e   : > { %v1314_v0 = vpack.c.bf16 %v1278_v14, %v1277_v54  ;;  %2249 = vst [vmem:[#allocation5 + $0x378] sm:$0xf] %v18086_v18  ;;  %v1276_v63 = vsel %vm996_vm13, %v17995_v27, %v13395_v60  ;;  %6966 = vmatprep.mubr.bf16.mxu0 %v15802_v1  ;;  %v15814_v36 = vld [vmem:[#allocation5 + $0x28c] ss:$40 sps:$4 sm:$0xff]   ;;  %16942 = vpow2.f32 %v1153_v47  ;;  %v15945_v52 = vld [vmem:[%s21252_s2 + $0x170] sm:$0xff]   ;;  %vm999_vm15 = vcmp.gt.f32.partialorder %v18048_v3, 0.0  ;;  %v16937_v33 = vpop.eup %16936 }
 0x16f   : > { %v1313_v32 = vpack.c.bf16 %v1276_v63, %v1275_v34  ;;  %7207 = vmatmul.mubr.bf16.gmra.mrb[28].mxu1 %v15809_v51  ;;  %v1061_v43 = vmin.f32 %v18084_v38, 0.0  ;;  %v2496_v27 = vsel %vm17684_vm12, %v2494_v56, %v2495_v46  ;;  %v1830_v26 = vrot.slane %v2495_v46, 4  ;;  %v1619_v11 = vld [vmem:[#allocation2 + $0x60] sm:$0xff]  ;;  %v15808_v62 = vld [vmem:[#allocation5 + $0x230] ss:$40 sps:$4 sm:$0xff]  }
 0x170   : > { %1342 = vst [vmem:[#allocation2 + $0x98] sm:$0xff] %v1314_v0  ;;  %7214 = vmatprep.mubr.bf16.mxu1 %v15814_v36  ;;  %v1831_v61 = vrot.slane %v18067_v24, 6  ;;  %7387 = vmatpush1.bf16.msra.mxu1 %v15945_v52  ;;  %vm1002_vm0 = vcmp.gt.f32.partialorder %v18052_v44, 0.0  ;;  %2660 = vst [vmem:[#allocation5 + $0x304] sm:$0xf] %v2496_v27  ;;  %v2501_v9 = vrot.slane %v18086_v18, 6  ;;  %v13489_v21 = vcombine.low %v1619_v11, %v1619_v11 }
 0x171   : > { %1341 = vst [vmem:[#allocation2 + $0x90] sm:$0xff] %v1313_v32  ;;  %7388 = vmatprep.subr.bf16.mxu1 %v17156_v4  ;;  %v1163_v40 = vmul.f32 1.442695, %v1061_v43  ;;  %1991 = vst [vmem:[#allocation5 + $0x324] sm:$0xf] %v2496_v27  ;;  %v13400_v7 = vadd.f32 -1.0, %v16937_v33  ;;  %v18128_v25 = vadd.f32 %v17851_v15, %v888_v16  ;;  %v13593_v34 = vcombine.high %v1619_v11, %v1619_v11 }
 0x172   : > { %v1832_v13 = vsel %vm17684_vm12, %v1830_v26, %v1831_v61  ;;  %v2500_v48 = vrot.slane %v1831_v61, 4  ;;  %v1059_v8 = vmin.f32 %v18112_v6, 0.0  ;;  %v15811_v5 = vld [vmem:[#allocation5 + $0x284] ss:$40 sps:$4 sm:$0xff]   ;;  %v15817_v22 = vld [vmem:[#allocation5 + $0x288] ss:$40 sps:$4 sm:$0xff]  }
 0x173   : > { %1992 = vst [vmem:[#allocation5 + $0x34c] sm:$0xf] %v1832_v13  ;;  %2661 = vst [vmem:[#allocation5 + $0x32c] sm:$0xf] %v1832_v13  ;;  %16944 = vpow2.f32 %v1163_v40  ;;  %v16939_v24 = vpop.eup %16938  ;;  %v1836_v58 = vrot.slane %v2501_v9, 4  ;;  %v1837_v49 = vrot.slane %v13489_v21, 6  ;;  %v1281_v19 = vsel %vm1001_vm14, %v18016_v59, %v13400_v7 }
 0x174   : > { %v2502_v17 = vsel %vm17684_vm12, %v2500_v48, %v2501_v9  ;;  %v1159_v54 = vmul.f32 1.442695, %v1059_v8  ;;  %v13398_v41 = vadd.f32 -1.0, %v16939_v24  ;;  %2250 = vst [vmem:[#allocation5 + $0x3a0] sm:$0xf] %v13489_v21  ;;  %vm1000_vm1 = vcmp.gt.f32.partialorder %v18055_v29, 0.0 }
 0x175   : > { %6967 = vmatmul.mubr.bf16.gmra.mrb[84].mxu0 %v15808_v62  ;;  %2662 = vst [vmem:[#allocation5 + $0x354] sm:$0xf] %v2502_v17  ;;  %1580 = vst [vmem:[#allocation5 + $0x3c0] sm:$0xf] %v13489_v21  ;;  %v1062_v50 = vmin.f32 %v18125_v23, 0.0  ;;  %v1838_v60 = vsel %vm17684_vm12, %v1836_v58, %v1837_v49  ;;  %v893_v59 = vmul.f32 %v17859_v31, %v17904_v42  ;;  %v1060_v0 = vmin.f32 %v18128_v25, 0.0 }
 0x176   : > { %6974 = vmatprep.mubr.bf16.mxu0 %v15811_v5  ;;  %16946 = vpow2.f32 %v1159_v54  ;;  %1993 = vst [vmem:[#allocation5 + $0x374] sm:$0xf] %v2502_v17  ;;  %v1279_v30 = vsel %vm999_vm15, %v18048_v3, %v13398_v41  ;;  %1581 = vst [vmem:[#allocation5 + $0x3e8] sm:$0xf] %v13593_v34  ;;  %vm1005_vm2 = vcmp.gt.f32.partialorder %v18084_v38, 0.0  ;;  %v2506_v3 = vrot.slane %v1837_v49, 4 }
 0x177   : > { %v16941_v55 = vpop.eup %16940  ;;  %7215 = vmatmul.mubr.bf16.gmra.mrb[32].mxu1 %v15817_v22  ;;  %v15822_v14 = vld [vmem:[#allocation5 + $0x2dc] ss:$40 sps:$4 sm:$0xff]   ;;  %2251 = vst [vmem:[#allocation5 + $0x3c8] sm:$0xf] %v13593_v34  ;;  %v1165_v47 = vmul.f32 1.442695, %v1062_v50  ;;  %v18148_v53 = vadd.f32 %v17851_v15, %v893_v59  ;;  %v891_v40 = vmul.f32 %v17859_v31, %v17918_v45  ;;  %v894_v45 = vmul.f32 %v17859_v31, %v17924_v35 }
 0x178   : > { %v16943_v12 = vpop.eup %16942  ;;  %v13401_v18 = vadd.f32 -1.0, %v16941_v55  ;;  %1994 = vst [vmem:[#allocation5 + $0x39c] sm:$0xf] %v1838_v60  ;;  %7222 = vmatprep.mubr.bf16.mxu1 %v15822_v14  ;;  %v2507_v56 = vrot.slane %v13593_v34, 6  ;;  %v1620_v42 = vld [vmem:[#allocation2 + $0x68] sm:$0xff]  ;;  %vm1003_vm3 = vcmp.gt.f32.partialorder %v18112_v6, 0.0  ;;  %v892_v8 = vmul.f32 %v17859_v31, %v17938_v28 }
 0x179   : > { %v13399_v1 = vadd.f32 -1.0, %v16943_v12  ;;  %v15816_v46 = vld [vmem:[#allocation5 + $0x280] ss:$40 sps:$4 sm:$0xff]   ;;  %16948 = vpow2.f32 %v1165_v47  ;;  %v1161_v52 = vmul.f32 1.442695, %v1060_v0  ;;  %v1065_v27 = vmin.f32 %v18148_v53, 0.0 }
 0x17a   : > { %v1282_v51 = vsel %vm1002_vm0, %v18052_v44, %v13401_v18  ;;  %v15819_v43 = vld [vmem:[#allocation5 + $0x2d4] ss:$40 sps:$4 sm:$0xff]   ;;  %v2508_v44 = vsel %vm17684_vm12, %v2506_v3, %v2507_v56  ;;  %v15826_v33 = vld [vmem:[#allocation5 + $0x2d8] ss:$40 sps:$4 sm:$0xff]   ;;  %2663 = vst [vmem:[#allocation5 + $0x37c] sm:$0xf] %v1838_v60  ;;  %v13491_v26 = vcombine.low %v1620_v42, %v1620_v42  ;;  %v13595_v11 = vcombine.high %v1620_v42, %v1620_v42 }
 0x17b   : > { %v1316_v63 = vpack.c.bf16 %v1282_v51, %v1281_v19  ;;  %v1280_v36 = vsel %vm1000_vm1, %v18055_v29, %v13399_v1  ;;  %16950 = vpow2.f32 %v1161_v52  ;;  %2664 = vst [vmem:[#allocation5 + $0x3a4] sm:$0xf] %v2508_v44  ;;  %v1842_v9 = vrot.slane %v2507_v56, 4  ;;  %v15962_v13 = vld [vmem:[%s21252_s2 + $0x178] sm:$0xff]   ;;  %1995 = vst [vmem:[#allocation5 + $0x3c4] sm:$0xf] %v2508_v44 }
 0x17c   : > { %v1315_v32 = vpack.c.bf16 %v1280_v36, %v1279_v30  ;;  %v15831_v61 = vld [vmem:[#allocation5 + $0x32c] ss:$40 sps:$4 sm:$0xff]   ;;  %vm1006_vm4 = vcmp.gt.f32.partialorder %v18125_v23, 0.0  ;;  %v1171_v48 = vmul.f32 1.442695, %v1065_v27  ;;  %v1843_v62 = vrot.slane %v13491_v26, 6  ;;  %7389 = vmatpush1.bf16.msra.mxu1 %v15962_v13 }
 0x17d   : > { %1344 = vst [vmem:[#allocation2 + $0xa8] sm:$0xff] %v1316_v63  ;;  %6975 = vmatmul.mubr.bf16.gmra.mrb[88].mxu0 %v15816_v46  ;;  %v16945_v29 = vpop.eup %16944  ;;  %2252 = vst [vmem:[#allocation5 + $0x3f0] sm:$0xf] %v13491_v26  ;;  %vm1004_vm5 = vcmp.gt.f32.partialorder %v18128_v25, 0.0  ;;  %v18165_v7 = vadd.f32 %v17851_v15, %v891_v40  ;;  %v1621_v57 = vld [vmem:[#allocation2 + $0x70] sm:$0xff]  ;;  %7598 = vmatprep.subr.bf16.mxu1 %v17156_v4  ;;  %v2513_v22 = vrot.slane %v13595_v11, 6 }
 0x17e   : > { %1343 = vst [vmem:[#allocation2 + $0xa0] sm:$0xff] %v1315_v32  ;;  %6982 = vmatprep.mubr.bf16.mxu0 %v15819_v43  ;;  %1582 = vst [vmem:[#allocation5 + $0x410] sm:$0xf] %v13491_v26  ;;  %v13404_v5 = vadd.f32 -1.0, %v16945_v29  ;;  %16952 = vpow2.f32 %v1171_v48  ;;  %v1844_v17 = vsel %vm17684_vm12, %v1842_v9, %v1843_v62  ;;  %v2512_v24 = vrot.slane %v1843_v62, 4  ;;  %v1622_v63 = vld [vmem:[#allocation2 + $0x78] sm:$0xff] }
 0x17f   : > { %7223 = vmatmul.mubr.bf16.gmra.mrb[36].mxu1 %v15826_v33  ;;  %1583 = vst [vmem:[#allocation5 + $0x438] sm:$0xf] %v13595_v11  ;;  %2253 = vst [vmem:[#allocation5 + $0x418] sm:$0xf] %v13595_v11  ;;  %v1063_v35 = vmin.f32 %v18165_v7, 0.0  ;;  %v18176_v28 = vadd.f32 %v17851_v15, %v894_v45  ;;  %v18179_v54 = vadd.f32 %v17851_v15, %v892_v8  ;;  %v1848_v59 = vrot.slane %v2513_v22, 4 }
 0x180   : > { %7230 = vmatprep.mubr.bf16.mxu1 %v15831_v61  ;;  %v16947_v16 = vpop.eup %16946  ;;  %1996 = vst [vmem:[#allocation5 + $0x3ec] sm:$0xf] %v1844_v17  ;;  %2665 = vst [vmem:[#allocation5 + $0x3cc] sm:$0xf] %v1844_v17  ;;  %v15825_v31 = vld [vmem:[#allocation5 + $0x2d0] ss:$40 sps:$4 sm:$0xff]   ;;  %v13493_v58 = vcombine.low %v1621_v57, %v1621_v57  ;;  %v2514_v49 = vsel %vm17684_vm12, %v2512_v24, %v2513_v22  ;;  %v13597_v55 = vcombine.high %v1621_v57, %v1621_v57 }
 0x181   : > { %v13402_v21 = vadd.f32 -1.0, %v16947_v16  ;;  %v15828_v41 = vld [vmem:[#allocation5 + $0x324] ss:$40 sps:$4 sm:$0xff]   ;;  %v1167_v34 = vmul.f32 1.442695, %v1063_v35  ;;  %v1285_v50 = vsel %vm1005_vm2, %v18084_v38, %v13404_v5  ;;  %v1066_v15 = vmin.f32 %v18176_v28, 0.0 }
 0x182   : > { %v15835_v30 = vld [vmem:[#allocation5 + $0x328] ss:$40 sps:$4 sm:$0xff]   ;;  %2666 = vst [vmem:[#allocation5 + $0x3f4] sm:$0xf] %v2514_v49  ;;  %v1064_v18 = vmin.f32 %v18179_v54, 0.0  ;;  %vm1009_vm6 = vcmp.gt.f32.partialorder %v18148_v53, 0.0  ;;  %v13495_v26 = vcombine.low %v1622_v63, %v1622_v63 }
 0x183   : > { %v16949_v19 = vpop.eup %16948  ;;  %v1283_v12 = vsel %vm1003_vm3, %v18112_v6, %v13402_v21  ;;  %2254 = vst [vmem:[#allocation5 + $0x440] sm:$0xf] %v13493_v58  ;;  %1584 = vst [vmem:[#allocation5 + $0x460] sm:$0xf] %v13493_v58  ;;  %v15840_v60 = vld [vmem:[#allocation5 + $0x37c] ss:$40 sps:$4 sm:$0xff]   ;;  %16954 = vpow2.f32 %v1167_v34 }
 0x184   : > { %v13405_v14 = vadd.f32 -1.0, %v16949_v19  ;;  %1585 = vst [vmem:[#allocation5 + $0x488] sm:$0xf] %v13597_v55  ;;  %2255 = vst [vmem:[#allocation5 + $0x468] sm:$0xf] %v13597_v55  ;;  %v1849_v6 = vrot.slane %v13493_v58, 6 }
 0x185   : > { %6983 = vmatmul.mubr.bf16.gmra.mrb[92].mxu0 %v15825_v31  ;;  %v16951_v38 = vpop.eup %16950  ;;  %v1173_v1 = vmul.f32 1.442695, %v1066_v15  ;;  %v1169_v47 = vmul.f32 1.442695, %v1064_v18  ;;  %1997 = vst [vmem:[#allocation5 + $0x414] sm:$0xf] %v2514_v49 }
 0x186   : > { %6990 = vmatprep.mubr.bf16.mxu0 %v15828_v41  ;;  %v17130_v0 = vld [vmem:[%s21255_s5] ss:$0 sm:$0xff]  ;;  %v1286_v3 = vsel %vm1006_vm4, %v18125_v23, %v13405_v14  ;;  %v13403_v56 = vadd.f32 -1.0, %v16951_v38  ;;  %v2519_v42 = vrot.slane %v13597_v55, 6  ;;  %v1850_v46 = vsel %vm17684_vm12, %v1848_v59, %v1849_v6  ;;  %v15837_v29 = vld [vmem:[#allocation5 + $0x374] ss:$40 sps:$4 sm:$0xff]  }
 0x187   : > { %7231 = vmatmul.mubr.bf16.gmra.mrb[40].mxu1 %v15835_v30  ;;  %v897_v51 = vmul.f32 %v17130_v0, %v17956_v10  ;;  %v1318_v36 = vpack.c.bf16 %v1286_v3, %v1285_v50  ;;  %16956 = vpow2.f32 %v1173_v1  ;;  %v2518_v52 = vrot.slane %v1849_v6, 4  ;;  %1998 = vst [vmem:[#allocation5 + $0x43c] sm:$0xf] %v1850_v46  ;;  %v17131_v23 = vld [vmem:[%s21256_s6] ss:$0 sm:$0xff]  ;;  %v1624_v35 = vld [vmem:[#allocation2 + $0x88] sm:$0xff] }
 0x188   : > { %7238 = vmatprep.mubr.bf16.mxu1 %v15840_v60  ;;  %v1284_v10 = vsel %vm1004_vm5, %v18128_v25, %v13403_v56  ;;  %16958 = vpow2.f32 %v1169_v47  ;;  %v16953_v43 = vpop.eup %16952  ;;  %v15834_v33 = vld [vmem:[#allocation5 + $0x320] ss:$40 sps:$4 sm:$0xff]   ;;  %2667 = vst [vmem:[#allocation5 + $0x41c] sm:$0xf] %v1850_v46  ;;  %vm1007_vm7 = vcmp.gt.f32.partialorder %v18165_v7, 0.0  ;;  %v13599_v25 = vcombine.high %v1622_v63, %v1622_v63  ;;  %v1625_v63 = vld [vmem:[#allocation2 + $0x90] sm:$0xff] }
 0x189   : > { %v18207_v32 = vadd.f32 %v17131_v23, %v897_v51  ;;  %1346 = vst [vmem:[#allocation2 + $0xb8] sm:$0xff] %v1318_v36  ;;  %v1317_v44 = vpack.c.bf16 %v1284_v10, %v1283_v12  ;;  %v2520_v27 = vsel %vm17684_vm12, %v2518_v52, %v2519_v42  ;;  %v895_v61 = vmul.f32 %v17130_v0, %v17965_v2  ;;  %v15843_v11 = vld [vmem:[#allocation5 + $0x378] ss:$40 sps:$4 sm:$0xff]   ;;  %v1623_v62 = vld [vmem:[#allocation2 + $0x80] sm:$0xff] }
 0x18a   : > { %2668 = vst [vmem:[#allocation5 + $0x444] sm:$0xf] %v2520_v27  ;;  %v898_v9 = vmul.f32 %v17130_v0, %v17969_v37  ;;  %v13408_v40 = vadd.f32 -1.0, %v16953_v43  ;;  %v1854_v48 = vrot.slane %v2519_v42, 4  ;;  %2256 = vst [vmem:[#allocation5 + $0x490] sm:$0xf] %v13495_v26  ;;  %v896_v5 = vmul.f32 %v17130_v0, %v17978_v39 }
 0x18b   : > { %1345 = vst [vmem:[#allocation2 + $0xb0] sm:$0xff] %v1317_v44  ;;  %v1069_v13 = vmin.f32 %v18207_v32, 0.0  ;;  %1586 = vst [vmem:[#allocation5 + $0x4b0] sm:$0xf] %v13495_v26  ;;  %v15848_v45 = vld [vmem:[#allocation5 + $0x3cc] ss:$40 sps:$4 sm:$0xff]   ;;  %v18215_v37 = vadd.f32 %v17131_v23, %v895_v61  ;;  %v13497_v22 = vcombine.low %v1623_v62, %v1623_v62  ;;  %v18224_v41 = vcombine.high %v1623_v62, %v1623_v62 }
 0x18c   : > { %v1855_v8 = vrot.slane %v13495_v26, 6  ;;  %1999 = vst [vmem:[#allocation5 + $0x464] sm:$0xf] %v2520_v27  ;;  %v2525_v57 = vrot.slane %v13599_v25, 6  ;;  %1587 = vst [vmem:[#allocation5 + $0x4d8] sm:$0xf] %v13599_v25  ;;  %v18217_v16 = vadd.f32 %v17131_v23, %v898_v9  ;;  %v18222_v58 = vadd.f32 %v17131_v23, %v896_v5 }
 0x18d   : > { %6991 = vmatmul.mubr.bf16.gmra.mrb[96].mxu0 %v15834_v33  ;;  %2257 = vst [vmem:[#allocation5 + $0x4b8] sm:$0xf] %v13599_v25  ;;  %v1179_v2 = vmul.f32 1.442695, %v1069_v13  ;;  %v16955_v17 = vpop.eup %16954  ;;  %vm1010_vm8 = vcmp.gt.f32.partialorder %v18176_v28, 0.0  ;;  %vm1008_vm9 = vcmp.gt.f32.partialorder %v18179_v54, 0.0  ;;  %v1289_v19 = vsel %vm1009_vm6, %v18148_v53, %v13408_v40 }
 0x18e   : > { %6998 = vmatprep.mubr.bf16.mxu0 %v15837_v29  ;;  %v1856_v21 = vsel %vm17684_vm12, %v1854_v48, %v1855_v8  ;;  %v2524_v24 = vrot.slane %v1855_v8, 4  ;;  %v13406_v31 = vadd.f32 -1.0, %v16955_v17  ;;  %v1067_v49 = vmin.f32 %v18215_v37, 0.0  ;;  %2258 = vst [vmem:[#allocation5 + $0x4e0] sm:$0xf] %v13497_v22  ;;  %v1626_v29 = vld [vmem:[#allocation2 + $0x98] sm:$0xff] }
 0x18f   : > { %7239 = vmatmul.mubr.bf16.gmra.mrb[44].mxu1 %v15843_v11  ;;  %16960 = vpow2.f32 %v1179_v2  ;;  %2000 = vst [vmem:[#allocation5 + $0x48c] sm:$0xf] %v1856_v21  ;;  %2669 = vst [vmem:[#allocation5 + $0x46c] sm:$0xf] %v1856_v21  ;;  %v15842_v55 = vld [vmem:[#allocation5 + $0x370] ss:$40 sps:$4 sm:$0xff]   ;;  %v18237_v30 = vcombine.low %v1624_v35, %v1624_v35  ;;  %v18240_v15 = vcombine.high %v1624_v35, %v1624_v35 }
 0x190   : > { %7246 = vmatprep.mubr.bf16.mxu1 %v15848_v45  ;;  %v2526_v39 = vsel %vm17684_vm12, %v2524_v24, %v2525_v57  ;;  %1588 = vst [vmem:[#allocation5 + $0x500] sm:$0xf] %v13497_v22  ;;  %v15845_v50 = vld [vmem:[#allocation5 + $0x3c4] ss:$40 sps:$4 sm:$0xff]   ;;  %vm1013_vm10 = vcmp.gt.f32.partialorder %v18207_v32, 0.0  ;;  %v1070_v12 = vmin.f32 %v18217_v16, 0.0  ;;  %v1287_v14 = vsel %vm1007_vm7, %v18165_v7, %v13406_v31 }
 0x191   : > { %v16957_v34 = vpop.eup %16956  ;;  %2670 = vst [vmem:[#allocation5 + $0x494] sm:$0xf] %v2526_v39  ;;  %1589 = vst [vmem:[#allocation5 + $0x528] sm:$0xf] %v18224_v41  ;;  %v15852_v60 = vld [vmem:[#allocation5 + $0x3c8] ss:$40 sps:$4 sm:$0xff]   ;;  %v13501_v23 = vcombine.low %v1625_v63, %v1625_v63  ;;  %v13605_v43 = vcombine.high %v1625_v63, %v1625_v63  ;;  %v13503_v21 = vcombine.low %v1626_v29, %v1626_v29 }
 0x192   : > { %2259 = vst [vmem:[#allocation5 + $0x508] sm:$0xf] %v18224_v41  ;;  %v16959_v18 = vpop.eup %16958  ;;  %v13409_v53 = vadd.f32 -1.0, %v16957_v34  ;;  %v1175_v59 = vmul.f32 1.442695, %v1067_v49  ;;  %v1068_v38 = vmin.f32 %v18222_v58, 0.0 }
 0x193   : > { %v13407_v1 = vadd.f32 -1.0, %v16959_v18  ;;  %v1181_v47 = vmul.f32 1.442695, %v1070_v12  ;;  %v1860_v6 = vrot.slane %v2525_v57, 4  ;;  %2260 = vst [vmem:[#allocation5 + $0x530] sm:$0xf] %v18237_v30 }
 0x194   : > { %1590 = vst [vmem:[#allocation5 + $0x550] sm:$0xf] %v18237_v30  ;;  %1591 = vst [vmem:[#allocation5 + $0x578] sm:$0xf] %v18240_v15  ;;  %v1290_v7 = vsel %vm1010_vm8, %v18176_v28, %v13409_v53  ;;  %v15857_v0 = vld [vmem:[#allocation5 + $0x41c] ss:$40 sps:$4 sm:$0xff]   ;;  %16962 = vpow2.f32 %v1175_v59 }
 0x195   : > { %6999 = vmatmul.mubr.bf16.gmra.mrb[100].mxu0 %v15842_v55  ;;  %2261 = vst [vmem:[#allocation5 + $0x558] sm:$0xf] %v18240_v15  ;;  %v1177_v51 = vmul.f32 1.442695, %v1068_v38  ;;  %v1861_v3 = vrot.slane %v13497_v22, 6  ;;  %v1320_v56 = vpack.c.bf16 %v1290_v7, %v1289_v19  ;;  %v1288_v42 = vsel %vm1008_vm9, %v18179_v54, %v13407_v1  ;;  %v1627_v62 = vld [vmem:[#allocation2 + $0xa0] sm:$0xff] }
 0x196   : > { %7006 = vmatprep.mubr.bf16.mxu0 %v15845_v50  ;;  %16964 = vpow2.f32 %v1181_v47  ;;  %v1319_v36 = vpack.c.bf16 %v1288_v42, %v1287_v14  ;;  %vm1011_vm11 = vcmp.gt.f32.partialorder %v18215_v37, 0.0  ;;  %2001 = vst [vmem:[#allocation5 + $0x4b4] sm:$0xf] %v2526_v39  ;;  %vm1014_vm13 = vcmp.gt.f32.partialorder %v18217_v16, 0.0  ;;  %v15851_v33 = vld [vmem:[#allocation5 + $0x3c0] ss:$40 sps:$4 sm:$0xff]  }
 0x197   : > { %7247 = vmatmul.mubr.bf16.gmra.mrb[48].mxu1 %v15852_v60  ;;  %16966 = vpow2.f32 %v1177_v51  ;;  %v1862_v28 = vsel %vm17684_vm12, %v1860_v6, %v1861_v3  ;;  %1348 = vst [vmem:[#allocation2 + $0xc8] sm:$0xff] %v1320_v56  ;;  %v2530_v46 = vrot.slane %v1861_v3, 4  ;;  %v2531_v52 = vrot.slane %v18224_v41, 6  ;;  %v15854_v25 = vld [vmem:[#allocation5 + $0x414] ss:$40 sps:$4 sm:$0xff]   ;;  %v1630_v56 = vld [vmem:[#allocation2 + $0xb8] sm:$0xff] }
 0x198   : > { %7254 = vmatprep.mubr.bf16.mxu1 %v15857_v0  ;;  %2002 = vst [vmem:[#allocation5 + $0x4dc] sm:$0xf] %v1862_v28  ;;  %v1867_v54 = vrot.slane %v18237_v30, 6  ;;  %1347 = vst [vmem:[#allocation2 + $0xc0] sm:$0xff] %v1319_v36  ;;  %vm1012_vm14 = vcmp.gt.f32.partialorder %v18222_v58, 0.0  ;;  %v2537_v10 = vrot.slane %v18240_v15, 6  ;;  %v13505_v22 = vcombine.low %v1627_v62, %v1627_v62 }
 0x199   : > { %v16961_v44 = vpop.eup %16960  ;;  %v2532_v27 = vsel %vm17684_vm12, %v2530_v46, %v2531_v52  ;;  %2671 = vst [vmem:[#allocation5 + $0x4bc] sm:$0xf] %v1862_v28  ;;  %v1866_v26 = vrot.slane %v2531_v52, 4  ;;  %2262 = vst [vmem:[#allocation5 + $0x580] sm:$0xf] %v13501_v23  ;;  %v1873_v48 = vrot.slane %v13501_v23, 6  ;;  %v13609_v35 = vcombine.high %v1627_v62, %v1627_v62 }
 0x19a   : > { %v13412_v61 = vadd.f32 -1.0, %v16961_v44  ;;  %2672 = vst [vmem:[#allocation5 + $0x4e4] sm:$0xf] %v2532_v27  ;;  %2003 = vst [vmem:[#allocation5 + $0x504] sm:$0xf] %v2532_v27  ;;  %v2536_v9 = vrot.slane %v1867_v54, 4  ;;  %v18300_v44 = vcombine.high %v1630_v56, %v1630_v56 }
 0x19b   : > { %v1872_v11 = vrot.slane %v2537_v10, 4  ;;  %1592 = vst [vmem:[#allocation5 + $0x5a0] sm:$0xf] %v13501_v23  ;;  %1593 = vst [vmem:[#allocation5 + $0x5c8] sm:$0xf] %v13605_v43  ;;  %v1868_v13 = vsel %vm17684_vm12, %v1866_v26, %v1867_v54  ;;  %v2543_v2 = vrot.slane %v13605_v43, 6 }
 0x19c   : > { %2263 = vst [vmem:[#allocation5 + $0x5a8] sm:$0xf] %v13605_v43  ;;  %v15860_v40 = vld [vmem:[#allocation5 + $0x418] ss:$40 sps:$4 sm:$0xff]   ;;  %v1293_v45 = vsel %vm1013_vm10, %v18207_v32, %v13412_v61  ;;  %v15866_v8 = vld [vmem:[#allocation5 + $0x46c] ss:$40 sps:$4 sm:$0xff]   ;;  %v2538_v57 = vsel %vm17684_vm12, %v2536_v9, %v2537_v10  ;;  %v13607_v32 = vcombine.high %v1626_v29, %v1626_v29  ;;  %v13511_v43 = vcombine.low %v1630_v56, %v1630_v56 }
 0x19d   : > { %7007 = vmatmul.mubr.bf16.gmra.mrb[104].mxu0 %v15851_v33  ;;  %2004 = vst [vmem:[#allocation5 + $0x52c] sm:$0xf] %v1868_v13  ;;  %2673 = vst [vmem:[#allocation5 + $0x50c] sm:$0xf] %v1868_v13  ;;  %v1874_v5 = vsel %vm17684_vm12, %v1872_v11, %v1873_v48  ;;  %v2542_v17 = vrot.slane %v1873_v48, 4  ;;  %v1628_v31 = vld [vmem:[#allocation2 + $0xa8] sm:$0xff] }
 0x19e   : > { %7014 = vmatprep.mubr.bf16.mxu0 %v15854_v25  ;;  %2674 = vst [vmem:[#allocation5 + $0x534] sm:$0xf] %v2538_v57  ;;  %2005 = vst [vmem:[#allocation5 + $0x554] sm:$0xf] %v2538_v57  ;;  %v16963_v24 = vpop.eup %16962  ;;  %v1878_v34 = vrot.slane %v2543_v2, 4  ;;  %v1879_v55 = vrot.slane %v13503_v21, 6  ;;  %v18282_v60 = vcombine.low %v1628_v31, %v1628_v31  ;;  %v13611_v36 = vcombine.high %v1628_v31, %v1628_v31 }
 0x19f   : > { %7255 = vmatmul.mubr.bf16.gmra.mrb[52].mxu1 %v15860_v40  ;;  %2006 = vst [vmem:[#allocation5 + $0x57c] sm:$0xf] %v1874_v5  ;;  %2675 = vst [vmem:[#allocation5 + $0x55c] sm:$0xf] %v1874_v5  ;;  %v13410_v39 = vadd.f32 -1.0, %v16963_v24  ;;  %v2544_v49 = vsel %vm17684_vm12, %v2542_v17, %v2543_v2  ;;  %v2549_v12 = vrot.slane %v13607_v32, 6 }
 0x1a0   : > { %7262 = vmatprep.mubr.bf16.mxu1 %v15866_v8  ;;  %v16965_v41 = vpop.eup %16964  ;;  %2264 = vst [vmem:[#allocation5 + $0x5d0] sm:$0xf] %v13503_v21  ;;  %1594 = vst [vmem:[#allocation5 + $0x5f0] sm:$0xf] %v13503_v21  ;;  %v15859_v30 = vld [vmem:[#allocation5 + $0x410] ss:$40 sps:$4 sm:$0xff]   ;;  %v1880_v53 = vsel %vm17684_vm12, %v1878_v34, %v1879_v55 }
 0x1a1   : > { %v16967_v19 = vpop.eup %16966  ;;  %v13413_v50 = vadd.f32 -1.0, %v16965_v41  ;;  %2676 = vst [vmem:[#allocation5 + $0x584] sm:$0xf] %v2544_v49  ;;  %1595 = vst [vmem:[#allocation5 + $0x618] sm:$0xf] %v13607_v32  ;;  %v1291_v18 = vsel %vm1011_vm11, %v18215_v37, %v13410_v39  ;;  %v2548_v38 = vrot.slane %v1879_v55, 4 }
 0x1a2   : > { %2265 = vst [vmem:[#allocation5 + $0x5f8] sm:$0xf] %v13607_v32  ;;  %2266 = vst [vmem:[#allocation5 + $0x620] sm:$0xf] %v13505_v22  ;;  %v15863_v15 = vld [vmem:[#allocation5 + $0x464] ss:$40 sps:$4 sm:$0xff]  }
 0x1a3   : > { %1596 = vst [vmem:[#allocation5 + $0x640] sm:$0xf] %v13505_v22  ;;  %1597 = vst [vmem:[#allocation5 + $0x668] sm:$0xf] %v13609_v35  ;;  %v13411_v14 = vadd.f32 -1.0, %v16967_v19  ;;  %v1294_v59 = vsel %vm1014_vm13, %v18217_v16, %v13413_v50  ;;  %v1629_v1 = vld [vmem:[#allocation2 + $0xb0] sm:$0xff]  ;;  %v2550_v3 = vsel %vm17684_vm12, %v2548_v38, %v2549_v12 }
 0x1a4   : > { %2267 = vst [vmem:[#allocation5 + $0x648] sm:$0xf] %v13609_v35  ;;  %2007 = vst [vmem:[#allocation5 + $0x5a4] sm:$0xf] %v2544_v49  ;;  %v1322_v47 = vpack.c.bf16 %v1294_v59, %v1293_v45  ;;  %v15869_v6 = vld [vmem:[#allocation5 + $0x468] ss:$40 sps:$4 sm:$0xff]   ;;  %v13509_v28 = vcombine.low %v1629_v1, %v1629_v1  ;;  %v13613_v46 = vcombine.high %v1629_v1, %v1629_v1 }
 0x1a5   : > { %2008 = vst [vmem:[#allocation5 + $0x5cc] sm:$0xf] %v1880_v53  ;;  %7015 = vmatmul.mubr.bf16.gmra.mrb[108].mxu0 %v15859_v30  ;;  %v1292_v37 = vsel %vm1012_vm14, %v18222_v58, %v13411_v14  ;;  %2677 = vst [vmem:[#allocation5 + $0x5ac] sm:$0xf] %v1880_v53  ;;  %v1884_v7 = vrot.slane %v2549_v12, 4  ;;  %v1885_v0 = vrot.slane %v13505_v22, 6 }
 0x1a6   : > { %2268 = vst [vmem:[#allocation5 + $0x670] sm:$0xf] %v18282_v60  ;;  %1598 = vst [vmem:[#allocation5 + $0x690] sm:$0xf] %v18282_v60  ;;  %7022 = vmatprep.mubr.bf16.mxu0 %v15863_v15  ;;  %v1321_v51 = vpack.c.bf16 %v1292_v37, %v1291_v18  ;;  %v15874_v16 = vld [vmem:[#allocation5 + $0x4bc] ss:$40 sps:$4 sm:$0xff]  }
 0x1a7   : > { %1350 = vst [vmem:[#allocation2 + $0xd8] sm:$0xff] %v1322_v47  ;;  %7263 = vmatmul.mubr.bf16.gmra.mrb[56].mxu1 %v15869_v6  ;;  %2678 = vst [vmem:[#allocation5 + $0x5d4] sm:$0xf] %v2550_v3  ;;  %v1886_v58 = vsel %vm17684_vm12, %v1884_v7, %v1885_v0  ;;  %v2554_v42 = vrot.slane %v1885_v0, 4  ;;  %v2555_v63 = vrot.slane %v13609_v35, 6  ;;  %v1631_v52 = vld [vmem:[#allocation2 + $0xc0] sm:$0xff] }
 0x1a8   : > { %2009 = vst [vmem:[#allocation5 + $0x5f4] sm:$0xf] %v2550_v3  ;;  %1349 = vst [vmem:[#allocation2 + $0xd0] sm:$0xff] %v1321_v51  ;;  %7270 = vmatprep.mubr.bf16.mxu1 %v15874_v16  ;;  %v18296_v54 = vld [vmem:[#allocation2 + $0xc8] sm:$0x3f]  ;;  %v1891_v33 = vrot.slane %v18282_v60, 6  ;;  %v18304_v61 = vcombine.low %v1631_v52, %v1631_v52  ;;  %v18307_v9 = vcombine.high %v1631_v52, %v1631_v52 }
 0x1a9   : > { %2010 = vst [vmem:[#allocation5 + $0x61c] sm:$0xf] %v1886_v58  ;;  %v2556_v10 = vsel %vm17684_vm12, %v2554_v42, %v2555_v63  ;;  %2679 = vst [vmem:[#allocation5 + $0x5fc] sm:$0xf] %v1886_v58  ;;  %v1890_v23 = vrot.slane %v2555_v63, 4  ;;  %v2561_v27 = vrot.slane %v13611_v36, 6  ;;  %v13515_v11 = vcombine.low %v18296_v54, %v18296_v54 }
 0x1aa   : > { %1599 = vst [vmem:[#allocation5 + $0x6b8] sm:$0xf] %v13611_v36  ;;  %2269 = vst [vmem:[#allocation5 + $0x698] sm:$0xf] %v13611_v36  ;;  %v15957_v26 = vld [vmem:[#allocation2 + $0xc8] ss:$0 sps:$4 sm:$0xff]   ;;  %v13516_v34 = vcombine.high %v18296_v54, %v18296_v54 }
 0x1ab   : > { %2680 = vst [vmem:[#allocation5 + $0x624] sm:$0xf] %v2556_v10  ;;  %2270 = vst [vmem:[#allocation5 + $0x6c0] sm:$0xf] %v13509_v28  ;;  %v15868_v29 = vld [vmem:[#allocation5 + $0x460] ss:$40 sps:$4 sm:$0xff]   ;;  %v1892_v48 = vsel %vm17684_vm12, %v1890_v23, %v1891_v33 }
 0x1ac   : > { %1600 = vst [vmem:[#allocation5 + $0x6e0] sm:$0xf] %v13509_v28  ;;  %1601 = vst [vmem:[#allocation5 + $0x708] sm:$0xf] %v13613_v46  ;;  %v1897_v25 = vrot.slane %v13509_v28, 6  ;;  %v2047_v40 = vld [vmem:[#allocation2 + $0xc8] sm:$0xff] }
 0x1ad   : > { %2271 = vst [vmem:[#allocation5 + $0x6e8] sm:$0xf] %v13613_v46  ;;  %2011 = vst [vmem:[#allocation5 + $0x644] sm:$0xf] %v2556_v10  ;;  %v15871_v13 = vld [vmem:[#allocation5 + $0x4b4] ss:$40 sps:$4 sm:$0xff]   ;;  %7023 = vmatmul.mubr.bf16.gmra.mrb[112].mxu0 %v15868_v29  ;;  %v18319_v21 = vcombine.low %v2047_v40, %v2047_v40  ;;  %v18328_v49 = vcombine.high %v2047_v40, %v2047_v40 }
 0x1ae   : > { %2272 = vst [vmem:[#allocation5 + $0x710] sm:$0xf] %v13511_v43  ;;  %1602 = vst [vmem:[#allocation5 + $0x730] sm:$0xf] %v13511_v43  ;;  %v2560_v62 = vrot.slane %v1891_v33, 4  ;;  %v1896_v8 = vrot.slane %v2561_v27, 4  ;;  %7030 = vmatprep.mubr.bf16.mxu0 %v15871_v13 }
 0x1af   : > { %1603 = vst [vmem:[#allocation5 + $0x758] sm:$0xf] %v18300_v44  ;;  %2273 = vst [vmem:[#allocation5 + $0x738] sm:$0xf] %v18300_v44  ;;  %v15878_v45 = vld [vmem:[#allocation5 + $0x4b8] ss:$40 sps:$4 sm:$0xff]  }
 0x1b0   : > { %1606 = vst [vmem:[#allocation5 + $0x7d0] sm:$0xf] %v15957_v26  ;;  %2012 = vst [vmem:[#allocation5 + $0x66c] sm:$0xf] %v1892_v48  ;;  %v2566_v57 = vrot.slane %v1897_v25, 4  ;;  %v2567_v2 = vrot.slane %v13613_v46, 6  ;;  %v2562_v17 = vsel %vm17684_vm12, %v2560_v62, %v2561_v27  ;;  %7271 = vmatmul.mubr.bf16.gmra.mrb[60].mxu1 %v15878_v45  ;;  %v1898_v32 = vsel %vm17684_vm12, %v1896_v8, %v1897_v25 }
 0x1b1   : > { %2681 = vst [vmem:[#allocation5 + $0x64c] sm:$0xf] %v1892_v48  ;;  %2274 = vst [vmem:[#allocation5 + $0x760] sm:$0xf] %v18304_v61  ;;  %v15883_v5 = vld [vmem:[#allocation5 + $0x50c] ss:$40 sps:$4 sm:$0xff]  }
 0x1b2   : > { %1604 = vst [vmem:[#allocation5 + $0x780] sm:$0xf] %v18304_v61  ;;  %1605 = vst [vmem:[#allocation5 + $0x7a8] sm:$0xf] %v18307_v9  ;;  %v2692_v24 = vld [vmem:[#allocation2 + $0x8] sm:$0xff]  ;;  %v2568_v22 = vsel %vm17684_vm12, %v2566_v57, %v2567_v2  ;;  %v1902_v35 = vrot.slane %v2567_v2, 4  ;;  %7278 = vmatprep.mubr.bf16.mxu1 %v15883_v5 }
 0x1b3   : > { %2275 = vst [vmem:[#allocation5 + $0x788] sm:$0xf] %v18307_v9  ;;  %2682 = vst [vmem:[#allocation5 + $0x674] sm:$0xf] %v2562_v17  ;;  %v1903_v31 = vrot.slane %v13511_v43, 6  ;;  %v2573_v41 = vrot.slane %v18300_v44, 6  ;;  %v13622_v55 = vcombine.low %v2692_v24, %v2692_v24  ;;  %v13623_v51 = vcombine.high %v2692_v24, %v2692_v24 }
 0x1b4   : > { %2013 = vst [vmem:[#allocation5 + $0x694] sm:$0xf] %v2562_v17  ;;  %2014 = vst [vmem:[#allocation5 + $0x6bc] sm:$0xf] %v1898_v32  ;;  %v1909_v39 = vrot.slane %v18304_v61, 6  ;;  %v2579_v14 = vrot.slane %v18307_v9, 6 }
 0x1b5   : > { %2683 = vst [vmem:[#allocation5 + $0x69c] sm:$0xf] %v1898_v32  ;;  %2684 = vst [vmem:[#allocation5 + $0x6c4] sm:$0xf] %v2568_v22  ;;  %v2948_v19 = vld [vmem:[#allocation2 + $0x8] sm:$0xfc]  ;;  %v1904_v50 = vsel %vm17684_vm12, %v1902_v35, %v1903_v31 }
 0x1b6   : > { %2276 = vst [vmem:[#allocation5 + $0x7b0] sm:$0xf] %v18319_v21  ;;  %2015 = vst [vmem:[#allocation5 + $0x6e4] sm:$0xf] %v2568_v22  ;;  %v2572_v12 = vrot.slane %v1903_v31, 4  ;;  %v1908_v15 = vrot.slane %v2573_v41, 4  ;;  %v13673_v16 = vcombine.low %v2948_v19, %v2948_v19  ;;  %v13674_v63 = vcombine.high %v2948_v19, %v2948_v19 }
 0x1b7   : > { %v15877_v30 = vld [vmem:[#allocation5 + $0x4b0] ss:$40 sps:$4 sm:$0xff]   ;;  %2016 = vst [vmem:[#allocation5 + $0x70c] sm:$0xf] %v1904_v50  ;;  %2685 = vst [vmem:[#allocation5 + $0x6ec] sm:$0xf] %v1904_v50 }
 0x1b8   : > { %v2578_v18 = vrot.slane %v1909_v39, 4  ;;  %2277 = vst [vmem:[#allocation5 + $0x7d8] sm:$0xf] %v18328_v49  ;;  %2897 = vst [vmem:[#allocation5 + $0x10] sm:$0xf] %v13622_v55  ;;  %v2574_v60 = vsel %vm17684_vm12, %v2572_v12, %v2573_v41  ;;  %v1915_v59 = vrot.slane %v13515_v11, 6  ;;  %7031 = vmatmul.mubr.bf16.gmra.mrb[116].mxu0 %v15877_v30  ;;  %v1910_v47 = vsel %vm17684_vm12, %v1908_v15, %v1909_v39 }
 0x1b9   : > { %v15880_v53 = vld [vmem:[#allocation5 + $0x504] ss:$40 sps:$4 sm:$0xff]   ;;  %v15886_v38 = vld [vmem:[#allocation5 + $0x508] ss:$40 sps:$4 sm:$0xff]   ;;  %2686 = vst [vmem:[#allocation5 + $0x714] sm:$0xf] %v2574_v60 }
 0x1ba   : > { %v15891_v1 = vld [vmem:[#allocation5 + $0x55c] ss:$40 sps:$4 sm:$0xff]   ;;  %2017 = vst [vmem:[#allocation5 + $0x734] sm:$0xf] %v2574_v60  ;;  %v2580_v37 = vsel %vm17684_vm12, %v2578_v18, %v2579_v14  ;;  %v1914_v6 = vrot.slane %v2579_v14, 4  ;;  %7038 = vmatprep.mubr.bf16.mxu0 %v15880_v53  ;;  %7279 = vmatmul.mubr.bf16.gmra.mrb[64].mxu1 %v15886_v38  ;;  %v2582_v58 = vrot.slane %v18319_v21, 6 }
 0x1bb   : > { %v2949_v7 = vld [vmem:[#allocation2 + $0x10] sm:$0xff]  ;;  %2018 = vst [vmem:[#allocation5 + $0x75c] sm:$0xf] %v1910_v47  ;;  %2687 = vst [vmem:[#allocation5 + $0x73c] sm:$0xf] %v1910_v47  ;;  %v2950_v3 = vld [vmem:[#allocation2 + $0x18] sm:$0xff]  ;;  %7286 = vmatprep.mubr.bf16.mxu1 %v15891_v1 }
 0x1bc   : > { %2688 = vst [vmem:[#allocation5 + $0x764] sm:$0xf] %v2580_v37  ;;  %v15960_v0 = vld [vmem:[#allocation2 + $0xd0] ss:$0 sps:$4 sm:$0x33]   ;;  %v1916_v56 = vsel %vm17684_vm12, %v1914_v6, %v1915_v59  ;;  %v2585_v42 = vrot.slane %v18328_v49, 6  ;;  %v13675_v52 = vcombine.low %v2949_v7, %v2949_v7  ;;  %v13625_v54 = vcombine.high %v2949_v7, %v2949_v7 }
 0x1bd   : > { %2019 = vst [vmem:[#allocation5 + $0x784] sm:$0xf] %v2580_v37  ;;  %v2951_v36 = vld [vmem:[#allocation2 + $0x20] sm:$0xff]  ;;  %2020 = vst [vmem:[#allocation5 + $0x7ac] sm:$0xf] %v1916_v56  ;;  %v1917_v28 = vrot.slane %v1915_v59, 4  ;;  %v2583_v10 = vsel %vm17684_vm12, %v1914_v6, %v2582_v58  ;;  %v13677_v43 = vcombine.low %v2950_v3, %v2950_v3  ;;  %v18348_v44 = vcombine.high %v2950_v3, %v2950_v3 }
 0x1be   : > { %v1918_v46 = vrot.slane %v13516_v34, 6  ;;  %2898 = vst [vmem:[#allocation5 + $0x38] sm:$0xf] %v13623_v51  ;;  %v2584_v23 = vrot.slane %v2582_v58, 4  ;;  %v2952_v33 = vld [vmem:[#allocation2 + $0x28] sm:$0xff]  ;;  %v2587_v26 = vrot.slane %v2585_v42, 4  ;;  %v18352_v25 = vcombine.low %v2951_v36, %v2951_v36 }
 0x1bf   : > { %2689 = vst [vmem:[#allocation5 + $0x78c] sm:$0xf] %v2583_v10  ;;  %v2588_v29 = vrot.slane %v15960_v0, 6  ;;  %2899 = vst [vmem:[#allocation5 + $0x60] sm:$0xf] %v13675_v52  ;;  %v2953_v61 = vld [vmem:[#allocation2 + $0x30] sm:$0xff]  ;;  %v18359_v2 = vcombine.high %v2951_v36, %v2951_v36  ;;  %v18362_v5 = vcombine.low %v2952_v33, %v2952_v33  ;;  %v18368_v35 = vcombine.high %v2952_v33, %v2952_v33 }
 0x1c0   : > { %v1919_v27 = vsel %vm17684_vm12, %v1917_v28, %v1918_v46  ;;  %2900 = vst [vmem:[#allocation5 + $0x88] sm:$0xf] %v13625_v54  ;;  %v15885_v9 = vld [vmem:[#allocation5 + $0x500] ss:$40 sps:$4 sm:$0xff]   ;;  %v2586_v11 = vsel %vm17684_vm12, %v2584_v23, %v2585_v42  ;;  %v13725_v40 = vrot.slane %v13673_v16, 10  ;;  %v3106_v13 = vrot.slane %v13674_v63, 6 }
 0x1c1   : > { %2021 = vst [vmem:[#allocation5 + $0x7d4] sm:$0xf] %v1919_v27  ;;  %v3109_v48 = vrot.slane %v13675_v52, 6  ;;  %2901 = vst [vmem:[#allocation5 + $0xb0] sm:$0xf] %v13677_v43  ;;  %v2954_v62 = vld [vmem:[#allocation2 + $0x38] sm:$0xff]  ;;  %v2589_v8 = vsel %vm17684_vm12, %v2587_v26, %v2588_v29  ;;  %7039 = vmatmul.mubr.bf16.gmra.mrb[120].mxu0 %v15885_v9  ;;  %v13683_v49 = vcombine.low %v2953_v61, %v2953_v61 }
 0x1c2   : > { %2902 = vst [vmem:[#allocation5 + $0xd8] sm:$0xf] %v18348_v44  ;;  %v15888_v45 = vld [vmem:[#allocation5 + $0x554] ss:$40 sps:$4 sm:$0xff]   ;;  %2690 = vst [vmem:[#allocation5 + $0x7b4] sm:$0xf] %v2586_v11  ;;  %v3107_v24 = vsel %vm17684_vm12, %v13725_v40, %v3106_v13  ;;  %v13633_v34 = vcombine.high %v2953_v61, %v2953_v61  ;;  %v18378_v12 = vcombine.low %v2954_v62, %v2954_v62 }
 0x1c3   : > { %v3112_v57 = vrot.slane %v13625_v54, 6  ;;  %2903 = vst [vmem:[#allocation5 + $0x100] sm:$0xf] %v18352_v25  ;;  %v18364_v17 = vld [vmem:[#allocation2 + $0x40] sm:$0xff]  ;;  %v15895_v21 = vld [vmem:[#allocation5 + $0x558] ss:$40 sps:$4 sm:$0xff]   ;;  %7046 = vmatprep.mubr.bf16.mxu0 %v15888_v45  ;;  %v18382_v18 = vcombine.high %v2954_v62, %v2954_v62 }
 0x1c4   : > { %2691 = vst [vmem:[#allocation5 + $0x7dc] sm:$0xf] %v2589_v8  ;;  %v3108_v32 = vrot.slane %v3106_v13, 4  ;;  %v3111_v22 = vrot.slane %v3109_v48, 4  ;;  %v15900_v31 = vld [vmem:[#allocation5 + $0x5ac] ss:$40 sps:$4 sm:$0xff]   ;;  %7287 = vmatmul.mubr.bf16.gmra.mrb[68].mxu1 %v15895_v21  ;;  %v18386_v14 = vcombine.low %v18364_v17, %v18364_v17  ;;  %v13637_v61 = vcombine.high %v18364_v17, %v18364_v17 }
 0x1c5   : > { %3309 = vst [vmem:[#allocation5 + $0x14] sm:$0xf] %v3107_v24  ;;  %v3114_v41 = vrot.slane %v3112_v57, 4  ;;  %v3115_v39 = vrot.slane %v13677_v43, 6  ;;  %2904 = vst [vmem:[#allocation5 + $0x128] sm:$0xf] %v18359_v2  ;;  %7294 = vmatprep.mubr.bf16.mxu1 %v15900_v31 }
 0x1c6   : > { %2905 = vst [vmem:[#allocation5 + $0x150] sm:$0xf] %v18362_v5  ;;  %v3110_v55 = vsel %vm17684_vm12, %v3108_v32, %v3109_v48  ;;  %v3113_v19 = vsel %vm17684_vm12, %v3111_v22, %v3112_v57  ;;  %v3118_v50 = vrot.slane %v18348_v44, 6  ;;  %2906 = vst [vmem:[#allocation5 + $0x178] sm:$0xf] %v18368_v35  ;;  %v3121_v60 = vrot.slane %v18352_v25, 6 }
 0x1c7   : > { %3310 = vst [vmem:[#allocation5 + $0x3c] sm:$0xf] %v3110_v55  ;;  %v3116_v30 = vsel %vm17684_vm12, %v3114_v41, %v3115_v39  ;;  %3311 = vst [vmem:[#allocation5 + $0x64] sm:$0xf] %v3113_v19  ;;  %v3117_v15 = vrot.slane %v3115_v39, 4  ;;  %v3124_v59 = vrot.slane %v18359_v2, 6 }
 0x1c8   : > { %2907 = vst [vmem:[#allocation5 + $0x1a0] sm:$0xf] %v13683_v49  ;;  %2908 = vst [vmem:[#allocation5 + $0x1c8] sm:$0xf] %v13633_v34  ;;  %v3120_v53 = vrot.slane %v3118_v50, 4  ;;  %v3127_v38 = vrot.slane %v18362_v5, 6 }
 0x1c9   : > { %3312 = vst [vmem:[#allocation5 + $0x8c] sm:$0xf] %v3116_v30  ;;  %2909 = vst [vmem:[#allocation5 + $0x1f0] sm:$0xf] %v18378_v12  ;;  %v18392_v1 = vld [vmem:[#allocation5 + $0x7d0] sm:$0xff]  ;;  %v3119_v47 = vsel %vm17684_vm12, %v3117_v15, %v3118_v50  ;;  %v3130_v37 = vrot.slane %v18368_v35, 6 }
 0x1ca   : > { %v3133_v6 = vrot.slane %v13683_v49, 6  ;;  %v3136_v7 = vrot.slane %v13633_v34, 6  ;;  %2910 = vst [vmem:[#allocation5 + $0x218] sm:$0xf] %v18382_v18  ;;  %2911 = vst [vmem:[#allocation5 + $0x240] sm:$0xf] %v18386_v14  ;;  %v3122_v3 = vsel %vm17684_vm12, %v3120_v53, %v3121_v60  ;;  %v14185_v54 = vcombine.high %v18392_v1, %v18392_v1 }
 0x1cb   : > { %v2956_v0 = vld [vmem:[#allocation2 + $0x48] sm:$0xff]  ;;  %v15897_v16 = vld [vmem:[#allocation5 + $0x5a4] ss:$40 sps:$4 sm:$0xff]   ;;  %3313 = vst [vmem:[#allocation5 + $0xb4] sm:$0xf] %v3119_v47  ;;  %v3123_v56 = vrot.slane %v3121_v60, 4 }
 0x1cc   : > { %v15894_v51 = vld [vmem:[#allocation5 + $0x550] ss:$40 sps:$4 sm:$0xff]   ;;  %3314 = vst [vmem:[#allocation5 + $0xdc] sm:$0xf] %v3122_v3  ;;  %v3126_v42 = vrot.slane %v3124_v59, 4  ;;  %v3129_v63 = vrot.slane %v3127_v38, 4  ;;  %v13689_v9 = vcombine.low %v2956_v0, %v2956_v0  ;;  %v13639_v11 = vcombine.high %v2956_v0, %v2956_v0 }
 0x1cd   : > { %v18401_v58 = vld [vmem:[#allocation5 + $0x7d8] sm:$0xff]  ;;  %v3132_v36 = vrot.slane %v3130_v37, 4  ;;  %v3135_v28 = vrot.slane %v3133_v6, 4  ;;  %7047 = vmatmul.mubr.bf16.gmra.mrb[124].mxu0 %v15894_v51  ;;  %v15904_v52 = vld [vmem:[#allocation5 + $0x5a8] ss:$40 sps:$4 sm:$0xff]   ;;  %v3125_v23 = vsel %vm17684_vm12, %v3123_v56, %v3124_v59  ;;  %v3138_v43 = vrot.slane %v3136_v7, 4 }
 0x1ce   : > { %v2957_v46 = vld [vmem:[#allocation2 + $0x50] sm:$0xff]  ;;  %v14187_v10 = vcombine.high %v18401_v58, %v18401_v58  ;;  %7054 = vmatprep.mubr.bf16.mxu0 %v15897_v16  ;;  %v3128_v33 = vsel %vm17684_vm12, %v3126_v42, %v3127_v38  ;;  %3315 = vst [vmem:[#allocation5 + $0x104] sm:$0xf] %v3125_v23  ;;  %v3131_v27 = vsel %vm17684_vm12, %v3129_v63, %v3130_v37  ;;  %v3139_v25 = vrot.slane %v18378_v12, 6  ;;  %v2958_v45 = vld [vmem:[#allocation2 + $0x58] sm:$0xff]  ;;  %v2959_v49 = vld [vmem:[#allocation2 + $0x60] sm:$0xff] }
 0x1cf   : > { %v15909_v44 = vld [vmem:[#allocation5 + $0x5fc] ss:$40 sps:$4 sm:$0xff]   ;;  %v3134_v26 = vsel %vm17684_vm12, %v3132_v36, %v3133_v6  ;;  %v3137_v29 = vsel %vm17684_vm12, %v3135_v28, %v3136_v7  ;;  %7295 = vmatmul.mubr.bf16.gmra.mrb[72].mxu1 %v15904_v52  ;;  %3316 = vst [vmem:[#allocation5 + $0x12c] sm:$0xf] %v3128_v33  ;;  %3317 = vst [vmem:[#allocation5 + $0x154] sm:$0xf] %v3131_v27  ;;  %v13691_v48 = vcombine.low %v2957_v46, %v2957_v46 }
 0x1d0   : > { %3318 = vst [vmem:[#allocation5 + $0x17c] sm:$0xf] %v3134_v26  ;;  %3319 = vst [vmem:[#allocation5 + $0x1a4] sm:$0xf] %v3137_v29  ;;  %7302 = vmatprep.mubr.bf16.mxu1 %v15909_v44  ;;  %v3142_v40 = vrot.slane %v18382_v18, 6  ;;  %v3145_v13 = vrot.slane %v18386_v14, 6  ;;  %v13641_v62 = vcombine.high %v2957_v46, %v2957_v46  ;;  %v3140_v8 = vsel %vm17684_vm12, %v3138_v43, %v3139_v25 }
 0x1d1   : > { %v3141_v57 = vrot.slane %v3139_v25, 4  ;;  %2912 = vst [vmem:[#allocation5 + $0x268] sm:$0xf] %v13637_v61  ;;  %v3148_v2 = vrot.slane %v13637_v61, 6  ;;  %v3151_v5 = vrot.slane %v13689_v9, 6  ;;  %v3154_v24 = vrot.slane %v13639_v11, 6 }
 0x1d2   : > { %2913 = vst [vmem:[#allocation5 + $0x290] sm:$0xf] %v13689_v9  ;;  %2914 = vst [vmem:[#allocation5 + $0x2b8] sm:$0xf] %v13639_v11  ;;  %v3144_v17 = vrot.slane %v3142_v40, 4  ;;  %v3147_v21 = vrot.slane %v3145_v13, 4  ;;  %v13693_v41 = vcombine.low %v2958_v45, %v2958_v45  ;;  %v13643_v39 = vcombine.high %v2958_v45, %v2958_v45 }
 0x1d3   : > { %3320 = vst [vmem:[#allocation5 + $0x1cc] sm:$0xf] %v3140_v8  ;;  %v3157_v32 = vrot.slane %v13691_v48, 6  ;;  %2915 = vst [vmem:[#allocation5 + $0x2e0] sm:$0xf] %v13691_v48  ;;  %v3143_v35 = vsel %vm17684_vm12, %v3141_v57, %v3142_v40  ;;  %v3150_v31 = vrot.slane %v3148_v2, 4  ;;  %v13695_v37 = vcombine.low %v2959_v49, %v2959_v49 }
 0x1d4   : > { %2916 = vst [vmem:[#allocation5 + $0x308] sm:$0xf] %v13641_v62  ;;  %v15903_v22 = vld [vmem:[#allocation5 + $0x5a0] ss:$40 sps:$4 sm:$0xff]   ;;  %v15906_v34 = vld [vmem:[#allocation5 + $0x5f4] ss:$40 sps:$4 sm:$0xff]   ;;  %v3146_v55 = vsel %vm17684_vm12, %v3144_v17, %v3145_v13  ;;  %v3149_v19 = vsel %vm17684_vm12, %v3147_v21, %v3148_v2  ;;  %v13645_v3 = vcombine.high %v2959_v49, %v2959_v49 }
 0x1d5   : > { %3321 = vst [vmem:[#allocation5 + $0x1f4] sm:$0xf] %v3143_v35  ;;  %v3153_v50 = vrot.slane %v3151_v5, 4  ;;  %v3156_v12 = vrot.slane %v3154_v24, 4  ;;  %v2960_v30 = vld [vmem:[#allocation2 + $0x68] sm:$0xff]  ;;  %7055 = vmatmul.mubr.bf16.gmra.mrb[128].mxu0 %v15903_v22  ;;  %v3152_v18 = vsel %vm17684_vm12, %v3150_v31, %v3151_v5  ;;  %v3159_v14 = vrot.slane %v3157_v32, 4 }
 0x1d6   : > { %v15912_v15 = vld [vmem:[#allocation5 + $0x5f8] ss:$40 sps:$4 sm:$0xff]   ;;  %3322 = vst [vmem:[#allocation5 + $0x21c] sm:$0xf] %v3146_v55  ;;  %3323 = vst [vmem:[#allocation5 + $0x244] sm:$0xf] %v3149_v19  ;;  %7062 = vmatprep.mubr.bf16.mxu0 %v15906_v34  ;;  %v13697_v63 = vcombine.low %v2960_v30, %v2960_v30  ;;  %v13647_v36 = vcombine.high %v2960_v30, %v2960_v30 }
 0x1d7   : > { %v3160_v53 = vrot.slane %v13641_v62, 6  ;;  %v3163_v60 = vrot.slane %v13693_v41, 6  ;;  %2917 = vst [vmem:[#allocation5 + $0x330] sm:$0xf] %v13693_v41  ;;  %2918 = vst [vmem:[#allocation5 + $0x358] sm:$0xf] %v13643_v39  ;;  %v3155_v38 = vsel %vm17684_vm12, %v3153_v50, %v3154_v24  ;;  %v3158_v47 = vsel %vm17684_vm12, %v3156_v12, %v3157_v32  ;;  %7303 = vmatmul.mubr.bf16.gmra.mrb[76].mxu1 %v15912_v15 }
 0x1d8   : > { %v15917_v59 = vld [vmem:[#allocation5 + $0x64c] ss:$40 sps:$4 sm:$0xff]   ;;  %3324 = vst [vmem:[#allocation5 + $0x26c] sm:$0xf] %v3152_v18  ;;  %v3166_v6 = vrot.slane %v13643_v39, 6  ;;  %v2961_v7 = vld [vmem:[#allocation2 + $0x70] sm:$0xff] }
 0x1d9   : > { %3325 = vst [vmem:[#allocation5 + $0x294] sm:$0xf] %v3155_v38  ;;  %3326 = vst [vmem:[#allocation5 + $0x2bc] sm:$0xf] %v3158_v47  ;;  %v3161_v0 = vsel %vm17684_vm12, %v3159_v14, %v3160_v53  ;;  %v3162_v51 = vrot.slane %v3160_v53, 4  ;;  %v3165_v16 = vrot.slane %v3163_v60, 4  ;;  %7310 = vmatprep.mubr.bf16.mxu1 %v15917_v59  ;;  %v13699_v43 = vcombine.low %v2961_v7, %v2961_v7 }
 0x1da   : > { %3327 = vst [vmem:[#allocation5 + $0x2e4] sm:$0xf] %v3161_v0  ;;  %v3168_v56 = vrot.slane %v3166_v6, 4  ;;  %v3169_v42 = vrot.slane %v13695_v37, 6  ;;  %2919 = vst [vmem:[#allocation5 + $0x380] sm:$0xf] %v13695_v37  ;;  %v13649_v40 = vcombine.high %v2961_v7, %v2961_v7 }
 0x1db   : > { %v2962_v28 = vld [vmem:[#allocation2 + $0x78] sm:$0xff]  ;;  %v3164_v46 = vsel %vm17684_vm12, %v3162_v51, %v3163_v60  ;;  %v3167_v52 = vsel %vm17684_vm12, %v3165_v16, %v3166_v6  ;;  %2920 = vst [vmem:[#allocation5 + $0x3a8] sm:$0xf] %v13645_v3  ;;  %v3172_v23 = vrot.slane %v13645_v3, 6  ;;  %v2963_v44 = vld [vmem:[#allocation2 + $0x80] sm:$0xff]  ;;  %v3175_v26 = vrot.slane %v13697_v63, 6 }
 0x1dc   : > { %3328 = vst [vmem:[#allocation5 + $0x30c] sm:$0xf] %v3164_v46  ;;  %v3170_v33 = vsel %vm17684_vm12, %v3168_v56, %v3169_v42  ;;  %3329 = vst [vmem:[#allocation5 + $0x334] sm:$0xf] %v3167_v52  ;;  %v3171_v27 = vrot.slane %v3169_v42, 4  ;;  %v3178_v29 = vrot.slane %v13647_v36, 6  ;;  %v13701_v13 = vcombine.low %v2962_v28, %v2962_v28 }
 0x1dd   : > { %2921 = vst [vmem:[#allocation5 + $0x3d0] sm:$0xf] %v13697_v63  ;;  %2922 = vst [vmem:[#allocation5 + $0x3f8] sm:$0xf] %v13647_v36  ;;  %v2964_v25 = vld [vmem:[#allocation2 + $0x88] sm:$0xff]  ;;  %v3174_v9 = vrot.slane %v3172_v23, 4  ;;  %v13651_v57 = vcombine.high %v2962_v28, %v2962_v28  ;;  %v13703_v2 = vcombine.low %v2963_v44, %v2963_v44  ;;  %v13653_v22 = vcombine.high %v2963_v44, %v2963_v44 }
 0x1de   : > { %v15911_v61 = vld [vmem:[#allocation5 + $0x5f0] ss:$40 sps:$4 sm:$0xff]   ;;  %3330 = vst [vmem:[#allocation5 + $0x35c] sm:$0xf] %v3170_v33  ;;  %v3181_v11 = vrot.slane %v13699_v43, 6  ;;  %v3173_v45 = vsel %vm17684_vm12, %v3171_v27, %v3172_v23  ;;  %v3177_v8 = vrot.slane %v3175_v26, 4  ;;  %v13705_v49 = vcombine.low %v2964_v25, %v2964_v25 }
 0x1df   : > { %2923 = vst [vmem:[#allocation5 + $0x420] sm:$0xf] %v13699_v43  ;;  %v2965_v48 = vld [vmem:[#allocation2 + $0x90] sm:$0xff]  ;;  %v15914_v62 = vld [vmem:[#allocation5 + $0x644] ss:$40 sps:$4 sm:$0xff]   ;;  %7063 = vmatmul.mubr.bf16.gmra.mrb[132].mxu0 %v15911_v61  ;;  %v3176_v21 = vsel %vm17684_vm12, %v3174_v9, %v3175_v26  ;;  %v3180_v24 = vrot.slane %v3178_v29, 4  ;;  %v13655_v19 = vcombine.high %v2964_v25, %v2964_v25 }
 0x1e0   : > { %v2966_v5 = vld [vmem:[#allocation2 + $0x98] sm:$0xff]  ;;  %v15921_v17 = vld [vmem:[#allocation5 + $0x648] ss:$40 sps:$4 sm:$0xff]   ;;  %3331 = vst [vmem:[#allocation5 + $0x384] sm:$0xf] %v3173_v45  ;;  %v3183_v32 = vrot.slane %v3181_v11, 4  ;;  %7070 = vmatprep.mubr.bf16.mxu0 %v15914_v62  ;;  %v3179_v31 = vsel %vm17684_vm12, %v3177_v8, %v3178_v29  ;;  %v18452_v50 = vcombine.low %v2965_v48, %v2965_v48  ;;  %v13657_v60 = vcombine.high %v2965_v48, %v2965_v48 }
 0x1e1   : > { %2924 = vst [vmem:[#allocation5 + $0x448] sm:$0xf] %v13649_v40  ;;  %2925 = vst [vmem:[#allocation5 + $0x470] sm:$0xf] %v13701_v13  ;;  %v15926_v35 = vld [vmem:[#allocation5 + $0x69c] ss:$40 sps:$4 sm:$0xff]   ;;  %7311 = vmatmul.mubr.bf16.gmra.mrb[80].mxu1 %v15921_v17  ;;  %v3182_v34 = vsel %vm17684_vm12, %v3180_v24, %v3181_v11  ;;  %v13709_v59 = vcombine.low %v2966_v5, %v2966_v5  ;;  %v18457_v38 = vcombine.high %v2966_v5, %v2966_v5 }
 0x1e2   : > { %3332 = vst [vmem:[#allocation5 + $0x3ac] sm:$0xf] %v3176_v21  ;;  %v3184_v41 = vrot.slane %v13649_v40, 6  ;;  %v3187_v39 = vrot.slane %v13701_v13, 6  ;;  %2926 = vst [vmem:[#allocation5 + $0x498] sm:$0xf] %v13651_v57  ;;  %7318 = vmatprep.mubr.bf16.mxu1 %v15926_v35 }
 0x1e3   : > { %2927 = vst [vmem:[#allocation5 + $0x4c0] sm:$0xf] %v13703_v2  ;;  %3333 = vst [vmem:[#allocation5 + $0x3d4] sm:$0xf] %v3179_v31  ;;  %v3190_v55 = vrot.slane %v13651_v57, 6  ;;  %v3193_v18 = vrot.slane %v13703_v2, 6 }
 0x1e4   : > { %2928 = vst [vmem:[#allocation5 + $0x4e8] sm:$0xf] %v13653_v22  ;;  %3334 = vst [vmem:[#allocation5 + $0x3fc] sm:$0xf] %v3182_v34  ;;  %v3185_v12 = vsel %vm17684_vm12, %v3183_v32, %v3184_v41  ;;  %v3186_v30 = vrot.slane %v3184_v41, 4  ;;  %v3189_v15 = vrot.slane %v3187_v39, 4 }
 0x1e5   : > { %2929 = vst [vmem:[#allocation5 + $0x510] sm:$0xf] %v13705_v49  ;;  %v15920_v14 = vld [vmem:[#allocation5 + $0x640] ss:$40 sps:$4 sm:$0xff]   ;;  %3335 = vst [vmem:[#allocation5 + $0x424] sm:$0xf] %v3185_v12 }
 0x1e6   : > { %v3192_v53 = vrot.slane %v3190_v55, 4  ;;  %2930 = vst [vmem:[#allocation5 + $0x538] sm:$0xf] %v13655_v19  ;;  %2931 = vst [vmem:[#allocation5 + $0x560] sm:$0xf] %v18452_v50  ;;  %v2967_v47 = vld [vmem:[#allocation2 + $0xa0] sm:$0xff]  ;;  %v3188_v37 = vsel %vm17684_vm12, %v3186_v30, %v3187_v39  ;;  %v3191_v6 = vsel %vm17684_vm12, %v3189_v15, %v3190_v55 }
 0x1e7   : > { %v3195_v7 = vrot.slane %v3193_v18, 4  ;;  %v3196_v0 = vrot.slane %v13653_v22, 6  ;;  %v2968_v51 = vld [vmem:[#allocation2 + $0xa8] sm:$0xff]  ;;  %3336 = vst [vmem:[#allocation5 + $0x44c] sm:$0xf] %v3188_v37  ;;  %v3199_v56 = vrot.slane %v13705_v49, 6  ;;  %7071 = vmatmul.mubr.bf16.gmra.mrb[136].mxu0 %v15920_v14  ;;  %v13711_v33 = vcombine.low %v2967_v47, %v2967_v47 }
 0x1e8   : > { %v15923_v16 = vld [vmem:[#allocation5 + $0x694] ss:$40 sps:$4 sm:$0xff]   ;;  %v3194_v3 = vsel %vm17684_vm12, %v3192_v53, %v3193_v18  ;;  %3337 = vst [vmem:[#allocation5 + $0x474] sm:$0xf] %v3191_v6  ;;  %v3202_v42 = vrot.slane %v13655_v19, 6  ;;  %v3205_v63 = vrot.slane %v18452_v50, 6  ;;  %v13661_v27 = vcombine.high %v2967_v47, %v2967_v47 }
 0x1e9   : > { %2932 = vst [vmem:[#allocation5 + $0x588] sm:$0xf] %v13657_v60  ;;  %2933 = vst [vmem:[#allocation5 + $0x5b0] sm:$0xf] %v13709_v59  ;;  %v3197_v36 = vsel %vm17684_vm12, %v3195_v7, %v3196_v0  ;;  %v3198_v28 = vrot.slane %v3196_v0, 4  ;;  %v3208_v46 = vrot.slane %v13657_v60, 6  ;;  %v13713_v26 = vcombine.low %v2968_v51, %v2968_v51  ;;  %7078 = vmatprep.mubr.bf16.mxu0 %v15923_v16 }
 0x1ea   : > { %2934 = vst [vmem:[#allocation5 + $0x5d8] sm:$0xf] %v18457_v38  ;;  %3338 = vst [vmem:[#allocation5 + $0x49c] sm:$0xf] %v3194_v3  ;;  %v3211_v52 = vrot.slane %v13709_v59, 6  ;;  %v2969_v23 = vld [vmem:[#allocation2 + $0xb0] sm:$0xff]  ;;  %v13663_v48 = vcombine.high %v2968_v51, %v2968_v51 }
 0x1eb   : > { %v15929_v43 = vld [vmem:[#allocation5 + $0x698] ss:$40 sps:$4 sm:$0xff]   ;;  %3339 = vst [vmem:[#allocation5 + $0x4c4] sm:$0xf] %v3197_v36  ;;  %v3201_v44 = vrot.slane %v3199_v56, 4  ;;  %v3200_v25 = vsel %vm17684_vm12, %v3198_v28, %v3199_v56  ;;  %v3204_v61 = vrot.slane %v3202_v42, 4  ;;  %v13715_v62 = vcombine.low %v2969_v23, %v2969_v23 }
 0x1ec   : > { %v15934_v29 = vld [vmem:[#allocation5 + $0x6ec] ss:$40 sps:$4 sm:$0xff]   ;;  %v3207_v9 = vrot.slane %v3205_v63, 4  ;;  %v3210_v11 = vrot.slane %v3208_v46, 4  ;;  %7319 = vmatmul.mubr.bf16.gmra.mrb[84].mxu1 %v15929_v43  ;;  %3340 = vst [vmem:[#allocation5 + $0x4ec] sm:$0xf] %v3200_v25  ;;  %v13665_v41 = vcombine.high %v2969_v23, %v2969_v23 }
 0x1ed   : > { %v3203_v40 = vsel %vm17684_vm12, %v3201_v44, %v3202_v42  ;;  %v3213_v13 = vrot.slane %v3211_v52, 4  ;;  %2935 = vst [vmem:[#allocation5 + $0x600] sm:$0xf] %v13711_v33  ;;  %2936 = vst [vmem:[#allocation5 + $0x628] sm:$0xf] %v13661_v27  ;;  %v2970_v45 = vld [vmem:[#allocation2 + $0xb8] sm:$0xff]  ;;  %7326 = vmatprep.mubr.bf16.mxu1 %v15934_v29  ;;  %v3206_v8 = vsel %vm17684_vm12, %v3204_v61, %v3205_v63 }
 0x1ee   : > { %2937 = vst [vmem:[#allocation5 + $0x650] sm:$0xf] %v13713_v26  ;;  %3341 = vst [vmem:[#allocation5 + $0x514] sm:$0xf] %v3203_v40  ;;  %v3209_v57 = vsel %vm17684_vm12, %v3207_v9, %v3208_v46  ;;  %v3212_v2 = vsel %vm17684_vm12, %v3210_v11, %v3211_v52  ;;  %v3214_v5 = vrot.slane %v18457_v38, 6  ;;  %v2971_v17 = vld [vmem:[#allocation2 + $0xc0] sm:$0xff]  ;;  %v13717_v39 = vcombine.low %v2970_v45, %v2970_v45 }
 0x1ef   : > { %3342 = vst [vmem:[#allocation5 + $0x53c] sm:$0xf] %v3206_v8  ;;  %3343 = vst [vmem:[#allocation5 + $0x564] sm:$0xf] %v3209_v57  ;;  %v3217_v21 = vrot.slane %v13711_v33, 6  ;;  %v3220_v24 = vrot.slane %v13661_v27, 6  ;;  %v13667_v19 = vcombine.high %v2970_v45, %v2970_v45  ;;  %v13719_v50 = vcombine.low %v2971_v17, %v2971_v17 }
 0x1f0   : > { %3344 = vst [vmem:[#allocation5 + $0x58c] sm:$0xf] %v3212_v2  ;;  %v3223_v32 = vrot.slane %v13713_v26, 6  ;;  %2938 = vst [vmem:[#allocation5 + $0x678] sm:$0xf] %v13663_v48  ;;  %v3226_v22 = vrot.slane %v13663_v48, 6  ;;  %v3215_v35 = vsel %vm17684_vm12, %v3213_v13, %v3214_v5  ;;  %v13669_v16 = vcombine.high %v2971_v17, %v2971_v17 }
 0x1f1   : > { %2939 = vst [vmem:[#allocation5 + $0x6a0] sm:$0xf] %v13715_v62  ;;  %v3216_v31 = vrot.slane %v3214_v5, 4  ;;  %v15928_v49 = vld [vmem:[#allocation5 + $0x690] ss:$40 sps:$4 sm:$0xff]   ;;  %v3219_v34 = vrot.slane %v3217_v21, 4 }
 0x1f2   : > { %3345 = vst [vmem:[#allocation5 + $0x5b4] sm:$0xf] %v3215_v35  ;;  %v3222_v55 = vrot.slane %v3220_v24, 4  ;;  %v15931_v12 = vld [vmem:[#allocation5 + $0x6e4] ss:$40 sps:$4 sm:$0xff]   ;;  %v3225_v15 = vrot.slane %v3223_v32, 4  ;;  %7079 = vmatmul.mubr.bf16.gmra.mrb[140].mxu0 %v15928_v49 }
 0x1f3   : > { %v3218_v30 = vsel %vm17684_vm12, %v3216_v31, %v3217_v21  ;;  %v3228_v18 = vrot.slane %v3226_v22, 4  ;;  %v3229_v14 = vrot.slane %v13715_v62, 6  ;;  %2940 = vst [vmem:[#allocation5 + $0x6c8] sm:$0xf] %v13665_v41  ;;  %2941 = vst [vmem:[#allocation5 + $0x6f0] sm:$0xf] %v13717_v39  ;;  %v3221_v60 = vsel %vm17684_vm12, %v3219_v34, %v3220_v24  ;;  %7086 = vmatprep.mubr.bf16.mxu0 %v15931_v12 }
 0x1f4   : > { %v15938_v53 = vld [vmem:[#allocation5 + $0x6e8] ss:$40 sps:$4 sm:$0xff]   ;;  %3346 = vst [vmem:[#allocation5 + $0x5dc] sm:$0xf] %v3218_v30  ;;  %v3224_v59 = vsel %vm17684_vm12, %v3222_v55, %v3223_v32  ;;  %v3232_v38 = vrot.slane %v13665_v41, 6  ;;  %v3235_v47 = vrot.slane %v13717_v39, 6  ;;  %v3227_v7 = vsel %vm17684_vm12, %v3225_v15, %v3226_v22 }
 0x1f5   : > { %2942 = vst [vmem:[#allocation5 + $0x718] sm:$0xf] %v13667_v19  ;;  %2943 = vst [vmem:[#allocation5 + $0x740] sm:$0xf] %v13719_v50  ;;  %v2972_v37 = vld [vmem:[#allocation2 + $0xc8] sm:$0xff]  ;;  %v3230_v0 = vsel %vm17684_vm12, %v3228_v18, %v3229_v14  ;;  %v3231_v51 = vrot.slane %v3229_v14, 4  ;;  %7327 = vmatmul.mubr.bf16.gmra.mrb[88].mxu1 %v15938_v53 }
 0x1f6   : > { %v15943_v6 = vld [vmem:[#allocation5 + $0x73c] ss:$40 sps:$4 sm:$0xff]   ;;  %3347 = vst [vmem:[#allocation5 + $0x604] sm:$0xf] %v3221_v60  ;;  %3348 = vst [vmem:[#allocation5 + $0x62c] sm:$0xf] %v3224_v59  ;;  %v13721_v52 = vcombine.low %v2972_v37, %v2972_v37  ;;  %v13671_v43 = vcombine.high %v2972_v37, %v2972_v37 }
 0x1f7   : > { %v2973_v3 = vld [vmem:[#allocation2 + $0xd0] sm:$0x3f]  ;;  %3349 = vst [vmem:[#allocation5 + $0x654] sm:$0xf] %v3227_v7  ;;  %3350 = vst [vmem:[#allocation5 + $0x67c] sm:$0xf] %v3230_v0  ;;  %7334 = vmatprep.mubr.bf16.mxu1 %v15943_v6  ;;  %v3233_v46 = vsel %vm17684_vm12, %v3231_v51, %v3232_v38 }
 0x1f8   : > { %v3234_v56 = vrot.slane %v3232_v38, 4  ;;  %v3237_v42 = vrot.slane %v3235_v47, 4  ;;  %v3238_v63 = vrot.slane %v13667_v19, 6  ;;  %v3241_v36 = vrot.slane %v13719_v50, 6  ;;  %v3361_v28 = vld [vmem:[#allocation2 + $0x10] sm:$0xff]  ;;  %v3362_v29 = vld [vmem:[#allocation2 + $0x18] sm:$0xff] }
 0x1f9   : > { %2944 = vst [vmem:[#allocation5 + $0x768] sm:$0xf] %v13669_v16  ;;  %v3244_v23 = vrot.slane %v13669_v16, 6  ;;  %3351 = vst [vmem:[#allocation5 + $0x6a4] sm:$0xf] %v3233_v46  ;;  %v13723_v61 = vcombine.low %v2973_v3, %v2973_v3  ;;  %v13724_v9 = vcombine.high %v2973_v3, %v2973_v3  ;;  %v13727_v11 = vcombine.low %v3361_v28, %v3361_v28  ;;  %v3363_v13 = vld [vmem:[#allocation2 + $0x20] sm:$0xff] }
 0x1fa   : > { %v3236_v44 = vsel %vm17684_vm12, %v3234_v56, %v3235_v47  ;;  %v3239_v33 = vsel %vm17684_vm12, %v3237_v42, %v3238_v63  ;;  %v3240_v27 = vrot.slane %v3238_v63, 4  ;;  %v3243_v26 = vrot.slane %v3241_v36, 4  ;;  %2945 = vst [vmem:[#allocation5 + $0x790] sm:$0xf] %v13721_v52  ;;  %2946 = vst [vmem:[#allocation5 + $0x7b8] sm:$0xf] %v13671_v43 }
 0x1fb   : > { %3352 = vst [vmem:[#allocation5 + $0x6cc] sm:$0xf] %v3236_v44  ;;  %3353 = vst [vmem:[#allocation5 + $0x6f4] sm:$0xf] %v3239_v33  ;;  %v3246_v25 = vrot.slane %v3244_v23, 4  ;;  %v3247_v8 = vrot.slane %v13721_v52, 6  ;;  %v13779_v24 = vcombine.high %v3361_v28, %v3361_v28  ;;  %v13729_v32 = vcombine.low %v3362_v29, %v3362_v29 }
 0x1fc   : > { %v16115_v40 = vld [vmem:[#allocation2 + $0xc] ss:$0 sps:$4 sm:$0xcc]   ;;  %v15937_v48 = vld [vmem:[#allocation5 + $0x6e0] ss:$40 sps:$4 sm:$0xff]   ;;  %v3242_v62 = vsel %vm17684_vm12, %v3240_v27, %v3241_v36  ;;  %v3245_v45 = vsel %vm17684_vm12, %v3243_v26, %v3244_v23  ;;  %v3250_v57 = vrot.slane %v13671_v43, 6  ;;  %v18502_v22 = vcombine.high %v3362_v29, %v3362_v29 }
 0x1fd   : > { %v3364_v2 = vld [vmem:[#allocation2 + $0x28] sm:$0xff]  ;;  %v3365_v5 = vld [vmem:[#allocation2 + $0x30] sm:$0xff]  ;;  %3354 = vst [vmem:[#allocation5 + $0x71c] sm:$0xf] %v3242_v62  ;;  %3355 = vst [vmem:[#allocation5 + $0x744] sm:$0xf] %v3245_v45  ;;  %7087 = vmatmul.mubr.bf16.gmra.mrb[144].mxu0 %v15937_v48  ;;  %v3248_v41 = vsel %vm17684_vm12, %v3246_v25, %v3247_v8  ;;  %v18506_v34 = vcombine.low %v3363_v13, %v3363_v13  ;;  %v18509_v12 = vcombine.high %v3363_v13, %v3363_v13 }
 0x1fe   : > { %v15940_v17 = vld [vmem:[#allocation5 + $0x734] ss:$40 sps:$4 sm:$0xff]   ;;  %v3253_v21 = vrot.slane %v13723_v61, 6  ;;  %3566 = vst [vmem:[#allocation5 + $0x40] sm:$0xf] %v13727_v11  ;;  %v3366_v35 = vld [vmem:[#allocation2 + $0x38] sm:$0xff]  ;;  %v18511_v30 = vcombine.low %v3364_v2, %v3364_v2  ;;  %v18518_v53 = vcombine.high %v3364_v2, %v3364_v2  ;;  %v18520_v60 = vcombine.low %v3365_v5, %v3365_v5 }
 0x1ff   : > { %v15947_v31 = vld [vmem:[#allocation5 + $0x738] ss:$40 sps:$4 sm:$0xff]   ;;  %v3249_v39 = vrot.slane %v3247_v8, 4  ;;  %v3252_v49 = vrot.slane %v3250_v57, 4  ;;  %7094 = vmatprep.mubr.bf16.mxu0 %v15940_v17  ;;  %v15953_v55 = vld [vmem:[#allocation5 + $0x78c] ss:$40 sps:$4 sm:$0xff]   ;;  %v18528_v0 = vcombine.high %v3365_v5, %v3365_v5  ;;  %v18530_v51 = vcombine.low %v3366_v35, %v3366_v35 }
 0x200   : > { %3356 = vst [vmem:[#allocation5 + $0x76c] sm:$0xf] %v3248_v41  ;;  %v3255_v19 = vrot.slane %v3253_v21, 4  ;;  %v3256_v50 = vrot.slane %v13724_v9, 6  ;;  %3567 = vst [vmem:[#allocation5 + $0x68] sm:$0xf] %v13779_v24  ;;  %7335 = vmatmul.mubr.bf16.gmra.mrb[92].mxu1 %v15947_v31  ;;  %v18532_v16 = vcombine.high %v3366_v35, %v3366_v35  ;;  %v14184_v35 = vcombine.low %v18392_v1, %v18392_v1 }
 0x201   : > { %3568 = vst [vmem:[#allocation5 + $0x90] sm:$0xf] %v13729_v32  ;;  %3569 = vst [vmem:[#allocation5 + $0xb8] sm:$0xf] %v18502_v22  ;;  %v3251_v15 = vsel %vm17684_vm12, %v3249_v39, %v3250_v57  ;;  %v3254_v18 = vsel %vm17684_vm12, %v3252_v49, %v3253_v21  ;;  %v16108_v14 = vld [vmem:[#allocation2 + $0xd0] ss:$0 sps:$4 sm:$0xff]   ;;  %7342 = vmatprep.mubr.bf16.mxu1 %v15953_v55  ;;  %v14186_v31 = vcombine.low %v18401_v58, %v18401_v58 }
 0x202   : > { %3570 = vst [vmem:[#allocation5 + $0xe0] sm:$0xf] %v18506_v34  ;;  %3357 = vst [vmem:[#allocation5 + $0x794] sm:$0xf] %v3251_v15  ;;  %v3257_v59 = vsel %vm17684_vm12, %v3255_v19, %v3256_v50  ;;  %v13829_v38 = vrot.slane %v16115_v40, 10  ;;  %v3776_v47 = vrot.slane %v13727_v11, 6 }
 0x203   : > { %3358 = vst [vmem:[#allocation5 + $0x7bc] sm:$0xf] %v3254_v18  ;;  %v3779_v37 = vrot.slane %v13779_v24, 6  ;;  %3571 = vst [vmem:[#allocation5 + $0x108] sm:$0xf] %v18509_v12  ;;  %v3367_v6 = vld [vmem:[#allocation2 + $0x40] sm:$0xff] }
 0x204   : > { %3572 = vst [vmem:[#allocation5 + $0x130] sm:$0xf] %v18511_v30  ;;  %2947 = vst [vmem:[#allocation5 + $0x7e0] sm:$0xf] %v16108_v14  ;;  %v3782_v7 = vrot.slane %v13729_v32, 6  ;;  %v3777_v3 = vsel %vm17684_vm12, %v13829_v38, %v3776_v47  ;;  %v3778_v56 = vrot.slane %v3776_v47, 4  ;;  %v18540_v23 = vcombine.low %v3367_v6, %v3367_v6 }
 0x205   : > { %3359 = vst [vmem:[#allocation5 + $0x7e4] sm:$0xf] %v3257_v59  ;;  %3573 = vst [vmem:[#allocation5 + $0x158] sm:$0xf] %v18518_v53  ;;  %v3781_v42 = vrot.slane %v3779_v37, 4  ;;  %v3785_v63 = vrot.slane %v18502_v22, 6  ;;  %v18543_v43 = vcombine.high %v3367_v6, %v3367_v6 }
 0x206   : > { %3574 = vst [vmem:[#allocation5 + $0x180] sm:$0xf] %v18520_v60  ;;  %v3368_v36 = vld [vmem:[#allocation2 + $0x48] sm:$0xff]  ;;  %3979 = vst [vmem:[#allocation5 + $0x1c] sm:$0xf] %v3777_v3  ;;  %v3784_v46 = vrot.slane %v3782_v7, 4  ;;  %v3780_v33 = vsel %vm17684_vm12, %v3778_v56, %v3779_v37 }
 0x207   : > { %v15946_v28 = vld [vmem:[#allocation5 + $0x730] ss:$40 sps:$4 sm:$0xff]   ;;  %v3788_v52 = vrot.slane %v18506_v34, 6  ;;  %3575 = vst [vmem:[#allocation5 + $0x1a8] sm:$0xf] %v18528_v0  ;;  %v3783_v27 = vsel %vm17684_vm12, %v3781_v42, %v3782_v7  ;;  %v3787_v26 = vrot.slane %v3785_v63, 4  ;;  %v18553_v40 = vcombine.low %v3368_v36, %v3368_v36 }
 0x208   : > { %3576 = vst [vmem:[#allocation5 + $0x1d0] sm:$0xf] %v18530_v51  ;;  %3577 = vst [vmem:[#allocation5 + $0x1f8] sm:$0xf] %v18532_v16  ;;  %v15949_v44 = vld [vmem:[#allocation5 + $0x784] ss:$40 sps:$4 sm:$0xff]   ;;  %7095 = vmatmul.mubr.bf16.gmra.mrb[148].mxu0 %v15946_v28  ;;  %v3786_v9 = vsel %vm17684_vm12, %v3784_v46, %v3785_v63  ;;  %v18556_v13 = vcombine.high %v3368_v36, %v3368_v36 }
 0x209   : > { %v3791_v29 = vrot.slane %v18509_v12, 6  ;;  %v3369_v25 = vld [vmem:[#allocation2 + $0x50] sm:$0xff]  ;;  %v15956_v61 = vld [vmem:[#allocation5 + $0x788] ss:$40 sps:$4 sm:$0xff]   ;;  %3980 = vst [vmem:[#allocation5 + $0x44] sm:$0xf] %v3780_v33  ;;  %7102 = vmatprep.mubr.bf16.mxu0 %v15949_v44  ;;  %v3789_v48 = vsel %vm17684_vm12, %v3787_v26, %v3788_v52 }
 0x20a   : > { %3981 = vst [vmem:[#allocation5 + $0x6c] sm:$0xf] %v3783_v27  ;;  %v3790_v11 = vrot.slane %v3788_v52, 4  ;;  %3578 = vst [vmem:[#allocation5 + $0x220] sm:$0xf] %v18540_v23  ;;  %v3794_v45 = vrot.slane %v18511_v30, 6  ;;  %7343 = vmatmul.mubr.bf16.gmra.mrb[96].mxu1 %v15956_v61  ;;  %v18567_v17 = vcombine.low %v3369_v25, %v3369_v25 }
 0x20b   : > { %3579 = vst [vmem:[#allocation5 + $0x248] sm:$0xf] %v18543_v43  ;;  %3982 = vst [vmem:[#allocation5 + $0x94] sm:$0xf] %v3786_v9  ;;  %v3793_v62 = vrot.slane %v3791_v29, 4  ;;  %v3797_v8 = vrot.slane %v18518_v53, 6  ;;  %7350 = vmatprep.mubr.bf16.mxu1 %v14187_v10 }
 0x20c   : > { %v3792_v57 = vsel %vm17684_vm12, %v3790_v11, %v3791_v29  ;;  %3983 = vst [vmem:[#allocation5 + $0xbc] sm:$0xf] %v3789_v48  ;;  %v3800_v2 = vrot.slane %v18520_v60, 6  ;;  %v3803_v5 = vrot.slane %v18528_v0, 6  ;;  %3580 = vst [vmem:[#allocation5 + $0x270] sm:$0xf] %v18553_v40  ;;  %v13795_v60 = vcombine.high %v3369_v25, %v3369_v25 }
 0x20d   : > { %3581 = vst [vmem:[#allocation5 + $0x298] sm:$0xf] %v18556_v13  ;;  %3984 = vst [vmem:[#allocation5 + $0xe4] sm:$0xf] %v3792_v57  ;;  %v3795_v21 = vsel %vm17684_vm12, %v3793_v62, %v3794_v45  ;;  %v3796_v24 = vrot.slane %v3794_v45, 4  ;;  %v3799_v32 = vrot.slane %v3797_v8, 4 }
 0x20e   : > { %v3806_v22 = vrot.slane %v18530_v51, 6  ;;  %3985 = vst [vmem:[#allocation5 + $0x10c] sm:$0xf] %v3795_v21  ;;  %v3802_v41 = vrot.slane %v3800_v2, 4  ;;  %v3805_v39 = vrot.slane %v3803_v5, 4  ;;  %v3370_v10 = vld [vmem:[#allocation2 + $0x58] sm:$0xff] }
 0x20f   : > { %3582 = vst [vmem:[#allocation5 + $0x2c0] sm:$0xf] %v18567_v17  ;;  %v3798_v49 = vsel %vm17684_vm12, %v3796_v24, %v3797_v8  ;;  %v3801_v34 = vsel %vm17684_vm12, %v3799_v32, %v3800_v2  ;;  %v3809_v19 = vrot.slane %v18532_v16, 6  ;;  %v3371_v50 = vld [vmem:[#allocation2 + $0x60] sm:$0xff]  ;;  %v3812_v15 = vrot.slane %v18540_v23, 6  ;;  %v3372_v38 = vld [vmem:[#allocation2 + $0x68] sm:$0xff] }
 0x210   : > { %v3808_v55 = vrot.slane %v3806_v22, 4  ;;  %v15955_v12 = vld [vmem:[#allocation5 + $0x780] ss:$40 sps:$4 sm:$0xff]   ;;  %3986 = vst [vmem:[#allocation5 + $0x134] sm:$0xf] %v3798_v49  ;;  %v3804_v58 = vsel %vm17684_vm12, %v3802_v41, %v3803_v5  ;;  %v3807_v30 = vsel %vm17684_vm12, %v3805_v39, %v3806_v22  ;;  %v3815_v18 = vrot.slane %v18543_v43, 6 }
 0x211   : > { %3987 = vst [vmem:[#allocation5 + $0x15c] sm:$0xf] %v3801_v34  ;;  %3988 = vst [vmem:[#allocation5 + $0x184] sm:$0xf] %v3804_v58  ;;  %v3811_v53 = vrot.slane %v3809_v19, 4  ;;  %v13745_v59 = vcombine.low %v3370_v10, %v3370_v10  ;;  %7103 = vmatmul.mubr.bf16.gmra.mrb[152].mxu0 %v15955_v12  ;;  %v3814_v47 = vrot.slane %v3812_v15, 4  ;;  %v13797_v6 = vcombine.high %v3370_v10, %v3370_v10 }
 0x212   : > { %v3810_v14 = vsel %vm17684_vm12, %v3808_v55, %v3809_v19  ;;  %3989 = vst [vmem:[#allocation5 + $0x1ac] sm:$0xf] %v3807_v30  ;;  %v3817_v37 = vrot.slane %v3815_v18, 4  ;;  %v13747_v7 = vcombine.low %v3371_v50, %v3371_v50  ;;  %7110 = vmatprep.mubr.bf16.mxu0 %v14185_v54  ;;  %v15972_v0 = vld [vmem:[#allocation5 + $0x14] ss:$40 sps:$4 sm:$0xff]   ;;  %v3818_v16 = vrot.slane %v18553_v40, 6  ;;  %7351 = vmatmul.mubr.bf16.gmra.mrb[100].mxu1 %v14186_v31 }
 0x213   : > { %3990 = vst [vmem:[#allocation5 + $0x1d4] sm:$0xf] %v3810_v14  ;;  %v3813_v51 = vsel %vm17684_vm12, %v3811_v53, %v3812_v15  ;;  %v3821_v3 = vrot.slane %v18556_v13, 6  ;;  %v3824_v56 = vrot.slane %v18567_v17, 6  ;;  %3583 = vst [vmem:[#allocation5 + $0x2e8] sm:$0xf] %v13795_v60  ;;  %v3816_v42 = vsel %vm17684_vm12, %v3814_v47, %v3815_v18  ;;  %7390 = vmatprep.mubr.bf16.mxu1 %v15972_v0 }
 0x214   : > { %3584 = vst [vmem:[#allocation5 + $0x310] sm:$0xf] %v13745_v59  ;;  %3991 = vst [vmem:[#allocation5 + $0x1fc] sm:$0xf] %v3813_v51  ;;  %v3827_v63 = vrot.slane %v13795_v60, 6  ;;  %v13799_v54 = vcombine.high %v3371_v50, %v3371_v50  ;;  %v18604_v36 = vcombine.low %v3372_v38, %v3372_v38  ;;  %v3819_v28 = vsel %vm17684_vm12, %v3817_v37, %v3818_v16  ;;  %v3373_v26 = vld [vmem:[#allocation2 + $0x70] sm:$0xff] }
 0x215   : > { %3585 = vst [vmem:[#allocation5 + $0x338] sm:$0xf] %v13797_v6  ;;  %3586 = vst [vmem:[#allocation5 + $0x360] sm:$0xf] %v13747_v7  ;;  %v3820_v46 = vrot.slane %v3818_v16, 4  ;;  %v3823_v52 = vrot.slane %v3821_v3, 4  ;;  %v13801_v45 = vcombine.high %v3372_v38, %v3372_v38  ;;  %v13751_v57 = vcombine.low %v3373_v26, %v3373_v26 }
 0x216   : > { %3992 = vst [vmem:[#allocation5 + $0x224] sm:$0xf] %v3816_v42  ;;  %v3826_v23 = vrot.slane %v3824_v56, 4  ;;  %3993 = vst [vmem:[#allocation5 + $0x24c] sm:$0xf] %v3819_v28  ;;  %v3829_v43 = vrot.slane %v3827_v63, 4  ;;  %v13803_v2 = vcombine.high %v3373_v26, %v3373_v26 }
 0x217   : > { %v3830_v44 = vrot.slane %v13745_v59, 6  ;;  %v3833_v33 = vrot.slane %v13797_v6, 6  ;;  %v3836_v27 = vrot.slane %v13747_v7, 6  ;;  %3587 = vst [vmem:[#allocation5 + $0x388] sm:$0xf] %v13799_v54  ;;  %v3374_v29 = vld [vmem:[#allocation2 + $0x78] sm:$0xff]  ;;  %v3822_v25 = vsel %vm17684_vm12, %v3820_v46, %v3821_v3 }
 0x218   : > { %3588 = vst [vmem:[#allocation5 + $0x3b0] sm:$0xf] %v18604_v36  ;;  %v3825_v61 = vsel %vm17684_vm12, %v3823_v52, %v3824_v56  ;;  %v3828_v9 = vsel %vm17684_vm12, %v3826_v23, %v3827_v63  ;;  %v3839_v11 = vrot.slane %v13799_v54, 6  ;;  %v15973_v40 = vld [vmem:[%s21252_s2 + $0x180] sm:$0xff]   ;;  %3994 = vst [vmem:[#allocation5 + $0x274] sm:$0xf] %v3822_v25  ;;  %v13753_v5 = vcombine.low %v3374_v29, %v3374_v29 }
 0x219   : > { %3995 = vst [vmem:[#allocation5 + $0x29c] sm:$0xf] %v3825_v61  ;;  %3996 = vst [vmem:[#allocation5 + $0x2c4] sm:$0xf] %v3828_v9  ;;  %v3831_v13 = vsel %vm17684_vm12, %v3829_v43, %v3830_v44  ;;  %v3832_v48 = vrot.slane %v3830_v44, 4  ;;  %v3835_v62 = vrot.slane %v3833_v33, 4  ;;  %7111 = vmatmul.mubr.bf16.gmra.mrb[156].mxu0 %v14184_v35  ;;  %v13805_v41 = vcombine.high %v3374_v29, %v3374_v29 }
 0x21a   : > { %3997 = vst [vmem:[#allocation5 + $0x2ec] sm:$0xf] %v3831_v13  ;;  %v3838_v8 = vrot.slane %v3836_v27, 4  ;;  %v3375_v17 = vld [vmem:[#allocation2 + $0x80] sm:$0xff]  ;;  %v3376_v21 = vld [vmem:[#allocation2 + $0x88] sm:$0xff]  ;;  %v3841_v31 = vrot.slane %v3839_v11, 4 }
 0x21b   : > { %v15970_v24 = vld [vmem:[#allocation5 + $0x10] ss:$40 sps:$4 sm:$0xff]   ;;  %v3834_v32 = vsel %vm17684_vm12, %v3832_v48, %v3833_v33  ;;  %v3837_v22 = vsel %vm17684_vm12, %v3835_v62, %v3836_v27  ;;  %3589 = vst [vmem:[#allocation5 + $0x3d8] sm:$0xf] %v13801_v45  ;;  %v15976_v39 = vld [vmem:[#allocation5 + $0x64] ss:$40 sps:$4 sm:$0xff]   ;;  %v13755_v55 = vcombine.low %v3375_v17, %v3375_v17  ;;  %v13807_v19 = vcombine.high %v3375_v17, %v3375_v17 }
 0x21c   : > { %3998 = vst [vmem:[#allocation5 + $0x314] sm:$0xf] %v3834_v32  ;;  %v3840_v10 = vsel %vm17684_vm12, %v3838_v8, %v3839_v11  ;;  %3999 = vst [vmem:[#allocation5 + $0x33c] sm:$0xf] %v3837_v22  ;;  %v3842_v49 = vrot.slane %v18604_v36, 6  ;;  %v3845_v1 = vrot.slane %v13801_v45, 6  ;;  %7391 = vmatmul.mubr.bf16.vlgmr.msra.gmra.mrb[0].mxu1 %v15970_v24  ;;  %v13757_v50 = vcombine.low %v3376_v21, %v3376_v21 }
 0x21d   : > { %3590 = vst [vmem:[#allocation5 + $0x400] sm:$0xf] %v13751_v57  ;;  %v3848_v35 = vrot.slane %v13751_v57, 6  ;;  %3591 = vst [vmem:[#allocation5 + $0x428] sm:$0xf] %v13803_v2  ;;  %v3851_v34 = vrot.slane %v13803_v2, 6  ;;  %7599 = vmatpush1.bf16.msra.mxu1 %v15973_v40  ;;  %7398 = vmatprep.mubr.bf16.mxu1 %v15976_v39  ;;  %v13809_v63 = vcombine.high %v3376_v21, %v3376_v21 }
 0x21e   : > { %3592 = vst [vmem:[#allocation5 + $0x450] sm:$0xf] %v13753_v5  ;;  %4000 = vst [vmem:[#allocation5 + $0x364] sm:$0xf] %v3840_v10  ;;  %v15983_v12 = vld [vmem:[%s21252_s2 + $0x188] sm:$0xff]   ;;  %v3843_v58 = vsel %vm17684_vm12, %v3841_v31, %v3842_v49  ;;  %v3844_v30 = vrot.slane %v3842_v49, 4  ;;  %7600 = vmatprep.subr.bf16.mxu1 %v17156_v4 }
 0x21f   : > { %3593 = vst [vmem:[#allocation5 + $0x478] sm:$0xf] %v13805_v41  ;;  %v3847_v15 = vrot.slane %v3845_v1, 4  ;;  %v3850_v18 = vrot.slane %v3848_v35, 4  ;;  %4001 = vst [vmem:[#allocation5 + $0x38c] sm:$0xf] %v3843_v58 }
 0x220   : > { %v3853_v14 = vrot.slane %v3851_v34, 4  ;;  %v3854_v53 = vrot.slane %v13753_v5, 6  ;;  %v3857_v60 = vrot.slane %v13805_v41, 6  ;;  %3594 = vst [vmem:[#allocation5 + $0x4a0] sm:$0xf] %v13755_v55  ;;  %v3860_v59 = vrot.slane %v13755_v55, 6 }
 0x221   : > { %3595 = vst [vmem:[#allocation5 + $0x4c8] sm:$0xf] %v13807_v19  ;;  %3596 = vst [vmem:[#allocation5 + $0x4f0] sm:$0xf] %v13757_v50  ;;  %v3377_v38 = vld [vmem:[#allocation2 + $0x90] sm:$0xff]  ;;  %v3846_v47 = vsel %vm17684_vm12, %v3844_v30, %v3845_v1  ;;  %v3849_v37 = vsel %vm17684_vm12, %v3847_v15, %v3848_v35  ;;  %v3852_v6 = vsel %vm17684_vm12, %v3850_v18, %v3851_v34  ;;  %v3863_v7 = vrot.slane %v13807_v19, 6 }
 0x222   : > { %4002 = vst [vmem:[#allocation5 + $0x3b4] sm:$0xf] %v3846_v47  ;;  %4003 = vst [vmem:[#allocation5 + $0x3dc] sm:$0xf] %v3849_v37  ;;  %v3855_v0 = vsel %vm17684_vm12, %v3853_v14, %v3854_v53  ;;  %v3856_v51 = vrot.slane %v3854_v53, 4  ;;  %v3859_v16 = vrot.slane %v3857_v60, 4  ;;  %7601 = vmatpush1.bf16.msra.mxu1 %v15983_v12  ;;  %v13759_v36 = vcombine.low %v3377_v38, %v3377_v38 }
 0x223   : > { %4004 = vst [vmem:[#allocation5 + $0x404] sm:$0xf] %v3852_v6  ;;  %v3862_v3 = vrot.slane %v3860_v59, 4  ;;  %v3378_v56 = vld [vmem:[#allocation2 + $0x98] sm:$0xff]  ;;  %v15994_v42 = vld [vmem:[%s21252_s2 + $0x190] sm:$0xff]   ;;  %v3865_v54 = vrot.slane %v3863_v7, 4  ;;  %v13811_v28 = vcombine.high %v3377_v38, %v3377_v38  ;;  %7602 = vmatprep.subr.bf16.mxu1 %v17156_v4 }
 0x224   : > { %4005 = vst [vmem:[#allocation5 + $0x42c] sm:$0xf] %v3855_v0  ;;  %v3379_v46 = vld [vmem:[#allocation2 + $0xa0] sm:$0xff]  ;;  %v3858_v23 = vsel %vm17684_vm12, %v3856_v51, %v3857_v60  ;;  %v3861_v43 = vsel %vm17684_vm12, %v3859_v16, %v3860_v59  ;;  %v3866_v33 = vrot.slane %v13757_v50, 6  ;;  %v15981_v27 = vld [vmem:[#allocation5 + $0xb4] ss:$40 sps:$4 sm:$0xff]   ;;  %v13761_v25 = vcombine.low %v3378_v56, %v3378_v56 }
 0x225   : > { %v15978_v52 = vld [vmem:[#allocation5 + $0x60] ss:$40 sps:$4 sm:$0xff]   ;;  %v3864_v44 = vsel %vm17684_vm12, %v3862_v3, %v3863_v7  ;;  %4006 = vst [vmem:[#allocation5 + $0x454] sm:$0xf] %v3858_v23  ;;  %4007 = vst [vmem:[#allocation5 + $0x47c] sm:$0xf] %v3861_v43  ;;  %v13813_v61 = vcombine.high %v3378_v56, %v3378_v56  ;;  %v13763_v48 = vcombine.low %v3379_v46, %v3379_v46 }
 0x226   : > { %4008 = vst [vmem:[#allocation5 + $0x4a4] sm:$0xf] %v3864_v44  ;;  %v3869_v26 = vrot.slane %v13809_v63, 6  ;;  %3597 = vst [vmem:[#allocation5 + $0x518] sm:$0xf] %v13809_v63  ;;  %v3872_v29 = vrot.slane %v13759_v36, 6  ;;  %7399 = vmatmul.mubr.bf16.gmra.mrb[4].mxu1 %v15978_v52  ;;  %v3867_v11 = vsel %vm17684_vm12, %v3865_v54, %v3866_v33  ;;  %v13815_v22 = vcombine.high %v3379_v46, %v3379_v46 }
 0x227   : > { %3598 = vst [vmem:[#allocation5 + $0x540] sm:$0xf] %v13759_v36  ;;  %3599 = vst [vmem:[#allocation5 + $0x568] sm:$0xf] %v13811_v28  ;;  %v16000_v9 = vld [vmem:[%s21252_s2 + $0x198] sm:$0xff]   ;;  %v3868_v40 = vrot.slane %v3866_v33, 4  ;;  %7406 = vmatprep.mubr.bf16.mxu1 %v15981_v27  ;;  %7603 = vmatpush1.bf16.msra.mxu1 %v15994_v42 }
 0x228   : > { %v3875_v13 = vrot.slane %v13811_v28, 6  ;;  %v3380_v62 = vld [vmem:[#allocation2 + $0xa8] sm:$0xff]  ;;  %v3381_v45 = vld [vmem:[#allocation2 + $0xb0] sm:$0xff]  ;;  %v18659_v8 = vpop.f32.mrb[56].mxu0  ;;  %4009 = vst [vmem:[#allocation5 + $0x4cc] sm:$0xf] %v3867_v11  ;;  %7604 = vmatprep.subr.bf16.mxu1 %v17156_v4 }
 0x229   : > { %v3871_v57 = vrot.slane %v3869_v26, 4  ;;  %v3874_v2 = vrot.slane %v3872_v29, 4  ;;  %3600 = vst [vmem:[#allocation5 + $0x590] sm:$0xf] %v13761_v25  ;;  %v3878_v5 = vrot.slane %v13761_v25, 6  ;;  %v3881_v17 = vrot.slane %v13813_v61, 6 }
 0x22a   : > { %3601 = vst [vmem:[#allocation5 + $0x5b8] sm:$0xf] %v13813_v61  ;;  %v6914_v21 = vpop.f32.mrb[57].mxu0  ;;  %v3870_v24 = vsel %vm17684_vm12, %v3868_v40, %v3869_v26  ;;  %v3877_v32 = vrot.slane %v3875_v13, 4  ;;  %3602 = vst [vmem:[#allocation5 + $0x5e0] sm:$0xf] %v13763_v48  ;;  %v13765_v1 = vcombine.low %v3380_v62, %v3380_v62  ;;  %v13817_v35 = vcombine.high %v3380_v62, %v3380_v62 }
 0x22b   : > { %v3884_v31 = vrot.slane %v13763_v48, 6  ;;  %v3382_v41 = vld [vmem:[#allocation2 + $0xb8] sm:$0xff]  ;;  %v18664_v39 = vpop.f32.mrb[58].mxu0  ;;  %4010 = vst [vmem:[#allocation5 + $0x4f4] sm:$0xf] %v3870_v24  ;;  %v3873_v10 = vsel %vm17684_vm12, %v3871_v57, %v3872_v29  ;;  %v3876_v49 = vsel %vm17684_vm12, %v3874_v2, %v3875_v13  ;;  %v3383_v34 = vld [vmem:[#allocation2 + $0xc0] sm:$0xff]  ;;  %v13767_v58 = vcombine.low %v3381_v45, %v3381_v45  ;;  %7605 = vmatpush1.bf16.msra.mxu1 %v16000_v9 }
 0x22c   : > { %v6917_v55 = vpop.f32.mrb[59].mxu0  ;;  %v16011_v19 = vld [vmem:[%s21252_s2 + $0x1a0] sm:$0xff]   ;;  %4011 = vst [vmem:[#allocation5 + $0x51c] sm:$0xf] %v3873_v10  ;;  %4012 = vst [vmem:[#allocation5 + $0x544] sm:$0xf] %v3876_v49  ;;  %v3879_v50 = vsel %vm17684_vm12, %v3877_v32, %v3878_v5  ;;  %v18675_v30 = vcombine.high %v3381_v45, %v3381_v45  ;;  %v18677_v60 = vcombine.low %v3382_v41, %v3382_v41  ;;  %7606 = vmatprep.subr.bf16.mxu1 %v17156_v4 }
 0x22d   : > { %v3880_v12 = vrot.slane %v3878_v5, 4  ;;  %3603 = vst [vmem:[#allocation5 + $0x608] sm:$0xf] %v13815_v22  ;;  %v15984_v15 = vld [vmem:[#allocation5 + $0xb0] ss:$40 sps:$4 sm:$0xff]   ;;  %v3883_v18 = vrot.slane %v3881_v17, 4  ;;  %v18683_v37 = vcombine.high %v3382_v41, %v3382_v41  ;;  %v18685_v6 = vcombine.low %v3383_v34, %v3383_v34 }
 0x22e   : > { %4013 = vst [vmem:[#allocation5 + $0x56c] sm:$0xf] %v3879_v50  ;;  %v3886_v14 = vrot.slane %v3884_v31, 4  ;;  %v3887_v53 = vrot.slane %v13815_v22, 6  ;;  %3604 = vst [vmem:[#allocation5 + $0x630] sm:$0xf] %v13765_v1  ;;  %7407 = vmatmul.mubr.bf16.gmra.mrb[8].mxu1 %v15984_v15  ;;  %v18697_v28 = vcombine.high %v3383_v34, %v3383_v34 }
 0x22f   : > { %3605 = vst [vmem:[#allocation5 + $0x658] sm:$0xf] %v13817_v35  ;;  %v15987_v59 = vld [vmem:[#allocation5 + $0x104] ss:$40 sps:$4 sm:$0xff]   ;;  %v3882_v38 = vsel %vm17684_vm12, %v3880_v12, %v3881_v17  ;;  %v3890_v47 = vrot.slane %v13765_v1, 6  ;;  %v3384_v7 = vld [vmem:[#allocation2 + $0xc8] sm:$0xff]  ;;  %v3885_v51 = vsel %vm17684_vm12, %v3883_v18, %v3884_v31  ;;  %7607 = vmatpush1.bf16.msra.mxu1 %v16011_v19 }
 0x230   : > { %3606 = vst [vmem:[#allocation5 + $0x680] sm:$0xf] %v13767_v58  ;;  %3607 = vst [vmem:[#allocation5 + $0x6a8] sm:$0xf] %v18675_v30  ;;  %v18687_v0 = vld [vmem:[#allocation2 + $0x10] sm:$0xff]  ;;  %v3888_v16 = vsel %vm17684_vm12, %v3886_v14, %v3887_v53  ;;  %v3889_v3 = vrot.slane %v3887_v53, 4  ;;  %7414 = vmatprep.mubr.bf16.mxu1 %v15987_v59  ;;  %7608 = vmatprep.subr.bf16.mxu1 %v17156_v4  ;;  %v18713_v25 = vcombine.low %v3384_v7, %v3384_v7 }
 0x231   : > { %4014 = vst [vmem:[#allocation5 + $0x594] sm:$0xf] %v3882_v38  ;;  %v3893_v56 = vrot.slane %v13817_v35, 6  ;;  %3608 = vst [vmem:[#allocation5 + $0x6d0] sm:$0xf] %v18677_v60  ;;  %v3385_v42 = vld [vmem:[#allocation2 + $0xd0] sm:$0xff]  ;;  %v18716_v61 = vcombine.high %v3384_v7, %v3384_v7  ;;  %v13830_v62 = vcombine.low %v18687_v0, %v18687_v0  ;;  %v13831_v5 = vcombine.high %v18687_v0, %v18687_v0 }
 0x232   : > { %4015 = vst [vmem:[#allocation5 + $0x5bc] sm:$0xf] %v3885_v51  ;;  %4016 = vst [vmem:[#allocation5 + $0x5e4] sm:$0xf] %v3888_v16  ;;  %v3892_v63 = vrot.slane %v3890_v47, 4  ;;  %v3896_v54 = vrot.slane %v13767_v58, 6  ;;  %v3891_v43 = vsel %vm17684_vm12, %v3889_v3, %v3890_v47  ;;  %v18718_v9 = vcombine.low %v3385_v42, %v3385_v42 }
 0x233   : > { %v3899_v36 = vrot.slane %v18675_v30, 6  ;;  %3609 = vst [vmem:[#allocation5 + $0x6f8] sm:$0xf] %v18683_v37  ;;  %3610 = vst [vmem:[#allocation5 + $0x720] sm:$0xf] %v18685_v6  ;;  %v18701_v52 = vpop.f32.mrb[60].mxu0  ;;  %v18724_v48 = vcombine.high %v3385_v42, %v3385_v42 }
 0x234   : > { %v18699_v46 = vld [vmem:[#allocation2 + $0x10] sm:$0xfc]  ;;  %v16022_v23 = vld [vmem:[%s21252_s2 + $0x1a8] sm:$0xff]   ;;  %v3895_v44 = vrot.slane %v3893_v56, 4  ;;  %v3902_v33 = vrot.slane %v18677_v60, 6  ;;  %v3905_v27 = vrot.slane %v18683_v37, 6  ;;  %v3894_v29 = vsel %vm17684_vm12, %v3892_v63, %v3893_v56 }
 0x235   : > { %v6922_v26 = vpop.f32.mrb[61].mxu0  ;;  %4017 = vst [vmem:[#allocation5 + $0x60c] sm:$0xf] %v3891_v43  ;;  %3611 = vst [vmem:[#allocation5 + $0x748] sm:$0xf] %v18697_v28  ;;  %v3898_v13 = vrot.slane %v3896_v54, 4  ;;  %v13881_v17 = vcombine.low %v18699_v46, %v18699_v46  ;;  %v13882_v21 = vcombine.high %v18699_v46, %v18699_v46  ;;  %7609 = vmatpush1.bf16.msra.mxu1 %v16022_v23 }
 0x236   : > { %v18720_v11 = vpop.f32.mrb[62].mxu0  ;;  %4018 = vst [vmem:[#allocation5 + $0x634] sm:$0xf] %v3894_v29  ;;  %v3897_v40 = vsel %vm17684_vm12, %v3895_v44, %v3896_v54  ;;  %v4287_v45 = vld [vmem:[#allocation2 + $0x18] sm:$0xff]  ;;  %v3901_v2 = vrot.slane %v3899_v36, 4  ;;  %v16028_v24 = vld [vmem:[%s21252_s2 + $0x1b0] sm:$0xff]   ;;  %7610 = vmatprep.subr.bf16.mxu1 %v17156_v4 }
 0x237   : > { %v6925_v57 = vpop.f32.mrb[63].mxu0  ;;  %4019 = vst [vmem:[#allocation5 + $0x65c] sm:$0xf] %v3897_v40  ;;  %3612 = vst [vmem:[#allocation5 + $0x770] sm:$0xf] %v18713_v25  ;;  %v3900_v32 = vsel %vm17684_vm12, %v3898_v13, %v3899_v36  ;;  %v3904_v22 = vrot.slane %v3902_v33, 4  ;;  %v18748_v55 = vcombine.low %v4287_v45, %v4287_v45  ;;  %v18750_v19 = vcombine.high %v4287_v45, %v4287_v45 }
 0x238   : > { %3613 = vst [vmem:[#allocation5 + $0x798] sm:$0xf] %v18716_v61  ;;  %3614 = vst [vmem:[#allocation5 + $0x7c0] sm:$0xf] %v18718_v9  ;;  %v3907_v31 = vrot.slane %v3905_v27, 4  ;;  %v3908_v41 = vrot.slane %v18685_v6, 6  ;;  %v3903_v35 = vsel %vm17684_vm12, %v3901_v2, %v3902_v33 }
 0x239   : > { %3615 = vst [vmem:[#allocation5 + $0x7e8] sm:$0xf] %v18724_v48  ;;  %4235 = vst [vmem:[#allocation5 + $0x20] sm:$0xf] %v13830_v62  ;;  %v4288_v10 = vld [vmem:[#allocation2 + $0x20] sm:$0xff]  ;;  %v4289_v49 = vld [vmem:[#allocation2 + $0x28] sm:$0xff]  ;;  %v3906_v58 = vsel %vm17684_vm12, %v3904_v22, %v3905_v27  ;;  %7611 = vmatpush1.bf16.msra.mxu1 %v16028_v24 }
 0x23a   : > { %v15989_v1 = vld [vmem:[#allocation5 + $0x100] ss:$40 sps:$4 sm:$0xff]   ;;  %4020 = vst [vmem:[#allocation5 + $0x684] sm:$0xf] %v3900_v32  ;;  %v3911_v34 = vrot.slane %v18697_v28, 6  ;;  %v4290_v50 = vld [vmem:[#allocation2 + $0x30] sm:$0xff]  ;;  %v3909_v30 = vsel %vm17684_vm12, %v3907_v31, %v3908_v41  ;;  %v18769_v0 = vcombine.low %v4288_v10, %v4288_v10  ;;  %v18771_v51 = vcombine.high %v4288_v10, %v4288_v10  ;;  %7612 = vmatprep.subr.bf16.mxu1 %v17156_v4 }
 0x23b   : > { %4236 = vst [vmem:[#allocation5 + $0x48] sm:$0xf] %v13831_v5  ;;  %v15992_v12 = vld [vmem:[#allocation5 + $0x154] ss:$40 sps:$4 sm:$0xff]   ;;  %4021 = vst [vmem:[#allocation5 + $0x6ac] sm:$0xf] %v3903_v35  ;;  %7415 = vmatmul.mubr.bf16.gmra.mrb[12].mxu1 %v15989_v1  ;;  %v18776_v56 = vcombine.low %v4289_v49, %v4289_v49  ;;  %v18778_v42 = vcombine.high %v4289_v49, %v4289_v49  ;;  %v18780_v63 = vcombine.low %v4290_v50, %v4290_v50 }
 0x23c   : > { %v3910_v15 = vrot.slane %v3908_v41, 4  ;;  %v3914_v18 = vrot.slane %v18713_v25, 6  ;;  %v16039_v14 = vld [vmem:[%s21252_s2 + $0x1b8] sm:$0xff]   ;;  %4022 = vst [vmem:[#allocation5 + $0x6d4] sm:$0xf] %v3906_v58  ;;  %v3913_v53 = vrot.slane %v3911_v34, 4  ;;  %7422 = vmatprep.mubr.bf16.mxu1 %v15992_v12 }
 0x23d   : > { %4023 = vst [vmem:[#allocation5 + $0x6fc] sm:$0xf] %v3909_v30  ;;  %v3917_v60 = vrot.slane %v18716_v61, 6  ;;  %v3920_v59 = vrot.slane %v18718_v9, 6  ;;  %v3923_v38 = vrot.slane %v18724_v48, 6  ;;  %v18765_v47 = vpop.f32.mrb[64].mxu0  ;;  %7613 = vmatpush1.bf16.msra.mxu1 %v16039_v14  ;;  %v18806_v48 = vcombine.high %v4290_v50, %v4290_v50 }
 0x23e   : > { %4237 = vst [vmem:[#allocation5 + $0x70] sm:$0xf] %v18748_v55  ;;  %4238 = vst [vmem:[#allocation5 + $0x98] sm:$0xf] %v18750_v19  ;;  %v3912_v37 = vsel %vm17684_vm12, %v3910_v15, %v3911_v34  ;;  %v3916_v6 = vrot.slane %v3914_v18, 4  ;;  %v6930_v16 = vpop.f32.mrb[65].mxu0  ;;  %v3915_v3 = vsel %vm17684_vm12, %v3913_v53, %v3914_v18  ;;  %7614 = vmatprep.subr.bf16.mxu1 %v17156_v4 }
 0x23f   : > { %v16255_v7 = vld [vmem:[#allocation2 + $0xd8] ss:$0 sps:$4 sm:$0x33]   ;;  %4024 = vst [vmem:[#allocation5 + $0x724] sm:$0xf] %v3912_v37  ;;  %v18782_v54 = vpop.f32.mrb[66].mxu0 }
 0x240   : > { %v3918_v36 = vsel %vm17684_vm12, %v3916_v6, %v3917_v60  ;;  %4025 = vst [vmem:[#allocation5 + $0x74c] sm:$0xf] %v3915_v3  ;;  %v3919_v28 = vrot.slane %v3917_v60, 4  ;;  %v3922_v23 = vrot.slane %v3920_v59, 4  ;;  %v3925_v43 = vrot.slane %v3923_v38, 4  ;;  %v4291_v44 = vld [vmem:[#allocation2 + $0x38] sm:$0xff] }
 0x241   : > { %4239 = vst [vmem:[#allocation5 + $0xc0] sm:$0xf] %v18769_v0  ;;  %4240 = vst [vmem:[#allocation5 + $0xe8] sm:$0xf] %v18771_v51  ;;  %v6933_v33 = vpop.f32.mrb[67].mxu0  ;;  %v3926_v27 = vrot.slane %v16255_v7, 6  ;;  %v18814_v32 = vcombine.low %v4291_v44, %v4291_v44  ;;  %v18816_v22 = vcombine.high %v4291_v44, %v4291_v44 }
 0x242   : > { %4026 = vst [vmem:[#allocation5 + $0x774] sm:$0xf] %v3918_v36  ;;  %v13933_v26 = vrot.slane %v13881_v17, 10  ;;  %v4444_v29 = vrot.slane %v13882_v21, 6  ;;  %v4447_v25 = vrot.slane %v18748_v55, 6  ;;  %v4292_v61 = vld [vmem:[#allocation2 + $0x40] sm:$0xff]  ;;  %v3921_v40 = vsel %vm17684_vm12, %v3919_v28, %v3920_v59 }
 0x243   : > { %4241 = vst [vmem:[#allocation5 + $0x110] sm:$0xf] %v18776_v56  ;;  %4242 = vst [vmem:[#allocation5 + $0x138] sm:$0xf] %v18778_v42  ;;  %v16046_v9 = vld [vmem:[%s21252_s2 + $0x1c0] sm:$0xff]   ;;  %v3924_v46 = vsel %vm17684_vm12, %v3922_v23, %v3923_v38  ;;  %v4450_v13 = vrot.slane %v18750_v19, 6  ;;  %v3927_v45 = vsel %vm17684_vm12, %v3925_v43, %v3926_v27  ;;  %v18818_v31 = vcombine.low %v4292_v61, %v4292_v61 }
 0x244   : > { %4243 = vst [vmem:[#allocation5 + $0x160] sm:$0xf] %v18780_v63  ;;  %v15995_v62 = vld [vmem:[#allocation5 + $0x150] ss:$40 sps:$4 sm:$0xff]   ;;  %4027 = vst [vmem:[#allocation5 + $0x79c] sm:$0xf] %v3921_v40  ;;  %v4445_v57 = vsel %vm17684_vm12, %v13933_v26, %v4444_v29  ;;  %7615 = vmatpush1.bf16.msra.mxu1 %v16046_v9  ;;  %v18833_v50 = vcombine.high %v4292_v61, %v4292_v61 }
 0x245   : > { %4028 = vst [vmem:[#allocation5 + $0x7c4] sm:$0xf] %v3924_v46  ;;  %v4446_v2 = vrot.slane %v4444_v29, 4  ;;  %v4449_v5 = vrot.slane %v4447_v25, 4  ;;  %v4293_v17 = vld [vmem:[#allocation2 + $0x48] sm:$0xff]  ;;  %v4452_v24 = vrot.slane %v4450_v13, 4  ;;  %7423 = vmatmul.mubr.bf16.gmra.mrb[16].mxu1 %v15995_v62  ;;  %7616 = vmatprep.subr.bf16.mxu1 %v17156_v4 }
 0x246   : > { %v15998_v21 = vld [vmem:[#allocation5 + $0x1a4] ss:$40 sps:$4 sm:$0xff]   ;;  %4029 = vst [vmem:[#allocation5 + $0x7ec] sm:$0xf] %v3927_v45  ;;  %4647 = vst [vmem:[#allocation5 + $0x24] sm:$0xf] %v4445_v57  ;;  %v18836_v12 = vcombine.low %v4293_v17, %v4293_v17  ;;  %v18838_v58 = vcombine.high %v4293_v17, %v4293_v17 }
 0x247   : > { %4244 = vst [vmem:[#allocation5 + $0x188] sm:$0xf] %v18806_v48  ;;  %v4448_v41 = vsel %vm17684_vm12, %v4446_v2, %v4447_v25  ;;  %v4451_v10 = vsel %vm17684_vm12, %v4449_v5, %v4450_v13  ;;  %v4453_v49 = vrot.slane %v18769_v0, 6  ;;  %v4456_v1 = vrot.slane %v18771_v51, 6  ;;  %v4294_v35 = vld [vmem:[#allocation2 + $0x50] sm:$0xff]  ;;  %v4295_v34 = vld [vmem:[#allocation2 + $0x58] sm:$0xff]  ;;  %7430 = vmatprep.mubr.bf16.mxu1 %v15998_v21 }
 0x248   : > { %v18826_v55 = vpop.f32.mrb[68].mxu0  ;;  %v16056_v19 = vld [vmem:[%s21252_s2 + $0x1c8] sm:$0xff]   ;;  %4648 = vst [vmem:[#allocation5 + $0x4c] sm:$0xf] %v4448_v41  ;;  %4649 = vst [vmem:[#allocation5 + $0x74] sm:$0xf] %v4451_v10  ;;  %v18849_v38 = vcombine.low %v4294_v35, %v4294_v35  ;;  %v18851_v37 = vcombine.high %v4294_v35, %v4294_v35  ;;  %v18853_v6 = vcombine.low %v4295_v34, %v4295_v34 }
 0x249   : > { %4245 = vst [vmem:[#allocation5 + $0x1b0] sm:$0xf] %v18814_v32  ;;  %4246 = vst [vmem:[#allocation5 + $0x1d8] sm:$0xf] %v18816_v22  ;;  %v6938_v30 = vpop.f32.mrb[69].mxu0  ;;  %v4454_v15 = vsel %vm17684_vm12, %v4452_v24, %v4453_v49  ;;  %v4455_v18 = vrot.slane %v4453_v49, 4  ;;  %v18855_v7 = vcombine.high %v4295_v34, %v4295_v34  ;;  %7617 = vmatpush1.bf16.msra.mxu1 %v16056_v19 }
 0x24a   : > { %4247 = vst [vmem:[#allocation5 + $0x200] sm:$0xf] %v18818_v31  ;;  %v4458_v14 = vrot.slane %v4456_v1, 4  ;;  %v4459_v53 = vrot.slane %v18776_v56, 6  ;;  %v4296_v60 = vld [vmem:[#allocation2 + $0x60] sm:$0xff]  ;;  %v18844_v59 = vpop.f32.mrb[70].mxu0  ;;  %7618 = vmatprep.subr.bf16.mxu1 %v17156_v4 }
 0x24b   : > { %4650 = vst [vmem:[#allocation5 + $0x9c] sm:$0xf] %v4454_v15  ;;  %4248 = vst [vmem:[#allocation5 + $0x228] sm:$0xf] %v18833_v50  ;;  %v4297_v0 = vld [vmem:[#allocation2 + $0x68] sm:$0xff]  ;;  %v6941_v51 = vpop.f32.mrb[71].mxu0  ;;  %v4457_v16 = vsel %vm17684_vm12, %v4455_v18, %v4456_v1  ;;  %v18873_v33 = vcombine.high %v4296_v60, %v4296_v60 }
 0x24c   : > { %4249 = vst [vmem:[#allocation5 + $0x250] sm:$0xf] %v18836_v12  ;;  %4250 = vst [vmem:[#allocation5 + $0x278] sm:$0xf] %v18838_v58  ;;  %v4460_v3 = vsel %vm17684_vm12, %v4458_v14, %v4459_v53  ;;  %v4461_v56 = vrot.slane %v4459_v53, 4  ;;  %v4462_v36 = vrot.slane %v18778_v42, 6  ;;  %v18871_v42 = vcombine.low %v4296_v60, %v4296_v60 }
 0x24d   : > { %v4298_v28 = vld [vmem:[#allocation2 + $0x70] sm:$0xff]  ;;  %4651 = vst [vmem:[#allocation5 + $0xc4] sm:$0xf] %v4457_v16  ;;  %4652 = vst [vmem:[#allocation5 + $0xec] sm:$0xf] %v4460_v3  ;;  %v4465_v43 = vrot.slane %v18780_v63, 6  ;;  %v18879_v25 = vcombine.low %v4297_v0, %v4297_v0  ;;  %v18885_v45 = vcombine.high %v4297_v0, %v4297_v0 }
 0x24e   : > { %v16067_v23 = vld [vmem:[%s21252_s2 + $0x1d0] sm:$0xff]   ;;  %v4468_v44 = vrot.slane %v18806_v48, 6  ;;  %4251 = vst [vmem:[#allocation5 + $0x2a0] sm:$0xf] %v18849_v38  ;;  %4252 = vst [vmem:[#allocation5 + $0x2c8] sm:$0xf] %v18851_v37  ;;  %v4463_v63 = vsel %vm17684_vm12, %v4461_v56, %v4462_v36  ;;  %v18888_v57 = vcombine.low %v4298_v28, %v4298_v28  ;;  %v18903_v49 = vcombine.high %v4298_v28, %v4298_v28 }
 0x24f   : > { %4253 = vst [vmem:[#allocation5 + $0x2f0] sm:$0xf] %v18853_v6  ;;  %4254 = vst [vmem:[#allocation5 + $0x318] sm:$0xf] %v18855_v7  ;;  %v16001_v27 = vld [vmem:[#allocation5 + $0x1a0] ss:$40 sps:$4 sm:$0xff]   ;;  %7619 = vmatpush1.bf16.msra.mxu1 %v16067_v23 }
 0x250   : > { %v4464_v26 = vrot.slane %v4462_v36, 4  ;;  %v4471_v29 = vrot.slane %v18814_v32, 6  ;;  %v16004_v61 = vld [vmem:[#allocation5 + $0x1f4] ss:$40 sps:$4 sm:$0xff]   ;;  %4653 = vst [vmem:[#allocation5 + $0x114] sm:$0xf] %v4463_v63  ;;  %7431 = vmatmul.mubr.bf16.gmra.mrb[20].mxu1 %v16001_v27  ;;  %7620 = vmatprep.subr.bf16.mxu1 %v17156_v4 }
 0x251   : > { %v4467_v9 = vrot.slane %v4465_v43, 4  ;;  %v4470_v40 = vrot.slane %v4468_v44, 4  ;;  %4255 = vst [vmem:[#allocation5 + $0x340] sm:$0xf] %v18871_v42  ;;  %4256 = vst [vmem:[#allocation5 + $0x368] sm:$0xf] %v18873_v33  ;;  %7438 = vmatprep.mubr.bf16.mxu1 %v16004_v61 }
 0x252   : > { %v4299_v46 = vld [vmem:[#allocation2 + $0x78] sm:$0xff]  ;;  %v4300_v13 = vld [vmem:[#allocation2 + $0x80] sm:$0xff]  ;;  %v4466_v48 = vsel %vm17684_vm12, %v4464_v26, %v4465_v43  ;;  %v4473_v62 = vrot.slane %v4471_v29, 4  ;;  %4257 = vst [vmem:[#allocation5 + $0x390] sm:$0xf] %v18879_v25  ;;  %v18890_v2 = vpop.f32.mrb[72].mxu0 }
 0x253   : > { %v16073_v5 = vld [vmem:[%s21252_s2 + $0x1d8] sm:$0xff]   ;;  %4654 = vst [vmem:[#allocation5 + $0x13c] sm:$0xf] %v4466_v48  ;;  %v4469_v17 = vsel %vm17684_vm12, %v4467_v9, %v4468_v44  ;;  %v4472_v21 = vsel %vm17684_vm12, %v4470_v40, %v4471_v29  ;;  %v4474_v24 = vrot.slane %v18816_v22, 6  ;;  %v4477_v32 = vrot.slane %v18818_v31, 6  ;;  %v4301_v41 = vld [vmem:[#allocation2 + $0x88] sm:$0xff] }
 0x254   : > { %v6946_v10 = vpop.f32.mrb[73].mxu0  ;;  %4655 = vst [vmem:[#allocation5 + $0x164] sm:$0xf] %v4469_v17  ;;  %4656 = vst [vmem:[#allocation5 + $0x18c] sm:$0xf] %v4472_v21  ;;  %v18906_v1 = vcombine.low %v4299_v46, %v4299_v46  ;;  %v18908_v35 = vcombine.high %v4299_v46, %v4299_v46  ;;  %v18910_v34 = vcombine.low %v4300_v13, %v4300_v13  ;;  %v4480_v15 = vrot.slane %v18833_v50, 6 }
 0x255   : > { %4258 = vst [vmem:[#allocation5 + $0x3b8] sm:$0xf] %v18885_v45  ;;  %4259 = vst [vmem:[#allocation5 + $0x3e0] sm:$0xf] %v18888_v57  ;;  %v18912_v22 = vpop.f32.mrb[74].mxu0  ;;  %v4475_v31 = vsel %vm17684_vm12, %v4473_v62, %v4474_v24  ;;  %v4476_v19 = vrot.slane %v4474_v24, 4  ;;  %v18922_v60 = vcombine.high %v4300_v13, %v4300_v13  ;;  %v18925_v0 = vcombine.low %v4301_v41, %v4301_v41 }
 0x256   : > { %v4479_v30 = vrot.slane %v4477_v32, 4  ;;  %v6949_v18 = vpop.f32.mrb[75].mxu0  ;;  %4657 = vst [vmem:[#allocation5 + $0x1b4] sm:$0xf] %v4475_v31  ;;  %v4483_v14 = vrot.slane %v18836_v12, 6  ;;  %v4486_v53 = vrot.slane %v18838_v58, 6  ;;  %7621 = vmatpush1.bf16.msra.mxu1 %v16073_v5  ;;  %v18948_v61 = vcombine.high %v4301_v41, %v4301_v41 }
 0x257   : > { %4260 = vst [vmem:[#allocation5 + $0x408] sm:$0xf] %v18903_v49  ;;  %4261 = vst [vmem:[#allocation5 + $0x430] sm:$0xf] %v18906_v1  ;;  %v16006_v51 = vld [vmem:[#allocation5 + $0x1f0] ss:$40 sps:$4 sm:$0xff]   ;;  %v4478_v12 = vsel %vm17684_vm12, %v4476_v19, %v4477_v32  ;;  %7622 = vmatprep.subr.bf16.mxu1 %v17156_v4 }
 0x258   : > { %4262 = vst [vmem:[#allocation5 + $0x458] sm:$0xf] %v18908_v35  ;;  %4263 = vst [vmem:[#allocation5 + $0x480] sm:$0xf] %v18910_v34  ;;  %v16084_v50 = vld [vmem:[%s21252_s2 + $0x1e0] sm:$0xff]   ;;  %v4481_v58 = vsel %vm17684_vm12, %v4479_v30, %v4480_v15  ;;  %v4482_v16 = vrot.slane %v4480_v15, 4  ;;  %7439 = vmatmul.mubr.bf16.gmra.mrb[24].mxu1 %v16006_v51 }
 0x259   : > { %v4489_v3 = vrot.slane %v18849_v38, 6  ;;  %4658 = vst [vmem:[#allocation5 + $0x1dc] sm:$0xf] %v4478_v12  ;;  %4659 = vst [vmem:[#allocation5 + $0x204] sm:$0xf] %v4481_v58  ;;  %v4485_v56 = vrot.slane %v4483_v14, 4 }
 0x25a   : > { %v4488_v36 = vrot.slane %v4486_v53, 4  ;;  %v4492_v28 = vrot.slane %v18851_v37, 6  ;;  %v4495_v23 = vrot.slane %v18853_v6, 6  ;;  %4264 = vst [vmem:[#allocation5 + $0x4a8] sm:$0xf] %v18922_v60  ;;  %v4302_v43 = vld [vmem:[#allocation2 + $0x90] sm:$0xff]  ;;  %v4484_v27 = vsel %vm17684_vm12, %v4482_v16, %v4483_v14  ;;  %7623 = vmatpush1.bf16.msra.mxu1 %v16084_v50 }
 0x25b   : > { %4265 = vst [vmem:[#allocation5 + $0x4d0] sm:$0xf] %v18925_v0  ;;  %v16009_v44 = vld [vmem:[#allocation5 + $0x244] ss:$40 sps:$4 sm:$0xff]   ;;  %v4491_v38 = vrot.slane %v4489_v3, 4  ;;  %v4498_v63 = vrot.slane %v18855_v7, 6  ;;  %v4487_v37 = vsel %vm17684_vm12, %v4485_v56, %v4486_v53  ;;  %v18957_v46 = vcombine.low %v4302_v43, %v4302_v43  ;;  %7624 = vmatprep.subr.bf16.mxu1 %v17156_v4 }
 0x25c   : > { %v4501_v26 = vrot.slane %v18871_v42, 6  ;;  %4660 = vst [vmem:[#allocation5 + $0x22c] sm:$0xf] %v4484_v27  ;;  %v4490_v6 = vsel %vm17684_vm12, %v4488_v36, %v4489_v3  ;;  %v4494_v29 = vrot.slane %v4492_v28, 4  ;;  %v18950_v9 = vpop.f32.mrb[76].mxu0  ;;  %7446 = vmatprep.mubr.bf16.mxu1 %v16009_v44  ;;  %v16095_v7 = vld [vmem:[%s21252_s2 + $0x1e8] sm:$0xff]   ;;  %v18959_v13 = vcombine.high %v4302_v43, %v4302_v43 }
 0x25d   : > { %4661 = vst [vmem:[#allocation5 + $0x254] sm:$0xf] %v4487_v37  ;;  %4662 = vst [vmem:[#allocation5 + $0x27c] sm:$0xf] %v4490_v6  ;;  %v4493_v42 = vsel %vm17684_vm12, %v4491_v38, %v4492_v28  ;;  %v4497_v40 = vrot.slane %v4495_v23, 4  ;;  %v6954_v48 = vpop.f32.mrb[77].mxu0 }
 0x25e   : > { %v4496_v62 = vsel %vm17684_vm12, %v4494_v29, %v4495_v23  ;;  %4663 = vst [vmem:[#allocation5 + $0x2a4] sm:$0xf] %v4493_v42  ;;  %v4500_v5 = vrot.slane %v4498_v63, 4  ;;  %v4503_v17 = vrot.slane %v4501_v26, 4  ;;  %v4504_v21 = vrot.slane %v18873_v33, 6  ;;  %v4303_v24 = vld [vmem:[#allocation2 + $0x98] sm:$0xff]  ;;  %7625 = vmatpush1.bf16.msra.mxu1 %v16095_v7 }
 0x25f   : > { %4266 = vst [vmem:[#allocation5 + $0x4f8] sm:$0xf] %v18948_v61  ;;  %v4304_v32 = vld [vmem:[#allocation2 + $0xa0] sm:$0xff]  ;;  %v18966_v41 = vpop.f32.mrb[78].mxu0  ;;  %4664 = vst [vmem:[#allocation5 + $0x2cc] sm:$0xf] %v4496_v62  ;;  %v4499_v10 = vsel %vm17684_vm12, %v4497_v40, %v4498_v63  ;;  %v18982_v50 = vcombine.high %v4303_v24, %v4303_v24  ;;  %7626 = vmatprep.subr.bf16.mxu1 %v17156_v4 }
 0x260   : > { %v4507_v31 = vrot.slane %v18879_v25, 6  ;;  %v4510_v19 = vrot.slane %v18885_v45, 6  ;;  %v4513_v30 = vrot.slane %v18888_v57, 6  ;;  %4267 = vst [vmem:[#allocation5 + $0x520] sm:$0xf] %v18957_v46  ;;  %v6957_v33 = vpop.f32.mrb[79].mxu0  ;;  %v4502_v15 = vsel %vm17684_vm12, %v4500_v5, %v4501_v26 }
 0x261   : > { %4268 = vst [vmem:[#allocation5 + $0x548] sm:$0xf] %v18959_v13  ;;  %4665 = vst [vmem:[#allocation5 + $0x2f4] sm:$0xf] %v4499_v10  ;;  %v4505_v18 = vsel %vm17684_vm12, %v4503_v17, %v4504_v21  ;;  %v4506_v14 = vrot.slane %v4504_v21, 4  ;;  %v4516_v53 = vrot.slane %v18903_v49, 6  ;;  %v18980_v57 = vcombine.low %v4303_v24, %v4303_v24 }
 0x262   : > { %v4305_v25 = vld [vmem:[#allocation2 + $0xa8] sm:$0xff]  ;;  %v16012_v51 = vld [vmem:[#allocation5 + $0x240] ss:$40 sps:$4 sm:$0xff]   ;;  %4666 = vst [vmem:[#allocation5 + $0x31c] sm:$0xf] %v4502_v15  ;;  %v4509_v45 = vrot.slane %v4507_v31, 4  ;;  %v18984_v12 = vcombine.low %v4304_v32, %v4304_v32  ;;  %v18994_v23 = vcombine.high %v4304_v32, %v4304_v32 }
 0x263   : > { %4667 = vst [vmem:[#allocation5 + $0x344] sm:$0xf] %v4505_v18  ;;  %v16015_v58 = vld [vmem:[#allocation5 + $0x294] ss:$40 sps:$4 sm:$0xff]   ;;  %v4508_v16 = vsel %vm17684_vm12, %v4506_v14, %v4507_v31  ;;  %v4512_v3 = vrot.slane %v4510_v19, 4  ;;  %v4515_v49 = vrot.slane %v4513_v30, 4  ;;  %v18997_v43 = vcombine.low %v4305_v25, %v4305_v25  ;;  %7447 = vmatmul.mubr.bf16.gmra.mrb[28].mxu1 %v16012_v51 }
 0x264   : > { %v4518_v56 = vrot.slane %v4516_v53, 4  ;;  %4668 = vst [vmem:[#allocation5 + $0x36c] sm:$0xf] %v4508_v16  ;;  %v4511_v36 = vsel %vm17684_vm12, %v4509_v45, %v4510_v19  ;;  %v4519_v28 = vrot.slane %v18906_v1, 6  ;;  %4269 = vst [vmem:[#allocation5 + $0x570] sm:$0xf] %v18980_v57  ;;  %7454 = vmatprep.mubr.bf16.mxu1 %v16015_v58  ;;  %v19011_v42 = vcombine.high %v4305_v25, %v4305_v25 }
 0x265   : > { %4270 = vst [vmem:[#allocation5 + $0x598] sm:$0xf] %v18982_v50  ;;  %4271 = vst [vmem:[#allocation5 + $0x5c0] sm:$0xf] %v18984_v12  ;;  %v4306_v44 = vld [vmem:[#allocation2 + $0xb0] sm:$0xff]  ;;  %v4307_v27 = vld [vmem:[#allocation2 + $0xb8] sm:$0xff]  ;;  %v4514_v38 = vsel %vm17684_vm12, %v4512_v3, %v4513_v30  ;;  %v4517_v1 = vsel %vm17684_vm12, %v4515_v49, %v4516_v53 }
 0x266   : > { %4669 = vst [vmem:[#allocation5 + $0x394] sm:$0xf] %v4511_v36  ;;  %v4522_v63 = vrot.slane %v18908_v35, 6  ;;  %v4525_v26 = vrot.slane %v18910_v34, 6  ;;  %v19005_v37 = vpop.f32.mrb[80].mxu0  ;;  %v4520_v6 = vsel %vm17684_vm12, %v4518_v56, %v4519_v28  ;;  %v4521_v29 = vrot.slane %v4519_v28, 4 }
 0x267   : > { %4670 = vst [vmem:[#allocation5 + $0x3bc] sm:$0xf] %v4514_v38  ;;  %4671 = vst [vmem:[#allocation5 + $0x3e4] sm:$0xf] %v4517_v1  ;;  %v4528_v7 = vrot.slane %v18922_v60, 6  ;;  %v4308_v35 = vld [vmem:[#allocation2 + $0xc0] sm:$0xff]  ;;  %v19014_v48 = vcombine.low %v4306_v44, %v4306_v44  ;;  %v19016_v62 = vcombine.high %v4306_v44, %v4306_v44  ;;  %v19018_v5 = vcombine.low %v4307_v27, %v4307_v27 }
 0x268   : > { %4272 = vst [vmem:[#allocation5 + $0x5e8] sm:$0xf] %v18994_v23  ;;  %4273 = vst [vmem:[#allocation5 + $0x610] sm:$0xf] %v18997_v43  ;;  %v4309_v40 = vld [vmem:[#allocation2 + $0xc8] sm:$0xff]  ;;  %v6962_v34 = vpop.f32.mrb[81].mxu0  ;;  %v19020_v17 = vcombine.high %v4307_v27, %v4307_v27  ;;  %v4523_v60 = vsel %vm17684_vm12, %v4521_v29, %v4522_v63  ;;  %v19035_v15 = vcombine.low %v4308_v35, %v4308_v35 }
 0x269   : > { %4672 = vst [vmem:[#allocation5 + $0x40c] sm:$0xf] %v4520_v6  ;;  %v19022_v21 = vpop.f32.mrb[82].mxu0  ;;  %v4524_v24 = vrot.slane %v4522_v63, 4  ;;  %v4527_v32 = vrot.slane %v4525_v26, 4  ;;  %v4530_v10 = vrot.slane %v4528_v7, 4  ;;  %v19037_v18 = vcombine.high %v4308_v35, %v4308_v35 }
 0x26a   : > { %4274 = vst [vmem:[#allocation5 + $0x638] sm:$0xf] %v19011_v42  ;;  %v4310_v31 = vld [vmem:[#allocation2 + $0xd0] sm:$0xff]  ;;  %v6965_v19 = vpop.f32.mrb[83].mxu0  ;;  %4673 = vst [vmem:[#allocation5 + $0x434] sm:$0xf] %v4523_v60  ;;  %v19039_v14 = vcombine.low %v4309_v40, %v4309_v40  ;;  %v19051_v49 = vcombine.high %v4309_v40, %v4309_v40 }
 0x26b   : > { %v16101_v30 = vld [vmem:[%s21252_s2 + $0x1f0] sm:$0xff]   ;;  %v4531_v33 = vrot.slane %v18925_v0, 6  ;;  %4275 = vst [vmem:[#allocation5 + $0x660] sm:$0xf] %v19014_v48  ;;  %4276 = vst [vmem:[#allocation5 + $0x688] sm:$0xf] %v19016_v62  ;;  %v4526_v53 = vsel %vm17684_vm12, %v4524_v24, %v4525_v26  ;;  %v4529_v0 = vsel %vm17684_vm12, %v4527_v32, %v4528_v7  ;;  %v19071_v29 = vcombine.high %v4310_v31, %v4310_v31 }
 0x26c   : > { %4277 = vst [vmem:[#allocation5 + $0x6b0] sm:$0xf] %v19018_v5  ;;  %4278 = vst [vmem:[#allocation5 + $0x6d8] sm:$0xf] %v19020_v17  ;;  %v4534_v25 = vrot.slane %v18948_v61, 6  ;;  %v4537_v51 = vrot.slane %v18957_v46, 6  ;;  %7627 = vmatpush1.bf16.msra.mxu1 %v16101_v30  ;;  %v19054_v61 = vcombine.low %v4310_v31, %v4310_v31 }
 0x26d   : > { %v16017_v45 = vld [vmem:[#allocation5 + $0x290] ss:$40 sps:$4 sm:$0xff]   ;;  %v16020_v58 = vld [vmem:[#allocation5 + $0x2e4] ss:$40 sps:$4 sm:$0xff]   ;;  %4674 = vst [vmem:[#allocation5 + $0x45c] sm:$0xf] %v4526_v53  ;;  %v4532_v16 = vsel %vm17684_vm12, %v4530_v10, %v4531_v33  ;;  %7628 = vmatprep.subr.bf16.mxu1 %v17156_v4 }
 0x26e   : > { %4675 = vst [vmem:[#allocation5 + $0x484] sm:$0xf] %v4529_v0  ;;  %v4533_v3 = vrot.slane %v4531_v33, 4  ;;  %4279 = vst [vmem:[#allocation5 + $0x700] sm:$0xf] %v19035_v15  ;;  %v4536_v46 = vrot.slane %v4534_v25, 4  ;;  %7455 = vmatmul.mubr.bf16.gmra.mrb[32].mxu1 %v16017_v45 }
 0x26f   : > { %4280 = vst [vmem:[#allocation5 + $0x728] sm:$0xf] %v19037_v18  ;;  %4281 = vst [vmem:[#allocation5 + $0x750] sm:$0xf] %v19039_v14  ;;  %v4539_v56 = vrot.slane %v4537_v51, 4  ;;  %v4540_v36 = vrot.slane %v18959_v13, 6  ;;  %7462 = vmatprep.mubr.bf16.mxu1 %v16020_v58 }
 0x270   : > { %4676 = vst [vmem:[#allocation5 + $0x4ac] sm:$0xf] %v4532_v16  ;;  %v4543_v28 = vrot.slane %v18980_v57, 6  ;;  %v4535_v44 = vsel %vm17684_vm12, %v4533_v3, %v4534_v25  ;;  %v4546_v27 = vrot.slane %v18982_v50, 6  ;;  %4282 = vst [vmem:[#allocation5 + $0x778] sm:$0xf] %v19051_v49  ;;  %v4538_v1 = vsel %vm17684_vm12, %v4536_v46, %v4537_v51 }
 0x271   : > { %4283 = vst [vmem:[#allocation5 + $0x7a0] sm:$0xf] %v19054_v61  ;;  %v19064_v38 = vpop.f32.mrb[84].mxu0  ;;  %4677 = vst [vmem:[#allocation5 + $0x4d4] sm:$0xf] %v4535_v44  ;;  %v4541_v13 = vsel %vm17684_vm12, %v4539_v56, %v4540_v36  ;;  %v4542_v57 = vrot.slane %v4540_v36, 4 }
 0x272   : > { %v6970_v63 = vpop.f32.mrb[85].mxu0  ;;  %4678 = vst [vmem:[#allocation5 + $0x4fc] sm:$0xf] %v4538_v1  ;;  %4679 = vst [vmem:[#allocation5 + $0x524] sm:$0xf] %v4541_v13  ;;  %v4545_v26 = vrot.slane %v4543_v28, 4 }
 0x273   : > { %v4548_v50 = vrot.slane %v4546_v27, 4  ;;  %v4549_v6 = vrot.slane %v18984_v12, 6  ;;  %v19073_v7 = vpop.f32.mrb[86].mxu0  ;;  %v4544_v35 = vsel %vm17684_vm12, %v4542_v57, %v4543_v28  ;;  %v4552_v40 = vrot.slane %v18994_v23, 6  ;;  %4284 = vst [vmem:[#allocation5 + $0x7c8] sm:$0xf] %v19071_v29 }
 0x274   : > { %v4555_v34 = vrot.slane %v18997_v43, 6  ;;  %v4558_v60 = vrot.slane %v19011_v42, 6  ;;  %v6973_v24 = vpop.f32.mrb[87].mxu0  ;;  %4680 = vst [vmem:[#allocation5 + $0x54c] sm:$0xf] %v4544_v35  ;;  %v4547_v32 = vsel %vm17684_vm12, %v4545_v26, %v4546_v27  ;;  %v4561_v31 = vrot.slane %v19014_v48, 6 }
 0x275   : > { %v4550_v12 = vsel %vm17684_vm12, %v4548_v50, %v4549_v6  ;;  %v4551_v10 = vrot.slane %v4549_v6, 4  ;;  %v16023_v19 = vld [vmem:[#allocation5 + $0x2e0] ss:$40 sps:$4 sm:$0xff]   ;;  %4681 = vst [vmem:[#allocation5 + $0x574] sm:$0xf] %v4547_v32  ;;  %v4554_v23 = vrot.slane %v4552_v40, 4 }
 0x276   : > { %4682 = vst [vmem:[#allocation5 + $0x59c] sm:$0xf] %v4550_v12  ;;  %v16026_v43 = vld [vmem:[#allocation5 + $0x334] ss:$40 sps:$4 sm:$0xff]   ;;  %v4557_v30 = vrot.slane %v4555_v34, 4  ;;  %v4560_v33 = vrot.slane %v4558_v60, 4  ;;  %7463 = vmatmul.mubr.bf16.gmra.mrb[36].mxu1 %v16023_v19 }
 0x277   : > { %v4553_v42 = vsel %vm17684_vm12, %v4551_v10, %v4552_v40  ;;  %v4556_v53 = vsel %vm17684_vm12, %v4554_v23, %v4555_v34  ;;  %v4563_v0 = vrot.slane %v4561_v31, 4  ;;  %v4564_v25 = vrot.slane %v19016_v62, 6  ;;  %v4311_v51 = vld [vmem:[#allocation2 + $0xd8] sm:$0x3f]  ;;  %v19098_v56 = vpop.f32.mrb[88].mxu0  ;;  %7470 = vmatprep.mubr.bf16.mxu1 %v16026_v43 }
 0x278   : > { %4683 = vst [vmem:[#allocation5 + $0x5c4] sm:$0xf] %v4553_v42  ;;  %v4567_v48 = vrot.slane %v19018_v5, 6  ;;  %4684 = vst [vmem:[#allocation5 + $0x5ec] sm:$0xf] %v4556_v53  ;;  %v4559_v45 = vsel %vm17684_vm12, %v4557_v30, %v4558_v60  ;;  %v4562_v58 = vsel %vm17684_vm12, %v4560_v33, %v4561_v31  ;;  %v4570_v16 = vrot.slane %v19020_v17, 6 }
 0x279   : > { %v4573_v3 = vrot.slane %v19035_v15, 6  ;;  %v16389_v46 = vld [vmem:[#allocation2 + $0xd8] ss:$0 sps:$4 sm:$0xff]   ;;  %4685 = vst [vmem:[#allocation5 + $0x614] sm:$0xf] %v4559_v45  ;;  %v4565_v5 = vsel %vm17684_vm12, %v4563_v0, %v4564_v25  ;;  %v4566_v36 = vrot.slane %v4564_v25, 4  ;;  %v13931_v27 = vcombine.low %v4311_v51, %v4311_v51 }
 0x27a   : > { %v16111_v62 = vld [vmem:[%s21252_s2 + $0x1f8] sm:$0xff]   ;;  %4686 = vst [vmem:[#allocation5 + $0x63c] sm:$0xf] %v4562_v58  ;;  %v6978_v28 = vpop.f32.mrb[89].mxu0  ;;  %4687 = vst [vmem:[#allocation5 + $0x664] sm:$0xf] %v4565_v5  ;;  %v13932_v50 = vcombine.high %v4311_v51, %v4311_v51 }
 0x27b   : > { %v4569_v44 = vrot.slane %v4567_v48, 4  ;;  %v4572_v17 = vrot.slane %v4570_v16, 4  ;;  %4285 = vst [vmem:[#allocation5 + $0x7f0] sm:$0xf] %v16389_v46  ;;  %v19105_v15 = vpop.f32.mrb[90].mxu0  ;;  %7629 = vmatpush1.bf16.msra.mxu1 %v16111_v62  ;;  %v4568_v1 = vsel %vm17684_vm12, %v4566_v36, %v4567_v48  ;;  %v4575_v26 = vrot.slane %v4573_v3, 4 }
 0x27c   : > { %v6981_v13 = vpop.f32.mrb[91].mxu0  ;;  %7838 = vmatprep.subr.bf16.mxu1 %v17156_v4  ;;  %4688 = vst [vmem:[#allocation5 + $0x68c] sm:$0xf] %v4568_v1  ;;  %v4576_v6 = vrot.slane %v19037_v18, 6  ;;  %v4579_v35 = vrot.slane %v19039_v14, 6  ;;  %v4582_v40 = vrot.slane %v19051_v49, 6 }
 0x27d   : > { %v4571_v57 = vsel %vm17684_vm12, %v4569_v44, %v4570_v16  ;;  %v4574_v63 = vsel %vm17684_vm12, %v4572_v17, %v4573_v3  ;;  %v16029_v34 = vld [vmem:[#allocation5 + $0x330] ss:$40 sps:$4 sm:$0xff]   ;;  %v4585_v60 = vrot.slane %v19054_v61, 6  ;;  %v4588_v24 = vrot.slane %v19071_v29, 6  ;;  %v16032_v12 = vld [vmem:[#allocation5 + $0x384] ss:$40 sps:$4 sm:$0xff]  }
 0x27e   : > { %4689 = vst [vmem:[#allocation5 + $0x6b4] sm:$0xf] %v4571_v57  ;;  %4690 = vst [vmem:[#allocation5 + $0x6dc] sm:$0xf] %v4574_v63  ;;  %v4591_v32 = vrot.slane %v13931_v27, 6  ;;  %v4577_v10 = vsel %vm17684_vm12, %v4575_v26, %v4576_v6  ;;  %v4578_v31 = vrot.slane %v4576_v6, 4  ;;  %7471 = vmatmul.mubr.bf16.gmra.mrb[40].mxu1 %v16029_v34 }
 0x27f   : > { %4691 = vst [vmem:[#allocation5 + $0x704] sm:$0xf] %v4577_v10  ;;  %v4581_v19 = vrot.slane %v4579_v35, 4  ;;  %v4584_v23 = vrot.slane %v4582_v40, 4  ;;  %v4594_v18 = vrot.slane %v13932_v50, 6  ;;  %v19121_v43 = vpop.f32.mrb[92].mxu0  ;;  %7478 = vmatprep.mubr.bf16.mxu1 %v16032_v12 }
 0x280   : > { %v4580_v14 = vsel %vm17684_vm12, %v4578_v31, %v4579_v35  ;;  %v4587_v49 = vrot.slane %v4585_v60, 4  ;;  %v4590_v61 = vrot.slane %v4588_v24, 4  ;;  %v6986_v29 = vpop.f32.mrb[93].mxu0  ;;  %v4593_v33 = vrot.slane %v4591_v32, 4  ;;  %v16034_v45 = vld [vmem:[#allocation5 + $0x380] ss:$40 sps:$4 sm:$0xff]  }
 0x281   : > { %4692 = vst [vmem:[#allocation5 + $0x72c] sm:$0xf] %v4580_v14  ;;  %v4583_v42 = vsel %vm17684_vm12, %v4581_v19, %v4582_v40  ;;  %v4586_v30 = vsel %vm17684_vm12, %v4584_v23, %v4585_v60  ;;  %v19129_v53 = vpop.f32.mrb[94].mxu0  ;;  %v16037_v58 = vld [vmem:[#allocation5 + $0x3d4] ss:$40 sps:$4 sm:$0xff]   ;;  %vm8649_vm0 = vcmask 1043456  }
 0x282   : > { %4693 = vst [vmem:[#allocation5 + $0x754] sm:$0xf] %v4583_v42  ;;  %4694 = vst [vmem:[#allocation5 + $0x77c] sm:$0xf] %v4586_v30  ;;  %v4589_v0 = vsel %vm17684_vm12, %v4587_v49, %v4588_v24  ;;  %v4592_v25 = vsel %vm17684_vm12, %v4590_v61, %v4591_v32  ;;  %v6989_v48 = vpop.f32.mrb[95].mxu0  ;;  %v4595_v51 = vsel %vm17684_vm12, %v4593_v33, %v4594_v18 }
 0x283   : > { %4695 = vst [vmem:[#allocation5 + $0x7a4] sm:$0xf] %v4589_v0  ;;  %4696 = vst [vmem:[#allocation5 + $0x7cc] sm:$0xf] %v4592_v25  ;;  %v19137_v16 = vpop.f32.mrb[96].mxu0 }
 0x284   : > { %4697 = vst [vmem:[#allocation5 + $0x7f4] sm:$0xf] %v4595_v51  ;;  %v6994_v3 = vpop.f32.mrb[97].mxu0  ;;  %v16040_v5 = vld [vmem:[#allocation5 + $0x3d0] ss:$40 sps:$4 sm:$0xff]  }
 0x285   : > { %v19139_v46 = vpop.f32.mrb[98].mxu0  ;;  %v16043_v36 = vld [vmem:[#allocation5 + $0x424] ss:$40 sps:$4 sm:$0xff]   ;;  %v16045_v1 = vld [vmem:[#allocation5 + $0x420] ss:$40 sps:$4 sm:$0xff]  }
 0x286   : > { %7479 = vmatmul.mubr.bf16.gmra.mrb[44].mxu1 %v16034_v45  ;;  %v6997_v62 = vpop.f32.mrb[99].mxu0  ;;  %v16049_v13 = vld [vmem:[#allocation5 + $0x474] ss:$40 sps:$4 sm:$0xff]   ;;  %v16051_v6 = vld [vmem:[#allocation5 + $0x470] ss:$40 sps:$4 sm:$0xff]  }
 0x287   : > { %7486 = vmatprep.mubr.bf16.mxu1 %v16037_v58  ;;  %v19141_v28 = vpop.f32.mrb[100].mxu0  ;;  %v16054_v35 = vld [vmem:[#allocation5 + $0x4c4] ss:$40 sps:$4 sm:$0xff]   ;;  %v16057_v32 = vld [vmem:[#allocation5 + $0x4c0] ss:$40 sps:$4 sm:$0xff]  }
 0x288   : > { %v7002_v44 = vpop.f32.mrb[101].mxu0  ;;  %v16060_v12 = vld [vmem:[#allocation5 + $0x514] ss:$40 sps:$4 sm:$0xff]   ;;  %v16062_v18 = vld [vmem:[#allocation5 + $0x510] ss:$40 sps:$4 sm:$0xff]  }
 0x289   : > { %v19143_v17 = vpop.f32.mrb[102].mxu0  ;;  %v16065_v14 = vld [vmem:[#allocation5 + $0x564] ss:$40 sps:$4 sm:$0xff]   ;;  %v16068_v30 = vld [vmem:[#allocation5 + $0x560] ss:$40 sps:$4 sm:$0xff]  }
 0x28a   : > { %v7005_v27 = vpop.f32.mrb[103].mxu0  ;;  %v16071_v33 = vld [vmem:[#allocation5 + $0x5b4] ss:$40 sps:$4 sm:$0xff]   ;;  %v16074_v45 = vld [vmem:[#allocation5 + $0x5b0] ss:$40 sps:$4 sm:$0xff]  }
 0x28b   : > { %v19145_v57 = vpop.f32.mrb[104].mxu0  ;;  %v16077_v58 = vld [vmem:[#allocation5 + $0x604] ss:$40 sps:$4 sm:$0xff]   ;;  %v16079_v44 = vld [vmem:[#allocation5 + $0x600] ss:$40 sps:$4 sm:$0xff]  }
 0x28c   : > { %v7010_v63 = vpop.f32.mrb[105].mxu0  ;;  %v16082_v27 = vld [vmem:[#allocation5 + $0x654] ss:$40 sps:$4 sm:$0xff]  }
 0x28d   : > { %v19147_v26 = vpop.f32.mrb[106].mxu0 }
 0x28e   : > { %7487 = vmatmul.mubr.bf16.gmra.mrb[48].mxu1 %v16040_v5  ;;  %v7013_v50 = vpop.f32.mrb[107].mxu0 }
 0x28f   : > { %7494 = vmatprep.mubr.bf16.mxu1 %v16043_v36  ;;  %v19149_v40 = vpop.f32.mrb[108].mxu0 }
 0x290   : > { %v7018_v34 = vpop.f32.mrb[109].mxu0 }
 0x291   : > { %v19151_v60 = vpop.f32.mrb[110].mxu0 }
 0x292   : > { %v7021_v24 = vpop.f32.mrb[111].mxu0 }
 0x293   : > { %v19153_v10 = vpop.f32.mrb[112].mxu0 }
 0x294   : > { %v7026_v31 = vpop.f32.mrb[113].mxu0 }
 0x295   : > { %v19155_v19 = vpop.f32.mrb[114].mxu0  ;;  %v16090_v31 = vld [vmem:[#allocation5 + $0x6a0] ss:$40 sps:$4 sm:$0xff]  }
 0x296   : > { %7495 = vmatmul.mubr.bf16.gmra.mrb[52].mxu1 %v16045_v1  ;;  %v7029_v23 = vpop.f32.mrb[115].mxu0 }
 0x297   : > { %7502 = vmatprep.mubr.bf16.mxu1 %v16049_v13  ;;  %v19157_v49 = vpop.f32.mrb[116].mxu0  ;;  %v16093_v23 = vld [vmem:[#allocation5 + $0x6f4] ss:$40 sps:$4 sm:$0xff]  }
 0x298   : > { %v7034_v61 = vpop.f32.mrb[117].mxu0 }
 0x299   : > { %v19159_v29 = vpop.f32.mrb[118].mxu0 }
 0x29a   : > { %v7037_v42 = vpop.f32.mrb[119].mxu0 }
 0x29b   : > { %v19161_v0 = vpop.f32.mrb[120].mxu0 }
 0x29c   : > { %v7042_v25 = vpop.f32.mrb[121].mxu0 }
 0x29d   : > { %v19163_v48 = vpop.f32.mrb[122].mxu0 }
 0x29e   : > { %7503 = vmatmul.mubr.bf16.gmra.mrb[56].mxu1 %v16051_v6  ;;  %v7045_v51 = vpop.f32.mrb[123].mxu0  ;;  %v16085_v6 = vld [vmem:[#allocation5 + $0x650] ss:$40 sps:$4 sm:$0xff]  }
 0x29f   : > { %7510 = vmatprep.mubr.bf16.mxu1 %v16054_v35  ;;  %v16088_v35 = vld [vmem:[#allocation5 + $0x6a4] ss:$40 sps:$4 sm:$0xff]  }
 0x2a0   : > { %v19165_v3 = vpop.f32.mrb[124].mxu0 }
 0x2a1   : > { %v7050_v62 = vpop.f32.mrb[125].mxu0 }
 0x2a2   : > { %v19167_v5 = vpop.f32.mrb[126].mxu0  ;;  %v16102_v62 = vld [vmem:[#allocation5 + $0x740] ss:$40 sps:$4 sm:$0xff]  }
 0x2a3   : > { %v7053_v36 = vpop.f32.mrb[127].mxu0 }
 0x2a4   : > { %v16105_v36 = vld [vmem:[#allocation5 + $0x794] ss:$40 sps:$4 sm:$0xff]  }
 0x2a6   : > { %7511 = vmatmul.mubr.bf16.gmra.mrb[60].mxu1 %v16057_v32 }
 0x2a7   : > { %7518 = vmatprep.mubr.bf16.mxu1 %v16060_v12 }
 0x2a8   : > { %v19169_v1 = vpop.f32.mrb[128].mxu0 }
 0x2a9   : > { %v7058_v13 = vpop.f32.mrb[129].mxu0 }
 0x2aa   : > { %v19171_v63 = vpop.f32.mrb[130].mxu0 }
 0x2ab   : > { %v7061_v50 = vpop.f32.mrb[131].mxu0 }
 0x2ae   : > { %7519 = vmatmul.mubr.bf16.gmra.mrb[64].mxu1 %v16062_v18 }
 0x2af   : > { %7526 = vmatprep.mubr.bf16.mxu1 %v16065_v14 }
 0x2b2   : > { %v19173_v34 = vpop.f32.mrb[132].mxu0 }
 0x2b3   : > { %v7066_v24 = vpop.f32.mrb[133].mxu0 }
 0x2b4   : > { %v19175_v32 = vpop.f32.mrb[134].mxu0 }
 0x2b5   : > { %v7069_v12 = vpop.f32.mrb[135].mxu0 }
 0x2b6   : > { %7527 = vmatmul.mubr.bf16.gmra.mrb[68].mxu1 %v16068_v30  ;;  %v16096_v30 = vld [vmem:[#allocation5 + $0x6f0] ss:$40 sps:$4 sm:$0xff]  }
 0x2b7   : > { %7534 = vmatprep.mubr.bf16.mxu1 %v16071_v33  ;;  %v16099_v33 = vld [vmem:[#allocation5 + $0x744] ss:$40 sps:$4 sm:$0xff]  }
 0x2ba   : > { %v19177_v18 = vpop.f32.mrb[136].mxu0 }
 0x2bb   : > { %v7074_v14 = vpop.f32.mrb[137].mxu0 }
 0x2bc   : > { %v19179_v61 = vpop.f32.mrb[138].mxu0 }
 0x2bd   : > { %v7077_v42 = vpop.f32.mrb[139].mxu0 }
 0x2be   : > { %7535 = vmatmul.mubr.bf16.gmra.mrb[72].mxu1 %v16074_v45 }
 0x2bf   : > { %7542 = vmatprep.mubr.bf16.mxu1 %v16077_v58 }
 0x2c5   : > { %v19181_v25 = vpop.f32.mrb[140].mxu0 }
 0x2c6   : > { %7543 = vmatmul.mubr.bf16.gmra.mrb[76].mxu1 %v16079_v44  ;;  %v7082_v51 = vpop.f32.mrb[141].mxu0 }
 0x2c7   : > { %7550 = vmatprep.mubr.bf16.mxu1 %v16082_v27  ;;  %v19183_v45 = vpop.f32.mrb[142].mxu0 }
 0x2c8   : > { %21260 = vst [vmem:[#allocation8_spill] sm:$0xff] %v19183_v45  ;;  %v7085_v58 = vpop.f32.mrb[143].mxu0 }
 0x2ce   : > { %7551 = vmatmul.mubr.bf16.gmra.mrb[80].mxu1 %v16085_v6  ;;  %v4950_v6 = vld [vmem:[#allocation5 + $0x7e0] sm:$0xff] }
 0x2cf   : > { %7558 = vmatprep.mubr.bf16.mxu1 %v16088_v35  ;;  %v16107_v35 = vld [vmem:[#allocation5 + $0x790] ss:$40 sps:$4 sm:$0xff]   ;;  %v14189_v24 = vcombine.high %v4950_v6, %v4950_v6  ;;  %v14188_v42 = vcombine.low %v4950_v6, %v4950_v6 }
 0x2d0   : > { %v19185_v44 = vpop.f32.mrb[144].mxu0  ;;  %v16130_v6 = vld [vmem:[%s21252_s2 + $0x208] sm:$0xff]  }
 0x2d1   : > { %21261 = vst [vmem:[#allocation9_spill] sm:$0xff] %v19185_v44  ;;  %v7090_v27 = vpop.f32.mrb[145].mxu0 }
 0x2d2   : > { %v19187_v13 = vpop.f32.mrb[146].mxu0  ;;  %v16117_v27 = vld [vmem:[#allocation5 + $0x18] ss:$40 sps:$4 sm:$0xff]  }
 0x2d3   : > { %21262 = vst [vmem:[#allocation10_spill] sm:$0xff] %v19187_v13  ;;  %v7093_v50 = vpop.f32.mrb[147].mxu0 }
 0x2d4   : > { %v16123_v50 = vld [vmem:[#allocation5 + $0x6c] ss:$40 sps:$4 sm:$0xff]  }
 0x2d6   : > { %7559 = vmatmul.mubr.bf16.gmra.mrb[84].mxu1 %v16090_v31 }
 0x2d7   : > { %7566 = vmatprep.mubr.bf16.mxu1 %v16093_v23 }
 0x2db   : > { %v19189_v12 = vpop.f32.mrb[148].mxu0 }
 0x2dc   : > { %21263 = vst [vmem:[#allocation11_spill] sm:$0xff] %v19189_v12  ;;  %v7098_v31 = vpop.f32.mrb[149].mxu0 }
 0x2dd   : > { %v19191_v23 = vpop.f32.mrb[150].mxu0 }
 0x2de   : > { %7567 = vmatmul.mubr.bf16.gmra.mrb[88].mxu1 %v16096_v30  ;;  %21264 = vst [vmem:[#allocation12_spill] sm:$0xff] %v19191_v23  ;;  %v7101_v14 = vpop.f32.mrb[151].mxu0  ;;  %v16119_v30 = vld [vmem:[#allocation5 + $0x1c] ss:$40 sps:$4 sm:$0xff]  }
 0x2df   : > { %7574 = vmatprep.mubr.bf16.mxu1 %v16099_v33 }
 0x2e4   : > { %v19193_v33 = vpop.f32.mrb[152].mxu0 }
 0x2e5   : > { %21265 = vst [vmem:[#allocation13_spill] sm:$0xff] %v19193_v33  ;;  %v7106_v51 = vpop.f32.mrb[153].mxu0 }
 0x2e6   : > { %7575 = vmatmul.mubr.bf16.gmra.mrb[92].mxu1 %v16102_v62  ;;  %v19195_v58 = vpop.f32.mrb[154].mxu0  ;;  %v16128_v51 = vld [vmem:[#allocation5 + $0xbc] ss:$40 sps:$4 sm:$0xff]  }
 0x2e7   : > { %7582 = vmatprep.mubr.bf16.mxu1 %v16105_v36  ;;  %21266 = vst [vmem:[#allocation14_spill] sm:$0xff] %v19195_v58  ;;  %v7109_v62 = vpop.f32.mrb[155].mxu0  ;;  %v16120_v36 = vld [vmem:[%s21252_s2 + $0x200] sm:$0xff]  }
 0x2e8   : > { %v16147_v62 = vld [vmem:[%s21252_s2 + $0x218] sm:$0xff]  }
 0x2ee   : > { %7583 = vmatmul.mubr.bf16.gmra.mrb[96].mxu1 %v16107_v35  ;;  %v19200_v35 = vpop.f32.mrb[156].mxu0 }
 0x2ef   : > { %7590 = vmatprep.mubr.bf16.mxu1 %v14189_v24  ;;  %21267 = vst [vmem:[#allocation15_spill] sm:$0xff] %v19200_v35  ;;  %v7114_v24 = vpop.f32.mrb[157].mxu0  ;;  %v16284_v35 = vld [vmem:[#allocation5 + $0x164] ss:$40 sps:$4 sm:$0xff]  }
 0x2f0   : > { %v7115_v31 = vpop.f32.mrb[158].mxu0  ;;  %v16175_v24 = vld [vmem:[%s21252_s2 + $0x230] sm:$0xff]  }
 0x2f1   : > { %v7116_v14 = vpop.f32.mrb[159].mxu0  ;;  %v16136_v31 = vld [vmem:[#allocation5 + $0x108] ss:$40 sps:$4 sm:$0xff]  }
 0x2f2   : > { %v16139_v14 = vld [vmem:[#allocation5 + $0x15c] ss:$40 sps:$4 sm:$0xff]  }
 0x2f6   : > { %7591 = vmatmul.mubr.bf16.gmra.mrb[100].mxu1 %v14188_v42  ;;  %v16141_v42 = vld [vmem:[%s21252_s2 + $0x210] sm:$0xff]  }
 0x2f7   : > { %7630 = vmatprep.mubr.bf16.mxu1 %v16119_v30  ;;  %v16125_v30 = vld [vmem:[#allocation5 + $0x68] ss:$40 sps:$4 sm:$0xff]  }
 0x2fe   : > { %7631 = vmatmul.mubr.bf16.vlgmr.msra.gmra.mrb[0].mxu1 %v16117_v27  ;;  %v16131_v27 = vld [vmem:[#allocation5 + $0xb8] ss:$40 sps:$4 sm:$0xff]  }
 0x2ff   : > { %7839 = vmatpush1.bf16.msra.mxu1 %v16120_v36  ;;  %7638 = vmatprep.mubr.bf16.mxu1 %v16123_v50  ;;  %v16158_v36 = vld [vmem:[%s21252_s2 + $0x220] sm:$0xff]  }
 0x300   : > { %7840 = vmatprep.subr.bf16.mxu1 %v17156_v4  ;;  %v16134_v50 = vld [vmem:[#allocation5 + $0x10c] ss:$40 sps:$4 sm:$0xff]  }
 0x303   : > { %7841 = vmatpush1.bf16.msra.mxu1 %v16130_v6  ;;  %v16169_v6 = vld [vmem:[%s21252_s2 + $0x228] sm:$0xff]  }
 0x304   : > { %7842 = vmatprep.subr.bf16.mxu1 %v17156_v4 }
 0x306   : > { %7639 = vmatmul.mubr.bf16.gmra.mrb[4].mxu1 %v16125_v30  ;;  %v16193_v30 = vld [vmem:[%s21252_s2 + $0x240] sm:$0xff]  }
 0x307   : > { %7646 = vmatprep.mubr.bf16.mxu1 %v16128_v51  ;;  %7843 = vmatpush1.bf16.msra.mxu1 %v16141_v42  ;;  %v16186_v42 = vld [vmem:[%s21252_s2 + $0x238] sm:$0xff]  }
 0x308   : > { %7844 = vmatprep.subr.bf16.mxu1 %v17156_v4  ;;  %v16142_v51 = vld [vmem:[#allocation5 + $0x158] ss:$40 sps:$4 sm:$0xff]  }
 0x30b   : > { %7845 = vmatpush1.bf16.msra.mxu1 %v16147_v62  ;;  %v16145_v62 = vld [vmem:[#allocation5 + $0x1ac] ss:$40 sps:$4 sm:$0xff]  }
 0x30c   : > { %7846 = vmatprep.subr.bf16.mxu1 %v17156_v4 }
 0x30e   : > { %7647 = vmatmul.mubr.bf16.gmra.mrb[8].mxu1 %v16131_v27  ;;  %v16214_v27 = vld [vmem:[%s21252_s2 + $0x250] sm:$0xff]  }
 0x30f   : > { %7654 = vmatprep.mubr.bf16.mxu1 %v16134_v50  ;;  %7847 = vmatpush1.bf16.msra.mxu1 %v16158_v36  ;;  %v16203_v36 = vld [vmem:[%s21252_s2 + $0x248] sm:$0xff]  }
 0x310   : > { %7848 = vmatprep.subr.bf16.mxu1 %v17156_v4  ;;  %v16148_v50 = vld [vmem:[#allocation5 + $0x1a8] ss:$40 sps:$4 sm:$0xff]  }
 0x313   : > { %7849 = vmatpush1.bf16.msra.mxu1 %v16169_v6  ;;  %v16151_v6 = vld [vmem:[#allocation5 + $0x1fc] ss:$40 sps:$4 sm:$0xff]  }
 0x314   : > { %7850 = vmatprep.subr.bf16.mxu1 %v17156_v4 }
 0x316   : > { %7655 = vmatmul.mubr.bf16.gmra.mrb[12].mxu1 %v16136_v31  ;;  %v16231_v31 = vld [vmem:[%s21252_s2 + $0x260] sm:$0xff]  }
 0x317   : > { %7662 = vmatprep.mubr.bf16.mxu1 %v16139_v14  ;;  %7851 = vmatpush1.bf16.msra.mxu1 %v16175_v24  ;;  %v16220_v24 = vld [vmem:[%s21252_s2 + $0x258] sm:$0xff]  }
 0x318   : > { %7852 = vmatprep.subr.bf16.mxu1 %v17156_v4  ;;  %v16153_v14 = vld [vmem:[#allocation5 + $0x1f8] ss:$40 sps:$4 sm:$0xff]  }
 0x31b   : > { %7853 = vmatpush1.bf16.msra.mxu1 %v16186_v42  ;;  %v16156_v42 = vld [vmem:[#allocation5 + $0x24c] ss:$40 sps:$4 sm:$0xff]  }
 0x31c   : > { %7854 = vmatprep.subr.bf16.mxu1 %v17156_v4 }
 0x31e   : > { %7663 = vmatmul.mubr.bf16.gmra.mrb[16].mxu1 %v16142_v51  ;;  %v16248_v51 = vld [vmem:[%s21252_s2 + $0x270] sm:$0xff]  }
 0x31f   : > { %7670 = vmatprep.mubr.bf16.mxu1 %v16145_v62  ;;  %7855 = vmatpush1.bf16.msra.mxu1 %v16193_v30  ;;  %v16242_v30 = vld [vmem:[%s21252_s2 + $0x268] sm:$0xff]  }
 0x320   : > { %7856 = vmatprep.subr.bf16.mxu1 %v17156_v4  ;;  %v16159_v62 = vld [vmem:[#allocation5 + $0x248] ss:$40 sps:$4 sm:$0xff]  }
 0x323   : > { %7857 = vmatpush1.bf16.msra.mxu1 %v16203_v36  ;;  %v16162_v36 = vld [vmem:[#allocation5 + $0x29c] ss:$40 sps:$4 sm:$0xff]  }
 0x324   : > { %7858 = vmatprep.subr.bf16.mxu1 %v17156_v4 }
 0x326   : > { %7671 = vmatmul.mubr.bf16.gmra.mrb[20].mxu1 %v16148_v50  ;;  %v16167_v50 = vld [vmem:[#allocation5 + $0x2ec] ss:$40 sps:$4 sm:$0xff]  }
 0x327   : > { %7678 = vmatprep.mubr.bf16.mxu1 %v16151_v6  ;;  %7859 = vmatpush1.bf16.msra.mxu1 %v16214_v27  ;;  %v16164_v27 = vld [vmem:[#allocation5 + $0x298] ss:$40 sps:$4 sm:$0xff]  }
 0x328   : > { %7860 = vmatprep.subr.bf16.mxu1 %v17156_v4  ;;  %v16257_v6 = vld [vmem:[%s21252_s2 + $0x278] sm:$0xff]  }
 0x32b   : > { %7861 = vmatpush1.bf16.msra.mxu1 %v16220_v24  ;;  %v16170_v24 = vld [vmem:[#allocation5 + $0x2e8] ss:$40 sps:$4 sm:$0xff]  }
 0x32c   : > { %7862 = vmatprep.subr.bf16.mxu1 %v17156_v4 }
 0x32e   : > { %7679 = vmatmul.mubr.bf16.gmra.mrb[24].mxu1 %v16153_v14  ;;  %v16176_v14 = vld [vmem:[#allocation5 + $0x338] ss:$40 sps:$4 sm:$0xff]  }
 0x32f   : > { %7686 = vmatprep.mubr.bf16.mxu1 %v16156_v42  ;;  %7863 = vmatpush1.bf16.msra.mxu1 %v16231_v31  ;;  %v16173_v31 = vld [vmem:[#allocation5 + $0x33c] ss:$40 sps:$4 sm:$0xff]   ;;  %v16179_v42 = vld [vmem:[#allocation5 + $0x38c] ss:$40 sps:$4 sm:$0xff]  }
 0x330   : > { %7864 = vmatprep.subr.bf16.mxu1 %v17156_v4 }
 0x333   : > { %7865 = vmatpush1.bf16.msra.mxu1 %v16242_v30  ;;  %v16181_v30 = vld [vmem:[#allocation5 + $0x388] ss:$40 sps:$4 sm:$0xff]  }
 0x334   : > { %7866 = vmatprep.subr.bf16.mxu1 %v17156_v4 }
 0x336   : > { %7687 = vmatmul.mubr.bf16.gmra.mrb[28].mxu1 %v16159_v62  ;;  %v16190_v62 = vld [vmem:[#allocation5 + $0x42c] ss:$40 sps:$4 sm:$0xff]  }
 0x337   : > { %7694 = vmatprep.mubr.bf16.mxu1 %v16162_v36  ;;  %7867 = vmatpush1.bf16.msra.mxu1 %v16248_v51  ;;  %v16184_v51 = vld [vmem:[#allocation5 + $0x3dc] ss:$40 sps:$4 sm:$0xff]   ;;  %v16192_v36 = vld [vmem:[#allocation5 + $0x428] ss:$40 sps:$4 sm:$0xff]  }
 0x338   : > { %7868 = vmatprep.subr.bf16.mxu1 %v17156_v4  ;;  %v16187_v4 = vld [vmem:[#allocation5 + $0x3d8] ss:$40 sps:$4 sm:$0xff]  }
 0x33b   : > { %7869 = vmatpush1.bf16.msra.mxu1 %v16257_v6  ;;  %v16201_v6 = vld [vmem:[#allocation5 + $0x4cc] ss:$40 sps:$4 sm:$0xff]  }
 0x33e   : > { %7695 = vmatmul.mubr.bf16.gmra.mrb[32].mxu1 %v16164_v27  ;;  %v16196_v27 = vld [vmem:[#allocation5 + $0x47c] ss:$40 sps:$4 sm:$0xff]  }
 0x33f   : > { %7702 = vmatprep.mubr.bf16.mxu1 %v16167_v50  ;;  %v16198_v50 = vld [vmem:[#allocation5 + $0x478] ss:$40 sps:$4 sm:$0xff]  }
 0x346   : > { %7703 = vmatmul.mubr.bf16.gmra.mrb[36].mxu1 %v16170_v24  ;;  %v16204_v24 = vld [vmem:[#allocation5 + $0x4c8] ss:$40 sps:$4 sm:$0xff]  }
 0x347   : > { %7710 = vmatprep.mubr.bf16.mxu1 %v16173_v31  ;;  %v16207_v31 = vld [vmem:[#allocation5 + $0x51c] ss:$40 sps:$4 sm:$0xff]  }
 0x34e   : > { %7711 = vmatmul.mubr.bf16.gmra.mrb[40].mxu1 %v16176_v14  ;;  %v16209_v14 = vld [vmem:[#allocation5 + $0x518] ss:$40 sps:$4 sm:$0xff]  }
 0x34f   : > { %7718 = vmatprep.mubr.bf16.mxu1 %v16179_v42  ;;  %v16212_v42 = vld [vmem:[#allocation5 + $0x56c] ss:$40 sps:$4 sm:$0xff]  }
 0x356   : > { %7719 = vmatmul.mubr.bf16.gmra.mrb[44].mxu1 %v16181_v30  ;;  %v16215_v30 = vld [vmem:[#allocation5 + $0x568] ss:$40 sps:$4 sm:$0xff]  }
 0x357   : > { %7726 = vmatprep.mubr.bf16.mxu1 %v16184_v51  ;;  %v16218_v51 = vld [vmem:[#allocation5 + $0x5bc] ss:$40 sps:$4 sm:$0xff]  }
 0x35e   : > { %7727 = vmatmul.mubr.bf16.gmra.mrb[48].mxu1 %v16187_v4  ;;  %v16221_v4 = vld [vmem:[#allocation5 + $0x5b8] ss:$40 sps:$4 sm:$0xff]  }
 0x35f   : > { %7734 = vmatprep.mubr.bf16.mxu1 %v16190_v62  ;;  %v16224_v62 = vld [vmem:[#allocation5 + $0x60c] ss:$40 sps:$4 sm:$0xff]  }
 0x366   : > { %7735 = vmatmul.mubr.bf16.gmra.mrb[52].mxu1 %v16192_v36  ;;  %v16226_v36 = vld [vmem:[#allocation5 + $0x608] ss:$40 sps:$4 sm:$0xff]  }
 0x367   : > { %7742 = vmatprep.mubr.bf16.mxu1 %v16196_v27  ;;  %v16229_v27 = vld [vmem:[#allocation5 + $0x65c] ss:$40 sps:$4 sm:$0xff]  }
 0x36e   : > { %7743 = vmatmul.mubr.bf16.gmra.mrb[56].mxu1 %v16198_v50  ;;  %v16232_v50 = vld [vmem:[#allocation5 + $0x658] ss:$40 sps:$4 sm:$0xff]  }
 0x36f   : > { %7750 = vmatprep.mubr.bf16.mxu1 %v16201_v6  ;;  %v16235_v6 = vld [vmem:[#allocation5 + $0x6ac] ss:$40 sps:$4 sm:$0xff]  }
 0x376   : > { %7751 = vmatmul.mubr.bf16.gmra.mrb[60].mxu1 %v16204_v24  ;;  %v16237_v24 = vld [vmem:[#allocation5 + $0x6a8] ss:$40 sps:$4 sm:$0xff]  }
 0x377   : > { %7758 = vmatprep.mubr.bf16.mxu1 %v16207_v31  ;;  %v16240_v31 = vld [vmem:[#allocation5 + $0x6fc] ss:$40 sps:$4 sm:$0xff]  }
 0x37e   : > { %7759 = vmatmul.mubr.bf16.gmra.mrb[64].mxu1 %v16209_v14  ;;  %v16243_v14 = vld [vmem:[#allocation5 + $0x6f8] ss:$40 sps:$4 sm:$0xff]  }
 0x37f   : > { %7766 = vmatprep.mubr.bf16.mxu1 %v16212_v42  ;;  %v16246_v42 = vld [vmem:[#allocation5 + $0x74c] ss:$40 sps:$4 sm:$0xff]  }
 0x386   : > { %7767 = vmatmul.mubr.bf16.gmra.mrb[68].mxu1 %v16215_v30  ;;  %v16249_v30 = vld [vmem:[#allocation5 + $0x748] ss:$40 sps:$4 sm:$0xff]  }
 0x387   : > { %7774 = vmatprep.mubr.bf16.mxu1 %v16218_v51  ;;  %v16252_v51 = vld [vmem:[#allocation5 + $0x79c] ss:$40 sps:$4 sm:$0xff]  }
 0x38e   : > { %7775 = vmatmul.mubr.bf16.gmra.mrb[72].mxu1 %v16221_v4  ;;  %v4951_v4 = vld [vmem:[#allocation5 + $0x7e8] sm:$0xff] }
 0x38f   : > { %7782 = vmatprep.mubr.bf16.mxu1 %v16224_v62  ;;  %v16254_v62 = vld [vmem:[#allocation5 + $0x798] ss:$40 sps:$4 sm:$0xff]  }
 0x396   : > { %7783 = vmatmul.mubr.bf16.gmra.mrb[76].mxu1 %v16226_v36  ;;  %v14191_v36 = vcombine.high %v4951_v4, %v4951_v4 }
 0x397   : > { %7790 = vmatprep.mubr.bf16.mxu1 %v16229_v27  ;;  %v14190_v27 = vcombine.low %v4951_v4, %v4951_v4  ;;  %v16286_v4 = vld [vmem:[#allocation5 + $0x160] ss:$40 sps:$4 sm:$0xff]  }
 0x39e   : > { %7791 = vmatmul.mubr.bf16.gmra.mrb[80].mxu1 %v16232_v50  ;;  %v16266_v50 = vld [vmem:[#allocation5 + $0x24] ss:$40 sps:$4 sm:$0xff]  }
 0x39f   : > { %7798 = vmatprep.mubr.bf16.mxu1 %v16235_v6  ;;  %v16264_v6 = vld [vmem:[#allocation5 + $0x20] ss:$40 sps:$4 sm:$0xff]  }
 0x3a6   : > { %7799 = vmatmul.mubr.bf16.gmra.mrb[84].mxu1 %v16237_v24  ;;  %v16269_v24 = vld [vmem:[#allocation5 + $0x74] ss:$40 sps:$4 sm:$0xff]  }
 0x3a7   : > { %7806 = vmatprep.mubr.bf16.mxu1 %v16240_v31  ;;  %v16271_v31 = vld [vmem:[#allocation5 + $0x70] ss:$40 sps:$4 sm:$0xff]  }
 0x3ae   : > { %7807 = vmatmul.mubr.bf16.gmra.mrb[88].mxu1 %v16243_v14  ;;  %v16274_v14 = vld [vmem:[#allocation5 + $0xc4] ss:$40 sps:$4 sm:$0xff]  }
 0x3af   : > { %7814 = vmatprep.mubr.bf16.mxu1 %v16246_v42  ;;  %v16276_v42 = vld [vmem:[#allocation5 + $0xc0] ss:$40 sps:$4 sm:$0xff]  }
 0x3b6   : > { %7815 = vmatmul.mubr.bf16.gmra.mrb[92].mxu1 %v16249_v30  ;;  %v16279_v30 = vld [vmem:[#allocation5 + $0x114] ss:$40 sps:$4 sm:$0xff]  }
 0x3b7   : > { %7822 = vmatprep.mubr.bf16.mxu1 %v16252_v51  ;;  %v16281_v51 = vld [vmem:[#allocation5 + $0x110] ss:$40 sps:$4 sm:$0xff]  }
 0x3be   : > { %7823 = vmatmul.mubr.bf16.gmra.mrb[96].mxu1 %v16254_v62  ;;  %v16289_v62 = vld [vmem:[#allocation5 + $0x1b4] ss:$40 sps:$4 sm:$0xff]  }
 0x3bf   : > { %7830 = vmatprep.mubr.bf16.mxu1 %v14191_v36  ;;  %v16291_v36 = vld [vmem:[#allocation5 + $0x1b0] ss:$40 sps:$4 sm:$0xff]  }
 0x3c6   : > { %7831 = vmatmul.mubr.bf16.gmra.mrb[100].mxu1 %v14190_v27  ;;  %v16294_v27 = vld [vmem:[#allocation5 + $0x204] ss:$40 sps:$4 sm:$0xff]  }
 0x3c7   : > { %7870 = vmatprep.mubr.bf16.mxu1 %v16266_v50  ;;  %v16296_v50 = vld [vmem:[#allocation5 + $0x200] ss:$40 sps:$4 sm:$0xff]  }
 0x3ce   : > { %7871 = vmatmul.mubr.bf16.vlgmr.msra.gmra.mrb[0].mxu1 %v16264_v6  ;;  %v16299_v6 = vld [vmem:[#allocation5 + $0x254] ss:$40 sps:$4 sm:$0xff]  }
 0x3cf   : > { %7878 = vmatprep.mubr.bf16.mxu1 %v16269_v24  ;;  %v16381_v24 = vld [vmem:[%s21253_s3 + $0x40] sm:$0xff]  }
 0x3d0   : > { %14894 = vmatprep.subr.bf16.mxu0 %v16381_v24  ;;  %v16324_v24 = vld [vmem:[#allocation5 + $0x3e4] ss:$40 sps:$4 sm:$0xff]  }
 0x3d6   : > { %7879 = vmatmul.mubr.bf16.gmra.mrb[4].mxu1 %v16271_v31  ;;  %v16301_v31 = vld [vmem:[#allocation5 + $0x250] ss:$40 sps:$4 sm:$0xff]  }
 0x3d7   : > { %7886 = vmatprep.mubr.bf16.mxu1 %v16274_v14  ;;  %v16304_v14 = vld [vmem:[#allocation5 + $0x2a4] ss:$40 sps:$4 sm:$0xff]  }
 0x3de   : > { %7887 = vmatmul.mubr.bf16.gmra.mrb[8].mxu1 %v16276_v42  ;;  %v16306_v42 = vld [vmem:[#allocation5 + $0x2a0] ss:$40 sps:$4 sm:$0xff]  }
 0x3df   : > { %7894 = vmatprep.mubr.bf16.mxu1 %v16279_v30  ;;  %v16309_v30 = vld [vmem:[#allocation5 + $0x2f4] ss:$40 sps:$4 sm:$0xff]  }
 0x3e6   : > { %7895 = vmatmul.mubr.bf16.gmra.mrb[12].mxu1 %v16281_v51  ;;  %v16311_v51 = vld [vmem:[#allocation5 + $0x2f0] ss:$40 sps:$4 sm:$0xff]  }
 0x3e7   : > { %7902 = vmatprep.mubr.bf16.mxu1 %v16284_v35  ;;  %v16382_v35 = vld [vmem:[%s21253_s3] sm:$0xff]  }
 0x3e8   : > { %14895 = vmatpush3.bf16.msra.mxu0 %v16382_v35  ;;  %v16326_v35 = vld [vmem:[#allocation5 + $0x3e0] ss:$40 sps:$4 sm:$0xff]  }
 0x3ee   : > { %7903 = vmatmul.mubr.bf16.gmra.mrb[16].mxu1 %v16286_v4  ;;  %v16314_v4 = vld [vmem:[#allocation5 + $0x344] ss:$40 sps:$4 sm:$0xff]  }
 0x3ef   : > { %7910 = vmatprep.mubr.bf16.mxu1 %v16289_v62  ;;  %v16393_v62 = vld [vmem:[%s21253_s3 + $0x48] sm:$0xff]  }
 0x3f0   : > { %14896 = vmatprep.subr.bf16.mxu0 %v16393_v62  ;;  %v16344_v62 = vld [vmem:[#allocation5 + $0x524] ss:$40 sps:$4 sm:$0xff]  }
 0x3f6   : > { %7911 = vmatmul.mubr.bf16.gmra.mrb[20].mxu1 %v16291_v36  ;;  %v16394_v36 = vld [vmem:[%s21253_s3 + $0x8] sm:$0xff]  }
 0x3f7   : > { %7918 = vmatprep.mubr.bf16.mxu1 %v16294_v27  ;;  %14897 = vmatpush3.bf16.msra.mxu0 %v16394_v36  ;;  %v16316_v27 = vld [vmem:[#allocation5 + $0x340] ss:$40 sps:$4 sm:$0xff]  }
 0x3f8   : > { %v16346_v36 = vld [vmem:[#allocation5 + $0x520] ss:$40 sps:$4 sm:$0xff]  }
 0x3fe   : > { %7919 = vmatmul.mubr.bf16.gmra.mrb[24].mxu1 %v16296_v50  ;;  %v16319_v50 = vld [vmem:[#allocation5 + $0x394] ss:$40 sps:$4 sm:$0xff]  }
 0x3ff   : > { %7926 = vmatprep.mubr.bf16.mxu1 %v16299_v6  ;;  %v16321_v6 = vld [vmem:[#allocation5 + $0x390] ss:$40 sps:$4 sm:$0xff]  }
 0x406   : > { %7927 = vmatmul.mubr.bf16.gmra.mrb[28].mxu1 %v16301_v31  ;;  %v16329_v31 = vld [vmem:[#allocation5 + $0x434] ss:$40 sps:$4 sm:$0xff]  }
 0x407   : > { %7934 = vmatprep.mubr.bf16.mxu1 %v16304_v14  ;;  %v16331_v14 = vld [vmem:[#allocation5 + $0x430] ss:$40 sps:$4 sm:$0xff]  }
 0x40e   : > { %7935 = vmatmul.mubr.bf16.gmra.mrb[32].mxu1 %v16306_v42  ;;  %v16334_v42 = vld [vmem:[#allocation5 + $0x484] ss:$40 sps:$4 sm:$0xff]  }
 0x40f   : > { %7942 = vmatprep.mubr.bf16.mxu1 %v16309_v30  ;;  %v16336_v30 = vld [vmem:[#allocation5 + $0x480] ss:$40 sps:$4 sm:$0xff]  }
 0x416   : > { %7943 = vmatmul.mubr.bf16.gmra.mrb[36].mxu1 %v16311_v51  ;;  %v16339_v51 = vld [vmem:[#allocation5 + $0x4d4] ss:$40 sps:$4 sm:$0xff]  }
 0x417   : > { %7950 = vmatprep.mubr.bf16.mxu1 %v16314_v4  ;;  %v16341_v4 = vld [vmem:[#allocation5 + $0x4d0] ss:$40 sps:$4 sm:$0xff]  }
 0x41e   : > { %7951 = vmatmul.mubr.bf16.gmra.mrb[40].mxu1 %v16316_v27  ;;  %v16349_v27 = vld [vmem:[#allocation5 + $0x574] ss:$40 sps:$4 sm:$0xff]  }
 0x41f   : > { %7958 = vmatprep.mubr.bf16.mxu1 %v16319_v50  ;;  %v16351_v50 = vld [vmem:[#allocation5 + $0x570] ss:$40 sps:$4 sm:$0xff]  }
 0x426   : > { %7959 = vmatmul.mubr.bf16.gmra.mrb[44].mxu1 %v16321_v6  ;;  %v16354_v6 = vld [vmem:[#allocation5 + $0x5c4] ss:$40 sps:$4 sm:$0xff]  }
 0x427   : > { %7966 = vmatprep.mubr.bf16.mxu1 %v16324_v24  ;;  %v16395_v24 = vld [vmem:[%s21253_s3 + $0x50] sm:$0xff]  }
 0x428   : > { %14898 = vmatprep.subr.bf16.mxu0 %v16395_v24  ;;  %v16379_v24 = vld [vmem:[#allocation5 + $0x754] ss:$40 sps:$4 sm:$0xff]  }
 0x42e   : > { %7967 = vmatmul.mubr.bf16.gmra.mrb[48].mxu1 %v16326_v35  ;;  %v16396_v35 = vld [vmem:[%s21253_s3 + $0x10] sm:$0xff]  }
 0x42f   : > { %7974 = vmatprep.mubr.bf16.mxu1 %v16329_v31  ;;  %14899 = vmatpush3.bf16.msra.mxu0 %v16396_v35  ;;  %v16356_v31 = vld [vmem:[#allocation5 + $0x5c0] ss:$40 sps:$4 sm:$0xff]   ;;  %v16383_v35 = vld [vmem:[#allocation5 + $0x750] ss:$40 sps:$4 sm:$0xff]  }
 0x436   : > { %7975 = vmatmul.mubr.bf16.gmra.mrb[52].mxu1 %v16331_v14  ;;  %v16359_v14 = vld [vmem:[#allocation5 + $0x614] ss:$40 sps:$4 sm:$0xff]  }
 0x437   : > { %7982 = vmatprep.mubr.bf16.mxu1 %v16334_v42  ;;  %v16361_v42 = vld [vmem:[#allocation5 + $0x610] ss:$40 sps:$4 sm:$0xff]  }
 0x43e   : > { %7983 = vmatmul.mubr.bf16.gmra.mrb[56].mxu1 %v16336_v30  ;;  %v16364_v30 = vld [vmem:[#allocation5 + $0x664] ss:$40 sps:$4 sm:$0xff]  }
 0x43f   : > { %7990 = vmatprep.mubr.bf16.mxu1 %v16339_v51  ;;  %v16366_v51 = vld [vmem:[#allocation5 + $0x660] ss:$40 sps:$4 sm:$0xff]  }
 0x446   : > { %7991 = vmatmul.mubr.bf16.gmra.mrb[60].mxu1 %v16341_v4  ;;  %v16369_v4 = vld [vmem:[#allocation5 + $0x6b4] ss:$40 sps:$4 sm:$0xff]  }
 0x447   : > { %7998 = vmatprep.mubr.bf16.mxu1 %v16344_v62  ;;  %v16397_v62 = vld [vmem:[%s21253_s3 + $0x58] sm:$0xff]  }
 0x448   : > { %14900 = vmatprep.subr.bf16.mxu0 %v16397_v62  ;;  %v16401_v62 = vld [vmem:[%s21253_s3 + $0x68] sm:$0xff]  }
 0x44e   : > { %7999 = vmatmul.mubr.bf16.gmra.mrb[64].mxu1 %v16346_v36  ;;  %v16398_v36 = vld [vmem:[%s21253_s3 + $0x18] sm:$0xff]  }
 0x44f   : > { %8006 = vmatprep.mubr.bf16.mxu1 %v16349_v27  ;;  %14901 = vmatpush3.bf16.msra.mxu0 %v16398_v36  ;;  %v16371_v27 = vld [vmem:[#allocation5 + $0x6b0] ss:$40 sps:$4 sm:$0xff]  }
 0x450   : > { %v16402_v36 = vld [vmem:[%s21253_s3 + $0x28] sm:$0xff]  }
 0x456   : > { %8007 = vmatmul.mubr.bf16.gmra.mrb[68].mxu1 %v16351_v50  ;;  %v16374_v50 = vld [vmem:[#allocation5 + $0x704] ss:$40 sps:$4 sm:$0xff]  }
 0x457   : > { %8014 = vmatprep.mubr.bf16.mxu1 %v16354_v6  ;;  %v16376_v6 = vld [vmem:[#allocation5 + $0x700] ss:$40 sps:$4 sm:$0xff]  }
 0x45e   : > { %8015 = vmatmul.mubr.bf16.gmra.mrb[72].mxu1 %v16356_v31  ;;  %v16386_v31 = vld [vmem:[#allocation5 + $0x7a4] ss:$40 sps:$4 sm:$0xff]  }
 0x45f   : > { %8022 = vmatprep.mubr.bf16.mxu1 %v16359_v14  ;;  %v16399_v14 = vld [vmem:[%s21253_s3 + $0x60] sm:$0xff]  }
 0x460   : > { %14902 = vmatprep.subr.bf16.mxu0 %v16399_v14 }
 0x466   : > { %8023 = vmatmul.mubr.bf16.gmra.mrb[76].mxu1 %v16361_v42  ;;  %v16400_v42 = vld [vmem:[%s21253_s3 + $0x20] sm:$0xff]  }
 0x467   : > { %8030 = vmatprep.mubr.bf16.mxu1 %v16364_v30  ;;  %v4952_v30 = vld [vmem:[#allocation5 + $0x7f0] sm:$0xff]  ;;  %14903 = vmatpush3.bf16.msra.mxu0 %v16400_v42 }
 0x468   : > { %14904 = vmatprep.subr.bf16.mxu0 %v16401_v62 }
 0x46b   : > { %14905 = vmatpush3.bf16.msra.mxu0 %v16402_v36 }
 0x46e   : > { %8031 = vmatmul.mubr.bf16.gmra.mrb[80].mxu1 %v16366_v51  ;;  %v16388_v51 = vld [vmem:[#allocation5 + $0x7a0] ss:$40 sps:$4 sm:$0xff]  }
 0x46f   : > { %8038 = vmatprep.mubr.bf16.mxu1 %v16369_v4  ;;  %v14193_v4 = vcombine.high %v4952_v30, %v4952_v30 }
 0x476   : > { %8039 = vmatmul.mubr.bf16.gmra.mrb[84].mxu1 %v16371_v27  ;;  %v14192_v27 = vcombine.low %v4952_v30, %v4952_v30  ;;  %v19316_v30 = vld [vmem:[%s21256_s6 + $0x1] ss:$0 sm:$0xff] }
 0x477   : > { %8046 = vmatprep.mubr.bf16.mxu1 %v16374_v50  ;;  %v19301_v50 = vld [vmem:[%s21255_s5 + $0x1] ss:$0 sm:$0xff] }
 0x47e   : > { %8047 = vmatmul.mubr.bf16.gmra.mrb[88].mxu1 %v16376_v6 }
 0x47f   : > { %8054 = vmatprep.mubr.bf16.mxu1 %v16379_v24  ;;  %v16403_v24 = vld [vmem:[%s21253_s3 + $0x70] sm:$0xff]  }
 0x480   : > { %14906 = vmatprep.subr.bf16.mxu0 %v16403_v24 }
 0x486   : > { %8055 = vmatmul.mubr.bf16.gmra.mrb[92].mxu1 %v16383_v35  ;;  %v16404_v35 = vld [vmem:[%s21253_s3 + $0x30] sm:$0xff]  }
 0x487   : > { %8062 = vmatprep.mubr.bf16.mxu1 %v16386_v31  ;;  %v16405_v31 = vld [vmem:[%s21253_s3 + $0x78] sm:$0xff]   ;;  %14907 = vmatpush3.bf16.msra.mxu0 %v16404_v35 }
 0x488   : > { %14908 = vmatprep.subr.bf16.mxu0 %v16405_v31 }
 0x48e   : > { %8063 = vmatmul.mubr.bf16.gmra.mrb[96].mxu1 %v16388_v51 }
 0x48f   : > { %8070 = vmatprep.mubr.bf16.mxu1 %v14193_v4 }
 0x496   : > { %8071 = vmatmul.mubr.bf16.gmra.mrb[100].mxu1 %v14192_v27  ;;  %v16406_v27 = vld [vmem:[%s21253_s3 + $0x38] sm:$0xff]  }
 0x497   : > { %14909 = vmatpush3.bf16.msra.mxu0 %v16406_v27 }
 0x4a1   : > { %v7872_v6 = vpop.f32.mrb[0].mxu1 }
 0x4a2   : > { %v15244_v14 = vadd.f32 %v7872_v6, %v18659_v8  ;;  %v7874_v42 = vpop.f32.mrb[1].mxu1 }
 0x4a3   : > { %v7875_v51 = vpop.f32.mrb[2].mxu1 }
 0x4a4   : > { %v8084_v4 = vmul.f32 %v15244_v14, %v19301_v50  ;;  %v15245_v62 = vadd.f32 %v7875_v51, %v18664_v39  ;;  %v7877_v36 = vpop.f32.mrb[3].mxu1 }
 0x4a6   : > { %v8139_v8 = vadd.f32 %v19316_v30, %v8084_v4  ;;  %v8085_v6 = vmul.f32 %v15245_v62, %v19301_v50 }
 0x4a8   : > { %v8241_v42 = vmin.f32 %v8139_v8, 0.0  ;;  %v8140_v58 = vadd.f32 %v19316_v30, %v8085_v6  ;;  %vm8190_vm15 = vcmp.gt.f32.partialorder %v8139_v8, 0.0 }
 0x4a9   : > { %v7880_v24 = vpop.f32.mrb[4].mxu1 }
 0x4aa   : > { %v8292_v33 = vmul.f32 1.442695, %v8241_v42  ;;  %v8242_v14 = vmin.f32 %v8140_v58, 0.0  ;;  %v15246_v39 = vadd.f32 %v7880_v24, %v18701_v52  ;;  %v7882_v51 = vpop.f32.mrb[5].mxu1  ;;  %vm8191_vm1 = vcmp.gt.f32.partialorder %v8140_v58, 0.0 }
 0x4ab   : > { %v7883_v35 = vpop.f32.mrb[6].mxu1 }
 0x4ac   : > { %16968 = vpow2.f32 %v8292_v33  ;;  %v8294_v36 = vmul.f32 1.442695, %v8242_v14  ;;  %v8086_v23 = vmul.f32 %v15246_v39, %v19301_v50  ;;  %v15247_v31 = vadd.f32 %v7883_v35, %v18720_v11  ;;  %v7885_v4 = vpop.f32.mrb[7].mxu1 }
 0x4ae   : > { %16970 = vpow2.f32 %v8294_v36  ;;  %v8141_v62 = vadd.f32 %v19316_v30, %v8086_v23  ;;  %v8087_v6 = vmul.f32 %v15247_v31, %v19301_v50 }
 0x4b0   : > { %v8243_v27 = vmin.f32 %v8141_v62, 0.0  ;;  %v19332_v42 = vadd.f32 %v19316_v30, %v8087_v6  ;;  %vm8192_vm2 = vcmp.gt.f32.partialorder %v8141_v62, 0.0 }
 0x4b1   : > { %v7888_v12 = vpop.f32.mrb[8].mxu1 }
 0x4b2   : > { %v8296_v52 = vmul.f32 1.442695, %v8243_v27  ;;  %v8244_v24 = vmin.f32 %v19332_v42, 0.0  ;;  %v15248_v33 = vadd.f32 %v7888_v12, %v18765_v47  ;;  %v7890_v14 = vpop.f32.mrb[9].mxu1  ;;  %vm8193_vm3 = vcmp.gt.f32.partialorder %v19332_v42, 0.0 }
 0x4b3   : > { %v7891_v39 = vpop.f32.mrb[10].mxu1 }
 0x4b4   : > { %16972 = vpow2.f32 %v8296_v52  ;;  %v8298_v11 = vmul.f32 1.442695, %v8244_v24  ;;  %v8088_v51 = vmul.f32 %v15248_v33, %v19301_v50  ;;  %v15249_v23 = vadd.f32 %v7891_v39, %v18782_v54  ;;  %v7893_v35 = vpop.f32.mrb[11].mxu1 }
 0x4b6   : > { %v16969_v36 = vpop.eup %16968  ;;  %16974 = vpow2.f32 %v8298_v11  ;;  %v19339_v31 = vadd.f32 %v19316_v30, %v8088_v51  ;;  %v8089_v4 = vmul.f32 %v15249_v23, %v19301_v50 }
 0x4b7   : > { %v14276_v6 = vadd.f32 -1.0, %v16969_v36 }
 0x4b8   : > { %v16971_v27 = vpop.eup %16970  ;;  %v8245_v47 = vmin.f32 %v19339_v31, 0.0  ;;  %v19344_v12 = vadd.f32 %v19316_v30, %v8089_v4  ;;  %vm8194_vm4 = vcmp.gt.f32.partialorder %v19339_v31, 0.0 }
 0x4b9   : > { %v8445_v52 = vsel %vm8190_vm15, %v8139_v8, %v14276_v6  ;;  %v14277_v24 = vadd.f32 -1.0, %v16971_v27  ;;  %v7896_v54 = vpop.f32.mrb[12].mxu1 }
 0x4ba   : > { %v8547_v33 = vcombine.high %v8445_v52, %v8445_v52  ;;  %v8300_v14 = vmul.f32 1.442695, %v8245_v47  ;;  %v7898_v39 = vpop.f32.mrb[13].mxu1  ;;  %v8246_v51 = vmin.f32 %v19344_v12, 0.0  ;;  %v15250_v23 = vadd.f32 %v7896_v54, %v18826_v55 }
 0x4bb   : > { %v8446_v11 = vsel %vm8191_vm1, %v8140_v58, %v14277_v24  ;;  %v7899_v35 = vpop.f32.mrb[14].mxu1  ;;  %v8650_v36 = vsel %vm8649_vm0, %v8445_v52, -inf  ;;  %vm8195_vm5 = vcmp.gt.f32.partialorder %v19344_v12, 0.0 }
 0x4bc   : > { %v8651_v13 = vsel %vm8649_vm0, %v8547_v33, -inf  ;;  %v8548_v4 = vcombine.high %v8446_v11, %v8446_v11  ;;  %16976 = vpow2.f32 %v8300_v14  ;;  %v7901_v8 = vpop.f32.mrb[15].mxu1  ;;  %v8302_v27 = vmul.f32 1.442695, %v8246_v51 }
 0x4bd   : > { %v8652_v6 = vmax.f32 %v8650_v36, %v8651_v13  ;;  %v8090_v44 = vmul.f32 %v15250_v23, %v19301_v50  ;;  %v15251_v47 = vadd.f32 %v7899_v35, %v18844_v59  ;;  %v8653_v58 = vsel %vm8649_vm0, %v8446_v11, -inf }
 0x4be   : > { %v16973_v39 = vpop.eup %16972  ;;  %16978 = vpow2.f32 %v8302_v27  ;;  %v8655_v14 = vsel %vm8649_vm0, %v8548_v4, -inf }
 0x4bf   : > { %v19353_v24 = vmax.f32 %v8652_v6, %v8653_v58  ;;  %v14278_v55 = vadd.f32 -1.0, %v16973_v39  ;;  %v19356_v52 = vadd.f32 %v19316_v30, %v8090_v44  ;;  %v8091_v13 = vmul.f32 %v15251_v47, %v19301_v50 }
 0x4c0   : > { %v16975_v54 = vpop.eup %16974 }
 0x4c1   : > { %v8447_v33 = vsel %vm8192_vm2, %v8141_v62, %v14278_v55  ;;  %v14279_v59 = vadd.f32 -1.0, %v16975_v54  ;;  %v8247_v51 = vmin.f32 %v19356_v52, 0.0  ;;  %v7904_v11 = vpop.f32.mrb[16].mxu1  ;;  %v19364_v36 = vadd.f32 %v19316_v30, %v8091_v13 }
 0x4c2   : > { %v8549_v23 = vcombine.high %v8447_v33, %v8447_v33  ;;  %v8656_v35 = vsel %vm8649_vm0, %v8447_v33, -inf  ;;  %v15252_v44 = vadd.f32 %v7904_v11, %v18890_v2  ;;  %v7906_v8 = vpop.f32.mrb[17].mxu1  ;;  %vm8196_vm6 = vcmp.gt.f32.partialorder %v19356_v52, 0.0 }
 0x4c3   : > { %v8657_v6 = vmax.f32 %v8655_v14, %v8656_v35  ;;  %v8448_v27 = vsel %vm8193_vm3, %v19332_v42, %v14279_v59  ;;  %v8304_v47 = vmul.f32 1.442695, %v8247_v51  ;;  %v7907_v62 = vpop.f32.mrb[18].mxu1  ;;  %v8248_v54 = vmin.f32 %v19364_v36, 0.0 }
 0x4c4   : > { %v8658_v4 = vsel %vm8649_vm0, %v8549_v23, -inf  ;;  %v8550_v39 = vcombine.high %v8448_v27, %v8448_v27  ;;  %v7909_v58 = vpop.f32.mrb[19].mxu1  ;;  %v8092_v33 = vmul.f32 %v15252_v44, %v19301_v50  ;;  %v15253_v2 = vadd.f32 %v7907_v62, %v18912_v22 }
 0x4c5   : > { %v8659_v55 = vmax.f32 %v8657_v6, %v8658_v4  ;;  %16980 = vpow2.f32 %v8304_v47  ;;  %v8306_v59 = vmul.f32 1.442695, %v8248_v54  ;;  %v8660_v51 = vsel %vm8649_vm0, %v8448_v27, -inf }
 0x4c6   : > { %v16977_v13 = vpop.eup %16976  ;;  %v8661_v45 = vsel %vm8649_vm0, %v8550_v39, -inf  ;;  %v19377_v11 = vadd.f32 %v19316_v30, %v8092_v33  ;;  %v8093_v23 = vmul.f32 %v15253_v2, %v19301_v50  ;;  %vm8197_vm7 = vcmp.gt.f32.partialorder %v19364_v36, 0.0 }
 0x4c7   : > { %v8854_v14 = vcombine.low %v19353_v24, %v8659_v55  ;;  %v14280_v42 = vadd.f32 -1.0, %v16977_v13  ;;  %v8662_v44 = vmax.f32 %v8660_v51, %v8661_v45  ;;  %16982 = vpow2.f32 %v8306_v59 }
 0x4c8   : > { %v16979_v35 = vpop.eup %16978  ;;  %v8249_v4 = vmin.f32 %v19377_v11, 0.0  ;;  %v19385_v39 = vadd.f32 %v19316_v30, %v8093_v23  ;;  %vm8198_vm8 = vcmp.gt.f32.partialorder %v19377_v11, 0.0 }
 0x4c9   : > { %v8449_v8 = vsel %vm8194_vm4, %v19339_v31, %v14280_v42  ;;  %v7912_v6 = vpop.f32.mrb[20].mxu1  ;;  %v14281_v47 = vadd.f32 -1.0, %v16979_v35 }
 0x4ca   : > { %v8551_v22 = vcombine.high %v8449_v8, %v8449_v8  ;;  %v8663_v24 = vsel %vm8649_vm0, %v8449_v8, -inf  ;;  %v7914_v27 = vpop.f32.mrb[21].mxu1  ;;  %v15254_v58 = vadd.f32 %v7912_v6, %v18950_v9  ;;  %v8308_v42 = vmul.f32 1.442695, %v8249_v4 }
 0x4cb   : > { %v8664_v62 = vmax.f32 %v8662_v44, %v8663_v24  ;;  %v7915_v45 = vpop.f32.mrb[22].mxu1  ;;  %v8450_v31 = vsel %vm8195_vm5, %v19344_v12, %v14281_v47  ;;  %v8250_v51 = vmin.f32 %v19385_v39, 0.0  ;;  %vm8199_vm9 = vcmp.gt.f32.partialorder %v19385_v39, 0.0 }
 0x4cc   : > { %v8665_v55 = vsel %vm8649_vm0, %v8551_v22, -inf  ;;  %v15255_v54 = vadd.f32 %v7915_v45, %v18966_v41  ;;  %v7917_v33 = vpop.f32.mrb[23].mxu1  ;;  %v8552_v13 = vcombine.high %v8450_v31, %v8450_v31  ;;  %v8666_v2 = vsel %vm8649_vm0, %v8450_v31, -inf }
 0x4cd   : > { %v8667_v59 = vmax.f32 %v8665_v55, %v8666_v2  ;;  %v8094_v23 = vmul.f32 %v15254_v58, %v19301_v50  ;;  %16984 = vpow2.f32 %v8308_v42  ;;  %v8310_v6 = vmul.f32 1.442695, %v8250_v51 }
 0x4ce   : > { %v8095_v35 = vmul.f32 %v15255_v54, %v19301_v50  ;;  %v8668_v44 = vsel %vm8649_vm0, %v8552_v13, -inf }
 0x4cf   : > { %v16981_v9 = vpop.eup %16980  ;;  %v8669_v12 = vmax.f32 %v8667_v59, %v8668_v44  ;;  %v19397_v41 = vadd.f32 %v19316_v30, %v8094_v23  ;;  %16986 = vpow2.f32 %v8310_v6 }
 0x4d0   : > { %v14282_v8 = vadd.f32 -1.0, %v16981_v9  ;;  %v19401_v22 = vadd.f32 %v19316_v30, %v8095_v35 }
 0x4d1   : > { %v7920_v24 = vpop.f32.mrb[24].mxu1  ;;  %v8855_v47 = vcombine.low %v8664_v62, %v8669_v12  ;;  %v16983_v58 = vpop.eup %16982  ;;  %v8251_v31 = vmin.f32 %v19397_v41, 0.0  ;;  %vm8200_vm10 = vcmp.gt.f32.partialorder %v19397_v41, 0.0 }
 0x4d2   : > { %v8451_v27 = vsel %vm8196_vm6, %v19356_v52, %v14282_v8  ;;  %v7922_v4 = vpop.f32.mrb[25].mxu1  ;;  %v14283_v33 = vadd.f32 -1.0, %v16983_v58  ;;  %v8252_v13 = vmin.f32 %v19401_v22, 0.0  ;;  %v15256_v2 = vadd.f32 %v7920_v24, %v19005_v37 }
 0x4d3   : > { %v8553_v45 = vcombine.high %v8451_v27, %v8451_v27  ;;  %v7923_v55 = vpop.f32.mrb[26].mxu1  ;;  %v14785_v54 = vpack.c.bf16 %v8855_v47, %v8854_v14  ;;  %v8670_v62 = vsel %vm8649_vm0, %v8451_v27, -inf  ;;  %v8312_v59 = vmul.f32 1.442695, %v8251_v31 }
 0x4d4   : > { %v7925_v42 = vpop.f32.mrb[27].mxu1  ;;  %v15257_v51 = vadd.f32 %v7923_v55, %v19022_v21  ;;  %v8452_v35 = vsel %vm8197_vm7, %v19364_v36, %v14283_v33  ;;  %v8314_v9 = vmul.f32 1.442695, %v8252_v13  ;;  %v8096_v14 = vmul.f32 %v15256_v2, %v19301_v50 }
 0x4d5   : > { %v8671_v52 = vsel %vm8649_vm0, %v8553_v45, -inf  ;;  %14786 = vst [vmem:[#allocation3] sm:$0xff] %v14785_v54   ;;  %v8554_v44 = vcombine.high %v8452_v35, %v8452_v35  ;;  %v8673_v12 = vsel %vm8649_vm0, %v8452_v35, -inf  ;;  %16988 = vpow2.f32 %v8312_v59 }
 0x4d6   : > { %v8672_v23 = vmax.f32 %v8670_v62, %v8671_v52  ;;  %v8097_v37 = vmul.f32 %v15257_v51, %v19301_v50  ;;  %16990 = vpow2.f32 %v8314_v9  ;;  %v19418_v6 = vadd.f32 %v19316_v30, %v8096_v14 }
 0x4d7   : > { %v16985_v21 = vpop.eup %16984  ;;  %v8675_v45 = vsel %vm8649_vm0, %v8554_v44, -inf  ;;  %vm8201_vm11 = vcmp.gt.f32.partialorder %v19401_v22, 0.0 }
 0x4d8   : > { %v19415_v8 = vmax.f32 %v8672_v23, %v8673_v12  ;;  %v19421_v24 = vadd.f32 %v19316_v30, %v8097_v37  ;;  %v14284_v47 = vadd.f32 -1.0, %v16985_v21  ;;  %v8253_v27 = vmin.f32 %v19418_v6, 0.0 }
 0x4d9   : > { %v7928_v36 = vpop.f32.mrb[28].mxu1  ;;  %v16987_v54 = vpop.eup %16986  ;;  %vm8202_vm13 = vcmp.gt.f32.partialorder %v19418_v6, 0.0 }
 0x4da   : > { %v15258_v4 = vadd.f32 %v7928_v36, %v19064_v38  ;;  %v7930_v58 = vpop.f32.mrb[29].mxu1  ;;  %v8254_v31 = vmin.f32 %v19421_v24, 0.0  ;;  %v8453_v33 = vsel %vm8198_vm8, %v19377_v11, %v14284_v47  ;;  %v8316_v13 = vmul.f32 1.442695, %v8253_v27 }
 0x4db   : > { %v7931_v55 = vpop.f32.mrb[30].mxu1  ;;  %v8555_v38 = vcombine.high %v8453_v33, %v8453_v33  ;;  %v8676_v52 = vsel %vm8649_vm0, %v8453_v33, -inf  ;;  %v14285_v59 = vadd.f32 -1.0, %v16987_v54  ;;  %vm8203_vm14 = vcmp.gt.f32.partialorder %v19421_v24, 0.0 }
 0x4dc   : > { %v8098_v2 = vmul.f32 %v15258_v4, %v19301_v50  ;;  %v15259_v42 = vadd.f32 %v7931_v55, %v19073_v7  ;;  %v7933_v62 = vpop.f32.mrb[31].mxu1  ;;  %v8318_v51 = vmul.f32 1.442695, %v8254_v31  ;;  %v8974_v23 = vld [vmem:[#allocation3] sm:$0xf]  ;;  %v8677_v35 = vmax.f32 %v8675_v45, %v8676_v52 }
 0x4dd   : > { %16992 = vpow2.f32 %v8316_v13  ;;  %v8975_v11 = vld [vmem:[#allocation3 + $0x4] sm:$0xf]  ;;  %8987 = vst [vmem:[#allocation6] sm:$0xf] %v8974_v23  ;;  %v9000_v44 = vld [vmem:[#allocation3] sm:$0xc]  ;;  %v8454_v7 = vsel %vm8199_vm9, %v19385_v39, %v14285_v59 }
 0x4de   : > { %v19434_v9 = vadd.f32 %v19316_v30, %v8098_v2  ;;  %v8099_v14 = vmul.f32 %v15259_v42, %v19301_v50  ;;  %v8678_v12 = vsel %vm8649_vm0, %v8555_v38, -inf  ;;  %16994 = vpow2.f32 %v8318_v51  ;;  %8988 = vst [vmem:[#allocation6 + $0x28] sm:$0xf] %v8975_v11  ;;  %v19445_v36 = vld [vmem:[#allocation3 + $0x4] sm:$0xf] }
 0x4df   : > { %v19441_v37 = vmax.f32 %v8677_v35, %v8678_v12  ;;  %v8556_v21 = vcombine.high %v8454_v7, %v8454_v7  ;;  %v16989_v47 = vpop.eup %16988  ;;  %v8680_v27 = vsel %vm8649_vm0, %v8454_v7, -inf  ;;  %v14344_v45 = vrot.slane %v9000_v44, 10 }
 0x4e0   : > { %v8255_v4 = vmin.f32 %v19434_v9, 0.0  ;;  %v19450_v58 = vadd.f32 %v19316_v30, %v8099_v14  ;;  %v16991_v31 = vpop.eup %16990  ;;  %v14286_v33 = vadd.f32 -1.0, %v16989_v47  ;;  %v9028_v59 = vrot.slane %v19445_v36, 6 }
 0x4e1   : > { %v7936_v39 = vpop.f32.mrb[32].mxu1  ;;  %v8856_v55 = vcombine.low %v19415_v8, %v19441_v37  ;;  %v8681_v54 = vsel %vm8649_vm0, %v8556_v21, -inf  ;;  %v14287_v62 = vadd.f32 -1.0, %v16991_v31  ;;  %vm8204_vm15 = vcmp.gt.f32.partialorder %v19434_v9, 0.0 }
 0x4e2   : > { %v15260_v13 = vadd.f32 %v7936_v39, %v19098_v56  ;;  %v7938_v2 = vpop.f32.mrb[33].mxu1  ;;  %v8682_v42 = vmax.f32 %v8680_v27, %v8681_v54  ;;  %v8320_v38 = vmul.f32 1.442695, %v8255_v4  ;;  %v8455_v51 = vsel %vm8200_vm10, %v19397_v41, %v14286_v33 }
 0x4e3   : > { %v7939_v52 = vpop.f32.mrb[34].mxu1  ;;  %v8256_v23 = vmin.f32 %v19450_v58, 0.0  ;;  %v8557_v11 = vcombine.high %v8455_v51, %v8455_v51  ;;  %v8683_v56 = vsel %vm8649_vm0, %v8455_v51, -inf  ;;  %v8456_v44 = vsel %vm8201_vm11, %v19401_v22, %v14287_v62 }
 0x4e4   : > { %v8100_v8 = vmul.f32 %v15260_v13, %v19301_v50  ;;  %v15261_v35 = vadd.f32 %v7939_v52, %v19105_v15  ;;  %v7941_v14 = vpop.f32.mrb[35].mxu1  ;;  %16996 = vpow2.f32 %v8320_v38  ;;  %v8684_v12 = vmax.f32 %v8682_v42, %v8683_v56 }
 0x4e5   : > { %v8558_v7 = vcombine.high %v8456_v44, %v8456_v44  ;;  %v8686_v37 = vsel %vm8649_vm0, %v8456_v44, -inf  ;;  %v8322_v41 = vmul.f32 1.442695, %v8256_v23  ;;  %v8685_v21 = vsel %vm8649_vm0, %v8557_v11, -inf }
 0x4e6   : > { %v19470_v36 = vadd.f32 %v19316_v30, %v8100_v8  ;;  %v8101_v15 = vmul.f32 %v15261_v35, %v19301_v50  ;;  %v9029_v47 = vsel %vm17684_vm12, %v14344_v45, %v9028_v59  ;;  %v8687_v4 = vmax.f32 %v8685_v21, %v8686_v37 }
 0x4e7   : > { %v16993_v27 = vpop.eup %16992  ;;  %v8688_v22 = vsel %vm8649_vm0, %v8558_v7, -inf  ;;  %16998 = vpow2.f32 %v8322_v41  ;;  %9077 = vst [vmem:[#allocation6 + $0x4] sm:$0xf] %v9029_v47  ;;  %vm8205_vm1 = vcmp.gt.f32.partialorder %v19450_v58, 0.0 }
 0x4e8   : > { %v16995_v39 = vpop.eup %16994  ;;  %v14288_v31 = vadd.f32 -1.0, %v16993_v27  ;;  %v8257_v54 = vmin.f32 %v19470_v36, 0.0  ;;  %v19478_v33 = vadd.f32 %v19316_v30, %v8101_v15  ;;  %v8689_v2 = vmax.f32 %v8687_v4, %v8688_v22 }
 0x4e9   : > { %v7944_v13 = vpop.f32.mrb[36].mxu1  ;;  %v14289_v42 = vadd.f32 -1.0, %v16995_v39  ;;  %v9030_v22 = vrot.slane %v9028_v59, 4  ;;  %vm8206_vm2 = vcmp.gt.f32.partialorder %v19470_v36, 0.0 }
 0x4ea   : > { %v15262_v45 = vadd.f32 %v7944_v13, %v19121_v43  ;;  %v7946_v62 = vpop.f32.mrb[37].mxu1  ;;  %v8457_v38 = vsel %vm8202_vm13, %v19418_v6, %v14288_v31  ;;  %v8324_v52 = vmul.f32 1.442695, %v8257_v54  ;;  %v8258_v51 = vmin.f32 %v19478_v33, 0.0 }
 0x4eb   : > { %v7947_v23 = vpop.f32.mrb[38].mxu1  ;;  %v8857_v8 = vcombine.low %v8684_v12, %v8689_v2  ;;  %v8559_v35 = vcombine.high %v8457_v38, %v8457_v38  ;;  %v8458_v14 = vsel %vm8203_vm14, %v19421_v24, %v14289_v42  ;;  %v8690_v56 = vsel %vm8649_vm0, %v8457_v38, -inf }
 0x4ec   : > { %v7949_v11 = vpop.f32.mrb[39].mxu1  ;;  %v8560_v44 = vcombine.high %v8458_v14, %v8458_v14  ;;  %17000 = vpow2.f32 %v8324_v52  ;;  %v8326_v7 = vmul.f32 1.442695, %v8258_v51  ;;  %v8102_v6 = vmul.f32 %v15262_v45, %v19301_v50 }
 0x4ed   : > { %v14790_v43 = vpack.c.bf16 %v8857_v8, %v8856_v55  ;;  %v8691_v37 = vsel %vm8649_vm0, %v8559_v35, -inf  ;;  %v15263_v41 = vadd.f32 %v7947_v23, %v19129_v53  ;;  %v8693_v12 = vsel %vm8649_vm0, %v8458_v14, -inf  ;;  %v16419_v55 = vld [vmem:[%s21253_s3 + $0xc0] sm:$0xff]  }
 0x4ee   : > { %v16997_v21 = vpop.eup %16996  ;;  %v8692_v15 = vmax.f32 %v8690_v56, %v8691_v37  ;;  %17002 = vpow2.f32 %v8326_v7  ;;  %v19492_v47 = vadd.f32 %v19316_v30, %v8102_v6  ;;  %v8695_v54 = vsel %vm8649_vm0, %v8560_v44, -inf  ;;  %14952 = vmatprep.subr.bf16.mxu0 %v16419_v55 }
 0x4ef   : > { %14852 = vst [vmem:[#allocation3 + $0x8] sm:$0xff] %v14790_v43   ;;  %v14290_v24 = vadd.f32 -1.0, %v16997_v21  ;;  %v8103_v27 = vmul.f32 %v15263_v41, %v19301_v50  ;;  %vm8207_vm3 = vcmp.gt.f32.partialorder %v19478_v33, 0.0 }
 0x4f0   : > { %v19498_v4 = vmax.f32 %v8692_v15, %v8693_v12  ;;  %v8259_v13 = vmin.f32 %v19492_v47, 0.0  ;;  %vm8208_vm4 = vcmp.gt.f32.partialorder %v19492_v47, 0.0 }
 0x4f1   : > { %v7952_v53 = vpop.f32.mrb[40].mxu1  ;;  %v16999_v39 = vpop.eup %16998  ;;  %v8459_v31 = vsel %vm8204_vm15, %v19434_v9, %v14290_v24  ;;  %v19506_v2 = vadd.f32 %v19316_v30, %v8103_v27 }
 0x4f2   : > { %v7954_v42 = vpop.f32.mrb[41].mxu1  ;;  %v8561_v45 = vcombine.high %v8459_v31, %v8459_v31  ;;  %v8696_v62 = vsel %vm8649_vm0, %v8459_v31, -inf  ;;  %v14291_v38 = vadd.f32 -1.0, %v16999_v39  ;;  %v15264_v52 = vadd.f32 %v7952_v53, %v19137_v16 }
 0x4f3   : > { %v7955_v51 = vpop.f32.mrb[42].mxu1  ;;  %v8697_v59 = vmax.f32 %v8695_v54, %v8696_v62  ;;  %v8328_v9 = vmul.f32 1.442695, %v8259_v13  ;;  %v8260_v23 = vmin.f32 %v19506_v2, 0.0  ;;  %vm8209_vm5 = vcmp.gt.f32.partialorder %v19506_v2, 0.0 }
 0x4f4   : > { %v7957_v8 = vpop.f32.mrb[43].mxu1  ;;  %v8698_v35 = vsel %vm8649_vm0, %v8561_v45, -inf  ;;  %v8460_v14 = vsel %vm8205_vm1, %v19450_v58, %v14291_v38  ;;  %v8104_v11 = vmul.f32 %v15264_v52, %v19301_v50  ;;  %v15265_v56 = vadd.f32 %v7955_v51, %v19139_v46 }
 0x4f5   : > { %v19518_v44 = vmax.f32 %v8697_v59, %v8698_v35  ;;  %v8562_v16 = vcombine.high %v8460_v14, %v8460_v14  ;;  %v8700_v7 = vsel %vm8649_vm0, %v8460_v14, -inf  ;;  %17004 = vpow2.f32 %v8328_v9 }
 0x4f6   : > { %v17001_v43 = vpop.eup %17000  ;;  %v8330_v37 = vmul.f32 1.442695, %v8260_v23  ;;  %v19522_v6 = vadd.f32 %v19316_v30, %v8104_v11  ;;  %v8105_v41 = vmul.f32 %v15265_v56, %v19301_v50  ;;  %v9002_v21 = vld [vmem:[#allocation3 + $0x8] sm:$0xf]  ;;  %v8977_v27 = vld [vmem:[#allocation3 + $0xc] sm:$0xf] }
 0x4f7   : > { %v8976_v15 = vld [vmem:[#allocation3 + $0x8] sm:$0xf]  ;;  %v8858_v58 = vcombine.low %v19498_v4, %v19518_v44  ;;  %v8701_v46 = vsel %vm8649_vm0, %v8562_v16, -inf  ;;  %v14292_v12 = vadd.f32 -1.0, %v17001_v43  ;;  %v9031_v24 = vrot.slane %v9002_v21, 6 }
 0x4f8   : > { %8989 = vst [vmem:[#allocation6 + $0x50] sm:$0xf] %v8976_v15  ;;  %v17003_v55 = vpop.eup %17002  ;;  %v8702_v53 = vmax.f32 %v8700_v7, %v8701_v46  ;;  %17006 = vpow2.f32 %v8330_v37  ;;  %v8261_v39 = vmin.f32 %v19522_v6, 0.0  ;;  %8990 = vst [vmem:[#allocation6 + $0x78] sm:$0xf] %v8977_v27  ;;  %v19534_v13 = vadd.f32 %v19316_v30, %v8105_v41 }
 0x4f9   : > { %v7960_v31 = vpop.f32.mrb[44].mxu1  ;;  %v8461_v54 = vsel %vm8206_vm2, %v19470_v36, %v14292_v12  ;;  %v14293_v4 = vadd.f32 -1.0, %v17003_v55  ;;  %v9032_v59 = vsel %vm17684_vm12, %v9030_v22, %v9031_v24  ;;  %v19544_v35 = vld [vmem:[#allocation3 + $0xc] sm:$0xf]  ;;  %v9033_v7 = vrot.slane %v9031_v24, 4 }
 0x4fa   : > { %v15266_v42 = vadd.f32 %v7960_v31, %v19141_v28  ;;  %v7962_v45 = vpop.f32.mrb[45].mxu1  ;;  %v8563_v62 = vcombine.high %v8461_v54, %v8461_v54  ;;  %v8703_v38 = vsel %vm8649_vm0, %v8461_v54, -inf  ;;  %v8332_v52 = vmul.f32 1.442695, %v8261_v39  ;;  %9078 = vst [vmem:[#allocation6 + $0x2c] sm:$0xf] %v9032_v59 }
 0x4fb   : > { %v7963_v51 = vpop.f32.mrb[46].mxu1  ;;  %v8704_v9 = vmax.f32 %v8702_v53, %v8703_v38  ;;  %v8462_v36 = vsel %vm8207_vm3, %v19478_v33, %v14293_v4  ;;  %v8262_v23 = vmin.f32 %v19534_v13, 0.0  ;;  %v9034_v43 = vrot.slane %v19544_v35, 6  ;;  %v16420_v39 = vld [vmem:[%s21253_s3 + $0x80] sm:$0xff]  }
 0x4fc   : > { %v7965_v8 = vpop.f32.mrb[47].mxu1  ;;  %v8564_v28 = vcombine.high %v8462_v36, %v8462_v36  ;;  %v8705_v14 = vsel %vm8649_vm0, %v8563_v62, -inf  ;;  %v8706_v11 = vsel %vm8649_vm0, %v8462_v36, -inf  ;;  %17008 = vpow2.f32 %v8332_v52 }
 0x4fd   : > { %v8707_v56 = vmax.f32 %v8705_v14, %v8706_v11  ;;  %v8334_v44 = vmul.f32 1.442695, %v8262_v23  ;;  %v8106_v22 = vmul.f32 %v15266_v42, %v19301_v50  ;;  %v15267_v16 = vadd.f32 %v7963_v51, %v19143_v17  ;;  %v16407_v42 = vld [vmem:[#allocation6] ss:$40 sps:$4 sm:$0xff]  }
 0x4fe   : > { %v8708_v33 = vsel %vm8649_vm0, %v8564_v28, -inf  ;;  %v9035_v17 = vsel %vm17684_vm12, %v9033_v7, %v9034_v43  ;;  %vm8210_vm6 = vcmp.gt.f32.partialorder %v19522_v6, 0.0  ;;  %vm8211_vm7 = vcmp.gt.f32.partialorder %v19534_v13, 0.0 }
 0x4ff   : > { %v17005_v37 = vpop.eup %17004  ;;  %v8709_v41 = vmax.f32 %v8707_v56, %v8708_v33  ;;  %17010 = vpow2.f32 %v8334_v44  ;;  %v19553_v21 = vadd.f32 %v19316_v30, %v8106_v22  ;;  %v8107_v15 = vmul.f32 %v15267_v16, %v19301_v50  ;;  %9079 = vst [vmem:[#allocation6 + $0x54] sm:$0xf] %v9035_v17  ;;  %v16422_v22 = vld [vmem:[%s21253_s3 + $0x88] sm:$0xff]  }
 0x500   : > { %v14294_v46 = vadd.f32 -1.0, %v17005_v37 }
 0x501   : > { %v7968_v12 = vpop.f32.mrb[48].mxu1  ;;  %v8859_v27 = vcombine.low %v8704_v9, %v8709_v41  ;;  %v8263_v24 = vmin.f32 %v19553_v21, 0.0  ;;  %v19563_v55 = vadd.f32 %v19316_v30, %v8107_v15  ;;  %v16409_v45 = vld [vmem:[#allocation6 + $0x4] ss:$40 sps:$4 sm:$0xff]   ;;  %v16421_v9 = vld [vmem:[%s21253_s3 + $0xc8] sm:$0xff]   ;;  %vm8212_vm8 = vcmp.gt.f32.partialorder %v19553_v21, 0.0 }
 0x502   : > { %v7970_v53 = vpop.f32.mrb[49].mxu1  ;;  %v17007_v31 = vpop.eup %17006  ;;  %v8463_v54 = vsel %vm8208_vm4, %v19492_v47, %v14294_v46  ;;  %v15268_v4 = vadd.f32 %v7968_v12, %v19145_v57  ;;  %10626 = vmatprep.mubr.bf16.mxu0 %v16409_v45 }
 0x503   : > { %v7971_v62 = vpop.f32.mrb[50].mxu1  ;;  %v14795_v38 = vpack.c.bf16 %v8859_v27, %v8858_v58  ;;  %v8565_v52 = vcombine.high %v8463_v54, %v8463_v54  ;;  %v14295_v51 = vadd.f32 -1.0, %v17007_v31  ;;  %v8336_v36 = vmul.f32 1.442695, %v8263_v24  ;;  %10627 = vmatmul.mubr.bf16.vlgmr.msra.gmra.mrb[160].mxu0 %v16407_v42 }
 0x504   : > { %v7973_v59 = vpop.f32.mrb[51].mxu1  ;;  %v8264_v23 = vmin.f32 %v19563_v55, 0.0  ;;  %v8108_v47 = vmul.f32 %v15268_v4, %v19301_v50  ;;  %v8710_v57 = vsel %vm8649_vm0, %v8463_v54, -inf  ;;  %v15269_v28 = vadd.f32 %v7971_v62, %v19147_v26  ;;  %14953 = vmatpush3.bf16.msra.mxu0 %v16420_v39  ;;  %v16423_v26 = vld [vmem:[%s21253_s3 + $0xd0] sm:$0xff]  }
 0x505   : > { %14853 = vst [vmem:[#allocation3 + $0x10] sm:$0xff] %v14795_v38   ;;  %v8711_v58 = vsel %vm8649_vm0, %v8565_v52, -inf  ;;  %v8464_v8 = vsel %vm8209_vm5, %v19506_v2, %v14295_v51  ;;  %17012 = vpow2.f32 %v8336_v36  ;;  %14954 = vmatprep.subr.bf16.mxu0 %v16421_v9  ;;  %v16424_v4 = vld [vmem:[%s21253_s3 + $0x90] sm:$0xff]   ;;  %v16428_v52 = vld [vmem:[%s21253_s3 + $0xd8] sm:$0xff]   ;;  %vm8213_vm9 = vcmp.gt.f32.partialorder %v19563_v55, 0.0 }
 0x506   : > { %v17009_v14 = vpop.eup %17008  ;;  %v8712_v11 = vmax.f32 %v8710_v57, %v8711_v58  ;;  %v8566_v56 = vcombine.high %v8464_v8, %v8464_v8  ;;  %v8713_v44 = vsel %vm8649_vm0, %v8464_v8, -inf  ;;  %v8338_v33 = vmul.f32 1.442695, %v8264_v23 }
 0x507   : > { %v14296_v16 = vadd.f32 -1.0, %v17009_v14  ;;  %v19585_v7 = vadd.f32 %v19316_v30, %v8108_v47  ;;  %v8109_v2 = vmul.f32 %v15269_v28, %v19301_v50 }
 0x508   : > { %v19591_v37 = vmax.f32 %v8712_v11, %v8713_v44  ;;  %v8715_v12 = vsel %vm8649_vm0, %v8566_v56, -inf  ;;  %17014 = vpow2.f32 %v8338_v33  ;;  %14955 = vmatpush3.bf16.msra.mxu0 %v16422_v22  ;;  %v16429_v11 = vld [vmem:[%s21253_s3 + $0x98] sm:$0xff]   ;;  %v16430_v44 = vld [vmem:[%s21253_s3 + $0xe0] sm:$0xff]  }
 0x509   : > { %v7976_v41 = vpop.f32.mrb[52].mxu1  ;;  %v17011_v15 = vpop.eup %17010  ;;  %v8465_v46 = vsel %vm8210_vm6, %v19522_v6, %v14296_v16  ;;  %v8265_v17 = vmin.f32 %v19585_v7, 0.0  ;;  %v19600_v31 = vadd.f32 %v19316_v30, %v8109_v2  ;;  %14956 = vmatprep.subr.bf16.mxu0 %v16423_v26  ;;  %vm8214_vm10 = vcmp.gt.f32.partialorder %v19585_v7, 0.0 }
 0x50a   : > { %v7978_v27 = vpop.f32.mrb[53].mxu1  ;;  %v8567_v24 = vcombine.high %v8465_v46, %v8465_v46  ;;  %v8716_v53 = vsel %vm8649_vm0, %v8465_v46, -inf  ;;  %v14297_v39 = vadd.f32 -1.0, %v17011_v15  ;;  %v15270_v45 = vadd.f32 %v7976_v41, %v19149_v40 }
 0x50b   : > { %v7979_v54 = vpop.f32.mrb[54].mxu1  ;;  %v8717_v6 = vmax.f32 %v8715_v12, %v8716_v53  ;;  %v8340_v42 = vmul.f32 1.442695, %v8265_v17  ;;  %v8266_v9 = vmin.f32 %v19600_v31, 0.0  ;;  %v9090_v27 = vld [vmem:[#allocation3 + $0x4] sm:$0xf] }
 0x50c   : > { %v15271_v62 = vadd.f32 %v7979_v54, %v19151_v60  ;;  %v7981_v38 = vpop.f32.mrb[55].mxu1  ;;  %v8718_v51 = vsel %vm8649_vm0, %v8567_v24, -inf  ;;  %v8466_v59 = vsel %vm8211_vm7, %v19534_v13, %v14297_v39  ;;  %v9004_v36 = vld [vmem:[#allocation3 + $0x10] sm:$0xf]  ;;  %v9036_v60 = vrot.slane %v9034_v43, 4  ;;  %14957 = vmatpush3.bf16.msra.mxu0 %v16424_v4 }
 0x50d   : > { %v19615_v23 = vmax.f32 %v8717_v6, %v8718_v51  ;;  %v8568_v40 = vcombine.high %v8466_v59, %v8466_v59  ;;  %17016 = vpow2.f32 %v8340_v42  ;;  %v8978_v47 = vld [vmem:[#allocation3 + $0x10] sm:$0xf]  ;;  %v8979_v57 = vld [vmem:[#allocation3 + $0x14] sm:$0xf]  ;;  %v8342_v58 = vmul.f32 1.442695, %v8266_v9  ;;  %14958 = vmatprep.subr.bf16.mxu0 %v16428_v52 }
 0x50e   : > { %v8110_v8 = vmul.f32 %v15270_v45, %v19301_v50  ;;  %v8111_v28 = vmul.f32 %v15271_v62, %v19301_v50  ;;  %v9037_v14 = vrot.slane %v9004_v36, 6  ;;  %8991 = vst [vmem:[#allocation6 + $0xa0] sm:$0xf] %v8978_v47  ;;  %8992 = vst [vmem:[#allocation6 + $0xc8] sm:$0xf] %v8979_v57  ;;  %v8720_v43 = vsel %vm8649_vm0, %v8466_v59, -inf }
 0x50f   : > { %v19621_v13 = vld [vmem:[#allocation3 + $0x14] sm:$0xf]  ;;  %v8860_v35 = vcombine.low %v19591_v37, %v19615_v23  ;;  %v8721_v56 = vsel %vm8649_vm0, %v8568_v40, -inf  ;;  %v17013_v22 = vpop.eup %17012  ;;  %17018 = vpow2.f32 %v8342_v58  ;;  %9103 = vst [vmem:[#allocation6 + $0x8] sm:$0xf] %v9090_v27  ;;  %v16432_v52 = vld [vmem:[%s21253_s3 + $0xe8] sm:$0xff]  }
 0x510   : > { %v19635_v16 = vadd.f32 %v19316_v30, %v8110_v8  ;;  %v19638_v33 = vadd.f32 %v19316_v30, %v8111_v28  ;;  %v9040_v26 = vrot.slane %v19621_v13, 6  ;;  %v14298_v41 = vadd.f32 -1.0, %v17013_v22  ;;  %14959 = vmatpush3.bf16.msra.mxu0 %v16429_v11  ;;  %v9091_v51 = vld [vmem:[#allocation3 + $0x8] sm:$0xf]  ;;  %v9092_v57 = vld [vmem:[#allocation3 + $0xc] sm:$0xf] }
 0x511   : > { %v7984_v2 = vpop.f32.mrb[56].mxu1  ;;  %v9038_v12 = vsel %vm17684_vm12, %v9036_v60, %v9037_v14  ;;  %v9039_v17 = vrot.slane %v9037_v14, 4  ;;  %v8722_v24 = vmax.f32 %v8720_v43, %v8721_v56  ;;  %14960 = vmatprep.subr.bf16.mxu0 %v16430_v44  ;;  %9104 = vst [vmem:[#allocation6 + $0x30] sm:$0xf] %v9091_v51  ;;  %v19671_v60 = vld [vmem:[%s21255_s5 + $0x1] ss:$0 sm:$0xff] }
 0x512   : > { %v15272_v15 = vadd.f32 %v7984_v2, %v19153_v10  ;;  %v7986_v46 = vpop.f32.mrb[57].mxu1  ;;  %v8267_v53 = vmin.f32 %v19635_v16, 0.0  ;;  %v8268_v39 = vmin.f32 %v19638_v33, 0.0  ;;  %9080 = vst [vmem:[#allocation6 + $0x7c] sm:$0xf] %v9038_v12  ;;  %v16431_v10 = vld [vmem:[%s21253_s3 + $0xa0] sm:$0xff]   ;;  %v17015_v4 = vpop.eup %17014  ;;  %v8467_v6 = vsel %vm8212_vm8, %v19553_v21, %v14298_v41 }
 0x513   : > { %v7987_v54 = vpop.f32.mrb[58].mxu1  ;;  %v9041_v38 = vsel %vm17684_vm12, %v9039_v17, %v9040_v26  ;;  %v8569_v59 = vcombine.high %v8467_v6, %v8467_v6  ;;  %v8723_v9 = vsel %vm8649_vm0, %v8467_v6, -inf  ;;  %v14299_v21 = vadd.f32 -1.0, %v17015_v4  ;;  %v9093_v28 = vld [vmem:[#allocation3 + $0x10] sm:$0xf]  ;;  %v16446_v23 = vld [vmem:[%s21253_s3 + $0x140] sm:$0xff]  }
 0x514   : > { %v8112_v42 = vmul.f32 %v15272_v15, %v19301_v50  ;;  %v15273_v45 = vadd.f32 %v7987_v54, %v19155_v19  ;;  %v7989_v62 = vpop.f32.mrb[59].mxu1  ;;  %v8344_v36 = vmul.f32 1.442695, %v8267_v53  ;;  %9081 = vst [vmem:[#allocation6 + $0xa4] sm:$0xf] %v9041_v38  ;;  %v19663_v19 = vmax.f32 %v8722_v24, %v8723_v9  ;;  %14961 = vmatpush3.bf16.msra.mxu0 %v16431_v10  ;;  %v16439_v54 = vld [vmem:[%s21253_s3 + $0xb0] sm:$0xff]  }
 0x515   : > { %v8346_v50 = vmul.f32 1.442695, %v8268_v39  ;;  %v8468_v58 = vsel %vm8213_vm9, %v19563_v55, %v14299_v21  ;;  %v8725_v8 = vsel %vm8649_vm0, %v8569_v59, -inf  ;;  %9105 = vst [vmem:[#allocation6 + $0x58] sm:$0xf] %v9092_v57  ;;  %vm8215_vm11 = vcmp.gt.f32.partialorder %v19600_v31, 0.0  ;;  %14962 = vmatprep.subr.bf16.mxu0 %v16432_v52 }
 0x516   : > { %v19666_v40 = vadd.f32 %v19316_v30, %v8112_v42  ;;  %v8113_v47 = vmul.f32 %v19671_v60, %v15273_v45  ;;  %17020 = vpow2.f32 %v8344_v36  ;;  %v16433_v30 = vld [vmem:[%s21253_s3 + $0xa8] sm:$0xff]   ;;  %v8570_v11 = vcombine.high %v8468_v58, %v8468_v58  ;;  %v16438_v55 = vld [vmem:[%s21253_s3 + $0xf0] sm:$0xff]   ;;  %v9116_v56 = vld [vmem:[#allocation3 + $0x4] sm:$0xc]  ;;  %9106 = vst [vmem:[#allocation6 + $0x80] sm:$0xf] %v9093_v28 }
 0x517   : > { %v17017_v14 = vpop.eup %17016  ;;  %v8726_v43 = vsel %vm8649_vm0, %v8468_v58, -inf  ;;  %17022 = vpow2.f32 %v8346_v50  ;;  %v19691_v41 = vld [vmem:[%s21256_s6 + $0x1] ss:$0 sm:$0xff]  ;;  %v9117_v12 = vld [vmem:[#allocation3 + $0x8] sm:$0xf]  ;;  %v14345_v38 = vrot.slane %v9116_v56, 10 }
 0x518   : > { %v8727_v44 = vmax.f32 %v8725_v8, %v8726_v43  ;;  %v14300_v22 = vadd.f32 -1.0, %v17017_v14  ;;  %v8269_v2 = vmin.f32 %v19666_v40, 0.0  ;;  %v19694_v15 = vadd.f32 %v19691_v41, %v8113_v47  ;;  %v9094_v17 = vld [vmem:[#allocation3 + $0x14] sm:$0xf]  ;;  %v16412_v62 = vld [vmem:[#allocation6 + $0x50] ss:$40 sps:$4 sm:$0xff]   ;;  %14963 = vmatpush3.bf16.msra.mxu0 %v16433_v30 }
 0x519   : > { %v7992_v46 = vpop.f32.mrb[60].mxu1  ;;  %v8728_v27 = vsel %vm8649_vm0, %v8570_v11, -inf  ;;  %v16410_v39 = vld [vmem:[#allocation6 + $0x54] ss:$40 sps:$4 sm:$0xff]   ;;  %9107 = vst [vmem:[#allocation6 + $0xa8] sm:$0xf] %v9094_v17  ;;  %v17019_v10 = vpop.eup %17018  ;;  %14964 = vmatprep.subr.bf16.mxu0 %v16438_v55 }
 0x51a   : > { %v15274_v24 = vadd.f32 %v7992_v46, %v19157_v49  ;;  %v7994_v53 = vpop.f32.mrb[61].mxu1  ;;  %v8729_v4 = vmax.f32 %v8727_v44, %v8728_v27  ;;  %v8469_v6 = vsel %vm8214_vm10, %v19585_v7, %v14300_v22  ;;  %v8348_v42 = vmul.f32 1.442695, %v8269_v2  ;;  %10634 = vmatprep.mubr.bf16.mxu0 %v16410_v39  ;;  %v16441_v21 = vld [vmem:[%s21253_s3 + $0xf8] sm:$0xff]   ;;  %v19716_v8 = vld [vmem:[#allocation3 + $0xc] sm:$0xf] }
 0x51b   : > { %v7995_v45 = vpop.f32.mrb[62].mxu1  ;;  %v8571_v52 = vcombine.high %v8469_v6, %v8469_v6  ;;  %v8730_v49 = vsel %vm8649_vm0, %v8469_v6, -inf  ;;  %v14301_v51 = vadd.f32 -1.0, %v17019_v10  ;;  %v8270_v59 = vmin.f32 %v19694_v15, 0.0  ;;  %10635 = vmatmul.mubr.bf16.gmra.mrb[164].mxu0 %v16412_v62 }
 0x51c   : > { %v7997_v9 = vpop.f32.mrb[63].mxu1  ;;  %v8861_v7 = vcombine.low %v19663_v19, %v8729_v4  ;;  %17024 = vpow2.f32 %v8348_v42  ;;  %v8114_v36 = vmul.f32 %v19671_v60, %v15274_v24  ;;  %v15275_v50 = vadd.f32 %v7995_v45, %v19159_v29  ;;  %14965 = vmatpush3.bf16.msra.mxu0 %v16439_v54  ;;  %v16442_v29 = vld [vmem:[%s21253_s3 + $0xb8] sm:$0xff]  }
 0x51d   : > { %v8731_v47 = vsel %vm8649_vm0, %v8571_v52, -inf  ;;  %v8470_v57 = vsel %vm8215_vm11, %v19600_v31, %v14301_v51  ;;  %v8350_v58 = vmul.f32 1.442695, %v8270_v59  ;;  %v9144_v30 = vrot.slane %v9117_v12, 6  ;;  %14966 = vmatprep.subr.bf16.mxu0 %v16441_v21 }
 0x51e   : > { %v14800_v19 = vpack.c.bf16 %v8861_v7, %v8860_v35  ;;  %v8732_v28 = vmax.f32 %v8730_v49, %v8731_v47  ;;  %v8572_v14 = vcombine.high %v8470_v57, %v8470_v57  ;;  %v8733_v11 = vsel %vm8649_vm0, %v8470_v57, -inf }
 0x51f   : > { %17026 = vpow2.f32 %v8350_v58  ;;  %v19726_v31 = vadd.f32 %v19691_v41, %v8114_v36  ;;  %v8115_v43 = vmul.f32 %v19671_v60, %v15275_v50  ;;  %v9145_v37 = vsel %vm17684_vm12, %v14345_v38, %v9144_v30 }
 0x520   : > { %v17021_v35 = vpop.eup %17020  ;;  %14854 = vst [vmem:[#allocation3 + $0x18] sm:$0xff] %v14800_v19   ;;  %v19734_v55 = vmax.f32 %v8732_v28, %v8733_v11  ;;  %vm8216_vm13 = vcmp.gt.f32.partialorder %v19635_v16, 0.0  ;;  %v9146_v44 = vrot.slane %v9144_v30, 4  ;;  %v9147_v22 = vrot.slane %v19716_v8, 6  ;;  %9193 = vst [vmem:[#allocation6 + $0xc] sm:$0xf] %v9145_v37  ;;  %14967 = vmatpush3.bf16.msra.mxu0 %v16442_v29 }
 0x521   : > { %v8000_v56 = vpop.f32.mrb[64].mxu1  ;;  %v17023_v2 = vpop.eup %17022  ;;  %v14302_v46 = vadd.f32 -1.0, %v17021_v35  ;;  %vm8217_vm14 = vcmp.gt.f32.partialorder %v19638_v33, 0.0  ;;  %v8271_v12 = vmin.f32 %v19726_v31, 0.0  ;;  %v19741_v17 = vadd.f32 %v19691_v41, %v8115_v43  ;;  %15010 = vmatprep.subr.bf16.mxu0 %v16446_v23 }
 0x522   : > { %v8002_v27 = vpop.f32.mrb[65].mxu1  ;;  %v14303_v24 = vadd.f32 -1.0, %v17023_v2  ;;  %v15276_v53 = vadd.f32 %v8000_v56, %v19161_v0  ;;  %v19746_v54 = vrot.slane %v9040_v26, 4  ;;  %v9148_v10 = vsel %vm17684_vm12, %v9146_v44, %v9147_v22 }
 0x523   : > { %v8003_v39 = vpop.f32.mrb[66].mxu1  ;;  %v8471_v4 = vsel %vm8216_vm13, %v19635_v16, %v14302_v46  ;;  %v8735_v6 = vsel %vm8649_vm0, %v8572_v14, -inf  ;;  %v8352_v42 = vmul.f32 1.442695, %v8271_v12  ;;  %v8272_v0 = vmin.f32 %v19741_v17, 0.0 }
 0x524   : > { %v8005_v45 = vpop.f32.mrb[67].mxu1  ;;  %9194 = vst [vmem:[#allocation6 + $0x34] sm:$0xf] %v9148_v10  ;;  %v8573_v13 = vcombine.high %v8471_v4, %v8471_v4  ;;  %v8736_v26 = vsel %vm8649_vm0, %v8471_v4, -inf  ;;  %v8472_v62 = vsel %vm8217_vm14, %v19638_v33, %v14303_v24  ;;  %v8116_v38 = vmul.f32 %v19671_v60, %v15276_v53 }
 0x525   : > { %v8737_v52 = vmax.f32 %v8735_v6, %v8736_v26  ;;  %v8574_v49 = vcombine.high %v8472_v62, %v8472_v62  ;;  %vm8218_vm15 = vcmp.gt.f32.partialorder %v19666_v40, 0.0  ;;  %17028 = vpow2.f32 %v8352_v42 }
 0x526   : > { %v17025_v16 = vpop.eup %17024  ;;  %v8738_v51 = vsel %vm8649_vm0, %v8573_v13, -inf  ;;  %v8354_v59 = vmul.f32 1.442695, %v8272_v0  ;;  %v19765_v9 = vadd.f32 %v19691_v41, %v8116_v38  ;;  %v15277_v21 = vadd.f32 %v8003_v39, %v19163_v48 }
 0x527   : > { %v19768_v7 = vmax.f32 %v8737_v52, %v8738_v51  ;;  %v8740_v33 = vsel %vm8649_vm0, %v8472_v62, -inf  ;;  %v8741_v36 = vsel %vm8649_vm0, %v8574_v49, -inf  ;;  %v14304_v50 = vadd.f32 -1.0, %v17025_v16  ;;  %v8980_v47 = vld [vmem:[#allocation3 + $0x18] sm:$0xf] }
 0x528   : > { %v8742_v57 = vmax.f32 %v8740_v33, %v8741_v36  ;;  %vm8219_vm1 = vcmp.gt.f32.partialorder %v19694_v15, 0.0  ;;  %17030 = vpow2.f32 %v8354_v59  ;;  %v8273_v58 = vmin.f32 %v19765_v9, 0.0  ;;  %v8981_v19 = vld [vmem:[#allocation3 + $0x1c] sm:$0xf]  ;;  %8993 = vst [vmem:[#allocation6 + $0xf0] sm:$0xf] %v8980_v47 }
 0x529   : > { %v8008_v30 = vpop.f32.mrb[68].mxu1  ;;  %v17027_v28 = vpop.eup %17026  ;;  %v8862_v48 = vcombine.low %v19734_v55, %v19768_v7  ;;  %v8473_v14 = vsel %vm8218_vm15, %v19666_v40, %v14304_v50  ;;  %v8117_v11 = vmul.f32 %v19671_v60, %v15277_v21  ;;  %v9006_v37 = vld [vmem:[#allocation3 + $0x18] sm:$0xf]  ;;  %8994 = vst [vmem:[#allocation6 + $0x118] sm:$0xf] %v8981_v19  ;;  %vm8220_vm2 = vcmp.gt.f32.partialorder %v19726_v31, 0.0 }
 0x52a   : > { %v15278_v29 = vadd.f32 %v8008_v30, %v19165_v3  ;;  %v8010_v43 = vpop.f32.mrb[69].mxu1  ;;  %v9095_v23 = vld [vmem:[#allocation3 + $0x18] sm:$0xf]  ;;  %v8575_v35 = vcombine.high %v8473_v14, %v8473_v14  ;;  %v8743_v56 = vsel %vm8649_vm0, %v8473_v14, -inf  ;;  %v14305_v44 = vadd.f32 -1.0, %v17027_v28 }
 0x52b   : > { %v8356_v2 = vmul.f32 1.442695, %v8273_v58  ;;  %v8011_v46 = vpop.f32.mrb[70].mxu1  ;;  %9108 = vst [vmem:[#allocation6 + $0xd0] sm:$0xf] %v9095_v23  ;;  %v8744_v12 = vmax.f32 %v8742_v57, %v8743_v56  ;;  %v19783_v27 = vadd.f32 %v19691_v41, %v8117_v11  ;;  %v9043_v10 = vrot.slane %v9006_v37, 6 }
 0x52c   : > { %v8118_v40 = vmul.f32 %v19671_v60, %v15278_v29  ;;  %v15279_v24 = vadd.f32 %v8011_v46, %v19167_v5  ;;  %v8013_v3 = vpop.f32.mrb[71].mxu1  ;;  %v8474_v53 = vsel %vm8219_vm1, %v19694_v15, %v14305_v44  ;;  %v8745_v39 = vsel %vm8649_vm0, %v8575_v35, -inf  ;;  %v19791_v4 = vld [vmem:[#allocation3 + $0x1c] sm:$0xf]  ;;  %v9119_v28 = vld [vmem:[#allocation3 + $0x10] sm:$0xf] }
 0x52d   : > { %17032 = vpow2.f32 %v8356_v2  ;;  %v8576_v6 = vcombine.high %v8474_v53, %v8474_v53  ;;  %v8746_v42 = vsel %vm8649_vm0, %v8474_v53, -inf  ;;  %v8274_v0 = vmin.f32 %v19783_v27, 0.0  ;;  %v9096_v45 = vld [vmem:[#allocation3 + $0x1c] sm:$0xf]  ;;  %v16415_v53 = vld [vmem:[#allocation6 + $0xa0] ss:$40 sps:$4 sm:$0xff]  }
 0x52e   : > { %v8747_v5 = vmax.f32 %v8745_v39, %v8746_v42  ;;  %v19797_v13 = vadd.f32 %v19691_v41, %v8118_v40  ;;  %v8119_v15 = vmul.f32 %v19671_v60, %v15279_v24  ;;  %v9044_v26 = vsel %vm17684_vm12, %v19746_v54, %v9043_v10  ;;  %9109 = vst [vmem:[#allocation6 + $0xf8] sm:$0xf] %v9096_v45 }
 0x52f   : > { %v17029_v62 = vpop.eup %17028  ;;  %v8748_v38 = vsel %vm8649_vm0, %v8576_v6, -inf  ;;  %v8358_v52 = vmul.f32 1.442695, %v8274_v0  ;;  %9082 = vst [vmem:[#allocation6 + $0xcc] sm:$0xf] %v9044_v26  ;;  %v9045_v49 = vrot.slane %v9043_v10, 4 }
 0x530   : > { %v9046_v16 = vrot.slane %v19791_v4, 6  ;;  %v8749_v51 = vmax.f32 %v8747_v5, %v8748_v38  ;;  %v14306_v59 = vadd.f32 -1.0, %v17029_v62  ;;  %v8275_v21 = vmin.f32 %v19797_v13, 0.0  ;;  %v19841_v10 = vld [vmem:[#allocation3 + $0x14] sm:$0xf] }
 0x531   : > { %v8016_v33 = vpop.f32.mrb[72].mxu1  ;;  %v9149_v36 = vrot.slane %v9147_v22, 4  ;;  %17034 = vpow2.f32 %v8358_v52  ;;  %v19809_v54 = vadd.f32 %v19691_v41, %v8119_v15  ;;  %vm8221_vm3 = vcmp.gt.f32.partialorder %v19741_v17, 0.0 }
 0x532   : > { %v15280_v50 = vadd.f32 %v8016_v33, %v19169_v1  ;;  %v8018_v47 = vpop.f32.mrb[73].mxu1  ;;  %v9047_v57 = vsel %vm17684_vm12, %v9045_v49, %v9046_v16  ;;  %v17031_v58 = vpop.eup %17030  ;;  %v8863_v30 = vcombine.low %v8744_v12, %v8749_v51  ;;  %v8475_v19 = vsel %vm8220_vm2, %v19726_v31, %v14306_v59 }
 0x533   : > { %v8360_v8 = vmul.f32 1.442695, %v8275_v21  ;;  %v8019_v22 = vpop.f32.mrb[74].mxu1  ;;  %9083 = vst [vmem:[#allocation6 + $0xf4] sm:$0xf] %v9047_v57  ;;  %v8577_v14 = vcombine.high %v8475_v19, %v8475_v19  ;;  %v8750_v1 = vsel %vm8649_vm0, %v8475_v19, -inf }
 0x534   : > { %v14307_v11 = vadd.f32 -1.0, %v17031_v58  ;;  %vm8222_vm4 = vcmp.gt.f32.partialorder %v19765_v9, 0.0  ;;  %v8021_v29 = vpop.f32.mrb[75].mxu1  ;;  %v14805_v43 = vpack.c.bf16 %v8863_v30, %v8862_v48  ;;  %v8276_v31 = vmin.f32 %v19809_v54, 0.0  ;;  %v9206_v58 = vld [vmem:[#allocation3 + $0x8] sm:$0xf] }
 0x535   : > { %17036 = vpow2.f32 %v8360_v8  ;;  %v8120_v37 = vmul.f32 %v19671_v60, %v15280_v50  ;;  %v8751_v23 = vsel %vm8649_vm0, %v8577_v14, -inf  ;;  %v15281_v56 = vadd.f32 %v8019_v22, %v19171_v63  ;;  %9219 = vst [vmem:[#allocation6 + $0x10] sm:$0xf] %v9206_v58 }
 0x536   : > { %v8476_v35 = vsel %vm8221_vm3, %v19741_v17, %v14307_v11  ;;  %v9150_v44 = vrot.slane %v9119_v28, 6  ;;  %14855 = vst [vmem:[#allocation3 + $0x20] sm:$0xff] %v14805_v43   ;;  %v8752_v46 = vmax.f32 %v8750_v1, %v8751_v23  ;;  %v8362_v55 = vmul.f32 1.442695, %v8276_v31  ;;  %v16413_v7 = vld [vmem:[#allocation6 + $0xa4] ss:$40 sps:$4 sm:$0xff]  }
 0x537   : > { %v17033_v2 = vpop.eup %17032  ;;  %v8578_v12 = vcombine.high %v8476_v35, %v8476_v35  ;;  %v8753_v40 = vsel %vm8649_vm0, %v8476_v35, -inf  ;;  %v19832_v24 = vadd.f32 %v19691_v41, %v8120_v37  ;;  %v8121_v3 = vmul.f32 %v19671_v60, %v15281_v56  ;;  %10642 = vmatprep.mubr.bf16.mxu0 %v16413_v7 }
 0x538   : > { %v14308_v48 = vadd.f32 -1.0, %v17033_v2  ;;  %v9151_v17 = vsel %vm17684_vm12, %v9149_v36, %v9150_v44  ;;  %v19837_v63 = vmax.f32 %v8752_v46, %v8753_v40  ;;  %vm8223_vm5 = vcmp.gt.f32.partialorder %v19783_v27, 0.0  ;;  %10643 = vmatmul.mubr.bf16.gmra.mrb[168].mxu0 %v16415_v53 }
 0x539   : > { %vm8224_vm6 = vcmp.gt.f32.partialorder %v19797_v13, 0.0  ;;  %17038 = vpow2.f32 %v8362_v55  ;;  %v8024_v39 = vpop.f32.mrb[76].mxu1  ;;  %9195 = vst [vmem:[#allocation6 + $0x5c] sm:$0xf] %v9151_v17  ;;  %v8277_v42 = vmin.f32 %v19832_v24, 0.0  ;;  %v19848_v0 = vadd.f32 %v19691_v41, %v8121_v3 }
 0x53a   : > { %v8477_v6 = vsel %vm8222_vm4, %v19765_v9, %v14308_v48  ;;  %v8026_v45 = vpop.f32.mrb[77].mxu1  ;;  %v9152_v5 = vrot.slane %v9150_v44, 4  ;;  %v8755_v26 = vsel %vm8649_vm0, %v8578_v12, -inf  ;;  %v15282_v38 = vadd.f32 %v8024_v39, %v19173_v34 }
 0x53b   : > { %v8579_v15 = vcombine.high %v8477_v6, %v8477_v6  ;;  %v8756_v62 = vsel %vm8649_vm0, %v8477_v6, -inf  ;;  %v8027_v52 = vpop.f32.mrb[78].mxu1  ;;  %v17035_v49 = vpop.eup %17034  ;;  %v8364_v59 = vmul.f32 1.442695, %v8277_v42  ;;  %v8278_v9 = vmin.f32 %v19848_v0, 0.0 }
 0x53c   : > { %v8757_v51 = vmax.f32 %v8755_v26, %v8756_v62  ;;  %v8029_v21 = vpop.f32.mrb[79].mxu1  ;;  %v9153_v33 = vrot.slane %v19841_v10, 6  ;;  %v14309_v50 = vadd.f32 -1.0, %v17035_v49  ;;  %v8122_v47 = vmul.f32 %v19671_v60, %v15282_v38  ;;  %v9207_v6 = vld [vmem:[#allocation3 + $0xc] sm:$0xf] }
 0x53d   : > { %v8758_v36 = vsel %vm8649_vm0, %v8579_v15, -inf  ;;  %v15283_v57 = vadd.f32 %v8027_v52, %v19175_v32  ;;  %17040 = vpow2.f32 %v8364_v59  ;;  %v8366_v34 = vmul.f32 1.442695, %v8278_v9  ;;  %v9008_v19 = vld [vmem:[#allocation3 + $0x20] sm:$0xf] }
 0x53e   : > { %v19858_v30 = vmax.f32 %v8757_v51, %v8758_v36  ;;  %v8982_v8 = vld [vmem:[#allocation3 + $0x20] sm:$0xf]  ;;  %v9154_v22 = vsel %vm17684_vm12, %v9152_v5, %v9153_v33  ;;  %v8478_v14 = vsel %vm8223_vm5, %v19783_v27, %v14309_v50  ;;  %v19868_v32 = vadd.f32 %v19691_v41, %v8122_v47  ;;  %v8983_v29 = vld [vmem:[#allocation3 + $0x24] sm:$0xf]  ;;  %9220 = vst [vmem:[#allocation6 + $0x38] sm:$0xf] %v9207_v6 }
 0x53f   : > { %v17037_v28 = vpop.eup %17036  ;;  %v8123_v1 = vmul.f32 %v19671_v60, %v15283_v57  ;;  %v9049_v11 = vrot.slane %v9008_v19, 6  ;;  %8995 = vst [vmem:[#allocation6 + $0x140] sm:$0xf] %v8982_v8  ;;  %9196 = vst [vmem:[#allocation6 + $0x84] sm:$0xf] %v9154_v22  ;;  %v8580_v31 = vcombine.high %v8478_v14, %v8478_v14  ;;  %v9048_v23 = vrot.slane %v9046_v16, 4 }
 0x540   : > { %v8864_v43 = vcombine.low %v19837_v63, %v19858_v30  ;;  %v14310_v37 = vadd.f32 -1.0, %v17037_v28  ;;  %8996 = vst [vmem:[#allocation6 + $0x168] sm:$0xf] %v8983_v29  ;;  %v9097_v35 = vld [vmem:[#allocation3 + $0x20] sm:$0xf]  ;;  %v8760_v27 = vsel %vm8649_vm0, %v8478_v14, -inf  ;;  %17042 = vpow2.f32 %v8366_v34 }
 0x541   : > { %v8279_v56 = vmin.f32 %v19868_v32, 0.0  ;;  %v19878_v44 = vadd.f32 %v19691_v41, %v8123_v1  ;;  %v8032_v2 = vpop.f32.mrb[80].mxu1  ;;  %9110 = vst [vmem:[#allocation6 + $0x120] sm:$0xf] %v9097_v35  ;;  %v8761_v46 = vsel %vm8649_vm0, %v8580_v31, -inf  ;;  %v9050_v40 = vsel %vm17684_vm12, %v9048_v23, %v9049_v11 }
 0x542   : > { %v8479_v12 = vsel %vm8224_vm6, %v19797_v13, %v14310_v37  ;;  %v15284_v4 = vadd.f32 %v8032_v2, %v19177_v18  ;;  %v8034_v16 = vpop.f32.mrb[81].mxu1  ;;  %v9098_v55 = vld [vmem:[#allocation3 + $0x24] sm:$0xf]  ;;  %v8762_v48 = vmax.f32 %v8760_v27, %v8761_v46  ;;  %9084 = vst [vmem:[#allocation6 + $0x11c] sm:$0xf] %v9050_v40  ;;  %vm8225_vm7 = vcmp.gt.f32.partialorder %v19809_v54, 0.0 }
 0x543   : > { %v17039_v7 = vpop.eup %17038  ;;  %v8581_v3 = vcombine.high %v8479_v12, %v8479_v12  ;;  %v8763_v53 = vsel %vm8649_vm0, %v8479_v12, -inf  ;;  %v8368_v17 = vmul.f32 1.442695, %v8279_v56  ;;  %v8035_v39 = vpop.f32.mrb[82].mxu1  ;;  %9111 = vst [vmem:[#allocation6 + $0x148] sm:$0xf] %v9098_v55 }
 0x544   : > { %v14311_v13 = vadd.f32 -1.0, %v17039_v7  ;;  %v8280_v18 = vmin.f32 %v19878_v44, 0.0  ;;  %v8124_v42 = vmul.f32 %v19671_v60, %v15284_v4  ;;  %v8037_v45 = vpop.f32.mrb[83].mxu1  ;;  %v19891_v5 = vld [vmem:[#allocation3 + $0x24] sm:$0xf]  ;;  %v8764_v15 = vmax.f32 %v8762_v48, %v8763_v53  ;;  %v21268_v40 = vld [vmem:[#allocation8_spill] sm:$0xff] }
 0x545   : > { %v8765_v26 = vsel %vm8649_vm0, %v8581_v3, -inf  ;;  %17044 = vpow2.f32 %v8368_v17  ;;  %v15285_v62 = vadd.f32 %v8035_v39, %v19179_v61  ;;  %v9051_v51 = vrot.slane %v9049_v11, 4  ;;  %v9208_v50 = vld [vmem:[#allocation3 + $0x10] sm:$0xf]  ;;  %v16418_v27 = vld [vmem:[#allocation6 + $0xf0] ss:$40 sps:$4 sm:$0xff]  }
 0x546   : > { %v8480_v38 = vsel %vm8225_vm7, %v19809_v54, %v14311_v13  ;;  %v8370_v52 = vmul.f32 1.442695, %v8280_v18  ;;  %v19897_v49 = vadd.f32 %v19691_v41, %v8124_v42  ;;  %v9052_v36 = vrot.slane %v19891_v5, 6  ;;  %v9209_v54 = vld [vmem:[#allocation3 + $0x14] sm:$0xf] }
 0x547   : > { %v8582_v59 = vcombine.high %v8480_v38, %v8480_v38  ;;  %v8766_v9 = vsel %vm8649_vm0, %v8480_v38, -inf  ;;  %v8125_v21 = vmul.f32 %v19671_v60, %v15285_v62  ;;  %v17041_v47 = vpop.eup %17040  ;;  %vm8226_vm8 = vcmp.gt.f32.partialorder %v19832_v24, 0.0  ;;  %9221 = vst [vmem:[#allocation6 + $0x60] sm:$0xf] %v9208_v50  ;;  %9222 = vst [vmem:[#allocation6 + $0x88] sm:$0xf] %v9209_v54 }
 0x548   : > { %v8767_v57 = vmax.f32 %v8765_v26, %v8766_v9  ;;  %17046 = vpow2.f32 %v8370_v52  ;;  %v8281_v61 = vmin.f32 %v19897_v49, 0.0  ;;  %v14312_v34 = vadd.f32 -1.0, %v17041_v47  ;;  %v9210_v12 = vld [vmem:[#allocation3 + $0x18] sm:$0xf]  ;;  %v9211_v55 = vld [vmem:[#allocation3 + $0x1c] sm:$0xf] }
 0x549   : > { %v8768_v58 = vsel %vm8649_vm0, %v8582_v59, -inf  ;;  %v19906_v19 = vadd.f32 %v19691_v41, %v8125_v21  ;;  %v8040_v8 = vpop.f32.mrb[84].mxu1  ;;  %v9053_v22 = vsel %vm17684_vm12, %v9051_v51, %v9052_v36  ;;  %v16416_v29 = vld [vmem:[#allocation6 + $0xf4] ss:$40 sps:$4 sm:$0xff]   ;;  %vm8227_vm9 = vcmp.gt.f32.partialorder %v19848_v0, 0.0 }
 0x54a   : > { %v8769_v28 = vmax.f32 %v8767_v57, %v8768_v58  ;;  %v8372_v14 = vmul.f32 1.442695, %v8281_v61  ;;  %v15286_v1 = vadd.f32 %v8040_v8, %v19181_v25  ;;  %v8042_v11 = vpop.f32.mrb[85].mxu1  ;;  %9085 = vst [vmem:[#allocation6 + $0x144] sm:$0xf] %v9053_v22  ;;  %v17043_v31 = vpop.eup %17042  ;;  %v8481_v37 = vsel %vm8226_vm8, %v19832_v24, %v14312_v34  ;;  %10650 = vmatprep.mubr.bf16.mxu0 %v16416_v29 }
 0x54b   : > { %v8282_v23 = vmin.f32 %v19906_v19, 0.0  ;;  %v8043_v35 = vpop.f32.mrb[86].mxu1  ;;  %v8583_v2 = vcombine.high %v8481_v37, %v8481_v37  ;;  %v14313_v46 = vadd.f32 -1.0, %v17043_v31  ;;  %vm8228_vm10 = vcmp.gt.f32.partialorder %v19868_v32, 0.0  ;;  %10651 = vmatmul.mubr.bf16.gmra.mrb[172].mxu0 %v16418_v27  ;;  %9223 = vst [vmem:[#allocation6 + $0xb0] sm:$0xf] %v9210_v12 }
 0x54c   : > { %v8865_v56 = vcombine.low %v8764_v15, %v8769_v28  ;;  %v8045_v25 = vpop.f32.mrb[87].mxu1  ;;  %17048 = vpow2.f32 %v8372_v14  ;;  %v8126_v16 = vmul.f32 %v19671_v60, %v15286_v1  ;;  %v15287_v24 = vadd.f32 %v8043_v35, %v21268_v40  ;;  %v19927_v17 = vld [vmem:[#allocation3 + $0x18] sm:$0xf]  ;;  %9224 = vst [vmem:[#allocation6 + $0xd8] sm:$0xf] %v9211_v55  ;;  %v21270_v28 = vld [vmem:[#allocation10_spill] sm:$0xff] }
 0x54d   : > { %v8374_v4 = vmul.f32 1.442695, %v8282_v23  ;;  %v8770_v48 = vsel %vm8649_vm0, %v8481_v37, -inf  ;;  %v8771_v3 = vsel %vm8649_vm0, %v8583_v2, -inf  ;;  %v8482_v53 = vsel %vm8227_vm9, %v19848_v0, %v14313_v46  ;;  %v9212_v1 = vld [vmem:[#allocation3 + $0x20] sm:$0xf] }
 0x54e   : > { %v14810_v7 = vpack.c.bf16 %v8865_v56, %v8864_v43  ;;  %v8772_v6 = vmax.f32 %v8770_v48, %v8771_v3  ;;  %v8584_v13 = vcombine.high %v8482_v53, %v8482_v53  ;;  %vm8229_vm11 = vcmp.gt.f32.partialorder %v19878_v44, 0.0  ;;  %v9213_v11 = vld [vmem:[#allocation3 + $0x24] sm:$0xf]  ;;  %v19964_v10 = vld [vmem:[#allocation3 + $0x1c] sm:$0xf] }
 0x54f   : > { %v17045_v39 = vpop.eup %17044  ;;  %17050 = vpow2.f32 %v8374_v4  ;;  %v8773_v63 = vsel %vm8649_vm0, %v8482_v53, -inf  ;;  %v19932_v43 = vadd.f32 %v19691_v41, %v8126_v16  ;;  %v8127_v18 = vmul.f32 %v19671_v60, %v15287_v24  ;;  %9225 = vst [vmem:[#allocation6 + $0x100] sm:$0xf] %v9212_v1  ;;  %9226 = vst [vmem:[#allocation6 + $0x128] sm:$0xf] %v9213_v11 }
 0x550   : > { %14856 = vst [vmem:[#allocation3 + $0x28] sm:$0xff] %v14810_v7   ;;  %v14314_v30 = vadd.f32 -1.0, %v17045_v39  ;;  %v19935_v42 = vmax.f32 %v8772_v6, %v8773_v63  ;;  %vm8230_vm13 = vcmp.gt.f32.partialorder %v19897_v49, 0.0  ;;  %v19938_v45 = vrot.slane %v9052_v36, 4  ;;  %v21269_v36 = vld [vmem:[#allocation9_spill] sm:$0xff]  ;;  %v21271_v6 = vld [vmem:[#allocation11_spill] sm:$0xff] }
 0x551   : > { %v8048_v0 = vpop.f32.mrb[88].mxu1  ;;  %v9156_v5 = vrot.slane %v19927_v17, 6  ;;  %v8775_v62 = vsel %vm8649_vm0, %v8584_v13, -inf  ;;  %v8283_v38 = vmin.f32 %v19932_v43, 0.0  ;;  %v19947_v52 = vadd.f32 %v19691_v41, %v8127_v18 }
 0x552   : > { %v17047_v15 = vpop.eup %17046  ;;  %v8483_v26 = vsel %vm8228_vm10, %v19868_v32, %v14314_v30  ;;  %v8050_v51 = vpop.f32.mrb[89].mxu1  ;;  %vm8231_vm14 = vcmp.gt.f32.partialorder %v19906_v19, 0.0  ;;  %v15288_v50 = vadd.f32 %v8048_v0, %v21269_v36  ;;  %v9155_v58 = vrot.slane %v9153_v33, 4 }
 0x553   : > { %v8585_v59 = vcombine.high %v8483_v26, %v8483_v26  ;;  %v8776_v9 = vsel %vm8649_vm0, %v8483_v26, -inf  ;;  %v14315_v21 = vadd.f32 -1.0, %v17047_v15  ;;  %v8051_v47 = vpop.f32.mrb[90].mxu1  ;;  %v8376_v61 = vmul.f32 1.442695, %v8283_v38 }
 0x554   : > { %v8777_v57 = vmax.f32 %v8775_v62, %v8776_v9  ;;  %v8284_v32 = vmin.f32 %v19947_v52, 0.0  ;;  %v8053_v54 = vpop.f32.mrb[91].mxu1  ;;  %v8128_v22 = vmul.f32 %v19671_v60, %v15288_v50  ;;  %v15289_v14 = vadd.f32 %v8051_v47, %v21270_v28 }
 0x555   : > { %v8778_v34 = vsel %vm8649_vm0, %v8585_v59, -inf  ;;  %v8484_v8 = vsel %vm8229_vm11, %v19878_v44, %v14315_v21  ;;  %17052 = vpow2.f32 %v8376_v61  ;;  %v9157_v2 = vsel %vm17684_vm12, %v9155_v58, %v9156_v5 }
 0x556   : > { %v19961_v29 = vmax.f32 %v8777_v57, %v8778_v34  ;;  %v8586_v31 = vcombine.high %v8484_v8, %v8484_v8  ;;  %v8780_v37 = vsel %vm8649_vm0, %v8484_v8, -inf  ;;  %v17049_v33 = vpop.eup %17048  ;;  %v8378_v23 = vmul.f32 1.442695, %v8284_v32  ;;  %9197 = vst [vmem:[#allocation6 + $0xac] sm:$0xf] %v9157_v2  ;;  %v21272_v32 = vld [vmem:[#allocation12_spill] sm:$0xff] }
 0x557   : > { %v19967_v44 = vadd.f32 %v19691_v41, %v8128_v22  ;;  %v8129_v35 = vmul.f32 %v19671_v60, %v15289_v14  ;;  %v9010_v27 = vld [vmem:[#allocation3 + $0x28] sm:$0xf]  ;;  %v14316_v12 = vadd.f32 -1.0, %v17049_v33  ;;  %v8985_v16 = vld [vmem:[#allocation3 + $0x2c] sm:$0xf]  ;;  %v9159_v48 = vrot.slane %v19964_v10, 6 }
 0x558   : > { %v8984_v56 = vld [vmem:[#allocation3 + $0x28] sm:$0xf]  ;;  %v8866_v46 = vcombine.low %v19935_v42, %v19961_v29  ;;  %v8781_v25 = vsel %vm8649_vm0, %v8586_v31, -inf  ;;  %v9055_v4 = vrot.slane %v9010_v27, 6  ;;  %17054 = vpow2.f32 %v8378_v23  ;;  %8998 = vst [vmem:[#allocation6 + $0x1b8] sm:$0xf] %v8985_v16 }
 0x559   : > { %8997 = vst [vmem:[#allocation6 + $0x190] sm:$0xf] %v8984_v56  ;;  %v17051_v40 = vpop.eup %17050  ;;  %v8782_v24 = vmax.f32 %v8780_v37, %v8781_v25  ;;  %v8285_v55 = vmin.f32 %v19967_v44, 0.0  ;;  %v8056_v7 = vpop.f32.mrb[92].mxu1  ;;  %v8485_v3 = vsel %vm8230_vm13, %v19897_v49, %v14316_v12  ;;  %v19983_v39 = vadd.f32 %v19691_v41, %v8129_v35  ;;  %v9099_v30 = vld [vmem:[#allocation3 + $0x28] sm:$0xf] }
 0x55a   : > { %v14317_v53 = vadd.f32 -1.0, %v17051_v40  ;;  %v15290_v13 = vadd.f32 %v8056_v7, %v21271_v6  ;;  %v8058_v63 = vpop.f32.mrb[93].mxu1  ;;  %v8587_v18 = vcombine.high %v8485_v3, %v8485_v3  ;;  %v8783_v0 = vsel %vm8649_vm0, %v8485_v3, -inf  ;;  %9112 = vst [vmem:[#allocation6 + $0x170] sm:$0xf] %v9099_v30  ;;  %v21273_v16 = vld [vmem:[#allocation13_spill] sm:$0xff] }
 0x55b   : > { %v8380_v15 = vmul.f32 1.442695, %v8285_v55  ;;  %v8059_v26 = vpop.f32.mrb[94].mxu1  ;;  %v9056_v62 = vsel %vm17684_vm12, %v19938_v45, %v9055_v4  ;;  %v8784_v38 = vmax.f32 %v8782_v24, %v8783_v0  ;;  %v8286_v51 = vmin.f32 %v19983_v39, 0.0  ;;  %v19994_v9 = vld [vmem:[#allocation3 + $0x2c] sm:$0xf] }
 0x55c   : > { %v8486_v49 = vsel %vm8231_vm14, %v19906_v19, %v14317_v53  ;;  %v8061_v59 = vpop.f32.mrb[95].mxu1  ;;  %9086 = vst [vmem:[#allocation6 + $0x16c] sm:$0xf] %v9056_v62  ;;  %v9100_v21 = vld [vmem:[#allocation3 + $0x2c] sm:$0xf]  ;;  %v8785_v50 = vsel %vm8649_vm0, %v8587_v18, -inf  ;;  %v8130_v19 = vmul.f32 %v19671_v60, %v15290_v13  ;;  %v15291_v54 = vadd.f32 %v8059_v26, %v21272_v32 }
 0x55d   : > { %v8588_v36 = vcombine.high %v8486_v49, %v8486_v49  ;;  %v8786_v47 = vsel %vm8649_vm0, %v8486_v49, -inf  ;;  %17056 = vpow2.f32 %v8380_v15  ;;  %v19998_v45 = vld [vmem:[#allocation3 + $0x20] sm:$0xf]  ;;  %9113 = vst [vmem:[#allocation6 + $0x198] sm:$0xf] %v9100_v21  ;;  %v9057_v22 = vrot.slane %v9055_v4, 4 }
 0x55e   : > { %v8787_v57 = vmax.f32 %v8785_v50, %v8786_v47  ;;  %v8382_v61 = vmul.f32 1.442695, %v8286_v51  ;;  %v9214_v58 = vld [vmem:[#allocation3 + $0x28] sm:$0xf]  ;;  %v9215_v34 = vld [vmem:[#allocation3 + $0x2c] sm:$0xf]  ;;  %v20007_v31 = vadd.f32 %v19691_v41, %v8130_v19  ;;  %v8131_v37 = vmul.f32 %v19671_v60, %v15291_v54 }
 0x55f   : > { %v8788_v8 = vsel %vm8649_vm0, %v8588_v36, -inf  ;;  %v9058_v28 = vrot.slane %v19994_v9, 6  ;;  %v9158_v14 = vrot.slane %v9156_v5, 4  ;;  %9227 = vst [vmem:[#allocation6 + $0x150] sm:$0xf] %v9214_v58  ;;  %v17053_v1 = vpop.eup %17052  ;;  %v9162_v5 = vrot.slane %v19998_v45, 6 }
 0x560   : > { %9228 = vst [vmem:[#allocation6 + $0x178] sm:$0xf] %v9215_v34  ;;  %v8789_v11 = vmax.f32 %v8787_v57, %v8788_v8  ;;  %17058 = vpow2.f32 %v8382_v61  ;;  %v14318_v33 = vadd.f32 -1.0, %v17053_v1  ;;  %vm8232_vm15 = vcmp.gt.f32.partialorder %v19932_v43, 0.0  ;;  %v16427_v7 = vld [vmem:[#allocation6 + $0x140] ss:$40 sps:$4 sm:$0xff]  }
 0x561   : > { %v8064_v23 = vpop.f32.mrb[96].mxu1  ;;  %v9059_v35 = vsel %vm17684_vm12, %v9057_v22, %v9058_v28  ;;  %v9160_v17 = vsel %vm17684_vm12, %v9158_v14, %v9159_v48  ;;  %v8287_v56 = vmin.f32 %v20007_v31, 0.0  ;;  %v20022_v2 = vadd.f32 %v19691_v41, %v8131_v37  ;;  %v21274_v42 = vld [vmem:[#allocation14_spill] sm:$0xff]  ;;  %v9124_v32 = vld [vmem:[#allocation3 + $0x24] sm:$0xf] }
 0x562   : > { %v8867_v27 = vcombine.low %v8784_v38, %v8789_v11  ;;  %v8066_v25 = vpop.f32.mrb[97].mxu1  ;;  %9087 = vst [vmem:[#allocation6 + $0x194] sm:$0xf] %v9059_v35  ;;  %9198 = vst [vmem:[#allocation6 + $0xd4] sm:$0xf] %v9160_v17  ;;  %v17055_v12 = vpop.eup %17054  ;;  %v8487_v4 = vsel %vm8232_vm15, %v19932_v43, %v14318_v33  ;;  %v15292_v40 = vadd.f32 %v8064_v23, %v21273_v16  ;;  %vm8233_vm1 = vcmp.gt.f32.partialorder %v19947_v52, 0.0 }
 0x563   : > { %v16425_v24 = vld [vmem:[#allocation6 + $0x144] ss:$40 sps:$4 sm:$0xff]   ;;  %v8067_v55 = vpop.f32.mrb[98].mxu1  ;;  %v8589_v53 = vcombine.high %v8487_v4, %v8487_v4  ;;  %v14319_v6 = vadd.f32 -1.0, %v17055_v12  ;;  %v8790_v63 = vsel %vm8649_vm0, %v8487_v4, -inf  ;;  %v8288_v18 = vmin.f32 %v20022_v2, 0.0 }
 0x564   : > { %v14815_v3 = vpack.c.bf16 %v8867_v27, %v8866_v46  ;;  %v8069_v13 = vpop.f32.mrb[99].mxu1  ;;  %v8384_v30 = vmul.f32 1.442695, %v8287_v56  ;;  %v8132_v43 = vmul.f32 %v19671_v60, %v15292_v40  ;;  %10658 = vmatprep.mubr.bf16.mxu0 %v16425_v24  ;;  %v15293_v29 = vadd.f32 %v8067_v55, %v21274_v42  ;;  %v9322_v26 = vld [vmem:[#allocation3 + $0xc] sm:$0xf] }
 0x565   : > { %v8791_v0 = vsel %vm8649_vm0, %v8589_v53, -inf  ;;  %v8488_v15 = vsel %vm8233_vm1, %v19947_v52, %v14319_v6  ;;  %10659 = vmatmul.mubr.bf16.gmra.mrb[176].mxu0 %v16427_v7  ;;  %v9161_v46 = vrot.slane %v9159_v48, 4  ;;  %9335 = vst [vmem:[#allocation6 + $0x18] sm:$0xf] %v9322_v26  ;;  %v8386_v21 = vmul.f32 1.442695, %v8288_v18 }
 0x566   : > { %14857 = vst [vmem:[#allocation3 + $0x30] sm:$0xff] %v14815_v3   ;;  %v8792_v38 = vmax.f32 %v8790_v63, %v8791_v0  ;;  %v8590_v49 = vcombine.high %v8488_v15, %v8488_v15  ;;  %v8793_v51 = vsel %vm8649_vm0, %v8488_v15, -inf  ;;  %17060 = vpow2.f32 %v8384_v30  ;;  %v9125_v14 = vld [vmem:[#allocation3 + $0x28] sm:$0xf]  ;;  %v20061_v35 = vld [vmem:[#allocation3 + $0x2c] sm:$0xf] }
 0x567   : > { %v17057_v62 = vpop.eup %17056  ;;  %v20040_v36 = vadd.f32 %v19691_v41, %v8132_v43  ;;  %v8133_v52 = vmul.f32 %v19671_v60, %v15293_v29  ;;  %vm8234_vm2 = vcmp.gt.f32.partialorder %v19967_v44, 0.0  ;;  %vm8235_vm3 = vcmp.gt.f32.partialorder %v19983_v39, 0.0  ;;  %v17135_v63 = vld [vmem:[%s21256_s6 + $0x1] ss:$0 sm:$0xff] }
 0x568   : > { %v14320_v59 = vadd.f32 -1.0, %v17057_v62  ;;  %v20043_v50 = vmax.f32 %v8792_v38, %v8793_v51  ;;  %v9163_v48 = vsel %vm17684_vm12, %v9161_v46, %v9162_v5  ;;  %v8795_v61 = vsel %vm8649_vm0, %v8590_v49, -inf }
 0x569   : > { %v8072_v10 = vpop.f32.mrb[100].mxu1  ;;  %17062 = vpow2.f32 %v8386_v21  ;;  %v8289_v60 = vmin.f32 %v20040_v36, 0.0  ;;  %9199 = vst [vmem:[#allocation6 + $0xfc] sm:$0xf] %v9163_v48  ;;  %v20056_v8 = vadd.f32 %v19691_v41, %v8133_v52  ;;  %v9060_v23 = vrot.slane %v9058_v28, 4 }
 0x56a   : > { %v17059_v47 = vpop.eup %17058  ;;  %v8489_v57 = vsel %vm8234_vm2, %v19967_v44, %v14320_v59  ;;  %v8074_v19 = vpop.f32.mrb[101].mxu1  ;;  %v21275_v44 = vld [vmem:[#allocation15_spill] sm:$0xff]  ;;  %vm8236_vm4 = vcmp.gt.f32.partialorder %v20007_v31, 0.0  ;;  %vm8237_vm5 = vcmp.gt.f32.partialorder %v20022_v2, 0.0  ;;  %v9164_v28 = vrot.slane %v9162_v5, 4 }
 0x56b   : > { %v8591_v54 = vcombine.high %v8489_v57, %v8489_v57  ;;  %v8796_v58 = vsel %vm8649_vm0, %v8489_v57, -inf  ;;  %v14321_v34 = vadd.f32 -1.0, %v17059_v47  ;;  %v8075_v22 = vpop.f32.mrb[102].mxu1  ;;  %v8388_v11 = vmul.f32 1.442695, %v8289_v60 }
 0x56c   : > { %v8797_v1 = vmax.f32 %v8795_v61, %v8796_v58  ;;  %v15294_v37 = vadd.f32 %v8072_v10, %v21275_v44  ;;  %v8076_v33 = vpop.f32.mrb[103].mxu1  ;;  %v8290_v41 = vmin.f32 %v20056_v8, 0.0  ;;  %v9165_v55 = vrot.slane %v9124_v32, 6  ;;  %v9232_v57 = vld [vmem:[#allocation3 + $0x8] sm:$0xc] }
 0x56d   : > { %v8798_v17 = vsel %vm8649_vm0, %v8591_v54, -inf  ;;  %v8490_v27 = vsel %vm8235_vm3, %v19983_v39, %v14321_v34  ;;  %v9012_v56 = vld [vmem:[#allocation3 + $0x30] sm:$0xf]  ;;  %17064 = vpow2.f32 %v8388_v11  ;;  %v17134_v39 = vld [vmem:[%s21255_s5 + $0x1] ss:$0 sm:$0xff]  ;;  %v9168_v53 = vrot.slane %v9125_v14, 6 }
 0x56e   : > { %v20069_v25 = vmax.f32 %v8797_v1, %v8798_v17  ;;  %v8592_v12 = vcombine.high %v8490_v27, %v8490_v27  ;;  %v8986_v9 = vld [vmem:[#allocation3 + $0x30] sm:$0x3]  ;;  %v8390_v16 = vmul.f32 1.442695, %v8290_v41  ;;  %v8134_v40 = vmul.f32 %v17134_v39, %v15294_v37  ;;  %v9128_v43 = vld [vmem:[#allocation3 + $0x34] sm:$0xf] }
 0x56f   : > { %v9101_v4 = vld [vmem:[#allocation3 + $0x30] sm:$0xf]  ;;  %v9061_v24 = vrot.slane %v9012_v56, 6  ;;  %8999 = vst [vmem:[#allocation6 + $0x1e0] sm:$0x3] %v8986_v9  ;;  %v9171_v45 = vrot.slane %v20061_v35, 6  ;;  %v9166_v29 = vsel %vm17684_vm12, %v9164_v28, %v9165_v55 }
 0x570   : > { %9114 = vst [vmem:[#allocation6 + $0x1c0] sm:$0xf] %v9101_v4  ;;  %v8868_v7 = vcombine.low %v20043_v50, %v20069_v25  ;;  %v8801_v3 = vsel %vm8649_vm0, %v8592_v12, -inf  ;;  %v9127_v5 = vld [vmem:[#allocation3 + $0x30] sm:$0xf]  ;;  %v17061_v6 = vpop.eup %17060  ;;  %v8800_v13 = vsel %vm8649_vm0, %v8490_v27, -inf  ;;  %17066 = vpow2.f32 %v8390_v16 }
 0x571   : > { %v20085_v30 = vadd.f32 %v17135_v63, %v8134_v40  ;;  %v9062_v18 = vsel %vm17684_vm12, %v9060_v23, %v9061_v24  ;;  %v9102_v0 = vld [vmem:[#allocation3 + $0x34] sm:$0x3]  ;;  %v14322_v15 = vadd.f32 -1.0, %v17061_v6  ;;  %v9063_v42 = vrot.slane %v9061_v24, 4  ;;  %v9216_v26 = vld [vmem:[#allocation3 + $0x30] sm:$0xf] }
 0x572   : > { %9088 = vst [vmem:[#allocation6 + $0x1bc] sm:$0xf] %v9062_v18  ;;  %v9167_v46 = vrot.slane %v9165_v55, 4  ;;  %9115 = vst [vmem:[#allocation6 + $0x1e8] sm:$0x3] %v9102_v0  ;;  %v8802_v62 = vmax.f32 %v8800_v13, %v8801_v3  ;;  %v9170_v49 = vrot.slane %v9168_v53, 4 }
 0x573   : > { %v8291_v38 = vmin.f32 %v20085_v30, 0.0  ;;  %9200 = vst [vmem:[#allocation6 + $0x124] sm:$0xf] %v9166_v29  ;;  %v9173_v51 = vrot.slane %v9171_v45, 4  ;;  %v9217_v59 = vld [vmem:[#allocation3 + $0x34] sm:$0xf]  ;;  %v17063_v21 = vpop.eup %17062  ;;  %v8491_v52 = vsel %vm8236_vm4, %v20007_v31, %v14322_v15 }
 0x574   : > { %9229 = vst [vmem:[#allocation6 + $0x1a0] sm:$0xf] %v9216_v26  ;;  %9089 = vst [vmem:[#allocation6 + $0x1e4] sm:$0x3] %v9063_v42  ;;  %v9169_v10 = vsel %vm17684_vm12, %v9167_v46, %v9168_v53  ;;  %v9174_v48 = vrot.slane %v9127_v5, 6  ;;  %v9177_v47 = vrot.slane %v9128_v43, 6  ;;  %v8593_v61 = vcombine.high %v8491_v52, %v8491_v52 }
 0x575   : > { %9230 = vst [vmem:[#allocation6 + $0x1c8] sm:$0xf] %v9217_v59  ;;  %v8803_v60 = vsel %vm8649_vm0, %v8491_v52, -inf  ;;  %v14323_v19 = vadd.f32 -1.0, %v17063_v21  ;;  %v8392_v32 = vmul.f32 1.442695, %v8291_v38  ;;  %v9172_v34 = vsel %vm17684_vm12, %v9170_v49, %v9171_v45 }
 0x576   : > { %9201 = vst [vmem:[#allocation6 + $0x14c] sm:$0xf] %v9169_v10  ;;  %v9323_v54 = vld [vmem:[#allocation3 + $0x10] sm:$0xf]  ;;  %v8804_v58 = vmax.f32 %v8802_v62, %v8803_v60  ;;  %v9175_v31 = vsel %vm17684_vm12, %v9173_v51, %v9174_v48  ;;  %v9176_v22 = vrot.slane %v9174_v48, 4  ;;  %v8805_v1 = vsel %vm8649_vm0, %v8593_v61, -inf }
 0x577   : > { %9336 = vst [vmem:[#allocation6 + $0x40] sm:$0xf] %v9323_v54  ;;  %v8492_v14 = vsel %vm8237_vm5, %v20022_v2, %v14323_v19  ;;  %17068 = vpow2.f32 %v8392_v32  ;;  %9202 = vst [vmem:[#allocation6 + $0x174] sm:$0xf] %v9172_v34  ;;  %v9179_v11 = vrot.slane %v9177_v47, 4  ;;  %v17065_v44 = vpop.eup %17064  ;;  %v14346_v27 = vrot.slane %v9232_v57, 10 }
 0x578   : > { %9203 = vst [vmem:[#allocation6 + $0x19c] sm:$0xf] %v9175_v31  ;;  %v8594_v37 = vcombine.high %v8492_v14, %v8492_v14  ;;  %v8806_v33 = vsel %vm8649_vm0, %v8492_v14, -inf  ;;  %v9178_v23 = vsel %vm17684_vm12, %v9176_v22, %v9177_v47  ;;  %v9233_v35 = vld [vmem:[#allocation3 + $0xc] sm:$0xf]  ;;  %v14324_v56 = vadd.f32 -1.0, %v17065_v44 }
 0x579   : > { %v9234_v17 = vld [vmem:[#allocation3 + $0x10] sm:$0xf]  ;;  %v8807_v41 = vmax.f32 %v8805_v1, %v8806_v33  ;;  %v16434_v12 = vld [vmem:[#allocation6 + $0x194] ss:$40 sps:$4 sm:$0xff]   ;;  %v16436_v2 = vld [vmem:[#allocation6 + $0x190] ss:$40 sps:$4 sm:$0xff]  }
 0x57a   : > { %9204 = vst [vmem:[#allocation6 + $0x1c4] sm:$0xf] %v9178_v23  ;;  %9205 = vst [vmem:[#allocation6 + $0x1ec] sm:$0x3] %v9179_v11  ;;  %v8808_v9 = vsel %vm8649_vm0, %v8594_v37, -inf  ;;  %vm8238_vm6 = vcmp.gt.f32.partialorder %v20040_v36, 0.0  ;;  %v17067_v28 = vpop.eup %17066  ;;  %10666 = vmatprep.mubr.bf16.mxu0 %v16434_v12 }
 0x57b   : > { %v8809_v4 = vmax.f32 %v8807_v41, %v8808_v9  ;;  %v8493_v16 = vsel %vm8238_vm6, %v20040_v36, %v14324_v56  ;;  %v9614_v39 = vld [vmem:[#allocation6 + $0x1e0] sm:$0x33]  ;;  %v9260_v40 = vrot.slane %v9233_v35, 6  ;;  %v14325_v55 = vadd.f32 -1.0, %v17067_v28  ;;  %10667 = vmatmul.mubr.bf16.gmra.mrb[180].mxu0 %v16436_v2  ;;  %v9325_v63 = vld [vmem:[#allocation3 + $0x18] sm:$0xf] }
 0x57c   : > { %v8595_v24 = vcombine.high %v8493_v16, %v8493_v16  ;;  %v14410_v3 = vcombine.high %v9614_v39, %v9614_v39  ;;  %v9263_v53 = vrot.slane %v9234_v17, 6  ;;  %v9235_v45 = vld [vmem:[#allocation3 + $0x14] sm:$0xf]  ;;  %vm8239_vm7 = vcmp.gt.f32.partialorder %v20056_v8, 0.0  ;;  %v9236_v15 = vld [vmem:[#allocation3 + $0x18] sm:$0xf] }
 0x57d   : > { %v8869_v5 = vcombine.low %v8804_v58, %v8809_v4  ;;  %v9261_v6 = vsel %vm17684_vm12, %v14346_v27, %v9260_v40  ;;  %v9324_v13 = vld [vmem:[#allocation3 + $0x14] sm:$0xf]  ;;  %v8810_v18 = vsel %vm8649_vm0, %v8493_v16, -inf  ;;  %v8494_v43 = vsel %vm8239_vm7, %v20056_v8, %v14325_v55  ;;  %9338 = vst [vmem:[#allocation6 + $0x90] sm:$0xf] %v9325_v63  ;;  %v16447_v28 = vld [vmem:[%s21253_s3 + $0x100] sm:$0xff]  }
 0x57e   : > { %v8811_v36 = vsel %vm8649_vm0, %v8595_v24, -inf  ;;  %10674 = vmatprep.mubr.bf16.mxu0 %v14410_v3  ;;  %v9262_v0 = vrot.slane %v9260_v40, 4  ;;  %9309 = vst [vmem:[#allocation6 + $0x14] sm:$0xf] %v9261_v6  ;;  %9337 = vst [vmem:[#allocation6 + $0x68] sm:$0xf] %v9324_v13  ;;  %v8596_v46 = vcombine.high %v8494_v43, %v8494_v43  ;;  %v14409_v47 = vcombine.low %v9614_v39, %v9614_v39 }
 0x57f   : > { %v14820_v42 = vpack.c.bf16 %v8869_v5, %v8868_v7  ;;  %v8812_v29 = vmax.f32 %v8810_v18, %v8811_v36  ;;  %v9237_v26 = vld [vmem:[#allocation3 + $0x1c] sm:$0xf]  ;;  %v9238_v62 = vld [vmem:[#allocation3 + $0x20] sm:$0xf]  ;;  %v8813_v38 = vsel %vm8649_vm0, %v8494_v43, -inf  ;;  %vm8240_vm8 = vcmp.gt.f32.partialorder %v20085_v30, 0.0 }
 0x580   : > { %v9264_v8 = vsel %vm17684_vm12, %v9262_v0, %v9263_v53  ;;  %v9265_v49 = vrot.slane %v9263_v53, 4  ;;  %v9239_v51 = vld [vmem:[#allocation3 + $0x24] sm:$0xf]  ;;  %v8815_v50 = vsel %vm8649_vm0, %v8596_v46, -inf  ;;  %v9266_v7 = vrot.slane %v9235_v45, 6 }
 0x581   : > { %v17069_v59 = vpop.eup %17068  ;;  %14858 = vst [vmem:[#allocation3 + $0x38] sm:$0xff] %v14820_v42   ;;  %v20125_v21 = vmax.f32 %v8812_v29, %v8813_v38  ;;  %v16445_v25 = vld [vmem:[#allocation6 + $0xc] ss:$40 sps:$4 sm:$0xff]   ;;  %9310 = vst [vmem:[#allocation6 + $0x3c] sm:$0xf] %v9264_v8  ;;  %v9269_v52 = vrot.slane %v9236_v15, 6 }
 0x582   : > { %v9240_v10 = vld [vmem:[#allocation3 + $0x28] sm:$0xf]  ;;  %v14326_v48 = vadd.f32 -1.0, %v17069_v59  ;;  %v9272_v57 = vrot.slane %v9237_v26, 6  ;;  %v9241_v61 = vld [vmem:[#allocation3 + $0x2c] sm:$0xf]  ;;  %v9267_v32 = vsel %vm17684_vm12, %v9265_v49, %v9266_v7 }
 0x583   : > { %v9438_v60 = vld [vmem:[#allocation3 + $0x10] sm:$0xf]  ;;  %v9439_v19 = vld [vmem:[#allocation3 + $0x14] sm:$0xf]  ;;  %v9268_v54 = vrot.slane %v9266_v7, 4  ;;  %v9271_v58 = vrot.slane %v9269_v52, 4  ;;  %10675 = vmatmul.mubr.bf16.gmra.mrb[184].mxu0 %v14409_v47 }
 0x584   : > { %v9275_v34 = vrot.slane %v9238_v62, 6  ;;  %v9242_v31 = vld [vmem:[#allocation3 + $0x30] sm:$0xf]  ;;  %9451 = vst [vmem:[#allocation6 + $0x20] sm:$0xf] %v9438_v60  ;;  %v8495_v22 = vsel %vm8240_vm8, %v20085_v30, %v14326_v48  ;;  %v9274_v14 = vrot.slane %v9272_v57, 4  ;;  %10714 = vmatprep.mubr.bf16.mxu0 %v16445_v25 }
 0x585   : > { %9452 = vst [vmem:[#allocation6 + $0x48] sm:$0xf] %v9439_v19  ;;  %9311 = vst [vmem:[#allocation6 + $0x64] sm:$0xf] %v9267_v32  ;;  %v9278_v1 = vrot.slane %v9239_v51, 6  ;;  %v9281_v11 = vrot.slane %v9240_v10, 6  ;;  %v8597_v37 = vcombine.high %v8495_v22, %v8495_v22  ;;  %v9270_v23 = vsel %vm17684_vm12, %v9268_v54, %v9269_v52 }
 0x586   : > { %v9326_v44 = vld [vmem:[#allocation3 + $0x1c] sm:$0xf]  ;;  %v8816_v33 = vsel %vm8649_vm0, %v8495_v22, -inf  ;;  %v9273_v35 = vsel %vm17684_vm12, %v9271_v58, %v9272_v57  ;;  %v9243_v17 = vld [vmem:[#allocation3 + $0x34] sm:$0xf]  ;;  %v9276_v41 = vsel %vm17684_vm12, %v9274_v14, %v9275_v34  ;;  %v9277_v56 = vrot.slane %v9275_v34, 4 }
 0x587   : > { %v9327_v27 = vld [vmem:[#allocation3 + $0x20] sm:$0xf]  ;;  %9339 = vst [vmem:[#allocation6 + $0xb8] sm:$0xf] %v9326_v44  ;;  %v8817_v30 = vmax.f32 %v8815_v50, %v8816_v33  ;;  %9312 = vst [vmem:[#allocation6 + $0x8c] sm:$0xf] %v9270_v23 }
 0x588   : > { %9313 = vst [vmem:[#allocation6 + $0xb4] sm:$0xf] %v9273_v35  ;;  %v9280_v12 = vrot.slane %v9278_v1, 4  ;;  %v9348_v2 = vld [vmem:[#allocation3 + $0xc] sm:$0xc]  ;;  %v8818_v9 = vsel %vm8649_vm0, %v8597_v37, -inf  ;;  %v9279_v3 = vsel %vm17684_vm12, %v9277_v56, %v9278_v1 }
 0x589   : > { %9340 = vst [vmem:[#allocation6 + $0xe0] sm:$0xf] %v9327_v27  ;;  %9314 = vst [vmem:[#allocation6 + $0xdc] sm:$0xf] %v9276_v41  ;;  %v9283_v4 = vrot.slane %v9281_v11, 4  ;;  %v9284_v16 = vrot.slane %v9241_v61, 6  ;;  %v8819_v24 = vmax.f32 %v8817_v30, %v8818_v9 }
 0x58a   : > { %v9287_v39 = vrot.slane %v9242_v31, 6  ;;  %v9349_v40 = vld [vmem:[#allocation3 + $0x10] sm:$0xf]  ;;  %v16443_v55 = vld [vmem:[#allocation6 + $0x8] ss:$40 sps:$4 sm:$0xff]   ;;  %v9282_v53 = vsel %vm17684_vm12, %v9280_v12, %v9281_v11  ;;  %v9290_v45 = vrot.slane %v9243_v17, 6 }
 0x58b   : > { %v9350_v5 = vld [vmem:[#allocation3 + $0x14] sm:$0xf]  ;;  %v9351_v6 = vld [vmem:[#allocation3 + $0x18] sm:$0xf]  ;;  %9315 = vst [vmem:[#allocation6 + $0x104] sm:$0xf] %v9279_v3  ;;  %v9285_v13 = vsel %vm17684_vm12, %v9283_v4, %v9284_v16  ;;  %v8870_v0 = vcombine.low %v20125_v21, %v8819_v24  ;;  %10715 = vmatmul.mubr.bf16.vlgmr.msra.gmra.mrb[188].mxu0 %v16443_v55 }
 0x58c   : > { %9316 = vst [vmem:[#allocation6 + $0x12c] sm:$0xf] %v9282_v53  ;;  %v9286_v63 = vrot.slane %v9284_v16, 4  ;;  %v9244_v18 = vld [vmem:[#allocation3 + $0x38] sm:$0xf]  ;;  %v9289_v36 = vrot.slane %v9287_v39, 4  ;;  %15011 = vmatpush3.bf16.msra.mxu0 %v16447_v28 }
 0x58d   : > { %v9218_v43 = vld [vmem:[#allocation3 + $0x38] sm:$0x3]  ;;  %v16448_v15 = vld [vmem:[#allocation6 + $0x5c] ss:$40 sps:$4 sm:$0xff]   ;;  %9317 = vst [vmem:[#allocation6 + $0x154] sm:$0xf] %v9285_v13  ;;  %v14768_v21 = vpack.c.bf16 %v8870_v0, %v8870_v0 }
 0x58e   : > { %v16450_v42 = vld [vmem:[%s21253_s3 + $0x148] sm:$0xff]   ;;  %v9292_v29 = vrot.slane %v9290_v45, 4  ;;  %v9293_v46 = vrot.slane %v9244_v18, 6  ;;  %9231 = vst [vmem:[#allocation6 + $0x1f0] sm:$0x3] %v9218_v43  ;;  %v14347_v26 = vrot.slane %v9348_v2, 10  ;;  %v9288_v38 = vsel %vm17684_vm12, %v9286_v63, %v9287_v39  ;;  %10722 = vmatprep.mubr.bf16.mxu0 %v16448_v15 }
 0x58f   : > { %v16451_v62 = vld [vmem:[%s21253_s3 + $0x108] sm:$0xff]   ;;  %v9291_v8 = vsel %vm17684_vm12, %v9289_v36, %v9290_v45  ;;  %v9376_v49 = vrot.slane %v9349_v40, 6  ;;  %v9379_v51 = vrot.slane %v9350_v5, 6  ;;  %v9352_v59 = vld [vmem:[#allocation3 + $0x1c] sm:$0xf]  ;;  %v9382_v7 = vrot.slane %v9351_v6, 6  ;;  %15012 = vmatprep.subr.bf16.mxu0 %v16450_v42 }
 0x590   : > { %9318 = vst [vmem:[#allocation6 + $0x17c] sm:$0xf] %v9288_v38  ;;  %v9294_v50 = vsel %vm17684_vm12, %v9292_v29, %v9293_v46  ;;  %9319 = vst [vmem:[#allocation6 + $0x1a4] sm:$0xf] %v9291_v8  ;;  %v9295_v25 = vrot.slane %v9293_v46, 4  ;;  %v16455_v60 = vld [vmem:[%s21253_s3 + $0x150] sm:$0xff]   ;;  %15013 = vmatpush3.bf16.msra.mxu0 %v16451_v62 }
 0x591   : > { %v9353_v52 = vld [vmem:[#allocation3 + $0x20] sm:$0xf]  ;;  %v9464_v10 = vld [vmem:[#allocation3 + $0x10] sm:$0xc]  ;;  %9320 = vst [vmem:[#allocation6 + $0x1cc] sm:$0xf] %v9294_v50  ;;  %v9377_v48 = vsel %vm17684_vm12, %v14347_v26, %v9376_v49  ;;  %15014 = vmatprep.subr.bf16.mxu0 %v16455_v60 }
 0x592   : > { %v9378_v47 = vrot.slane %v9376_v49, 4  ;;  %v9354_v57 = vld [vmem:[#allocation3 + $0x24] sm:$0xf]  ;;  %v20165_v61 = vld [vmem:[#allocation3 + $0x14] sm:$0xf]  ;;  %v9381_v19 = vrot.slane %v9379_v51, 4 }
 0x593   : > { %8973 = vst [vmem:[#allocation3 + $0x40] sm:$0xf] %v14768_v21  ;;  %9321 = vst [vmem:[#allocation6 + $0x1f4] sm:$0x3] %v9295_v25  ;;  %v9384_v32 = vrot.slane %v9382_v7, 4  ;;  %v9385_v58 = vrot.slane %v9352_v59, 6 }
 0x594   : > { %9425 = vst [vmem:[#allocation6 + $0x1c] sm:$0xf] %v9377_v48  ;;  %v9380_v54 = vsel %vm17684_vm12, %v9378_v47, %v9379_v51  ;;  %v9388_v34 = vrot.slane %v9353_v52, 6  ;;  %v16456_v31 = vld [vmem:[%s21253_s3 + $0x110] sm:$0xff]   ;;  %v9383_v22 = vsel %vm17684_vm12, %v9381_v19, %v9382_v7  ;;  %v9391_v14 = vrot.slane %v9354_v57, 6  ;;  %v16460_v37 = vld [vmem:[%s21253_s3 + $0x158] sm:$0xff]  }
 0x595   : > { %9426 = vst [vmem:[#allocation6 + $0x44] sm:$0xf] %v9380_v54  ;;  %v14348_v1 = vrot.slane %v9464_v10, 10  ;;  %v9492_v11 = vrot.slane %v20165_v61, 6  ;;  %v16452_v44 = vld [vmem:[#allocation6 + $0x58] ss:$40 sps:$4 sm:$0xff]   ;;  %v9386_v33 = vsel %vm17684_vm12, %v9384_v32, %v9385_v58  ;;  %15015 = vmatpush3.bf16.msra.mxu0 %v16456_v31 }
 0x596   : > { %9427 = vst [vmem:[#allocation6 + $0x6c] sm:$0xf] %v9383_v22  ;;  %v9387_v23 = vrot.slane %v9385_v58, 4  ;;  %v9390_v35 = vrot.slane %v9388_v34, 4  ;;  %9428 = vst [vmem:[#allocation6 + $0x94] sm:$0xf] %v9386_v33  ;;  %10723 = vmatmul.mubr.bf16.gmra.mrb[192].mxu0 %v16452_v44  ;;  %15016 = vmatprep.subr.bf16.mxu0 %v16460_v37 }
 0x597   : > { %v9328_v17 = vld [vmem:[#allocation3 + $0x24] sm:$0xf]  ;;  %v9329_v27 = vld [vmem:[#allocation3 + $0x28] sm:$0xf]  ;;  %v9493_v41 = vsel %vm17684_vm12, %v14348_v1, %v9492_v11  ;;  %v9393_v9 = vrot.slane %v9391_v14, 4  ;;  %v16461_v4 = vld [vmem:[%s21253_s3 + $0x118] sm:$0xff]  }
 0x598   : > { %v9355_v30 = vld [vmem:[#allocation3 + $0x28] sm:$0xf]  ;;  %v16453_v56 = vld [vmem:[#allocation6 + $0xac] ss:$40 sps:$4 sm:$0xff]   ;;  %v9389_v12 = vsel %vm17684_vm12, %v9387_v23, %v9388_v34  ;;  %v9392_v2 = vsel %vm17684_vm12, %v9390_v35, %v9391_v14  ;;  %9341 = vst [vmem:[#allocation6 + $0x108] sm:$0xf] %v9328_v17 }
 0x599   : > { %9342 = vst [vmem:[#allocation6 + $0x130] sm:$0xf] %v9329_v27  ;;  %9541 = vst [vmem:[#allocation6 + $0x24] sm:$0xf] %v9493_v41  ;;  %v9394_v28 = vrot.slane %v9355_v30, 6  ;;  %10730 = vmatprep.mubr.bf16.mxu0 %v16453_v56  ;;  %v16465_v16 = vld [vmem:[%s21253_s3 + $0x160] sm:$0xff]   ;;  %15017 = vmatpush3.bf16.msra.mxu0 %v16461_v4 }
 0x59a   : > { %9429 = vst [vmem:[#allocation6 + $0xbc] sm:$0xf] %v9389_v12  ;;  %9430 = vst [vmem:[#allocation6 + $0xe4] sm:$0xf] %v9392_v2  ;;  %v9356_v39 = vld [vmem:[#allocation3 + $0x2c] sm:$0xf]  ;;  %15018 = vmatprep.subr.bf16.mxu0 %v16465_v16 }
 0x59b   : > { %v9395_v40 = vsel %vm17684_vm12, %v9393_v9, %v9394_v28  ;;  %v9396_v24 = vrot.slane %v9394_v28, 4  ;;  %v16466_v55 = vld [vmem:[%s21253_s3 + $0x120] sm:$0xff]   ;;  %v9397_v3 = vrot.slane %v9356_v39, 6  ;;  %v9330_v53 = vld [vmem:[#allocation3 + $0x2c] sm:$0xf]  ;;  %v16474_v8 = vld [vmem:[%s21253_s3 + $0x170] sm:$0xff]  }
 0x59c   : > { %9431 = vst [vmem:[#allocation6 + $0x10c] sm:$0xf] %v9395_v40  ;;  %v9331_v45 = vld [vmem:[#allocation3 + $0x30] sm:$0xf]  ;;  %v16457_v5 = vld [vmem:[#allocation6 + $0xa8] ss:$40 sps:$4 sm:$0xff]  }
 0x59d   : > { %v16470_v6 = vld [vmem:[%s21253_s3 + $0x168] sm:$0xff]   ;;  %v9398_v13 = vsel %vm17684_vm12, %v9396_v24, %v9397_v3  ;;  %9343 = vst [vmem:[#allocation6 + $0x158] sm:$0xf] %v9330_v53  ;;  %9344 = vst [vmem:[#allocation6 + $0x180] sm:$0xf] %v9331_v45  ;;  %v9399_v43 = vrot.slane %v9397_v3, 4  ;;  %15019 = vmatpush3.bf16.msra.mxu0 %v16466_v55 }
 0x59e   : > { %v16458_v63 = vld [vmem:[#allocation6 + $0xfc] ss:$40 sps:$4 sm:$0xff]   ;;  %9432 = vst [vmem:[#allocation6 + $0x134] sm:$0xf] %v9398_v13  ;;  %v9357_v18 = vld [vmem:[#allocation3 + $0x30] sm:$0xf]  ;;  %10731 = vmatmul.mubr.bf16.gmra.mrb[196].mxu0 %v16457_v5  ;;  %15020 = vmatprep.subr.bf16.mxu0 %v16470_v6 }
 0x59f   : > { %v9358_v36 = vld [vmem:[#allocation3 + $0x34] sm:$0xf]  ;;  %v9400_v0 = vrot.slane %v9357_v18, 6  ;;  %10738 = vmatprep.mubr.bf16.mxu0 %v16458_v63  ;;  %v16471_v29 = vld [vmem:[%s21253_s3 + $0x128] sm:$0xff]   ;;  %v9333_v62 = vld [vmem:[#allocation3 + $0x38] sm:$0xf] }
 0x5a0   : > { %v9403_v15 = vrot.slane %v9358_v36, 6  ;;  %v9332_v42 = vld [vmem:[#allocation3 + $0x34] sm:$0xf]  ;;  %v9359_v38 = vld [vmem:[#allocation3 + $0x38] sm:$0xf]  ;;  %v9494_v25 = vrot.slane %v9492_v11, 4 }
 0x5a1   : > { %v9401_v46 = vsel %vm17684_vm12, %v9399_v43, %v9400_v0  ;;  %v9402_v26 = vrot.slane %v9400_v0, 4  ;;  %9345 = vst [vmem:[#allocation6 + $0x1a8] sm:$0xf] %v9332_v42  ;;  %9346 = vst [vmem:[#allocation6 + $0x1d0] sm:$0xf] %v9333_v62  ;;  %v9406_v59 = vrot.slane %v9359_v38, 6  ;;  %15021 = vmatpush3.bf16.msra.mxu0 %v16471_v29 }
 0x5a2   : > { %9433 = vst [vmem:[#allocation6 + $0x15c] sm:$0xf] %v9401_v46  ;;  %v9360_v49 = vld [vmem:[#allocation3 + $0x3c] sm:$0xf]  ;;  %v9405_v51 = vrot.slane %v9403_v15, 4  ;;  %v16475_v60 = vld [vmem:[%s21253_s3 + $0x130] sm:$0xff]   ;;  %15022 = vmatprep.subr.bf16.mxu0 %v16474_v8 }
 0x5a3   : > { %v9404_v21 = vsel %vm17684_vm12, %v9402_v26, %v9403_v15  ;;  %v9466_v50 = vld [vmem:[#allocation3 + $0x18] sm:$0xf]  ;;  %v9408_v10 = vrot.slane %v9406_v59, 4  ;;  %v9409_v48 = vrot.slane %v9360_v49, 6  ;;  %v9441_v57 = vld [vmem:[#allocation3 + $0x1c] sm:$0xf] }
 0x5a4   : > { %v9440_v7 = vld [vmem:[#allocation3 + $0x18] sm:$0xf]  ;;  %9434 = vst [vmem:[#allocation6 + $0x184] sm:$0xf] %v9404_v21  ;;  %v9407_v52 = vsel %vm17684_vm12, %v9405_v51, %v9406_v59  ;;  %v9495_v47 = vrot.slane %v9466_v50, 6  ;;  %v16482_v37 = vld [vmem:[%s21253_s3 + $0x1c0] sm:$0xff]  }
 0x5a5   : > { %9453 = vst [vmem:[#allocation6 + $0x70] sm:$0xf] %v9440_v7  ;;  %9435 = vst [vmem:[#allocation6 + $0x1ac] sm:$0xf] %v9407_v52  ;;  %v16462_v19 = vld [vmem:[#allocation6 + $0xf8] ss:$40 sps:$4 sm:$0xff]   ;;  %v9410_v32 = vsel %vm17684_vm12, %v9408_v10, %v9409_v48  ;;  %15023 = vmatpush3.bf16.msra.mxu0 %v16475_v60 }
 0x5a6   : > { %9454 = vst [vmem:[#allocation6 + $0x98] sm:$0xf] %v9441_v57  ;;  %v16477_v61 = vld [vmem:[%s21253_s3 + $0x178] sm:$0xff]   ;;  %v9496_v54 = vsel %vm17684_vm12, %v9494_v25, %v9495_v47  ;;  %v9497_v34 = vrot.slane %v9495_v47, 4  ;;  %9436 = vst [vmem:[#allocation6 + $0x1d4] sm:$0xf] %v9410_v32  ;;  %10739 = vmatmul.mubr.bf16.gmra.mrb[200].mxu0 %v16462_v19 }
 0x5a7   : > { %v9467_v58 = vld [vmem:[#allocation3 + $0x1c] sm:$0xf]  ;;  %9542 = vst [vmem:[#allocation6 + $0x4c] sm:$0xf] %v9496_v54  ;;  %v9411_v1 = vrot.slane %v9409_v48, 4  ;;  %15024 = vmatprep.subr.bf16.mxu0 %v16477_v61  ;;  %v16483_v5 = vld [vmem:[%s21253_s3 + $0x180] sm:$0xff]  }
 0x5a8   : > { %v16463_v31 = vld [vmem:[#allocation6 + $0x14c] ss:$40 sps:$4 sm:$0xff]   ;;  %v9498_v22 = vrot.slane %v9467_v58, 6  ;;  %v16467_v33 = vld [vmem:[#allocation6 + $0x148] ss:$40 sps:$4 sm:$0xff]   ;;  %v16486_v13 = vld [vmem:[%s21253_s3 + $0x1c8] sm:$0xff]  }
 0x5a9   : > { %v9334_v14 = vld [vmem:[#allocation3 + $0x3c] sm:$0x3]  ;;  %10746 = vmatprep.mubr.bf16.mxu0 %v16463_v31  ;;  %9437 = vst [vmem:[#allocation6 + $0x1fc] sm:$0x3] %v9411_v1  ;;  %v16468_v23 = vld [vmem:[#allocation6 + $0x19c] ss:$40 sps:$4 sm:$0xff]  }
 0x5aa   : > { %v16478_v11 = vld [vmem:[%s21253_s3 + $0x138] sm:$0xff]   ;;  %9347 = vst [vmem:[#allocation6 + $0x1f8] sm:$0x3] %v9334_v14  ;;  %v9499_v44 = vsel %vm17684_vm12, %v9497_v34, %v9498_v22  ;;  %v9468_v35 = vld [vmem:[#allocation3 + $0x20] sm:$0xf]  ;;  %v9500_v30 = vrot.slane %v9498_v22, 4 }
 0x5ab   : > { %9543 = vst [vmem:[#allocation6 + $0x74] sm:$0xf] %v9499_v44  ;;  %15025 = vmatpush3.bf16.msra.mxu0 %v16478_v11  ;;  %v9442_v17 = vld [vmem:[#allocation3 + $0x20] sm:$0xf]  ;;  %v9443_v27 = vld [vmem:[#allocation3 + $0x24] sm:$0xf] }
 0x5ac   : > { %15068 = vmatprep.subr.bf16.mxu0 %v16482_v37  ;;  %v9501_v41 = vrot.slane %v9468_v35, 6  ;;  %9455 = vst [vmem:[#allocation6 + $0xc0] sm:$0xf] %v9442_v17  ;;  %9456 = vst [vmem:[#allocation6 + $0xe8] sm:$0xf] %v9443_v27  ;;  %v16487_v0 = vld [vmem:[%s21253_s3 + $0x188] sm:$0xff]  }
 0x5ad   : > { %v9469_v56 = vld [vmem:[#allocation3 + $0x24] sm:$0xf]  ;;  %v9615_v12 = vld [vmem:[#allocation6 + $0x1e8] sm:$0x33]  ;;  %v16472_v4 = vld [vmem:[#allocation6 + $0x198] ss:$40 sps:$4 sm:$0xff]  }
 0x5ae   : > { %10747 = vmatmul.mubr.bf16.gmra.mrb[204].mxu0 %v16467_v33  ;;  %v9502_v2 = vsel %vm17684_vm12, %v9500_v30, %v9501_v41  ;;  %v9503_v9 = vrot.slane %v9501_v41, 4  ;;  %v9504_v28 = vrot.slane %v9469_v56, 6  ;;  %v14412_v16 = vcombine.high %v9615_v12, %v9615_v12  ;;  %v16481_v24 = vld [vmem:[#allocation6 + $0x14] ss:$40 sps:$4 sm:$0xff]   ;;  %v9470_v55 = vld [vmem:[#allocation3 + $0x28] sm:$0xf] }
 0x5af   : > { %10754 = vmatprep.mubr.bf16.mxu0 %v16468_v23  ;;  %9544 = vst [vmem:[#allocation6 + $0x9c] sm:$0xf] %v9502_v2  ;;  %v14411_v40 = vcombine.low %v9615_v12, %v9615_v12  ;;  %v9507_v53 = vrot.slane %v9470_v55, 6  ;;  %v16479_v6 = vld [vmem:[#allocation6 + $0x10] ss:$40 sps:$4 sm:$0xff]   ;;  %v16491_v46 = vld [vmem:[%s21253_s3 + $0x1d0] sm:$0xff]  }
 0x5b0   : > { %v9505_v39 = vsel %vm17684_vm12, %v9503_v9, %v9504_v28  ;;  %v9506_v3 = vrot.slane %v9504_v28, 4  ;;  %v16484_v63 = vld [vmem:[#allocation6 + $0x64] ss:$40 sps:$4 sm:$0xff]   ;;  %v9444_v18 = vld [vmem:[#allocation3 + $0x28] sm:$0xf]  ;;  %v16501_v57 = vld [vmem:[%s21253_s3 + $0x1e0] sm:$0xff]  }
 0x5b1   : > { %9545 = vst [vmem:[#allocation6 + $0xc4] sm:$0xf] %v9505_v39  ;;  %v9445_v36 = vld [vmem:[#allocation3 + $0x2c] sm:$0xf]  ;;  %9457 = vst [vmem:[#allocation6 + $0x110] sm:$0xf] %v9444_v18 }
 0x5b2   : > { %v9508_v45 = vsel %vm17684_vm12, %v9506_v3, %v9507_v53  ;;  %v9471_v43 = vld [vmem:[#allocation3 + $0x2c] sm:$0xf]  ;;  %9458 = vst [vmem:[#allocation6 + $0x138] sm:$0xf] %v9445_v36  ;;  %v9472_v15 = vld [vmem:[#allocation3 + $0x30] sm:$0xf] }
 0x5b3   : > { %9546 = vst [vmem:[#allocation6 + $0xec] sm:$0xf] %v9508_v45  ;;  %v9509_v42 = vrot.slane %v9507_v53, 4  ;;  %v9510_v29 = vrot.slane %v9471_v43, 6  ;;  %v9513_v26 = vrot.slane %v9472_v15, 6  ;;  %v16492_v8 = vld [vmem:[%s21253_s3 + $0x190] sm:$0xff]  }
 0x5b4   : > { %v16488_v51 = vld [vmem:[#allocation6 + $0x60] ss:$40 sps:$4 sm:$0xff]   ;;  %v16489_v21 = vld [vmem:[#allocation6 + $0xb4] ss:$40 sps:$4 sm:$0xff]   ;;  %v9447_v25 = vld [vmem:[#allocation3 + $0x34] sm:$0xf] }
 0x5b5   : > { %v9511_v62 = vsel %vm17684_vm12, %v9509_v42, %v9510_v29  ;;  %v9512_v38 = vrot.slane %v9510_v29, 4  ;;  %v16496_v59 = vld [vmem:[%s21253_s3 + $0x1d8] sm:$0xff]   ;;  %v9446_v50 = vld [vmem:[#allocation3 + $0x30] sm:$0xf]  ;;  %v9473_v7 = vld [vmem:[#allocation3 + $0x34] sm:$0xf] }
 0x5b6   : > { %10755 = vmatmul.mubr.bf16.gmra.mrb[208].mxu0 %v16472_v4  ;;  %9547 = vst [vmem:[#allocation6 + $0x114] sm:$0xf] %v9511_v62  ;;  %v16497_v52 = vld [vmem:[%s21253_s3 + $0x198] sm:$0xff]   ;;  %9459 = vst [vmem:[#allocation6 + $0x160] sm:$0xf] %v9446_v50  ;;  %v9515_v48 = vrot.slane %v9513_v26, 4 }
 0x5b7   : > { %10762 = vmatprep.mubr.bf16.mxu0 %v14412_v16  ;;  %v9514_v49 = vsel %vm17684_vm12, %v9512_v38, %v9513_v26  ;;  %9460 = vst [vmem:[#allocation6 + $0x188] sm:$0xf] %v9447_v25  ;;  %v9474_v10 = vld [vmem:[#allocation3 + $0x38] sm:$0xf]  ;;  %v9516_v47 = vrot.slane %v9473_v7, 6  ;;  %v16502_v32 = vld [vmem:[%s21253_s3 + $0x1a0] sm:$0xff]  }
 0x5b8   : > { %9548 = vst [vmem:[#allocation6 + $0x13c] sm:$0xf] %v9514_v49  ;;  %v9519_v60 = vrot.slane %v9474_v10, 6  ;;  %v16493_v58 = vld [vmem:[#allocation6 + $0xb0] ss:$40 sps:$4 sm:$0xff]   ;;  %v16510_v23 = vld [vmem:[%s21253_s3 + $0x1f0] sm:$0xff]  }
 0x5b9   : > { %v9517_v19 = vsel %vm17684_vm12, %v9515_v48, %v9516_v47  ;;  %v9518_v61 = vrot.slane %v9516_v47, 4  ;;  %v16506_v34 = vld [vmem:[%s21253_s3 + $0x1e8] sm:$0xff]   ;;  %v16494_v31 = vld [vmem:[#allocation6 + $0x104] ss:$40 sps:$4 sm:$0xff]   ;;  %v9448_v22 = vld [vmem:[#allocation3 + $0x38] sm:$0xf] }
 0x5ba   : > { %9549 = vst [vmem:[#allocation6 + $0x164] sm:$0xf] %v9517_v19  ;;  %v9449_v14 = vld [vmem:[#allocation3 + $0x3c] sm:$0xf]  ;;  %v16507_v11 = vld [vmem:[%s21253_s3 + $0x1a8] sm:$0xff]   ;;  %v9521_v37 = vrot.slane %v9519_v60, 4 }
 0x5bb   : > { %v9520_v54 = vsel %vm17684_vm12, %v9518_v61, %v9519_v60  ;;  %v9475_v1 = vld [vmem:[#allocation3 + $0x3c] sm:$0xf]  ;;  %9461 = vst [vmem:[#allocation6 + $0x1b0] sm:$0xf] %v9448_v22  ;;  %9462 = vst [vmem:[#allocation6 + $0x1d8] sm:$0xf] %v9449_v14 }
 0x5bc   : > { %9550 = vst [vmem:[#allocation6 + $0x18c] sm:$0xf] %v9520_v54  ;;  %v9476_v44 = vld [vmem:[#allocation3 + $0x40] sm:$0xf]  ;;  %v9522_v33 = vrot.slane %v9475_v1, 6  ;;  %v16511_v41 = vld [vmem:[%s21253_s3 + $0x1b0] sm:$0xff]  }
 0x5bd   : > { %v9525_v35 = vrot.slane %v9476_v44, 6  ;;  %v16498_v2 = vld [vmem:[#allocation6 + $0x100] ss:$40 sps:$4 sm:$0xff]   ;;  %v16499_v16 = vld [vmem:[#allocation6 + $0x154] ss:$40 sps:$4 sm:$0xff]   ;;  %vm11282_vm14 = vcmask 1045504  }
 0x5be   : > { %10763 = vmatmul.mubr.bf16.gmra.mrb[212].mxu0 %v14411_v40  ;;  %v9523_v17 = vsel %vm17684_vm12, %v9521_v37, %v9522_v33  ;;  %v9524_v27 = vrot.slane %v9522_v33, 4  ;;  %v16513_v9 = vld [vmem:[%s21253_s3 + $0x1f8] sm:$0xff]   ;;  %v9450_v40 = vld [vmem:[#allocation3 + $0x40] sm:$0x3]  ;;  %v16517_v42 = vld [vmem:[#allocation6 + $0x1c] ss:$40 sps:$4 sm:$0xff]  }
 0x5bf   : > { %10802 = vmatprep.mubr.bf16.mxu0 %v16481_v24  ;;  %9551 = vst [vmem:[#allocation6 + $0x1b4] sm:$0xf] %v9523_v17  ;;  %v9527_v24 = vrot.slane %v9525_v35, 4  ;;  %9463 = vst [vmem:[#allocation6 + $0x200] sm:$0x3] %v9450_v40  ;;  %v16518_v3 = vld [vmem:[%s21253_s3 + $0x240] sm:$0xff]  }
 0x5c0   : > { %v9526_v56 = vsel %vm17684_vm12, %v9524_v27, %v9525_v35  ;;  %v16503_v53 = vld [vmem:[#allocation6 + $0x150] ss:$40 sps:$4 sm:$0xff]   ;;  %v16504_v45 = vld [vmem:[#allocation6 + $0x1a4] ss:$40 sps:$4 sm:$0xff]  }
 0x5c1   : > { %9552 = vst [vmem:[#allocation6 + $0x1dc] sm:$0xf] %v9526_v56  ;;  %9553 = vst [vmem:[#allocation6 + $0x204] sm:$0x3] %v9527_v24  ;;  %v16515_v26 = vld [vmem:[#allocation6 + $0x18] ss:$40 sps:$4 sm:$0xff]  }
 0x5c2   : > { %v16522_v62 = vld [vmem:[%s21253_s3 + $0x248] sm:$0xff]   ;;  %v16520_v38 = vld [vmem:[#allocation6 + $0x6c] ss:$40 sps:$4 sm:$0xff]   ;;  %v16527_v49 = vld [vmem:[%s21253_s3 + $0x250] sm:$0xff]  }
 0x5c3   : > { %v16525_v50 = vld [vmem:[#allocation6 + $0xbc] ss:$40 sps:$4 sm:$0xff]   ;;  %v16534_v25 = vld [vmem:[%s21253_s3 + $0x218] sm:$0xff]   ;;  %v16538_v7 = vld [vmem:[%s21253_s3 + $0x260] sm:$0xff]  }
 0x5c4   : > { %v16529_v10 = vld [vmem:[#allocation6 + $0xb8] ss:$40 sps:$4 sm:$0xff]   ;;  %v16532_v47 = vld [vmem:[#allocation6 + $0x10c] ss:$40 sps:$4 sm:$0xff]   ;;  %v16530_v22 = vld [vmem:[#allocation6 + $0x108] ss:$40 sps:$4 sm:$0xff]  }
 0x5c5   : > { %v16543_v48 = vld [vmem:[%s21253_s3 + $0x268] sm:$0xff]   ;;  %v16547_v61 = vld [vmem:[%s21253_s3 + $0x270] sm:$0xff]   ;;  %v16549_v14 = vld [vmem:[%s21253_s3 + $0x278] sm:$0xff]  }
 0x5c6   : > { %10803 = vmatmul.mubr.bf16.vlgmr.msra.gmra.mrb[216].mxu0 %v16479_v6  ;;  %v16508_v6 = vld [vmem:[#allocation6 + $0x1a0] ss:$40 sps:$4 sm:$0xff]   ;;  %v16544_v60 = vld [vmem:[%s21253_s3 + $0x228] sm:$0xff]   ;;  %v16542_v37 = vld [vmem:[#allocation6 + $0x1ac] ss:$40 sps:$4 sm:$0xff]  }
 0x5c7   : > { %15069 = vmatpush3.bf16.msra.mxu0 %v16483_v5  ;;  %10810 = vmatprep.mubr.bf16.mxu0 %v16484_v63  ;;  %v9616_v5 = vld [vmem:[#allocation6 + $0x1f0] sm:$0x33]  ;;  %v16537_v1 = vld [vmem:[#allocation6 + $0x15c] ss:$40 sps:$4 sm:$0xff]   ;;  %v16535_v44 = vld [vmem:[#allocation6 + $0x158] ss:$40 sps:$4 sm:$0xff]  }
 0x5c8   : > { %15070 = vmatprep.subr.bf16.mxu0 %v16486_v13  ;;  %v14414_v13 = vcombine.high %v9616_v5, %v9616_v5  ;;  %v16540_v17 = vld [vmem:[#allocation6 + $0x1a8] ss:$40 sps:$4 sm:$0xff]  }
 0x5c9   : > { %v16554_v40 = vld [vmem:[#allocation6 + $0x70] ss:$40 sps:$4 sm:$0xff]  }
 0x5cb   : > { %15071 = vmatpush3.bf16.msra.mxu0 %v16487_v0  ;;  %v14413_v0 = vcombine.low %v9616_v5, %v9616_v5 }
 0x5cc   : > { %15072 = vmatprep.subr.bf16.mxu0 %v16491_v46  ;;  %v16519_v46 = vld [vmem:[%s21253_s3 + $0x200] sm:$0xff]  }
 0x5ce   : > { %10811 = vmatmul.mubr.bf16.gmra.mrb[220].mxu0 %v16488_v51  ;;  %v16528_v51 = vld [vmem:[%s21253_s3 + $0x210] sm:$0xff]  }
 0x5cf   : > { %10818 = vmatprep.mubr.bf16.mxu0 %v16489_v21  ;;  %15073 = vmatpush3.bf16.msra.mxu0 %v16492_v8  ;;  %v16523_v8 = vld [vmem:[%s21253_s3 + $0x208] sm:$0xff]   ;;  %v16533_v21 = vld [vmem:[%s21253_s3 + $0x258] sm:$0xff]  }
 0x5d0   : > { %15074 = vmatprep.subr.bf16.mxu0 %v16496_v59  ;;  %v16524_v59 = vld [vmem:[#allocation6 + $0x68] ss:$40 sps:$4 sm:$0xff]  }
 0x5d3   : > { %15075 = vmatpush3.bf16.msra.mxu0 %v16497_v52  ;;  %v16539_v52 = vld [vmem:[%s21253_s3 + $0x220] sm:$0xff]  }
 0x5d4   : > { %15076 = vmatprep.subr.bf16.mxu0 %v16501_v57 }
 0x5d6   : > { %10819 = vmatmul.mubr.bf16.gmra.mrb[224].mxu0 %v16493_v58  ;;  %v14910_v30 = vpop.f32.mrb[160].mxu0 }
 0x5d7   : > { %10826 = vmatprep.mubr.bf16.mxu0 %v16494_v31  ;;  %15077 = vmatpush3.bf16.msra.mxu0 %v16502_v32  ;;  %v14911_v12 = vpop.f32.mrb[161].mxu0  ;;  %v16548_v31 = vld [vmem:[%s21253_s3 + $0x230] sm:$0xff]  }
 0x5d8   : > { %15078 = vmatprep.subr.bf16.mxu0 %v16506_v34  ;;  %v20299_v28 = vadd.f32 %v14911_v12, %v14910_v30  ;;  %v14913_v4 = vpop.f32.mrb[162].mxu0 }
 0x5d9   : > { %v14914_v39 = vpop.f32.mrb[163].mxu0 }
 0x5da   : > { %v20301_v55 = vadd.f32 %v14914_v39, %v14913_v4  ;;  %v16551_v4 = vld [vmem:[#allocation6 + $0x20] ss:$40 sps:$4 sm:$0xff]  }
 0x5db   : > { %15079 = vmatpush3.bf16.msra.mxu0 %v16507_v11  ;;  %v16550_v11 = vld [vmem:[%s21253_s3 + $0x238] sm:$0xff]  }
 0x5dc   : > { %15080 = vmatprep.subr.bf16.mxu0 %v16510_v23  ;;  %v9617_v23 = vld [vmem:[#allocation6 + $0x1f8] sm:$0x33] }
 0x5dd   : > { %v14416_v56 = vcombine.high %v9617_v23, %v9617_v23 }
 0x5de   : > { %10827 = vmatmul.mubr.bf16.gmra.mrb[228].mxu0 %v16498_v2  ;;  %v14415_v2 = vcombine.low %v9617_v23, %v9617_v23 }
 0x5df   : > { %10834 = vmatprep.mubr.bf16.mxu0 %v16499_v16  ;;  %15081 = vmatpush3.bf16.msra.mxu0 %v16511_v41  ;;  %v16556_v16 = vld [vmem:[#allocation6 + $0x74] ss:$40 sps:$4 sm:$0xff]  }
 0x5e0   : > { %15082 = vmatprep.subr.bf16.mxu0 %v16513_v9  ;;  %v16553_v9 = vld [vmem:[#allocation6 + $0x24] ss:$40 sps:$4 sm:$0xff]  }
 0x5e3   : > { %15083 = vmatpush3.bf16.msra.mxu0 %v16514_v20 }
 0x5e4   : > { %15126 = vmatprep.subr.bf16.mxu0 %v16518_v3 }
 0x5e6   : > { %10835 = vmatmul.mubr.bf16.gmra.mrb[232].mxu0 %v16503_v53  ;;  %v16559_v53 = vld [vmem:[#allocation6 + $0xc4] ss:$40 sps:$4 sm:$0xff]  }
 0x5e7   : > { %10842 = vmatprep.mubr.bf16.mxu0 %v16504_v45 }
 0x5ee   : > { %10843 = vmatmul.mubr.bf16.gmra.mrb[236].mxu0 %v16508_v6  ;;  %v14916_v63 = vpop.f32.mrb[164].mxu0  ;;  %v16557_v6 = vld [vmem:[#allocation6 + $0xc0] ss:$40 sps:$4 sm:$0xff]  }
 0x5ef   : > { %10850 = vmatprep.mubr.bf16.mxu0 %v14414_v13  ;;  %v14917_v18 = vpop.f32.mrb[165].mxu0  ;;  %v16562_v13 = vld [vmem:[#allocation6 + $0x114] ss:$40 sps:$4 sm:$0xff]  }
 0x5f0   : > { %v20309_v36 = vadd.f32 %v14917_v18, %v14916_v63  ;;  %v14919_v43 = vpop.f32.mrb[166].mxu0  ;;  %v16560_v63 = vld [vmem:[#allocation6 + $0x110] ss:$40 sps:$4 sm:$0xff]   ;;  %v16565_v18 = vld [vmem:[#allocation6 + $0x164] ss:$40 sps:$4 sm:$0xff]  }
 0x5f1   : > { %v14920_v15 = vpop.f32.mrb[167].mxu0 }
 0x5f2   : > { %v20311_v29 = vadd.f32 %v14920_v15, %v14919_v43 }
 0x5f6   : > { %10851 = vmatmul.mubr.bf16.gmra.mrb[240].mxu0 %v14413_v0 }
 0x5f7   : > { %10890 = vmatprep.mubr.bf16.mxu0 %v16517_v42 }
 0x5fe   : > { %10891 = vmatmul.mubr.bf16.vlgmr.msra.gmra.mrb[244].mxu0 %v16515_v26 }
 0x5ff   : > { %15127 = vmatpush3.bf16.msra.mxu0 %v16519_v46  ;;  %10898 = vmatprep.mubr.bf16.mxu0 %v16520_v38  ;;  %v16563_v46 = vld [vmem:[#allocation6 + $0x160] ss:$40 sps:$4 sm:$0xff]   ;;  %v16568_v38 = vld [vmem:[#allocation6 + $0x1b4] ss:$40 sps:$4 sm:$0xff]  }
 0x600   : > { %15128 = vmatprep.subr.bf16.mxu0 %v16522_v62 }
 0x603   : > { %15129 = vmatpush3.bf16.msra.mxu0 %v16523_v8 }
 0x604   : > { %15130 = vmatprep.subr.bf16.mxu0 %v16527_v49 }
 0x606   : > { %10899 = vmatmul.mubr.bf16.gmra.mrb[248].mxu0 %v16524_v59 }
 0x607   : > { %10906 = vmatprep.mubr.bf16.mxu0 %v16525_v50  ;;  %15131 = vmatpush3.bf16.msra.mxu0 %v16528_v51  ;;  %v9618_v51 = vld [vmem:[#allocation6 + $0x200] sm:$0x33]  ;;  %v16566_v50 = vld [vmem:[#allocation6 + $0x1b0] ss:$40 sps:$4 sm:$0xff]  }
 0x608   : > { %15132 = vmatprep.subr.bf16.mxu0 %v16533_v21 }
 0x60b   : > { %15133 = vmatpush3.bf16.msra.mxu0 %v16534_v25  ;;  %v14922_v57 = vpop.f32.mrb[168].mxu0 }
 0x60c   : > { %15134 = vmatprep.subr.bf16.mxu0 %v16538_v7  ;;  %v14923_v19 = vpop.f32.mrb[169].mxu0  ;;  %v14418_v7 = vcombine.high %v9618_v51, %v9618_v51 }
 0x60d   : > { %v20349_v32 = vadd.f32 %v14923_v19, %v14922_v57  ;;  %v14925_v54 = vpop.f32.mrb[170].mxu0  ;;  %v14417_v57 = vcombine.low %v9618_v51, %v9618_v51 }
 0x60e   : > { %10907 = vmatmul.mubr.bf16.gmra.mrb[252].mxu0 %v16529_v10  ;;  %v14926_v58 = vpop.f32.mrb[171].mxu0 }
 0x60f   : > { %10914 = vmatprep.mubr.bf16.mxu0 %v16532_v47  ;;  %15135 = vmatpush3.bf16.msra.mxu0 %v16539_v52  ;;  %v20351_v34 = vadd.f32 %v14926_v58, %v14925_v54 }
 0x610   : > { %15136 = vmatprep.subr.bf16.mxu0 %v16543_v48 }
 0x613   : > { %15137 = vmatpush3.bf16.msra.mxu0 %v16544_v60 }
 0x614   : > { %15138 = vmatprep.subr.bf16.mxu0 %v16547_v61 }
 0x616   : > { %10915 = vmatmul.mubr.bf16.gmra.mrb[0].mxu0 %v16530_v22 }
 0x617   : > { %10922 = vmatprep.mubr.bf16.mxu0 %v16537_v1  ;;  %15139 = vmatpush3.bf16.msra.mxu0 %v16548_v31 }
 0x618   : > { %15140 = vmatprep.subr.bf16.mxu0 %v16549_v14 }
 0x61b   : > { %15141 = vmatpush3.bf16.msra.mxu0 %v16550_v11 }
 0x61e   : > { %10923 = vmatmul.mubr.bf16.gmra.mrb[4].mxu0 %v16535_v44  ;;  %v14928_v33 = vpop.f32.mrb[172].mxu0 }
 0x61f   : > { %10930 = vmatprep.mubr.bf16.mxu0 %v16542_v37  ;;  %v14929_v35 = vpop.f32.mrb[173].mxu0 }
 0x620   : > { %v20362_v27 = vadd.f32 %v14929_v35, %v14928_v33  ;;  %v14931_v30 = vpop.f32.mrb[174].mxu0 }
 0x621   : > { %v14932_v41 = vpop.f32.mrb[175].mxu0 }
 0x622   : > { %v20364_v12 = vadd.f32 %v14932_v41, %v14931_v30 }
 0x626   : > { %10931 = vmatmul.mubr.bf16.gmra.mrb[8].mxu0 %v16540_v17 }
 0x627   : > { %10938 = vmatprep.mubr.bf16.mxu0 %v14416_v56 }
 0x62e   : > { %10939 = vmatmul.mubr.bf16.gmra.mrb[12].mxu0 %v14415_v2 }
 0x62f   : > { %10978 = vmatprep.mubr.bf16.mxu0 %v16553_v9 }
 0x636   : > { %10979 = vmatmul.mubr.bf16.vlgmr.msra.gmra.mrb[16].mxu0 %v16551_v4 }
 0x637   : > { %10986 = vmatprep.mubr.bf16.mxu0 %v16556_v16 }
 0x638   : > { %v14934_v39 = vpop.f32.mrb[176].mxu0 }
 0x639   : > { %v14935_v24 = vpop.f32.mrb[177].mxu0 }
 0x63a   : > { %v20366_v20 = vadd.f32 %v14935_v24, %v14934_v39  ;;  %v14937_v3 = vpop.f32.mrb[178].mxu0 }
 0x63b   : > { %v14938_v45 = vpop.f32.mrb[179].mxu0 }
 0x63c   : > { %v20368_v5 = vadd.f32 %v14938_v45, %v14937_v3 }
 0x63e   : > { %10987 = vmatmul.mubr.bf16.gmra.mrb[20].mxu0 %v16554_v40 }
 0x63f   : > { %10994 = vmatprep.mubr.bf16.mxu0 %v16559_v53 }
 0x646   : > { %10995 = vmatmul.mubr.bf16.gmra.mrb[24].mxu0 %v16557_v6  ;;  %v16574_v6 = vld [vmem:[%s21254_s4 + $0x10] ss:$8 sps:$4 sm:$0xff]  }
 0x647   : > { %11002 = vmatprep.mubr.bf16.mxu0 %v16562_v13  ;;  %v16576_v13 = vld [vmem:[%s21254_s4 + $0x14] ss:$8 sps:$4 sm:$0xff]  }
 0x64e   : > { %11003 = vmatmul.mubr.bf16.gmra.mrb[28].mxu0 %v16560_v63  ;;  %v14940_v43 = vpop.f32.mrb[180].mxu0  ;;  %v16579_v63 = vld [vmem:[%s21254_s4 + $0x24] ss:$8 sps:$4 sm:$0xff]  }
 0x64f   : > { %11010 = vmatprep.mubr.bf16.mxu0 %v16565_v18  ;;  %v14941_v0 = vpop.f32.mrb[181].mxu0 }
 0x650   : > { %v20370_v15 = vadd.f32 %v14941_v0, %v14940_v43  ;;  %v14943_v42 = vpop.f32.mrb[182].mxu0 }
 0x651   : > { %v14944_v26 = vpop.f32.mrb[183].mxu0 }
 0x652   : > { %v20372_v62 = vadd.f32 %v14944_v26, %v14943_v42 }
 0x656   : > { %11011 = vmatmul.mubr.bf16.gmra.mrb[32].mxu0 %v16563_v46  ;;  %v14946_v8 = vpop.f32.mrb[184].mxu0 }
 0x657   : > { %11018 = vmatprep.mubr.bf16.mxu0 %v16568_v38  ;;  %v14947_v49 = vpop.f32.mrb[185].mxu0 }
 0x658   : > { %v20374_v59 = vadd.f32 %v14947_v49, %v14946_v8  ;;  %v14949_v21 = vpop.f32.mrb[186].mxu0 }
 0x659   : > { %v14950_v25 = vpop.f32.mrb[187].mxu0 }
 0x65e   : > { %11019 = vmatmul.mubr.bf16.gmra.mrb[36].mxu0 %v16566_v50  ;;  %v14968_v52 = vpop.f32.mrb[188].mxu0 }
 0x65f   : > { %11026 = vmatprep.mubr.bf16.mxu0 %v14418_v7  ;;  %v14969_v10 = vpop.f32.mrb[189].mxu0 }
 0x660   : > { %v14970_v48 = vadd.f32 %v14969_v10, %v14968_v52  ;;  %v14971_v47 = vpop.f32.mrb[190].mxu0 }
 0x661   : > { %v14972_v60 = vpop.f32.mrb[191].mxu0 }
 0x662   : > { %v20377_v19 = vadd.f32 %v14970_v48, %v20299_v28  ;;  %v14973_v61 = vadd.f32 %v14972_v60, %v14971_v47 }
 0x664   : > { %v20380_v54 = vadd.f32 %v14973_v61, %v20301_v55 }
 0x666   : > { %11027 = vmatmul.mubr.bf16.gmra.mrb[40].mxu0 %v14417_v57 }
 0x669   : > { %v14974_v58 = vpop.f32.mrb[192].mxu0 }
 0x66a   : > { %v14975_v31 = vpop.f32.mrb[193].mxu0 }
 0x66b   : > { %v14976_v22 = vadd.f32 %v14975_v31, %v14974_v58  ;;  %v14977_v14 = vpop.f32.mrb[194].mxu0 }
 0x66c   : > { %v14978_v1 = vpop.f32.mrb[195].mxu0 }
 0x66d   : > { %v20383_v11 = vadd.f32 %v14976_v22, %v20309_v36  ;;  %v14979_v44 = vadd.f32 %v14978_v1, %v14977_v14  ;;  %v16582_v1 = vld [vmem:[%s21254_s4 + $0x34] ss:$8 sps:$4 sm:$0xff]  }
 0x66f   : > { %v20386_v37 = vadd.f32 %v14979_v44, %v20311_v29 }
 0x671   : > { %v14980_v33 = vpop.f32.mrb[196].mxu0 }
 0x672   : > { %v14981_v28 = vpop.f32.mrb[197].mxu0 }
 0x673   : > { %v14982_v23 = vadd.f32 %v14981_v28, %v14980_v33  ;;  %v14983_v35 = vpop.f32.mrb[198].mxu0  ;;  %v16583_v28 = vld [vmem:[%s21254_s4 + $0x40] ss:$8 sps:$4 sm:$0xff]  }
 0x674   : > { %v14984_v17 = vpop.f32.mrb[199].mxu0 }
 0x675   : > { %v20389_v55 = vadd.f32 %v14982_v23, %v20349_v32  ;;  %v14985_v30 = vadd.f32 %v14984_v17, %v14983_v35  ;;  %v16571_v32 = vld [vmem:[%s21254_s4] ss:$8 sps:$4 sm:$0xff]   ;;  %v16585_v23 = vld [vmem:[%s21254_s4 + $0x44] ss:$8 sps:$4 sm:$0xff]  }
 0x677   : > { %v20392_v41 = vadd.f32 %v14985_v30, %v20351_v34  ;;  %v16573_v34 = vld [vmem:[%s21254_s4 + $0x4] ss:$8 sps:$4 sm:$0xff]  }
 0x678   : > { %12640 = vmatprep.subr.bf16.mxu0 %v16573_v34  ;;  %v16591_v34 = vld [vmem:[%s21254_s4 + $0x64] ss:$8 sps:$4 sm:$0xff]  }
 0x679   : > { %v14986_v56 = vpop.f32.mrb[200].mxu0  ;;  %12641 = vmatpush1.bf16.msra.mxu0 %v16571_v32  ;;  %v16589_v32 = vld [vmem:[%s21254_s4 + $0x60] ss:$8 sps:$4 sm:$0xff]  }
 0x67a   : > { %v14987_v2 = vpop.f32.mrb[201].mxu0  ;;  %12642 = vmatprep.subr.bf16.mxu0 %v16576_v13  ;;  %v16595_v13 = vld [vmem:[%s21254_s4 + $0x80] ss:$8 sps:$4 sm:$0xff]  }
 0x67b   : > { %v14988_v36 = vadd.f32 %v14987_v2, %v14986_v56  ;;  %v14989_v9 = vpop.f32.mrb[202].mxu0  ;;  %v16588_v56 = vld [vmem:[%s21254_s4 + $0x54] ss:$8 sps:$4 sm:$0xff]  }
 0x67c   : > { %v14990_v4 = vpop.f32.mrb[203].mxu0 }
 0x67d   : > { %v20395_v29 = vadd.f32 %v14988_v36, %v20362_v27  ;;  %v14991_v16 = vadd.f32 %v14990_v4, %v14989_v9  ;;  %12643 = vmatpush1.bf16.msra.mxu0 %v16574_v6 }
 0x67e   : > { %12644 = vmatprep.subr.bf16.mxu0 %v16579_v63 }
 0x67f   : > { %v20398_v39 = vadd.f32 %v14991_v16, %v20364_v12 }
 0x681   : > { %v14992_v40 = vpop.f32.mrb[204].mxu0 }
 0x682   : > { %v14993_v24 = vpop.f32.mrb[205].mxu0 }
 0x683   : > { %v14994_v3 = vadd.f32 %v14993_v24, %v14992_v40  ;;  %v14995_v53 = vpop.f32.mrb[206].mxu0 }
 0x684   : > { %v14996_v27 = vpop.f32.mrb[207].mxu0 }
 0x685   : > { %v20407_v45 = vadd.f32 %v14994_v3, %v20366_v20  ;;  %v14997_v12 = vadd.f32 %v14996_v27, %v14995_v53  ;;  %v16577_v20 = vld [vmem:[%s21254_s4 + $0x20] ss:$8 sps:$4 sm:$0xff]   ;;  %v16592_v27 = vld [vmem:[%s21254_s4 + $0x70] ss:$8 sps:$4 sm:$0xff]  }
 0x686   : > { %12645 = vmatpush1.bf16.msra.mxu0 %v16577_v20 }
 0x687   : > { %v20419_v18 = vadd.f32 %v14997_v12, %v20368_v5  ;;  %12646 = vmatprep.subr.bf16.mxu0 %v16582_v1  ;;  %v16610_v1 = vld [vmem:[%s21254_s4 + $0xd0] ss:$8 sps:$4 sm:$0xff]  }
 0x689   : > { %v14998_v43 = vpop.f32.mrb[208].mxu0 }
 0x68a   : > { %v14999_v0 = vpop.f32.mrb[209].mxu0 }
 0x68b   : > { %v15000_v42 = vadd.f32 %v14999_v0, %v14998_v43  ;;  %v15001_v46 = vpop.f32.mrb[210].mxu0 }
 0x68c   : > { %v15002_v26 = vpop.f32.mrb[211].mxu0 }
 0x68d   : > { %v20425_v38 = vadd.f32 %v15000_v42, %v20370_v15  ;;  %v15003_v8 = vadd.f32 %v15002_v26, %v15001_v46  ;;  %v16598_v26 = vld [vmem:[%s21254_s4 + $0x90] ss:$8 sps:$4 sm:$0xff]  }
 0x68f   : > { %v20428_v5 = vadd.f32 %v15003_v8, %v20372_v62 }
 0x691   : > { %v15004_v49 = vpop.f32.mrb[212].mxu0 }
 0x692   : > { %v15005_v51 = vpop.f32.mrb[213].mxu0 }
 0x693   : > { %v15006_v21 = vadd.f32 %v15005_v51, %v15004_v49  ;;  %v15007_v50 = vpop.f32.mrb[214].mxu0 }
 0x694   : > { %v15008_v25 = vpop.f32.mrb[215].mxu0 }
 0x695   : > { %v20431_v7 = vadd.f32 %v15006_v21, %v20374_v59  ;;  %v16580_v59 = vld [vmem:[%s21254_s4 + $0x30] ss:$8 sps:$4 sm:$0xff]   ;;  %v16601_v21 = vld [vmem:[%s21254_s4 + $0xa0] ss:$8 sps:$4 sm:$0xff]  }
 0x696   : > { %12647 = vmatpush1.bf16.msra.mxu0 %v16580_v59 }
 0x697   : > { %12648 = vmatprep.subr.bf16.mxu0 %v16585_v23  ;;  %v16615_v23 = vld [vmem:[%s21254_s4 + $0xe4] ss:$8 sps:$4 sm:$0xff]  }
 0x699   : > { %v15026_v52 = vpop.f32.mrb[216].mxu0 }
 0x69a   : > { %v15027_v10 = vpop.f32.mrb[217].mxu0  ;;  %12649 = vmatpush1.bf16.msra.mxu0 %v16583_v28  ;;  %v16613_v28 = vld [vmem:[%s21254_s4 + $0xe0] ss:$8 sps:$4 sm:$0xff]  }
 0x69b   : > { %v15028_v48 = vadd.f32 %v15027_v10, %v15026_v52  ;;  %v15029_v47 = vpop.f32.mrb[218].mxu0  ;;  %12650 = vmatprep.subr.bf16.mxu0 %v16588_v56  ;;  %v16616_v56 = vld [vmem:[%s21254_s4 + $0xf0] ss:$8 sps:$4 sm:$0xff]  }
 0x69c   : > { %v15030_v57 = vpop.f32.mrb[219].mxu0 }
 0x69d   : > { %v20434_v15 = vadd.f32 %v15028_v48, %v20377_v19  ;;  %v15031_v60 = vadd.f32 %v15030_v57, %v15029_v47  ;;  %v16604_v47 = vld [vmem:[%s21254_s4 + $0xb0] ss:$8 sps:$4 sm:$0xff]  }
 0x69f   : > { %v20437_v62 = vadd.f32 %v15031_v60, %v20380_v54 }
 0x6a1   : > { %v15032_v61 = vpop.f32.mrb[220].mxu0 }
 0x6a2   : > { %v15033_v58 = vpop.f32.mrb[221].mxu0 }
 0x6a3   : > { %v15034_v31 = vadd.f32 %v15033_v58, %v15032_v61  ;;  %v15035_v22 = vpop.f32.mrb[222].mxu0  ;;  %v16607_v61 = vld [vmem:[%s21254_s4 + $0xc0] ss:$8 sps:$4 sm:$0xff]  }
 0x6a4   : > { %v15036_v14 = vpop.f32.mrb[223].mxu0 }
 0x6a5   : > { %v20446_v19 = vadd.f32 %v15034_v31, %v20383_v11  ;;  %v15037_v44 = vadd.f32 %v15036_v14, %v15035_v22 }
 0x6a7   : > { %v20449_v54 = vadd.f32 %v15037_v44, %v20386_v37  ;;  %v16586_v37 = vld [vmem:[%s21254_s4 + $0x50] ss:$8 sps:$4 sm:$0xff]  }
 0x6a8   : > { %12651 = vmatpush1.bf16.msra.mxu0 %v16586_v37 }
 0x6a9   : > { %v15038_v33 = vpop.f32.mrb[224].mxu0  ;;  %12652 = vmatprep.subr.bf16.mxu0 %v16591_v34 }
 0x6aa   : > { %v15039_v35 = vpop.f32.mrb[225].mxu0 }
 0x6ab   : > { %v15040_v17 = vadd.f32 %v15039_v35, %v15038_v33  ;;  %v15041_v30 = vpop.f32.mrb[226].mxu0 }
 0x6ac   : > { %v15042_v11 = vpop.f32.mrb[227].mxu0  ;;  %12653 = vmatpush1.bf16.msra.mxu0 %v16589_v32 }
 0x6ad   : > { %v20464_v2 = vadd.f32 %v15040_v17, %v20389_v55  ;;  %v15043_v36 = vadd.f32 %v15042_v11, %v15041_v30 }
 0x6af   : > { %v20467_v9 = vadd.f32 %v15043_v36, %v20392_v41  ;;  %v16594_v41 = vld [vmem:[%s21254_s4 + $0x74] ss:$8 sps:$4 sm:$0xff]  }
 0x6b0   : > { %12654 = vmatprep.subr.bf16.mxu0 %v16594_v41  ;;  %v16618_v36 = vld [vmem:[%s21254_s4 + $0xf4] ss:$8 sps:$4 sm:$0xff]  }
 0x6b1   : > { %v15044_v4 = vpop.f32.mrb[228].mxu0  ;;  %12655 = vmatpush1.bf16.msra.mxu0 %v16592_v27 }
 0x6b2   : > { %v15045_v16 = vpop.f32.mrb[229].mxu0 }
 0x6b3   : > { %v15046_v40 = vadd.f32 %v15045_v16, %v15044_v4  ;;  %v15047_v24 = vpop.f32.mrb[230].mxu0  ;;  %v16623_v4 = vld [vmem:[%s21254_s4 + $0x104] ss:$8 sps:$4 sm:$0xff]  }
 0x6b4   : > { %v15048_v55 = vpop.f32.mrb[231].mxu0 }
 0x6b5   : > { %v20479_v3 = vadd.f32 %v15046_v40, %v20395_v29  ;;  %v15049_v53 = vadd.f32 %v15048_v55, %v15047_v24  ;;  %v16597_v29 = vld [vmem:[%s21254_s4 + $0x84] ss:$8 sps:$4 sm:$0xff]  }
 0x6b6   : > { %12656 = vmatprep.subr.bf16.mxu0 %v16597_v29 }
 0x6b7   : > { %v20485_v12 = vadd.f32 %v15049_v53, %v20398_v39  ;;  %v16600_v39 = vld [vmem:[%s21254_s4 + $0x94] ss:$8 sps:$4 sm:$0xff]   ;;  %12657 = vmatpush1.bf16.msra.mxu0 %v16595_v13 }
 0x6b8   : > { %12658 = vmatprep.subr.bf16.mxu0 %v16600_v39 }
 0x6b9   : > { %v15050_v6 = vpop.f32.mrb[232].mxu0 }
 0x6ba   : > { %v15051_v63 = vpop.f32.mrb[233].mxu0 }
 0x6bb   : > { %v15052_v20 = vadd.f32 %v15051_v63, %v15050_v6  ;;  %v15053_v43 = vpop.f32.mrb[234].mxu0  ;;  %12659 = vmatpush1.bf16.msra.mxu0 %v16598_v26 }
 0x6bc   : > { %v15054_v0 = vpop.f32.mrb[235].mxu0 }
 0x6bd   : > { %v20497_v42 = vadd.f32 %v15052_v20, %v20407_v45  ;;  %v15055_v46 = vadd.f32 %v15054_v0, %v15053_v43  ;;  %v16603_v45 = vld [vmem:[%s21254_s4 + $0xa4] ss:$8 sps:$4 sm:$0xff]  }
 0x6be   : > { %12660 = vmatprep.subr.bf16.mxu0 %v16603_v45 }
 0x6bf   : > { %v20503_v8 = vadd.f32 %v15055_v46, %v20419_v18  ;;  %v16606_v18 = vld [vmem:[%s21254_s4 + $0xb4] ss:$8 sps:$4 sm:$0xff]   ;;  %12661 = vmatpush1.bf16.msra.mxu0 %v16601_v21 }
 0x6c0   : > { %12662 = vmatprep.subr.bf16.mxu0 %v16606_v18 }
 0x6c1   : > { %v15056_v49 = vpop.f32.mrb[236].mxu0 }
 0x6c2   : > { %v15057_v51 = vpop.f32.mrb[237].mxu0 }
 0x6c3   : > { %v15058_v50 = vadd.f32 %v15057_v51, %v15056_v49  ;;  %v15059_v25 = vpop.f32.mrb[238].mxu0  ;;  %12663 = vmatpush1.bf16.msra.mxu0 %v16604_v47 }
 0x6c4   : > { %v15060_v52 = vpop.f32.mrb[239].mxu0 }
 0x6c5   : > { %v20515_v10 = vadd.f32 %v15058_v50, %v20425_v38  ;;  %v15061_v48 = vadd.f32 %v15060_v52, %v15059_v25  ;;  %v16609_v38 = vld [vmem:[%s21254_s4 + $0xc4] ss:$8 sps:$4 sm:$0xff]  }
 0x6c6   : > { %12664 = vmatprep.subr.bf16.mxu0 %v16609_v38 }
 0x6c7   : > { %v20521_v57 = vadd.f32 %v15061_v48, %v20428_v5  ;;  %v16612_v5 = vld [vmem:[%s21254_s4 + $0xd4] ss:$8 sps:$4 sm:$0xff]   ;;  %12665 = vmatpush1.bf16.msra.mxu0 %v16607_v61 }
 0x6c8   : > { %12666 = vmatprep.subr.bf16.mxu0 %v16612_v5 }
 0x6c9   : > { %v15062_v60 = vpop.f32.mrb[240].mxu0 }
 0x6ca   : > { %v15063_v58 = vpop.f32.mrb[241].mxu0 }
 0x6cb   : > { %v15064_v31 = vadd.f32 %v15063_v58, %v15062_v60  ;;  %v15065_v22 = vpop.f32.mrb[242].mxu0  ;;  %12667 = vmatpush1.bf16.msra.mxu0 %v16610_v1 }
 0x6cc   : > { %v15066_v14 = vpop.f32.mrb[243].mxu0  ;;  %12668 = vmatprep.subr.bf16.mxu0 %v16615_v23 }
 0x6cd   : > { %v20533_v59 = vadd.f32 %v15064_v31, %v20431_v7 }
 0x6cf   : > { %12669 = vmatpush1.bf16.msra.mxu0 %v16613_v28 }
 0x6d0   : > { %12670 = vmatprep.subr.bf16.mxu0 %v16618_v36 }
 0x6d1   : > { %v15084_v44 = vpop.f32.mrb[244].mxu0 }
 0x6d2   : > { %v15085_v33 = vpop.f32.mrb[245].mxu0 }
 0x6d3   : > { %v15086_v35 = vadd.f32 %v15085_v33, %v15084_v44  ;;  %v15087_v7 = vpop.f32.mrb[246].mxu0  ;;  %12671 = vmatpush1.bf16.msra.mxu0 %v16616_v56 }
 0x6d4   : > { %v15088_v17 = vpop.f32.mrb[247].mxu0  ;;  %12713 = vmatprep.subr.bf16.mxu0 %v16623_v4 }
 0x6d5   : > { %v10893_v30 = vadd.f32 %v15086_v35, %v20434_v15  ;;  %v15089_v11 = vadd.f32 %v15088_v17, %v15087_v7  ;;  %v20598_v35 = vld [vmem:[%s21256_s6 + $0x2] ss:$0 sm:$0xff] }
 0x6d7   : > { %v20546_v37 = vadd.f32 %v15089_v11, %v20437_v62 }
 0x6d9   : > { %v15090_v16 = vpop.f32.mrb[248].mxu0 }
 0x6da   : > { %v15091_v15 = vpop.f32.mrb[249].mxu0 }
 0x6db   : > { %v15092_v32 = vadd.f32 %v15091_v15, %v15090_v16  ;;  %v15093_v34 = vpop.f32.mrb[250].mxu0 }
 0x6dc   : > { %v15094_v62 = vpop.f32.mrb[251].mxu0 }
 0x6dd   : > { %v20558_v40 = vadd.f32 %v15092_v32, %v20446_v19  ;;  %v15095_v24 = vadd.f32 %v15094_v62, %v15093_v34 }
 0x6df   : > { %v20561_v55 = vadd.f32 %v15095_v24, %v20449_v54 }
 0x6e1   : > { %v15096_v41 = vpop.f32.mrb[252].mxu0 }
 0x6e2   : > { %v15097_v53 = vpop.f32.mrb[253].mxu0 }
 0x6e3   : > { %v15098_v27 = vadd.f32 %v15097_v53, %v15096_v41  ;;  %v15099_v6 = vpop.f32.mrb[254].mxu0 }
 0x6e4   : > { %v15100_v13 = vpop.f32.mrb[255].mxu0 }
 0x6e5   : > { %v20564_v29 = vadd.f32 %v15098_v27, %v20464_v2  ;;  %v15101_v63 = vadd.f32 %v15100_v13, %v15099_v6 }
 0x6e7   : > { %v20567_v20 = vadd.f32 %v15101_v63, %v20467_v9 }
 0x6e9   : > { %v15102_v43 = vpop.f32.mrb[0].mxu0 }
 0x6ea   : > { %v15103_v0 = vpop.f32.mrb[1].mxu0 }
 0x6eb   : > { %v15104_v19 = vadd.f32 %v15103_v0, %v15102_v43  ;;  %v15105_v39 = vpop.f32.mrb[2].mxu0 }
 0x6ec   : > { %v15106_v46 = vpop.f32.mrb[3].mxu0 }
 0x6ed   : > { %v20570_v54 = vadd.f32 %v15104_v19, %v20479_v3  ;;  %v15107_v26 = vadd.f32 %v15106_v46, %v15105_v39 }
 0x6ef   : > { %v20573_v49 = vadd.f32 %v15107_v26, %v20485_v12 }
 0x6f1   : > { %v15108_v51 = vpop.f32.mrb[4].mxu0 }
 0x6f2   : > { %v15109_v21 = vpop.f32.mrb[5].mxu0 }
 0x6f3   : > { %v15110_v2 = vadd.f32 %v15109_v21, %v15108_v51  ;;  %v15111_v45 = vpop.f32.mrb[6].mxu0 }
 0x6f4   : > { %v15112_v50 = vpop.f32.mrb[7].mxu0 }
 0x6f5   : > { %v20576_v9 = vadd.f32 %v15110_v2, %v20497_v42  ;;  %v15113_v25 = vadd.f32 %v15112_v50, %v15111_v45 }
 0x6f7   : > { %v20579_v52 = vadd.f32 %v15113_v25, %v20503_v8 }
 0x6f9   : > { %v15114_v18 = vpop.f32.mrb[8].mxu0 }
 0x6fa   : > { %v15115_v48 = vpop.f32.mrb[9].mxu0 }
 0x6fb   : > { %v15116_v3 = vadd.f32 %v15115_v48, %v15114_v18  ;;  %v15117_v47 = vpop.f32.mrb[10].mxu0 }
 0x6fc   : > { %v15118_v60 = vpop.f32.mrb[11].mxu0 }
 0x6fd   : > { %v20582_v12 = vadd.f32 %v15116_v3, %v20515_v10  ;;  %v15119_v61 = vadd.f32 %v15118_v60, %v15117_v47  ;;  %v20593_v10 = vld [vmem:[%s21255_s5 + $0x2] ss:$0 sm:$0xff] }
 0x6ff   : > { %v20585_v38 = vadd.f32 %v15119_v61, %v20521_v57 }
 0x701   : > { %v15120_v58 = vpop.f32.mrb[12].mxu0 }
 0x702   : > { %v15121_v31 = vpop.f32.mrb[13].mxu0 }
 0x703   : > { %v15122_v42 = vadd.f32 %v15121_v31, %v15120_v58  ;;  %v15123_v22 = vpop.f32.mrb[14].mxu0 }
 0x704   : > { %v15124_v14 = vpop.f32.mrb[15].mxu0 }
 0x705   : > { %v20588_v8 = vadd.f32 %v15122_v42, %v20533_v59 }
 0x709   : > { %v15142_v5 = vpop.f32.mrb[16].mxu0 }
 0x70a   : > { %v15143_v1 = vpop.f32.mrb[17].mxu0 }
 0x70b   : > { %v15144_v44 = vadd.f32 %v15143_v1, %v15142_v5  ;;  %v15145_v33 = vpop.f32.mrb[18].mxu0 }
 0x70c   : > { %v15146_v28 = vpop.f32.mrb[19].mxu0 }
 0x70d   : > { %v10981_v57 = vadd.f32 %v15144_v44, %v10893_v30  ;;  %v15147_v23 = vadd.f32 %v15146_v28, %v15145_v33 }
 0x70f   : > { %v11040_v59 = vmul.f32 %v20593_v10, %v10981_v57  ;;  %v10984_v7 = vadd.f32 %v15147_v23, %v20546_v37 }
 0x711   : > { %v11057_v17 = vadd.f32 %v20598_v35, %v11040_v59  ;;  %v11041_v11 = vmul.f32 %v20593_v10, %v10984_v7  ;;  %v15148_v56 = vpop.f32.mrb[20].mxu0 }
 0x712   : > { %v15149_v36 = vpop.f32.mrb[21].mxu0 }
 0x713   : > { %v11083_v4 = vmin.f32 %v11057_v17, 0.0  ;;  %v11058_v16 = vadd.f32 %v20598_v35, %v11041_v11  ;;  %v15150_v30 = vadd.f32 %v15149_v36, %v15148_v56  ;;  %v15151_v15 = vpop.f32.mrb[22].mxu0  ;;  %vm11070_vm12 = vcmp.gt.f32.partialorder %v11057_v17, 0.0 }
 0x714   : > { %v15152_v32 = vpop.f32.mrb[23].mxu0 }
 0x715   : > { %v11096_v34 = vmul.f32 1.442695, %v11083_v4  ;;  %v11084_v62 = vmin.f32 %v11058_v16, 0.0  ;;  %v10989_v24 = vadd.f32 %v15150_v30, %v20558_v40  ;;  %v15153_v41 = vadd.f32 %v15152_v32, %v15151_v15 }
 0x716   : > { %vm11071_vm0 = vcmp.gt.f32.partialorder %v11058_v16, 0.0 }
 0x717   : > { %17070 = vpow2.f32 %v11096_v34  ;;  %v11098_v53 = vmul.f32 1.442695, %v11084_v62  ;;  %v11042_v37 = vmul.f32 %v20593_v10, %v10989_v24  ;;  %v10992_v27 = vadd.f32 %v15153_v41, %v20561_v55 }
 0x719   : > { %17072 = vpow2.f32 %v11098_v53  ;;  %v20609_v6 = vadd.f32 %v20598_v35, %v11042_v37  ;;  %v15154_v13 = vpop.f32.mrb[24].mxu0  ;;  %v11043_v63 = vmul.f32 %v20593_v10, %v10992_v27 }
 0x71a   : > { %v15155_v43 = vpop.f32.mrb[25].mxu0 }
 0x71b   : > { %v11085_v0 = vmin.f32 %v20609_v6, 0.0  ;;  %v15156_v19 = vadd.f32 %v15155_v43, %v15154_v13  ;;  %v15157_v39 = vpop.f32.mrb[26].mxu0  ;;  %v11060_v40 = vadd.f32 %v20598_v35, %v11043_v63  ;;  %vm11072_vm9 = vcmp.gt.f32.partialorder %v20609_v6, 0.0 }
 0x71c   : > { %v15158_v46 = vpop.f32.mrb[27].mxu0 }
 0x71d   : > { %v11100_v26 = vmul.f32 1.442695, %v11085_v0  ;;  %v10997_v51 = vadd.f32 %v15156_v19, %v20564_v29  ;;  %v15159_v21 = vadd.f32 %v15158_v46, %v15157_v39  ;;  %v11086_v55 = vmin.f32 %v11060_v40, 0.0 }
 0x71e   : > { %vm11073_vm10 = vcmp.gt.f32.partialorder %v11060_v40, 0.0 }
 0x71f   : > { %17074 = vpow2.f32 %v11100_v26  ;;  %v11044_v2 = vmul.f32 %v20593_v10, %v10997_v51  ;;  %v11000_v45 = vadd.f32 %v15159_v21, %v20567_v20  ;;  %v11102_v50 = vmul.f32 1.442695, %v11086_v55 }
 0x721   : > { %v17071_v25 = vpop.eup %17070  ;;  %v20618_v18 = vadd.f32 %v20598_v35, %v11044_v2  ;;  %v11045_v48 = vmul.f32 %v20593_v10, %v11000_v45  ;;  %v15160_v3 = vpop.f32.mrb[28].mxu0  ;;  %17076 = vpow2.f32 %v11102_v50 }
 0x722   : > { %v14501_v47 = vadd.f32 -1.0, %v17071_v25  ;;  %v15161_v60 = vpop.f32.mrb[29].mxu0 }
 0x723   : > { %v17073_v61 = vpop.eup %17072  ;;  %v11087_v29 = vmin.f32 %v20618_v18, 0.0  ;;  %v20623_v58 = vadd.f32 %v20598_v35, %v11045_v48  ;;  %v15162_v31 = vadd.f32 %v15161_v60, %v15160_v3  ;;  %v15163_v42 = vpop.f32.mrb[30].mxu0  ;;  %vm11074_vm11 = vcmp.gt.f32.partialorder %v20618_v18, 0.0 }
 0x724   : > { %v14502_v20 = vadd.f32 -1.0, %v17073_v61  ;;  %v15164_v22 = vpop.f32.mrb[31].mxu0  ;;  %v11135_v44 = vsel %vm11070_vm12, %v11057_v17, %v14501_v47 }
 0x725   : > { %v11104_v14 = vmul.f32 1.442695, %v11087_v29  ;;  %v11088_v5 = vmin.f32 %v20623_v58, 0.0  ;;  %v11005_v1 = vadd.f32 %v15162_v31, %v20570_v54  ;;  %v15165_v28 = vadd.f32 %v15164_v22, %v15163_v42 }
 0x726   : > { %v11136_v33 = vsel %vm11071_vm0, %v11058_v16, %v14502_v20  ;;  %vm11075_vm13 = vcmp.gt.f32.partialorder %v20623_v58, 0.0 }
 0x727   : > { %v14825_v57 = vpack.c.bf16 %v11136_v33, %v11135_v44  ;;  %17078 = vpow2.f32 %v11104_v14  ;;  %v11106_v23 = vmul.f32 1.442695, %v11088_v5  ;;  %v11046_v59 = vmul.f32 %v20593_v10, %v11005_v1 }
 0x728   : > { %v11008_v7 = vadd.f32 %v15165_v28, %v20573_v49 }
 0x729   : > { %v17075_v11 = vpop.eup %17074  ;;  %14826 = vst [vmem:[#allocation4] sm:$0xff] %v14825_v57   ;;  %17080 = vpow2.f32 %v11106_v23  ;;  %v20630_v56 = vadd.f32 %v20598_v35, %v11046_v59  ;;  %v15166_v36 = vpop.f32.mrb[32].mxu0 }
 0x72a   : > { %v14503_v4 = vadd.f32 -1.0, %v17075_v11  ;;  %v11047_v54 = vmul.f32 %v20593_v10, %v11008_v7  ;;  %v15167_v17 = vpop.f32.mrb[33].mxu0 }
 0x72b   : > { %v11089_v16 = vmin.f32 %v20630_v56, 0.0  ;;  %v15168_v30 = vadd.f32 %v15167_v17, %v15166_v36  ;;  %v15169_v15 = vpop.f32.mrb[34].mxu0  ;;  %v17077_v32 = vpop.eup %17076  ;;  %vm11076_vm15 = vcmp.gt.f32.partialorder %v20630_v56, 0.0 }
 0x72c   : > { %v20636_v49 = vadd.f32 %v20598_v35, %v11047_v54  ;;  %v15170_v34 = vpop.f32.mrb[35].mxu0  ;;  %v14504_v62 = vadd.f32 -1.0, %v17077_v32  ;;  %v11137_v37 = vsel %vm11072_vm9, %v20609_v6, %v14503_v4 }
 0x72d   : > { %v11108_v24 = vmul.f32 1.442695, %v11089_v16  ;;  %v11013_v41 = vadd.f32 %v15168_v30, %v20576_v9  ;;  %v15171_v53 = vadd.f32 %v15170_v34, %v15169_v15  ;;  %v16627_v15 = vld [vmem:[%s21254_s4 + $0x114] ss:$8 sps:$4 sm:$0xff]   ;;  %v16625_v34 = vld [vmem:[%s21254_s4 + $0x110] ss:$8 sps:$4 sm:$0xff]  }
 0x72e   : > { %v11090_v27 = vmin.f32 %v20636_v49, 0.0  ;;  %v11138_v13 = vsel %vm11073_vm10, %v11060_v40, %v14504_v62  ;;  %vm11077_vm1 = vcmp.gt.f32.partialorder %v20636_v49, 0.0 }
 0x72f   : > { %17082 = vpow2.f32 %v11108_v24  ;;  %v11048_v63 = vmul.f32 %v20593_v10, %v11013_v41  ;;  %v11016_v43 = vadd.f32 %v15171_v53, %v20579_v52  ;;  %v14830_v0 = vpack.c.bf16 %v11138_v13, %v11137_v37  ;;  %v16631_v41 = vld [vmem:[%s21254_s4 + $0x124] ss:$8 sps:$4 sm:$0xff]  }
 0x730   : > { %v11110_v19 = vmul.f32 1.442695, %v11090_v27  ;;  %v16619_v29 = vld [vmem:[#allocation4] sm:$0xfc]  }
 0x731   : > { %v17079_v39 = vpop.eup %17078  ;;  %v20644_v46 = vadd.f32 %v20598_v35, %v11048_v63  ;;  %v11049_v9 = vmul.f32 %v20593_v10, %v11016_v43  ;;  %v15172_v26 = vpop.f32.mrb[36].mxu0  ;;  %14859 = vst [vmem:[#allocation4 + $0x8] sm:$0xff] %v14830_v0   ;;  %v11283_v44 = vrot.slane %v16619_v29, 2  ;;  %v16624_v30 = vld [vmem:[#allocation4] sm:$0xff]  }
 0x732   : > { %v14505_v6 = vadd.f32 -1.0, %v17079_v39  ;;  %17084 = vpow2.f32 %v11110_v19  ;;  %v15173_v51 = vpop.f32.mrb[37].mxu0 }
 0x733   : > { %v17081_v21 = vpop.eup %17080  ;;  %v11091_v40 = vmin.f32 %v20644_v46, 0.0  ;;  %v20649_v55 = vadd.f32 %v20598_v35, %v11049_v9  ;;  %v15174_v52 = vadd.f32 %v15173_v51, %v15172_v26  ;;  %v15175_v2 = vpop.f32.mrb[38].mxu0  ;;  %vm11078_vm2 = vcmp.gt.f32.partialorder %v20644_v46, 0.0 }
 0x734   : > { %v14506_v45 = vadd.f32 -1.0, %v17081_v21  ;;  %v15176_v50 = vpop.f32.mrb[39].mxu0  ;;  %v11139_v47 = vsel %vm11074_vm11, %v20618_v18, %v14505_v6 }
 0x735   : > { %v11112_v25 = vmul.f32 1.442695, %v11091_v40  ;;  %v11092_v48 = vmin.f32 %v20649_v55, 0.0  ;;  %v11021_v3 = vadd.f32 %v15174_v52, %v20582_v12  ;;  %v15177_v61 = vadd.f32 %v15176_v50, %v15175_v2  ;;  %v16633_v40 = vld [vmem:[%s21254_s4 + $0x130] ss:$8 sps:$4 sm:$0xff]  }
 0x736   : > { %v11140_v60 = vsel %vm11075_vm13, %v20623_v58, %v14506_v45  ;;  %vm11079_vm3 = vcmp.gt.f32.partialorder %v20649_v55, 0.0  ;;  %v16639_v52 = vld [vmem:[%s21254_s4 + $0x144] ss:$8 sps:$4 sm:$0xff]  }
 0x737   : > { %v14835_v31 = vpack.c.bf16 %v11140_v60, %v11139_v47  ;;  %17086 = vpow2.f32 %v11112_v25  ;;  %v11114_v42 = vmul.f32 1.442695, %v11092_v48  ;;  %v11050_v20 = vmul.f32 %v20593_v10, %v11021_v3  ;;  %v16643_v48 = vld [vmem:[%s21254_s4 + $0x154] ss:$8 sps:$4 sm:$0xff]  }
 0x738   : > { %v11024_v22 = vadd.f32 %v15177_v61, %v20585_v38  ;;  %v16620_v18 = vld [vmem:[#allocation4 + $0x8] sm:$0xff]   ;;  %v16621_v38 = vld [vmem:[%s21254_s4 + $0x100] ss:$8 sps:$4 sm:$0xff]  }
 0x739   : > { %v17083_v14 = vpop.eup %17082  ;;  %14860 = vst [vmem:[#allocation4 + $0x10] sm:$0xff] %v14835_v31   ;;  %17088 = vpow2.f32 %v11114_v42  ;;  %v20660_v5 = vadd.f32 %v20598_v35, %v11050_v20  ;;  %v15178_v12 = vpop.f32.mrb[40].mxu0  ;;  %v11284_v59 = vrot.slane %v16620_v18, 2  ;;  %v16632_v39 = vld [vmem:[#allocation4 + $0x8] sm:$0xff]  }
 0x73a   : > { %v11051_v58 = vmul.f32 %v20593_v10, %v11024_v22  ;;  %v15179_v1 = vpop.f32.mrb[41].mxu0  ;;  %v14507_v33 = vadd.f32 -1.0, %v17083_v14  ;;  %v16641_v61 = vld [vmem:[%s21254_s4 + $0x150] ss:$8 sps:$4 sm:$0xff]   ;;  %v16647_v42 = vld [vmem:[%s21254_s4 + $0x164] ss:$8 sps:$4 sm:$0xff]  }
 0x73b   : > { %v11093_v28 = vmin.f32 %v20660_v5, 0.0  ;;  %v15180_v57 = vadd.f32 %v15179_v1, %v15178_v12  ;;  %v15181_v23 = vpop.f32.mrb[42].mxu0  ;;  %v11285_v16 = vsel %vm11282_vm14, %v11283_v44, %v11284_v59  ;;  %vm11080_vm4 = vcmp.gt.f32.partialorder %v20660_v5, 0.0  ;;  %v16649_v20 = vld [vmem:[#allocation4 + $0x4] sm:$0xfc]  }
 0x73c   : > { %v17085_v7 = vpop.eup %17084  ;;  %v20669_v11 = vadd.f32 %v20598_v35, %v11051_v58  ;;  %v15182_v36 = vpop.f32.mrb[43].mxu0  ;;  %12672 = vmatprep.mubr.bf16.mxu0 %v11285_v16  ;;  %v11141_v62 = vsel %vm11076_vm15, %v20630_v56, %v14507_v33  ;;  %v16662_v16 = vld [vmem:[%s21254_s4 + $0x1a4] ss:$8 sps:$4 sm:$0xff]  }
 0x73d   : > { %v14508_v4 = vadd.f32 -1.0, %v17085_v7  ;;  %v11116_v54 = vmul.f32 1.442695, %v11093_v28  ;;  %v11029_v17 = vadd.f32 %v15180_v57, %v20588_v8  ;;  %12673 = vmatmul.mubr.bf16.vlgmr.msra.gmra.mrb[44].mxu0 %v16624_v30  ;;  %v16645_v28 = vld [vmem:[%s21254_s4 + $0x160] ss:$8 sps:$4 sm:$0xff]  }
 0x73e   : > { %v11094_v32 = vmin.f32 %v20669_v11, 0.0  ;;  %12714 = vmatpush1.bf16.msra.mxu0 %v16621_v38  ;;  %vm11081_vm5 = vcmp.gt.f32.partialorder %v20669_v11, 0.0  ;;  %v16653_v57 = vld [vmem:[%s21254_s4 + $0x174] ss:$8 sps:$4 sm:$0xff]   ;;  %v11368_v38 = vrot.slane %v16649_v20, 2 }
 0x73f   : > { %v11142_v8 = vsel %vm11077_vm1, %v20636_v49, %v14508_v4  ;;  %17090 = vpow2.f32 %v11116_v54  ;;  %v11052_v24 = vmul.f32 %v20593_v10, %v11029_v17  ;;  %12715 = vmatprep.subr.bf16.mxu0 %v16627_v15  ;;  %v16629_v10 = vld [vmem:[%s21254_s4 + $0x120] ss:$8 sps:$4 sm:$0xff]   ;;  %v16656_v36 = vld [vmem:[%s21254_s4 + $0x184] ss:$8 sps:$4 sm:$0xff]   ;;  %v16659_v54 = vld [vmem:[%s21254_s4 + $0x194] ss:$8 sps:$4 sm:$0xff]  }
 0x740   : > { %v14840_v53 = vpack.c.bf16 %v11142_v8, %v11141_v62  ;;  %v11118_v37 = vmul.f32 1.442695, %v11094_v32  ;;  %v16628_v63 = vld [vmem:[#allocation4 + $0x10] sm:$0xff]   ;;  %v16654_v4 = vld [vmem:[%s21254_s4 + $0x180] ss:$8 sps:$4 sm:$0xff]  }
 0x741   : > { %v17087_v27 = vpop.eup %17086  ;;  %v20688_v13 = vadd.f32 %v20598_v35, %v11052_v24  ;;  %v11286_v0 = vrot.slane %v16628_v63, 2  ;;  %v16635_v35 = vld [vmem:[%s21254_s4 + $0x134] ss:$8 sps:$4 sm:$0xff]   ;;  %v16657_v17 = vld [vmem:[%s21254_s4 + $0x190] ss:$8 sps:$4 sm:$0xff]  }
 0x742   : > { %14861 = vst [vmem:[#allocation4 + $0x18] sm:$0xff] %v14840_v53   ;;  %v14509_v56 = vadd.f32 -1.0, %v17087_v27  ;;  %17092 = vpow2.f32 %v11118_v37  ;;  %12716 = vmatpush1.bf16.msra.mxu0 %v16625_v34  ;;  %v16640_v60 = vld [vmem:[#allocation4 + $0x10] sm:$0xff]   ;;  %v16660_v30 = vld [vmem:[%s21254_s4 + $0x1a0] ss:$8 sps:$4 sm:$0xff]  }
 0x743   : > { %v17089_v49 = vpop.eup %17088  ;;  %v11095_v43 = vmin.f32 %v20688_v13, 0.0  ;;  %v11287_v26 = vsel %vm11282_vm14, %v11284_v59, %v11286_v0  ;;  %12717 = vmatprep.subr.bf16.mxu0 %v16631_v41  ;;  %v20725_v22 = vld [vmem:[#allocation4 + $0xc] sm:$0xff]   ;;  %vm11082_vm6 = vcmp.gt.f32.partialorder %v20688_v13, 0.0  ;;  %v16668_v34 = vld [vmem:[%s21254_s4 + $0x1c4] ss:$8 sps:$4 sm:$0xff]  }
 0x744   : > { %v14510_v19 = vadd.f32 -1.0, %v17089_v49  ;;  %v11143_v6 = vsel %vm11078_vm2, %v20644_v46, %v14509_v56  ;;  %12682 = vmatprep.mubr.bf16.mxu0 %v11287_v26  ;;  %v16637_v46 = vld [vmem:[%s21254_s4 + $0x140] ss:$8 sps:$4 sm:$0xff]   ;;  %v16665_v15 = vld [vmem:[%s21254_s4 + $0x1b4] ss:$8 sps:$4 sm:$0xff]  }
 0x745   : > { %v11120_v9 = vmul.f32 1.442695, %v11095_v43  ;;  %12683 = vmatmul.mubr.bf16.gmra.mrb[48].mxu0 %v16632_v39  ;;  %v16663_v32 = vld [vmem:[%s21254_s4 + $0x1b0] ss:$8 sps:$4 sm:$0xff]   ;;  %v16666_v62 = vld [vmem:[%s21254_s4 + $0x1c0] ss:$8 sps:$4 sm:$0xff]  }
 0x746   : > { %v11144_v51 = vsel %vm11079_vm3, %v20649_v55, %v14510_v19  ;;  %12718 = vmatpush1.bf16.msra.mxu0 %v16629_v10  ;;  %v16671_v8 = vld [vmem:[%s21254_s4 + $0x1d4] ss:$8 sps:$4 sm:$0xff]   ;;  %v16669_v24 = vld [vmem:[%s21254_s4 + $0x1d0] ss:$8 sps:$4 sm:$0xff]   ;;  %v16674_v41 = vld [vmem:[%s21254_s4 + $0x1e4] ss:$8 sps:$4 sm:$0xff]  }
 0x747   : > { %v14845_v21 = vpack.c.bf16 %v11144_v51, %v11143_v6  ;;  %17094 = vpow2.f32 %v11120_v9  ;;  %12719 = vmatprep.subr.bf16.mxu0 %v16635_v35  ;;  %v16672_v53 = vld [vmem:[%s21254_s4 + $0x1e0] ss:$8 sps:$4 sm:$0xff]   ;;  %v16677_v37 = vld [vmem:[%s21254_s4 + $0x1f4] ss:$8 sps:$4 sm:$0xff]   ;;  %v16681_v63 = vld [vmem:[%s21254_s4 + $0x204] ss:$8 sps:$4 sm:$0xff]  }
 0x748   : > { %v16679_v10 = vld [vmem:[%s21254_s4 + $0x200] ss:$8 sps:$4 sm:$0xff]   ;;  %v16685_v43 = vld [vmem:[%s21254_s4 + $0x214] ss:$8 sps:$4 sm:$0xff]   ;;  %v16683_v19 = vld [vmem:[%s21254_s4 + $0x210] ss:$8 sps:$4 sm:$0xff]  }
 0x749   : > { %v17091_v2 = vpop.eup %17090  ;;  %14862 = vst [vmem:[#allocation4 + $0x20] sm:$0xff] %v14845_v21   ;;  %v16636_v45 = vld [vmem:[#allocation4 + $0x18] sm:$0xff]   ;;  %v16678_v49 = vld [vmem:[#allocation4 + $0x4] sm:$0xff]   ;;  %v16686_v6 = vld [vmem:[#allocation4 + $0xc] sm:$0xff]  }
 0x74a   : > { %v14511_v55 = vadd.f32 -1.0, %v17091_v2  ;;  %v11288_v50 = vrot.slane %v16636_v45, 2  ;;  %12720 = vmatpush1.bf16.msra.mxu0 %v16633_v40  ;;  %v16648_v59 = vld [vmem:[#allocation4 + $0x18] sm:$0xff]   ;;  %v16689_v39 = vld [vmem:[%s21254_s4 + $0x224] ss:$8 sps:$4 sm:$0xff]  }
 0x74b   : > { %12721 = vmatprep.subr.bf16.mxu0 %v16639_v52  ;;  %v16682_v27 = vld [vmem:[#allocation4 + $0x14] sm:$0xff]   ;;  %v16687_v26 = vld [vmem:[%s21254_s4 + $0x220] ss:$8 sps:$4 sm:$0xff]   ;;  %v16697_v2 = vld [vmem:[%s21254_s4 + $0x244] ss:$8 sps:$4 sm:$0xff]  }
 0x74c   : > { %v17093_v25 = vpop.eup %17092  ;;  %v11289_v47 = vsel %vm11282_vm14, %v11286_v0, %v11288_v50  ;;  %v11145_v29 = vsel %vm11080_vm4, %v20660_v5, %v14511_v55  ;;  %v11369_v5 = vrot.slane %v20725_v22, 2  ;;  %v11371_v56 = vrot.slane %v16682_v27, 2  ;;  %v16693_v51 = vld [vmem:[%s21254_s4 + $0x234] ss:$8 sps:$4 sm:$0xff]   ;;  %v16691_v52 = vld [vmem:[%s21254_s4 + $0x230] ss:$8 sps:$4 sm:$0xff]  }
 0x74d   : > { %v14512_v3 = vadd.f32 -1.0, %v17093_v25  ;;  %12692 = vmatprep.mubr.bf16.mxu0 %v11289_v47  ;;  %v16694_v55 = vld [vmem:[#allocation4 + $0x14] sm:$0xff]   ;;  %v16705_v47 = vld [vmem:[%s21254_s4 + $0x264] ss:$8 sps:$4 sm:$0xff]  }
 0x74e   : > { %12693 = vmatmul.mubr.bf16.gmra.mrb[52].mxu0 %v16640_v60  ;;  %v11370_v7 = vsel %vm11282_vm14, %v11368_v38, %v11369_v5  ;;  %v11372_v0 = vsel %vm11282_vm14, %v11369_v5, %v11371_v56  ;;  %v16706_v60 = vld [vmem:[#allocation4 + $0x8] sm:$0xfc]   ;;  %v16710_v20 = vld [vmem:[%s21254_s4 + $0x274] ss:$8 sps:$4 sm:$0xff]  }
 0x74f   : > { %v11146_v31 = vsel %vm11081_vm5, %v20669_v11, %v14512_v3  ;;  %12722 = vmatpush1.bf16.msra.mxu0 %v16637_v46  ;;  %v16651_v11 = vld [vmem:[%s21254_s4 + $0x170] ss:$8 sps:$4 sm:$0xff]   ;;  %v16695_v46 = vld [vmem:[%s21254_s4 + $0x240] ss:$8 sps:$4 sm:$0xff]   ;;  %v16719_v5 = vld [vmem:[%s21254_s4 + $0x2a4] ss:$8 sps:$4 sm:$0xff]  }
 0x750   : > { %v14850_v14 = vpack.c.bf16 %v11146_v31, %v11145_v29  ;;  %v16644_v12 = vld [vmem:[#allocation4 + $0x20] ss:$0 sps:$4 sm:$0x33]   ;;  %12723 = vmatprep.subr.bf16.mxu0 %v16643_v48  ;;  %v16698_v40 = vld [vmem:[#allocation4 + $0x24] ss:$0 sps:$4 sm:$0x33]  }
 0x751   : > { %v17095_v18 = vpop.eup %17094  ;;  %v11290_v1 = vrot.slane %v16644_v12, 2  ;;  %v16690_v35 = vld [vmem:[#allocation4 + $0x1c] sm:$0xff]   ;;  %v11375_v45 = vrot.slane %v16698_v40, 2  ;;  %v20825_v48 = vld [vmem:[#allocation4 + $0x10] sm:$0xff]  }
 0x752   : > { %14863 = vst [vmem:[#allocation4 + $0x28] sm:$0xff] %v14850_v14   ;;  %v14513_v58 = vadd.f32 -1.0, %v17095_v18  ;;  %v11373_v9 = vrot.slane %v16690_v35, 2  ;;  %v16699_v3 = vld [vmem:[%s21254_s4 + $0x250] ss:$8 sps:$4 sm:$0xff]   ;;  %v16702_v31 = vld [vmem:[#allocation4 + $0x1c] sm:$0xff]  }
 0x753   : > { %12724 = vmatpush1.bf16.msra.mxu0 %v16641_v61  ;;  %v11291_v33 = vsel %vm11282_vm14, %v11288_v50, %v11290_v1  ;;  %v16701_v50 = vld [vmem:[%s21254_s4 + $0x254] ss:$8 sps:$4 sm:$0xff]   ;;  %v11454_v61 = vrot.slane %v20825_v48, 2  ;;  %v16703_v29 = vld [vmem:[%s21254_s4 + $0x260] ss:$8 sps:$4 sm:$0xff]  }
 0x754   : > { %v11147_v44 = vsel %vm11082_vm6, %v20688_v13, %v14513_v58  ;;  %12702 = vmatprep.mubr.bf16.mxu0 %v11291_v33  ;;  %12725 = vmatprep.subr.bf16.mxu0 %v16647_v42  ;;  %v16675_v13 = vld [vmem:[%s21254_s4 + $0x1f0] ss:$8 sps:$4 sm:$0xff]   ;;  %v11374_v21 = vsel %vm11282_vm14, %v11371_v56, %v11373_v9  ;;  %v11376_v25 = vsel %vm11282_vm14, %v11373_v9, %v11375_v45  ;;  %v11453_v42 = vrot.slane %v16706_v60, 2  ;;  %v16713_v12 = vld [vmem:[%s21254_s4 + $0x284] ss:$8 sps:$4 sm:$0xff]  }
 0x755   : > { %v14781_v23 = vpack.c.bf16 %v11147_v44, %v11147_v44  ;;  %v16708_v14 = vld [vmem:[%s21254_s4 + $0x270] ss:$8 sps:$4 sm:$0xff]   ;;  %v16711_v18 = vld [vmem:[%s21254_s4 + $0x280] ss:$8 sps:$4 sm:$0xff]   ;;  %v16716_v58 = vld [vmem:[%s21254_s4 + $0x294] ss:$8 sps:$4 sm:$0xff]  }
 0x756   : > { %12703 = vmatmul.mubr.bf16.gmra.mrb[56].mxu0 %v16648_v59  ;;  %v11455_v22 = vsel %vm11282_vm14, %v11453_v42, %v11454_v61  ;;  %v16714_v1 = vld [vmem:[%s21254_s4 + $0x290] ss:$8 sps:$4 sm:$0xff]   ;;  %v16717_v44 = vld [vmem:[%s21254_s4 + $0x2a0] ss:$8 sps:$4 sm:$0xff]   ;;  %v16722_v33 = vld [vmem:[%s21254_s4 + $0x2b4] ss:$8 sps:$4 sm:$0xff]  }
 0x757   : > { %11213 = vst [vmem:[#allocation4 + $0x30] sm:$0x3] %v14781_v23  ;;  %12726 = vmatpush1.bf16.msra.mxu0 %v16645_v28  ;;  %12745 = vmatprep.mubr.bf16.mxu0 %v11370_v7  ;;  %v16720_v28 = vld [vmem:[%s21254_s4 + $0x2b0] ss:$8 sps:$4 sm:$0xff]   ;;  %v16723_v23 = vld [vmem:[%s21254_s4 + $0x2c0] ss:$8 sps:$4 sm:$0xff]  }
 0x758   : > { %12727 = vmatprep.subr.bf16.mxu0 %v16653_v57  ;;  %v16725_v57 = vld [vmem:[%s21254_s4 + $0x2c4] ss:$8 sps:$4 sm:$0xff]   ;;  %v16728_v59 = vld [vmem:[%s21254_s4 + $0x2d4] ss:$8 sps:$4 sm:$0xff]   ;;  %v16726_v38 = vld [vmem:[%s21254_s4 + $0x2d0] ss:$8 sps:$4 sm:$0xff]  }
 0x759   : > { %v16731_v7 = vld [vmem:[%s21254_s4 + $0x2e4] ss:$8 sps:$4 sm:$0xff]   ;;  %v16750_v27 = vld [vmem:[%s21254_s4 + $0x334] ss:$8 sps:$4 sm:$0xff]   ;;  %v16748_v56 = vld [vmem:[%s21254_s4 + $0x330] ss:$8 sps:$4 sm:$0xff]  }
 0x75a   : > { %v16758_v35 = vld [vmem:[%s21254_s4 + $0x354] ss:$8 sps:$4 sm:$0xff]   ;;  %v16756_v9 = vld [vmem:[%s21254_s4 + $0x350] ss:$8 sps:$4 sm:$0xff]   ;;  %v16759_v40 = vld [vmem:[#allocation4 + $0x20] sm:$0xff]  }
 0x75b   : > { %12728 = vmatpush1.bf16.msra.mxu0 %v16651_v11  ;;  %v16729_v11 = vld [vmem:[%s21254_s4 + $0x2e0] ss:$8 sps:$4 sm:$0xff]   ;;  %v16771_v48 = vld [vmem:[%s21254_s4 + $0x390] ss:$8 sps:$4 sm:$0xff]   ;;  %v16779_v60 = vld [vmem:[%s21254_s4 + $0x3b4] ss:$8 sps:$4 sm:$0xff]  }
 0x75c   : > { %12729 = vmatprep.subr.bf16.mxu0 %v16656_v36  ;;  %v16734_v36 = vld [vmem:[%s21254_s4 + $0x2f4] ss:$8 sps:$4 sm:$0xff]  }
 0x75d   : > { %v16785_v42 = vld [vmem:[%s21254_s4 + $0x3d4] ss:$8 sps:$4 sm:$0xff]  }
 0x75f   : > { %12730 = vmatpush1.bf16.msra.mxu0 %v16654_v4  ;;  %v16739_v4 = vld [vmem:[#allocation4 + $0x18] sm:$0xff]  }
 0x760   : > { %12731 = vmatprep.subr.bf16.mxu0 %v16659_v54  ;;  %v16732_v54 = vld [vmem:[%s21254_s4 + $0x2f0] ss:$8 sps:$4 sm:$0xff]  }
 0x763   : > { %12732 = vmatpush1.bf16.msra.mxu0 %v16657_v17  ;;  %v16738_v17 = vld [vmem:[%s21254_s4 + $0x304] ss:$8 sps:$4 sm:$0xff]  }
 0x764   : > { %12733 = vmatprep.subr.bf16.mxu0 %v16662_v16  ;;  %v11456_v16 = vrot.slane %v16739_v4, 2  ;;  %v16807_v4 = vld [vmem:[%s21254_s4 + $0x434] ss:$8 sps:$4 sm:$0xff]  }
 0x767   : > { %12734 = vmatpush1.bf16.msra.mxu0 %v16660_v30  ;;  %v16736_v30 = vld [vmem:[%s21254_s4 + $0x300] ss:$8 sps:$4 sm:$0xff]  }
 0x768   : > { %12735 = vmatprep.subr.bf16.mxu0 %v16665_v15  ;;  %v16735_v15 = vld [vmem:[#allocation4 + $0x8] sm:$0xff]  }
 0x76b   : > { %12736 = vmatpush1.bf16.msra.mxu0 %v16663_v32  ;;  %v16742_v32 = vld [vmem:[%s21254_s4 + $0x314] ss:$8 sps:$4 sm:$0xff]  }
 0x76c   : > { %12737 = vmatprep.subr.bf16.mxu0 %v16668_v34  ;;  %v11457_v34 = vsel %vm11282_vm14, %v11454_v61, %v11456_v16  ;;  %v16777_v61 = vld [vmem:[%s21254_s4 + $0x3b0] ss:$8 sps:$4 sm:$0xff]  }
 0x76f   : > { %12738 = vmatpush1.bf16.msra.mxu0 %v16666_v62  ;;  %v16747_v62 = vld [vmem:[#allocation4 + $0x20] sm:$0xff]  }
 0x770   : > { %12739 = vmatprep.subr.bf16.mxu0 %v16671_v8  ;;  %v16740_v8 = vld [vmem:[%s21254_s4 + $0x310] ss:$8 sps:$4 sm:$0xff]  }
 0x773   : > { %12740 = vmatpush1.bf16.msra.mxu0 %v16669_v24  ;;  %v16746_v24 = vld [vmem:[%s21254_s4 + $0x324] ss:$8 sps:$4 sm:$0xff]  }
 0x774   : > { %12741 = vmatprep.subr.bf16.mxu0 %v16674_v41  ;;  %v11458_v41 = vrot.slane %v16747_v62, 2  ;;  %v16815_v62 = vld [vmem:[%s21254_s4 + $0x454] ss:$8 sps:$4 sm:$0xff]  }
 0x777   : > { %12742 = vmatpush1.bf16.msra.mxu0 %v16672_v53  ;;  %v16744_v53 = vld [vmem:[%s21254_s4 + $0x320] ss:$8 sps:$4 sm:$0xff]  }
 0x778   : > { %12743 = vmatprep.subr.bf16.mxu0 %v16677_v37  ;;  %v16743_v37 = vld [vmem:[#allocation4 + $0x10] sm:$0xff]  }
 0x77b   : > { %12744 = vmatpush1.bf16.msra.mxu0 %v16675_v13  ;;  %v11459_v13 = vsel %vm11282_vm14, %v11456_v16, %v11458_v41  ;;  %v16805_v16 = vld [vmem:[%s21254_s4 + $0x430] ss:$8 sps:$4 sm:$0xff]  }
 0x77c   : > { %12786 = vmatprep.subr.bf16.mxu0 %v16681_v63  ;;  %v16755_v63 = vld [vmem:[#allocation4 + $0x28] ss:$0 sps:$4 sm:$0x33]  }
 0x77e   : > { %12746 = vmatmul.mubr.bf16.vlgmr.msra.gmra.mrb[44].mxu0 %v16678_v49  ;;  %v11460_v49 = vrot.slane %v16755_v63, 2  ;;  %v16816_v63 = vld [vmem:[#allocation4 + $0x24] sm:$0xff]  }
 0x77f   : > { %12755 = vmatprep.mubr.bf16.mxu0 %v11372_v0  ;;  %12787 = vmatpush1.bf16.msra.mxu0 %v16679_v10  ;;  %v16754_v10 = vld [vmem:[%s21254_s4 + $0x344] ss:$8 sps:$4 sm:$0xff]   ;;  %v16751_v0 = vld [vmem:[#allocation4 + $0x18] sm:$0xff]  }
 0x780   : > { %12788 = vmatprep.subr.bf16.mxu0 %v16685_v43  ;;  %v16752_v43 = vld [vmem:[%s21254_s4 + $0x340] ss:$8 sps:$4 sm:$0xff]  }
 0x783   : > { %12789 = vmatpush1.bf16.msra.mxu0 %v16683_v19  ;;  %v11461_v19 = vsel %vm11282_vm14, %v11458_v41, %v11460_v49  ;;  %v16813_v41 = vld [vmem:[%s21254_s4 + $0x450] ss:$8 sps:$4 sm:$0xff]  }
 0x784   : > { %12790 = vmatprep.subr.bf16.mxu0 %v16689_v39  ;;  %v20928_v39 = vld [vmem:[#allocation4 + $0x14] sm:$0xff]  }
 0x786   : > { %12756 = vmatmul.mubr.bf16.gmra.mrb[48].mxu0 %v16686_v6  ;;  %v16763_v6 = vld [vmem:[#allocation4 + $0xc] sm:$0xfc]  }
 0x787   : > { %12765 = vmatprep.mubr.bf16.mxu0 %v11374_v21  ;;  %12791 = vmatpush1.bf16.msra.mxu0 %v16687_v26  ;;  %v16762_v26 = vld [vmem:[%s21254_s4 + $0x364] ss:$8 sps:$4 sm:$0xff]   ;;  %v16760_v21 = vld [vmem:[%s21254_s4 + $0x360] ss:$8 sps:$4 sm:$0xff]  }
 0x788   : > { %12792 = vmatprep.subr.bf16.mxu0 %v16693_v51  ;;  %v11539_v51 = vrot.slane %v20928_v39, 2  ;;  %v16828_v39 = vld [vmem:[%s21254_s4 + $0x490] ss:$8 sps:$4 sm:$0xff]  }
 0x78b   : > { %12793 = vmatpush1.bf16.msra.mxu0 %v16691_v52  ;;  %v11538_v52 = vrot.slane %v16763_v6, 2  ;;  %v16836_v6 = vld [vmem:[%s21254_s4 + $0x4b4] ss:$8 sps:$4 sm:$0xff]  }
 0x78c   : > { %12794 = vmatprep.subr.bf16.mxu0 %v16697_v2  ;;  %v16767_v2 = vld [vmem:[%s21254_s4 + $0x374] ss:$8 sps:$4 sm:$0xff]  }
 0x78d   : > { %v11540_v45 = vsel %vm11282_vm14, %v11538_v52, %v11539_v51  ;;  %v16842_v52 = vld [vmem:[%s21254_s4 + $0x4d4] ss:$8 sps:$4 sm:$0xff]  }
 0x78e   : > { %12766 = vmatmul.mubr.bf16.gmra.mrb[52].mxu0 %v16694_v55  ;;  %v16770_v55 = vld [vmem:[%s21254_s4 + $0x384] ss:$8 sps:$4 sm:$0xff]  }
 0x78f   : > { %12775 = vmatprep.mubr.bf16.mxu0 %v11376_v25  ;;  %12795 = vmatpush1.bf16.msra.mxu0 %v16695_v46  ;;  %v16765_v46 = vld [vmem:[%s21254_s4 + $0x370] ss:$8 sps:$4 sm:$0xff]   ;;  %v16773_v25 = vld [vmem:[%s21254_s4 + $0x394] ss:$8 sps:$4 sm:$0xff]  }
 0x790   : > { %12796 = vmatprep.subr.bf16.mxu0 %v16701_v50  ;;  %v16768_v50 = vld [vmem:[%s21254_s4 + $0x380] ss:$8 sps:$4 sm:$0xff]  }
 0x793   : > { %12797 = vmatpush1.bf16.msra.mxu0 %v16699_v3  ;;  %v16776_v3 = vld [vmem:[%s21254_s4 + $0x3a4] ss:$8 sps:$4 sm:$0xff]  }
 0x794   : > { %12798 = vmatprep.subr.bf16.mxu0 %v16705_v47  ;;  %v16774_v47 = vld [vmem:[%s21254_s4 + $0x3a0] ss:$8 sps:$4 sm:$0xff]  }
 0x796   : > { %12776 = vmatmul.mubr.bf16.gmra.mrb[56].mxu0 %v16702_v31  ;;  %v16780_v31 = vld [vmem:[%s21254_s4 + $0x3c0] ss:$8 sps:$4 sm:$0xff]  }
 0x797   : > { %12799 = vmatpush1.bf16.msra.mxu0 %v16703_v29  ;;  %12818 = vmatprep.mubr.bf16.mxu0 %v11455_v22  ;;  %v16782_v29 = vld [vmem:[%s21254_s4 + $0x3c4] ss:$8 sps:$4 sm:$0xff]  }
 0x798   : > { %12800 = vmatprep.subr.bf16.mxu0 %v16710_v20  ;;  %v16783_v20 = vld [vmem:[%s21254_s4 + $0x3d0] ss:$8 sps:$4 sm:$0xff]   ;;  %v16788_v22 = vld [vmem:[%s21254_s4 + $0x3e4] ss:$8 sps:$4 sm:$0xff]  }
 0x79b   : > { %12801 = vmatpush1.bf16.msra.mxu0 %v16708_v14  ;;  %v16786_v14 = vld [vmem:[%s21254_s4 + $0x3e0] ss:$8 sps:$4 sm:$0xff]  }
 0x79c   : > { %12802 = vmatprep.subr.bf16.mxu0 %v16713_v12  ;;  %v16791_v12 = vld [vmem:[%s21254_s4 + $0x3f4] ss:$8 sps:$4 sm:$0xff]  }
 0x79f   : > { %12803 = vmatpush1.bf16.msra.mxu0 %v16711_v18  ;;  %v16796_v18 = vld [vmem:[#allocation4 + $0x1c] sm:$0xff]  }
 0x7a0   : > { %12804 = vmatprep.subr.bf16.mxu0 %v16716_v58  ;;  %v16789_v58 = vld [vmem:[%s21254_s4 + $0x3f0] ss:$8 sps:$4 sm:$0xff]  }
 0x7a3   : > { %12805 = vmatpush1.bf16.msra.mxu0 %v16714_v1  ;;  %v16795_v1 = vld [vmem:[%s21254_s4 + $0x404] ss:$8 sps:$4 sm:$0xff]  }
 0x7a4   : > { %12806 = vmatprep.subr.bf16.mxu0 %v16719_v5  ;;  %v11541_v5 = vrot.slane %v16796_v18, 2  ;;  %v13010_v18 = vlaneseq }
 0x7a7   : > { %12807 = vmatpush1.bf16.msra.mxu0 %v16717_v44  ;;  %v16793_v44 = vld [vmem:[%s21254_s4 + $0x400] ss:$8 sps:$4 sm:$0xff]  }
 0x7a8   : > { %12808 = vmatprep.subr.bf16.mxu0 %v16722_v33  ;;  %v16792_v33 = vld [vmem:[#allocation4 + $0xc] sm:$0xff]  }
 0x7ab   : > { %12809 = vmatpush1.bf16.msra.mxu0 %v16720_v28  ;;  %v16799_v28 = vld [vmem:[%s21254_s4 + $0x414] ss:$8 sps:$4 sm:$0xff]  }
 0x7ac   : > { %12810 = vmatprep.subr.bf16.mxu0 %v16725_v57  ;;  %v11542_v57 = vsel %vm11282_vm14, %v11539_v51, %v11541_v5  ;;  %v16834_v51 = vld [vmem:[%s21254_s4 + $0x4b0] ss:$8 sps:$4 sm:$0xff]  }
 0x7af   : > { %12811 = vmatpush1.bf16.msra.mxu0 %v16723_v23  ;;  %v16804_v23 = vld [vmem:[#allocation4 + $0x24] sm:$0xff]  }
 0x7b0   : > { %12812 = vmatprep.subr.bf16.mxu0 %v16728_v59  ;;  %v16797_v59 = vld [vmem:[%s21254_s4 + $0x410] ss:$8 sps:$4 sm:$0xff]  }
 0x7b3   : > { %12813 = vmatpush1.bf16.msra.mxu0 %v16726_v38  ;;  %v16803_v38 = vld [vmem:[%s21254_s4 + $0x424] ss:$8 sps:$4 sm:$0xff]  }
 0x7b4   : > { %12814 = vmatprep.subr.bf16.mxu0 %v16731_v7  ;;  %v11543_v7 = vrot.slane %v16804_v23, 2 }
 0x7b7   : > { %12815 = vmatpush1.bf16.msra.mxu0 %v16729_v11  ;;  %v16801_v11 = vld [vmem:[%s21254_s4 + $0x420] ss:$8 sps:$4 sm:$0xff]  }
 0x7b8   : > { %12816 = vmatprep.subr.bf16.mxu0 %v16734_v36  ;;  %v16800_v36 = vld [vmem:[#allocation4 + $0x14] sm:$0xff]  }
 0x7bb   : > { %12817 = vmatpush1.bf16.msra.mxu0 %v16732_v54  ;;  %v11544_v54 = vsel %vm11282_vm14, %v11541_v5, %v11543_v7  ;;  %v14732_v5 = vld [vmem:[%s21255_s5 + $0x3] ss:$4 sm:$0x3] }
 0x7bc   : > { %12859 = vmatprep.subr.bf16.mxu0 %v16738_v17  ;;  %v16812_v17 = vld [vmem:[#allocation4 + $0x2c] ss:$0 sps:$4 sm:$0x33]  }
 0x7be   : > { %12819 = vmatmul.mubr.bf16.vlgmr.msra.gmra.mrb[44].mxu0 %v16735_v15  ;;  %v11545_v15 = vrot.slane %v16812_v17, 2 }
 0x7bf   : > { %12828 = vmatprep.mubr.bf16.mxu0 %v11457_v34  ;;  %12860 = vmatpush1.bf16.msra.mxu0 %v16736_v30  ;;  %v16811_v30 = vld [vmem:[%s21254_s4 + $0x444] ss:$8 sps:$4 sm:$0xff]  }
 0x7c0   : > { %12861 = vmatprep.subr.bf16.mxu0 %v16742_v32  ;;  %v16809_v32 = vld [vmem:[%s21254_s4 + $0x440] ss:$8 sps:$4 sm:$0xff]  }
 0x7c1   : > { %v16808_v34 = vld [vmem:[#allocation4 + $0x1c] sm:$0xff]  }
 0x7c3   : > { %12862 = vmatpush1.bf16.msra.mxu0 %v16740_v8  ;;  %v11546_v8 = vsel %vm11282_vm14, %v11543_v7, %v11545_v15 }
 0x7c4   : > { %12863 = vmatprep.subr.bf16.mxu0 %v16746_v24  ;;  %v16821_v24 = vld [vmem:[#allocation4 + $0x18] sm:$0xff]  }
 0x7c6   : > { %12829 = vmatmul.mubr.bf16.gmra.mrb[48].mxu0 %v16743_v37  ;;  %v16820_v37 = vld [vmem:[#allocation4 + $0x10] sm:$0xfc]  }
 0x7c7   : > { %12838 = vmatprep.mubr.bf16.mxu0 %v11459_v13  ;;  %12864 = vmatpush1.bf16.msra.mxu0 %v16744_v53  ;;  %v16819_v53 = vld [vmem:[%s21254_s4 + $0x464] ss:$8 sps:$4 sm:$0xff]   ;;  %v16817_v13 = vld [vmem:[%s21254_s4 + $0x460] ss:$8 sps:$4 sm:$0xff]  }
 0x7c8   : > { %12865 = vmatprep.subr.bf16.mxu0 %v16750_v27  ;;  %v11624_v27 = vrot.slane %v16821_v24, 2 }
 0x7cb   : > { %12866 = vmatpush1.bf16.msra.mxu0 %v16748_v56  ;;  %v11623_v56 = vrot.slane %v16820_v37, 2 }
 0x7cc   : > { %12867 = vmatprep.subr.bf16.mxu0 %v16754_v10  ;;  %v16824_v10 = vld [vmem:[%s21254_s4 + $0x474] ss:$8 sps:$4 sm:$0xff]  }
 0x7cd   : > { %v11625_v49 = vsel %vm11282_vm14, %v11623_v56, %v11624_v27 }
 0x7ce   : > { %12839 = vmatmul.mubr.bf16.gmra.mrb[52].mxu0 %v16751_v0  ;;  %v16827_v0 = vld [vmem:[%s21254_s4 + $0x484] ss:$8 sps:$4 sm:$0xff]  }
 0x7cf   : > { %12848 = vmatprep.mubr.bf16.mxu0 %v11461_v19  ;;  %12868 = vmatpush1.bf16.msra.mxu0 %v16752_v43  ;;  %v16822_v43 = vld [vmem:[%s21254_s4 + $0x470] ss:$8 sps:$4 sm:$0xff]   ;;  %v16830_v19 = vld [vmem:[%s21254_s4 + $0x494] ss:$8 sps:$4 sm:$0xff]  }
 0x7d0   : > { %12869 = vmatprep.subr.bf16.mxu0 %v16758_v35  ;;  %v16825_v35 = vld [vmem:[%s21254_s4 + $0x480] ss:$8 sps:$4 sm:$0xff]  }
 0x7d3   : > { %12870 = vmatpush1.bf16.msra.mxu0 %v16756_v9  ;;  %v16833_v9 = vld [vmem:[%s21254_s4 + $0x4a4] ss:$8 sps:$4 sm:$0xff]  }
 0x7d4   : > { %12871 = vmatprep.subr.bf16.mxu0 %v16762_v26  ;;  %v16831_v26 = vld [vmem:[%s21254_s4 + $0x4a0] ss:$8 sps:$4 sm:$0xff]  }
 0x7d6   : > { %12849 = vmatmul.mubr.bf16.gmra.mrb[56].mxu0 %v16759_v40  ;;  %v16837_v40 = vld [vmem:[%s21254_s4 + $0x4c0] ss:$8 sps:$4 sm:$0xff]  }
 0x7d7   : > { %12872 = vmatpush1.bf16.msra.mxu0 %v16760_v21  ;;  %12891 = vmatprep.mubr.bf16.mxu0 %v11540_v45  ;;  %v16839_v21 = vld [vmem:[%s21254_s4 + $0x4c4] ss:$8 sps:$4 sm:$0xff]  }
 0x7d8   : > { %12873 = vmatprep.subr.bf16.mxu0 %v16767_v2  ;;  %v16840_v2 = vld [vmem:[%s21254_s4 + $0x4d0] ss:$8 sps:$4 sm:$0xff]   ;;  %v16845_v45 = vld [vmem:[%s21254_s4 + $0x4e4] ss:$8 sps:$4 sm:$0xff]  }
 0x7db   : > { %12874 = vmatpush1.bf16.msra.mxu0 %v16765_v46  ;;  %v16843_v46 = vld [vmem:[%s21254_s4 + $0x4e0] ss:$8 sps:$4 sm:$0xff]  }
 0x7dc   : > { %12875 = vmatprep.subr.bf16.mxu0 %v16770_v55  ;;  %v16848_v55 = vld [vmem:[%s21254_s4 + $0x4f4] ss:$8 sps:$4 sm:$0xff]  }
 0x7df   : > { %12876 = vmatpush1.bf16.msra.mxu0 %v16768_v50  ;;  %v16850_v50 = vld [vmem:[#allocation4 + $0x20] sm:$0xff]  }
 0x7e0   : > { %12877 = vmatprep.subr.bf16.mxu0 %v16773_v25  ;;  %v16846_v25 = vld [vmem:[%s21254_s4 + $0x4f0] ss:$8 sps:$4 sm:$0xff]  }
 0x7e3   : > { %12878 = vmatpush1.bf16.msra.mxu0 %v16771_v48  ;;  %v11626_v48 = vrot.slane %v16850_v50, 2 }
 0x7e4   : > { %12879 = vmatprep.subr.bf16.mxu0 %v16776_v3  ;;  %v16849_v3 = vld [vmem:[#allocation4 + $0x10] sm:$0xff]  }
 0x7e7   : > { %12880 = vmatpush1.bf16.msra.mxu0 %v16774_v47  ;;  %v11627_v47 = vsel %vm11282_vm14, %v11624_v27, %v11626_v48 }
 0x7e8   : > { %12881 = vmatprep.subr.bf16.mxu0 %v16779_v60  ;;  %v16852_v60 = vld [vmem:[#allocation4 + $0x28] sm:$0xff]  }
 0x7eb   : > { %12882 = vmatpush1.bf16.msra.mxu0 %v16777_v61  ;;  %v11628_v61 = vrot.slane %v16852_v60, 2 }
 0x7ec   : > { %12883 = vmatprep.subr.bf16.mxu0 %v16782_v29  ;;  %v16851_v29 = vld [vmem:[#allocation4 + $0x18] sm:$0xff]  }
 0x7ef   : > { %12884 = vmatpush1.bf16.msra.mxu0 %v16780_v31  ;;  %v11629_v31 = vsel %vm11282_vm14, %v11626_v48, %v11628_v61 }
 0x7f0   : > { %12885 = vmatprep.subr.bf16.mxu0 %v16785_v42  ;;  %v16854_v42 = vld [vmem:[#allocation4 + $0x30] ss:$0 sps:$4 sm:$0x33]  }
 0x7f3   : > { %12886 = vmatpush1.bf16.msra.mxu0 %v16783_v20  ;;  %v11630_v20 = vrot.slane %v16854_v42, 2 }
 0x7f4   : > { %12887 = vmatprep.subr.bf16.mxu0 %v16788_v22  ;;  %v16853_v22 = vld [vmem:[#allocation4 + $0x20] sm:$0xff]  }
 0x7f7   : > { %12888 = vmatpush1.bf16.msra.mxu0 %v16786_v14  ;;  %v11631_v14 = vsel %vm11282_vm14, %v11628_v61, %v11630_v20 }
 0x7f8   : > { %12889 = vmatprep.subr.bf16.mxu0 %v16791_v12  ;;  %v16855_v12 = vld [vmem:[#allocation4 + $0x28] sm:$0xff]  }
 0x7fb   : > { %12890 = vmatpush1.bf16.msra.mxu0 %v16789_v58  ;;  %v13011_v58 = vshrl.u32 %v13010_v18, 7 }
 0x7fc   : > { %12932 = vmatprep.subr.bf16.mxu0 %v16795_v1 }
 0x7fd   : > { %v13012_v1 = vsub.s32 0, %v13011_v58 }
 0x7fe   : > { %12892 = vmatmul.mubr.bf16.vlgmr.msra.gmra.mrb[44].mxu0 %v16792_v33  ;;  %v14733_v33 = vld [vmem:[%s21256_s6 + $0x3] ss:$4 sm:$0x3] }
 0x7ff   : > { %12901 = vmatprep.mubr.bf16.mxu0 %v11542_v57  ;;  %12933 = vmatpush1.bf16.msra.mxu0 %v16793_v44  ;;  %v13016_v44 = vsub.s32 1, %v13011_v58  ;;  %v21108_v23 = vrot.slane %v14733_v33, %v13012_v1 }
 0x800   : > { %12934 = vmatprep.subr.bf16.mxu0 %v16799_v28  ;;  %v21104_v28 = vrot.slane %v14732_v5, %v13012_v1 }
 0x801   : > { %v21106_v57 = vrot.slane %v14732_v5, %v13016_v44 }
 0x803   : > { %12935 = vmatpush1.bf16.msra.mxu0 %v16797_v59 }
 0x804   : > { %12936 = vmatprep.subr.bf16.mxu0 %v16803_v38  ;;  %v21110_v38 = vrot.slane %v14733_v33, %v13016_v44 }
 0x806   : > { %12902 = vmatmul.mubr.bf16.gmra.mrb[48].mxu0 %v16800_v36 }
 0x807   : > { %12911 = vmatprep.mubr.bf16.mxu0 %v11544_v54  ;;  %12937 = vmatpush1.bf16.msra.mxu0 %v16801_v11 }
 0x808   : > { %12938 = vmatprep.subr.bf16.mxu0 %v16807_v4 }
 0x80b   : > { %12939 = vmatpush1.bf16.msra.mxu0 %v16805_v16 }
 0x80c   : > { %12940 = vmatprep.subr.bf16.mxu0 %v16811_v30 }
 0x80e   : > { %12912 = vmatmul.mubr.bf16.gmra.mrb[52].mxu0 %v16808_v34 }
 0x80f   : > { %12921 = vmatprep.mubr.bf16.mxu0 %v11546_v8  ;;  %12941 = vmatpush1.bf16.msra.mxu0 %v16809_v32 }
 0x810   : > { %12942 = vmatprep.subr.bf16.mxu0 %v16815_v62 }
 0x813   : > { %12943 = vmatpush1.bf16.msra.mxu0 %v16813_v41 }
 0x814   : > { %12944 = vmatprep.subr.bf16.mxu0 %v16819_v53 }
 0x816   : > { %12922 = vmatmul.mubr.bf16.gmra.mrb[56].mxu0 %v16816_v63 }
 0x817   : > { %12945 = vmatpush1.bf16.msra.mxu0 %v16817_v13  ;;  %12964 = vmatprep.mubr.bf16.mxu0 %v11625_v49 }
 0x818   : > { %12946 = vmatprep.subr.bf16.mxu0 %v16824_v10 }
 0x81b   : > { %12947 = vmatpush1.bf16.msra.mxu0 %v16822_v43 }
 0x81c   : > { %12948 = vmatprep.subr.bf16.mxu0 %v16827_v0 }
 0x81f   : > { %12949 = vmatpush1.bf16.msra.mxu0 %v16825_v35 }
 0x820   : > { %12950 = vmatprep.subr.bf16.mxu0 %v16830_v19 }
 0x823   : > { %12951 = vmatpush1.bf16.msra.mxu0 %v16828_v39 }
 0x824   : > { %12952 = vmatprep.subr.bf16.mxu0 %v16833_v9 }
 0x827   : > { %12953 = vmatpush1.bf16.msra.mxu0 %v16831_v26 }
 0x828   : > { %12954 = vmatprep.subr.bf16.mxu0 %v16836_v6 }
 0x82b   : > { %12955 = vmatpush1.bf16.msra.mxu0 %v16834_v51 }
 0x82c   : > { %12956 = vmatprep.subr.bf16.mxu0 %v16839_v21 }
 0x82f   : > { %12957 = vmatpush1.bf16.msra.mxu0 %v16837_v40 }
 0x830   : > { %12958 = vmatprep.subr.bf16.mxu0 %v16842_v52 }
 0x833   : > { %12959 = vmatpush1.bf16.msra.mxu0 %v16840_v2 }
 0x834   : > { %12960 = vmatprep.subr.bf16.mxu0 %v16845_v45 }
 0x837   : > { %12961 = vmatpush1.bf16.msra.mxu0 %v16843_v46 }
 0x838   : > { %12962 = vmatprep.subr.bf16.mxu0 %v16848_v55 }
 0x83b   : > { %12963 = vmatpush1.bf16.msra.mxu0 %v16846_v25 }
 0x83e   : > { %12965 = vmatmul.mubr.bf16.vlgmr.msra.gmra.mrb[44].mxu0 %v16849_v3 }
 0x83f   : > { %12974 = vmatprep.mubr.bf16.mxu0 %v11627_v47 }
 0x846   : > { %12975 = vmatmul.mubr.bf16.gmra.mrb[48].mxu0 %v16851_v29 }
 0x847   : > { %12984 = vmatprep.mubr.bf16.mxu0 %v11629_v31 }
 0x84e   : > { %12985 = vmatmul.mubr.bf16.gmra.mrb[52].mxu0 %v16853_v22 }
 0x84f   : > { %12994 = vmatprep.mubr.bf16.mxu0 %v11631_v14 }
 0x856   : > { %12995 = vmatmul.mubr.bf16.gmra.mrb[56].mxu0 %v16855_v12 }
 0x911   : > { %v12966_v59 = vpop.f32.mrb[44].mxu0 }
 0x912   : > { %v13020_v7 = vmul.f32 %v21104_v28, %v12966_v59  ;;  %v12968_v11 = vpop.f32.mrb[45].mxu0 }
 0x913   : > { %v13021_v36 = vmul.f32 %v21106_v57, %v12968_v11  ;;  %v12970_v4 = vpop.f32.mrb[46].mxu0 }
 0x914   : > { %v21115_v54 = vadd.f32 %v21108_v23, %v13020_v7  ;;  %v13022_v17 = vmul.f32 %v21104_v28, %v12970_v4  ;;  %v12972_v16 = vpop.f32.mrb[47].mxu0 }
 0x915   : > { %v21119_v30 = vadd.f32 %v21110_v38, %v13021_v36  ;;  %v13023_v15 = vmul.f32 %v21106_v57, %v12972_v16 }
 0x916   : > { %v13079_v32 = vmin.f32 %v21115_v54, 0.0  ;;  %v21124_v34 = vadd.f32 %v21108_v23, %v13022_v17  ;;  %vm13063_vm7 = vcmp.gt.f32.partialorder %v21115_v54, 0.0 }
 0x917   : > { %v13080_v62 = vmin.f32 %v21119_v30, 0.0  ;;  %v21128_v8 = vadd.f32 %v21110_v38, %v13023_v15  ;;  %vm13064_vm8 = vcmp.gt.f32.partialorder %v21119_v30, 0.0 }
 0x918   : > { %v13095_v24 = vmul.f32 1.442695, %v13079_v32  ;;  %v13081_v41 = vmin.f32 %v21124_v34, 0.0  ;;  %vm13065_vm12 = vcmp.gt.f32.partialorder %v21124_v34, 0.0 }
 0x919   : > { %v13097_v53 = vmul.f32 1.442695, %v13080_v62  ;;  %v13082_v37 = vmin.f32 %v21128_v8, 0.0  ;;  %v12976_v27 = vpop.f32.mrb[48].mxu0  ;;  %vm13066_vm0 = vcmp.gt.f32.partialorder %v21128_v8, 0.0 }
 0x91a   : > { %17096 = vpow2.f32 %v13095_v24  ;;  %v13099_v13 = vmul.f32 1.442695, %v13081_v41  ;;  %v13024_v63 = vmul.f32 %v21104_v28, %v12976_v27  ;;  %v12978_v56 = vpop.f32.mrb[49].mxu0 }
 0x91b   : > { %17098 = vpow2.f32 %v13097_v53  ;;  %v13101_v10 = vmul.f32 1.442695, %v13082_v37  ;;  %v13025_v49 = vmul.f32 %v21106_v57, %v12978_v56  ;;  %v12980_v43 = vpop.f32.mrb[50].mxu0 }
 0x91c   : > { %17100 = vpow2.f32 %v13099_v13  ;;  %v21135_v0 = vadd.f32 %v21108_v23, %v13024_v63  ;;  %v13026_v35 = vmul.f32 %v21104_v28, %v12980_v43  ;;  %v12982_v19 = vpop.f32.mrb[51].mxu0 }
 0x91d   : > { %17102 = vpow2.f32 %v13101_v10  ;;  %v21139_v39 = vadd.f32 %v21110_v38, %v13025_v49  ;;  %v13027_v9 = vmul.f32 %v21106_v57, %v12982_v19 }
 0x91e   : > { %v13083_v26 = vmin.f32 %v21135_v0, 0.0  ;;  %v21144_v6 = vadd.f32 %v21108_v23, %v13026_v35  ;;  %vm13067_vm9 = vcmp.gt.f32.partialorder %v21135_v0, 0.0 }
 0x91f   : > { %v13084_v51 = vmin.f32 %v21139_v39, 0.0  ;;  %v21148_v21 = vadd.f32 %v21110_v38, %v13027_v9  ;;  %vm13068_vm10 = vcmp.gt.f32.partialorder %v21139_v39, 0.0 }
 0x920   : > { %v13103_v40 = vmul.f32 1.442695, %v13083_v26  ;;  %v13085_v52 = vmin.f32 %v21144_v6, 0.0  ;;  %vm13069_vm11 = vcmp.gt.f32.partialorder %v21144_v6, 0.0 }
 0x921   : > { %v13105_v2 = vmul.f32 1.442695, %v13084_v51  ;;  %v13086_v45 = vmin.f32 %v21148_v21, 0.0  ;;  %v12986_v46 = vpop.f32.mrb[52].mxu0  ;;  %vm13070_vm13 = vcmp.gt.f32.partialorder %v21148_v21, 0.0 }
 0x922   : > { %17104 = vpow2.f32 %v13103_v40  ;;  %v13107_v55 = vmul.f32 1.442695, %v13085_v52  ;;  %v13028_v50 = vmul.f32 %v21104_v28, %v12986_v46  ;;  %v12988_v25 = vpop.f32.mrb[53].mxu0 }
 0x923   : > { %17106 = vpow2.f32 %v13105_v2  ;;  %v13109_v48 = vmul.f32 1.442695, %v13086_v45  ;;  %v13029_v3 = vmul.f32 %v21106_v57, %v12988_v25  ;;  %v12990_v47 = vpop.f32.mrb[54].mxu0 }
 0x924   : > { %v17097_v60 = vpop.eup %17096  ;;  %17108 = vpow2.f32 %v13107_v55  ;;  %v21158_v61 = vadd.f32 %v21108_v23, %v13028_v50  ;;  %v13030_v29 = vmul.f32 %v21104_v28, %v12990_v47  ;;  %v12992_v31 = vpop.f32.mrb[55].mxu0 }
 0x925   : > { %v17099_v42 = vpop.eup %17098  ;;  %v14734_v20 = vadd.f32 -1.0, %v17097_v60  ;;  %17110 = vpow2.f32 %v13109_v48  ;;  %v21163_v22 = vadd.f32 %v21110_v38, %v13029_v3  ;;  %v13031_v1 = vmul.f32 %v21106_v57, %v12992_v31 }
 0x926   : > { %v17101_v14 = vpop.eup %17100  ;;  %v14735_v12 = vadd.f32 -1.0, %v17099_v42  ;;  %v13087_v18 = vmin.f32 %v21158_v61, 0.0  ;;  %v21167_v58 = vadd.f32 %v21108_v23, %v13030_v29  ;;  %vm13071_vm14 = vcmp.gt.f32.partialorder %v21158_v61, 0.0 }
 0x927   : > { %v17103_v5 = vpop.eup %17102  ;;  %v13143_v44 = vsel %vm13063_vm7, %v21115_v54, %v14734_v20  ;;  %v14736_v33 = vadd.f32 -1.0, %v17101_v14  ;;  %v13088_v59 = vmin.f32 %v21163_v22, 0.0  ;;  %vm13072_vm15 = vcmp.gt.f32.partialorder %v21163_v22, 0.0 }
 0x928   : > { %v13144_v7 = vsel %vm13064_vm8, %v21119_v30, %v14735_v12  ;;  %v14737_v11 = vadd.f32 -1.0, %v17103_v5  ;;  %v13111_v36 = vmul.f32 1.442695, %v13087_v18  ;;  %v13089_v62 = vmin.f32 %v21167_v58, 0.0 }
 0x929   : > { %v13175_v4 = vcombine.low %v13143_v44, %v13144_v7  ;;  %v13176_v17 = vcombine.high %v13143_v44, %v13144_v7  ;;  %v13145_v16 = vsel %vm13065_vm12, %v21124_v34, %v14736_v33  ;;  %v13113_v54 = vmul.f32 1.442695, %v13088_v59  ;;  %v12996_v15 = vpop.f32.mrb[56].mxu0 }
 0x92a   : > { %v13146_v32 = vsel %vm13066_vm0, %v21128_v8, %v14737_v11  ;;  %17112 = vpow2.f32 %v13111_v36  ;;  %v21187_v30 = vadd.f32 %v21110_v38, %v13031_v1  ;;  %v12998_v24 = vpop.f32.mrb[57].mxu0  ;;  %v13115_v34 = vmul.f32 1.442695, %v13089_v62 }
 0x92b   : > { %v13205_v41 = vmax.f32 %v13175_v4, %v13176_v17  ;;  %v13177_v53 = vcombine.low %v13145_v16, %v13146_v32  ;;  %v13178_v37 = vcombine.high %v13145_v16, %v13146_v32  ;;  %17114 = vpow2.f32 %v13113_v54  ;;  %v13000_v27 = vpop.f32.mrb[58].mxu0 }
 0x92c   : > { %v17105_v13 = vpop.eup %17104  ;;  %v13090_v63 = vmin.f32 %v21187_v30, 0.0  ;;  %v13032_v8 = vmul.f32 %v21104_v28, %v12996_v15  ;;  %v13002_v56 = vpop.f32.mrb[59].mxu0  ;;  %v13033_v35 = vmul.f32 %v21106_v57, %v12998_v24  ;;  %v13034_v19 = vmul.f32 %v21104_v28, %v13000_v27 }
 0x92d   : > { %v17107_v10 = vpop.eup %17106  ;;  %v13206_v49 = vmax.f32 %v13205_v41, %v13177_v53  ;;  %v14738_v43 = vadd.f32 -1.0, %v17105_v13  ;;  %17116 = vpow2.f32 %v13115_v34  ;;  %v13035_v12 = vmul.f32 %v21106_v57, %v13002_v56 }
 0x92e   : > { %v17109_v9 = vpop.eup %17108  ;;  %v14739_v26 = vadd.f32 -1.0, %v17107_v10  ;;  %v13117_v51 = vmul.f32 1.442695, %v13090_v63  ;;  %v21195_v40 = vadd.f32 %v21108_v23, %v13032_v8  ;;  %v21202_v46 = vadd.f32 %v21110_v38, %v13033_v35 }
 0x92f   : > { %v17111_v52 = vpop.eup %17110  ;;  %v13147_v2 = vsel %vm13067_vm9, %v21135_v0, %v14738_v43  ;;  %v14740_v45 = vadd.f32 -1.0, %v17109_v9  ;;  %v21208_v50 = vadd.f32 %v21108_v23, %v13034_v19  ;;  %v13062_v33 = vadd.f32 %v21110_v38, %v13035_v12 }
 0x930   : > { %v13148_v28 = vsel %vm13068_vm10, %v21139_v39, %v14739_v26  ;;  %v14741_v55 = vadd.f32 -1.0, %v17111_v52  ;;  %17118 = vpow2.f32 %v13117_v51  ;;  %v13091_v3 = vmin.f32 %v21195_v40, 0.0 }
 0x931   : > { %v13179_v25 = vcombine.low %v13147_v2, %v13148_v28  ;;  %v13180_v48 = vcombine.high %v13147_v2, %v13148_v28  ;;  %v13149_v0 = vsel %vm13069_vm11, %v21144_v6, %v14740_v45  ;;  %v13092_v60 = vmin.f32 %v21202_v46, 0.0 }
 0x932   : > { %v13150_v47 = vsel %vm13070_vm13, %v21148_v21, %v14741_v55  ;;  %v13119_v42 = vmul.f32 1.442695, %v13091_v3  ;;  %v13093_v14 = vmin.f32 %v21208_v50, 0.0  ;;  %v13094_v4 = vmin.f32 %v13062_v33, 0.0 }
 0x933   : > { %v13207_v29 = vmax.f32 %v13178_v37, %v13179_v25  ;;  %v13181_v39 = vcombine.low %v13149_v0, %v13150_v47  ;;  %v13182_v31 = vcombine.high %v13149_v0, %v13150_v47  ;;  %v13121_v23 = vmul.f32 1.442695, %v13092_v60 }
 0x934   : > { %v17113_v20 = vpop.eup %17112  ;;  %17120 = vpow2.f32 %v13119_v42  ;;  %v13123_v44 = vmul.f32 1.442695, %v13093_v14  ;;  %vm13073_vm1 = vcmp.gt.f32.partialorder %v21167_v58, 0.0  ;;  %v13125_v38 = vmul.f32 1.442695, %v13094_v4 }
 0x935   : > { %v17115_v6 = vpop.eup %17114  ;;  %v13208_v18 = vmax.f32 %v13207_v29, %v13180_v48  ;;  %v13209_v1 = vmax.f32 %v13181_v39, %v13182_v31  ;;  %v14742_v5 = vadd.f32 -1.0, %v17113_v20  ;;  %17122 = vpow2.f32 %v13121_v23 }
 0x936   : > { %v14743_v21 = vadd.f32 -1.0, %v17115_v6  ;;  %17124 = vpow2.f32 %v13123_v44  ;;  %vm13074_vm2 = vcmp.gt.f32.partialorder %v21187_v30, 0.0  ;;  %vm13075_vm3 = vcmp.gt.f32.partialorder %v21195_v40, 0.0 }
 0x937   : > { %v13220_v59 = vcombine.low %v13206_v49, %v13208_v18  ;;  %v13221_v7 = vcombine.high %v13206_v49, %v13208_v18  ;;  %v13151_v57 = vsel %vm13071_vm14, %v21158_v61, %v14742_v5  ;;  %v17117_v11 = vpop.eup %17116  ;;  %17126 = vpow2.f32 %v13125_v38 }
 0x938   : > { %v13152_v36 = vsel %vm13072_vm15, %v21163_v22, %v14743_v21  ;;  %v14744_v54 = vadd.f32 -1.0, %v17117_v11  ;;  %vm13076_vm4 = vcmp.gt.f32.partialorder %v21202_v46, 0.0  ;;  %vm13077_vm5 = vcmp.gt.f32.partialorder %v21208_v50, 0.0 }
 0x939   : > { %13230 = vst [vmem:[%s21223_s13] sm:$0xff] %v13220_v59  ;;  %13231 = vst [vmem:[%s21223_s13 + $0x8] sm:$0xff] %v13221_v7  ;;  %v13183_v17 = vcombine.low %v13151_v57, %v13152_v36  ;;  %v13184_v16 = vcombine.high %v13151_v57, %v13152_v36  ;;  %vm13078_vm6 = vcmp.gt.f32.partialorder %v13062_v33, 0.0 }
 0x93a   : > { %v17119_v15 = vpop.eup %17118  ;;  %v13153_v62 = vsel %vm13073_vm1, %v21167_v58, %v14744_v54 }
 0x93b   : > { %v13210_v32 = vmax.f32 %v13209_v1, %v13183_v17  ;;  %v14745_v61 = vadd.f32 -1.0, %v17119_v15 }
 0x93d   : > { %v13154_v22 = vsel %vm13074_vm2, %v21187_v30, %v14745_v61 }
 0x93e   : > { %v13185_v24 = vcombine.low %v13153_v62, %v13154_v22  ;;  %v13186_v41 = vcombine.high %v13153_v62, %v13154_v22  ;;  %v17121_v53 = vpop.eup %17120 }
 0x93f   : > { %v17123_v37 = vpop.eup %17122  ;;  %v14746_v13 = vadd.f32 -1.0, %v17121_v53 }
 0x940   : > { %v13211_v27 = vmax.f32 %v13184_v16, %v13185_v24  ;;  %v14747_v34 = vadd.f32 -1.0, %v17123_v37  ;;  %v17125_v63 = vpop.eup %17124 }
 0x941   : > { %v13155_v58 = vsel %vm13075_vm3, %v21195_v40, %v14746_v13  ;;  %v14748_v30 = vadd.f32 -1.0, %v17125_v63  ;;  %v17127_v19 = vpop.eup %17126 }
 0x942   : > { %v13212_v8 = vmax.f32 %v13211_v27, %v13186_v41  ;;  %v13156_v56 = vsel %vm13076_vm4, %v21202_v46, %v14747_v34  ;;  %v14749_v51 = vadd.f32 -1.0, %v17127_v19 }
 0x943   : > { %v13187_v43 = vcombine.low %v13155_v58, %v13156_v56  ;;  %v13188_v35 = vcombine.high %v13155_v58, %v13156_v56  ;;  %v13157_v26 = vsel %vm13077_vm5, %v21208_v50, %v14748_v30 }
 0x944   : > { %v13222_v10 = vcombine.low %v13210_v32, %v13212_v8  ;;  %v13223_v49 = vcombine.high %v13210_v32, %v13212_v8  ;;  %v13158_v40 = vsel %vm13078_vm6, %v13062_v33, %v14749_v51 }
 0x945   : > { %v13213_v9 = vmax.f32 %v13187_v43, %v13188_v35  ;;  %v13189_v52 = vcombine.low %v13157_v26, %v13158_v40 }
 0x946   : > { %13232 = vst [vmem:[%s21223_s13 + $0x10] sm:$0xff] %v13222_v10  ;;  %13233 = vst [vmem:[%s21223_s13 + $0x18] sm:$0xff] %v13223_v49 }
 0x947   : > { %v13214_v2 = vmax.f32 %v13213_v9, %v13189_v52 }
 0x949   : > { %v13224_v45 = vcombine.high %v13214_v2, %v13214_v2  ;;  %13234 = vst [vmem:[%s21223_s13 + $0x20] sm:$0xf] %v13214_v2 }
 0x94b   : > { %13235 = vst [vmem:[%s21223_s13 + $0x28] sm:$0xf] %v13224_v45 }
 0x94c PF: > { %s17_s24 = sadd.s32 1, %s17154_s24  }
 0x94d   : > { %p14_p4 = scmp.ge.s32.totalorder %s17_s24, 4  }
 0x94f   :  { %16 = sbr.rel (!%p14_p4) target bundleno = 1 (0x1), region = 80 }

</bundles_post_ra>
